<compile_context>
chip_gen: v5e
topology: v5e:2x2
jax: 0.10.0
libtpu: 0.0.40
codegen_flags: <defaults>
</compile_context>

<pallas_src>
import numpy as np

import jax
import jax.numpy as jnp
from jax import lax
from jax.experimental import pallas as pl
from jax.experimental.pallas import tpu as pltpu


def _round_up(v, m):
    return (v + m - 1) // m * m


# ---------------------------------------------------------------------------
# Fused kernel
# ---------------------------------------------------------------------------
def cnn2_fused_kernel(
    x_ref,
    m1_ref, bt1_ref, m2_ref, bt2_ref, m3_ref, bt3_ref,
    wf1_ref, bf1_ref, wf2_ref, bf2_ref, wf3_ref, bf3_ref,
    o_ref,
    pad1_ref, pad2_ref, pad3_ref,
):
    bsz = x_ref.shape[0]

    def conv_relu_pool(pad_ref, m_ref, bias_ref, interior):
        """conv3x3(pad=1) + bias + ReLU + maxpool2x2 in the (H, W*C) layout.

        pad_ref : (bsz, H+2, K) VMEM scratch; rows 0 and H+1 are the zero halo.
        m_ref   : (3, K, H*Cout) banded conv weights (one slab per dy tap);
                  W-padding and the lane positions of the (uncompacted) pooled
                  input are encoded as zero / indexed rows of these matrices.
        interior: (bsz, H, K) value written into the pad interior.
        """
        hh = pad_ref.shape[1] - 2            # H == W (square feature maps)
        kk = pad_ref.shape[2]
        nn = m_ref.shape[2]
        cout = nn // hh

        # Halo-only zeroing (2 rows) + one full-lane interior slab store.
        zrow = jnp.zeros((bsz, 1, kk), jnp.float32)
        pad_ref[:, 0:1, :] = zrow
        pad_ref[:, hh + 1:hh + 2, :] = zrow
        pad_ref[:, 1:hh + 1, :] = interior

        # Three accumulating MXU matmuls: (bsz*H, K) @ (K, W*Cout), N = 256.
        acc = bias_ref[...]                                  # (1, N) broadcasts
        for dy in range(3):
            lhs = pad_ref[:, dy:dy + hh, :].reshape(bsz * hh, kk)
            acc = acc + jnp.dot(lhs, m_ref[dy],
                                preferred_element_type=jnp.float32)
        y = jnp.maximum(acc, 0.0).reshape(bsz, hh, nn)

        # 2x2 max-pool, stride 2.  H direction: leading-dim reshape + VPU max.
        yr = y.reshape(bsz, hh // 2, 2, nn)
        hp = jnp.maximum(yr[:, :, 0, :], yr[:, :, 1, :])
        # W direction: compare the slab with itself shifted by one channel
        # group.  Pooled column j' then lives at lane offset 2*j'*Cout; the
        # next layer's banded weights read exactly those lanes, so no lane
        # compaction / gather is needed.
        return jnp.maximum(hp[:, :, :nn - cout], hp[:, :, cout:])

    x = x_ref[...]                                           # (bsz, 32, 96)
    u1 = conv_relu_pool(pad1_ref, m1_ref, bt1_ref, x)        # (bsz, 16, 31*c0)
    u2 = conv_relu_pool(pad2_ref, m2_ref, bt2_ref, u1)       # (bsz,  8, 15*c1)
    u3 = conv_relu_pool(pad3_ref, m3_ref, bt3_ref, u2)       # (bsz,  4,  7*c2)

    # TODO(synk): nn.Dropout is identity at inference; training-mode dropout
    # (pltpu.prng_* masking) is not implemented here.

    # MLP head.  PyTorch's NCHW flatten and u3's sparse lane positions are
    # folded into wf1 host-side (shape (4, 7*c2, 128)): fc1 is 4 accumulating
    # matmuls over H -- no in-kernel flatten / transpose / lane-merging reshape.
    h = bf1_ref[...]
    for r in range(wf1_ref.shape[0]):
        h = h + jnp.dot(u3[:, r, :], wf1_ref[r],
                        preferred_element_type=jnp.float32)
    h = jnp.maximum(h, 0.0)
    h = jnp.maximum(
        jnp.dot(h, wf2_ref[...], preferred_element_type=jnp.float32)
        + bf2_ref[...], 0.0)
    out = jnp.dot(h, wf3_ref[...],
                  preferred_element_type=jnp.float32) + bf3_ref[...]
    o_ref[...] = out.astype(o_ref.dtype)


# ---------------------------------------------------------------------------
# Wrapper
# ---------------------------------------------------------------------------
def cnn2_forward(x_nchw, kparams, *, batch_block=32):
    assert batch_block % 8 == 0
    n = x_nchw.shape[0]
    assert x_nchw.shape[1:] == (3, 32, 32)

    m1, m2, m3 = kparams["m1"], kparams["m2"], kparams["m3"]
    wf1 = kparams["wf1"]

    # Large-ish batch block (amortizes per-step overhead, fills MXU rows); pad
    # the batch to a multiple of bb instead of gcd-degenerating to bb=1.
    bb = min(batch_block, _round_up(n, 8))
    n_pad = _round_up(n, bb)

    # NCHW -> (N, H, W*C) lane-merged layout, done once on the tiny input.
    x = jnp.transpose(x_nchw, (0, 2, 3, 1)).reshape(n, 32, 32 * 3)
    x = x.astype(jnp.float32)
    if n_pad != n:
        x = jnp.pad(x, ((0, n_pad - n), (0, 0), (0, 0)))

    def const_spec(arr):                     # weights: whole array, DMA'd once
        nd = arr.ndim
        def idx(i):
            return (0,) * nd
        return pl.BlockSpec(arr.shape, idx)

    out_padded = pl.pallas_call(
        cnn2_fused_kernel,
        out_shape=jax.ShapeDtypeStruct((n_pad, 128), jnp.float32),
        grid=(n_pad // bb,),
        in_specs=[
            pl.BlockSpec((bb, 32, 96), lambda i: (i, 0, 0)),
            const_spec(m1), const_spec(kparams["bt1"]),
            const_spec(m2), const_spec(kparams["bt2"]),
            const_spec(m3), const_spec(kparams["bt3"]),
            const_spec(wf1), const_spec(kparams["bf1"]),
            const_spec(kparams["wf2"]), const_spec(kparams["bf2"]),
            const_spec(kparams["wf3"]), const_spec(kparams["bf3"]),
        ],
        out_specs=pl.BlockSpec((bb, 128), lambda i: (i, 0)),
        scratch_shapes=[
            pltpu.VMEM((bb, 34, m1.shape[1]), jnp.float32),   # layer-1 padded rows
            pltpu.VMEM((bb, 18, m2.shape[1]), jnp.float32),   # layer-2 padded rows
            pltpu.VMEM((bb, 10, m3.shape[1]), jnp.float32),   # layer-3 padded rows
        ],
        compiler_params=pltpu.CompilerParams(
            dimension_semantics=("parallel",),    # megacore batch sharding
            vmem_limit_bytes=48 * 1024 * 1024,    # safe on v5e/v6e/v7x
        ),
    )(x,
      m1, kparams["bt1"], m2, kparams["bt2"], m3, kparams["bt3"],
      wf1, kparams["bf1"], kparams["wf2"], kparams["bf2"],
      kparams["wf3"], kparams["bf3"])

    return out_padded[:n, :10]


# ---------------------------------------------------------------------------
# Parameters: init (PyTorch-like) + host-side re-layout for the kernel
# ---------------------------------------------------------------------------
def init_params(key, conv_channels, linear_sizes):
    c0, c1, c2 = conv_channels
    l0, l1 = linear_sizes
    ks = jax.random.split(key, 12)

    def w(k, shape, scale=0.1):
        return (scale * jax.random.normal(k, shape)).astype(jnp.float32)

    return {
        "w1": w(ks[0], (3, 3, 3, c0)),   "b1": w(ks[1], (c0,)),
        "w2": w(ks[2], (3, 3, c0, c1)),  "b2": w(ks[3], (c1,)),
        "w3": w(ks[4], (3, 3, c1, c2)),  "b3": w(ks[5], (c2,)),
        "wf1": w(ks[6], (c2 * 16, l0)),  "bf1": w(ks[7], (l0,)),
        "wf2": w(ks[8], (l0, l1)),       "bf2": w(ks[9], (l1,)),
        "wf3": w(ks[10], (l1, 10)),      "bf3": w(ks[11], (10,)),
    }


def _banded_conv_mats(w_hwio, width, in_stride, in_width):
    """(3,3,Cin,Cout) conv weights -> (3, in_width, width*Cout) banded matmul
    weights for the (H, W*C) layout.  Input column c lives at lane c*in_stride
    (in_stride = 2*Cin for pooled-but-uncompacted inputs); output column j
    lands at lane j*Cout.  Out-of-range taps (W-side zero padding) and the
    garbage lanes between valid columns simply get zero weight rows."""
    w = np.asarray(w_hwio, np.float32)
    _, _, cin, cout = w.shape
    mats = np.zeros((3, in_width, width * cout), np.float32)
    for dy in range(3):
        for j in range(width):              # output column
            for dx in range(3):
                c = j + dx - 1              # input column (padding=1)
                if 0 <= c < width:
                    r0 = c * in_stride
                    mats[dy, r0:r0 + cin, j * cout:(j + 1) * cout] = w[dy, dx]
    return jnp.asarray(mats)


def _fold_fc1(wf1, c2, pad_to=128):
    """Fold PyTorch's NCHW flatten (x.view(-1, C*4*4)) and the lane positions
    of the pooled layer-3 output into fc1: (c2*16, l0) -> (4, 7*c2, pad_to)."""
    w = np.asarray(wf1, np.float32)
    l0 = w.shape[1]
    out = np.zeros((4, 7 * c2, pad_to), np.float32)
    for h in range(4):
        for ww in range(4):
            for c in range(c2):
                out[h, 2 * ww * c2 + c, :l0] = w[c * 16 + h * 4 + ww, :]
    return jnp.asarray(out)


def prepare_params(params, conv_channels, linear_sizes):
    c0, c1, c2 = conv_channels
    l0, l1 = linear_sizes
    assert l0 <= 128 and l1 <= 128

    def tiled_bias(b, reps):                # per-output-column bias tiling
        return jnp.asarray(np.tile(np.asarray(b, np.float32), reps)[None, :])

    def pad_mat(m, rows, cols):
        m = np.asarray(m, np.float32)
        out = np.zeros((rows, cols), np.float32)
        out[:m.shape[0], :m.shape[1]] = m
        return jnp.asarray(out)

    def pad_vec(v, cols):
        v = np.asarray(v, np.float32)
        out = np.zeros((1, cols), np.float32)
        out[0, :v.shape[0]] = v
        return jnp.asarray(out)

    return {
        # conv1 sees the compact input (stride Cin=3); conv2/3 see pooled,
        # uncompacted inputs (stride 2*Cin).
        "m1": _banded_conv_mats(params["w1"], 32, 3,      32 * 3),
        "m2": _banded_conv_mats(params["w2"], 16, 2 * c0, 31 * c0),
        "m3": _banded_conv_mats(params["w3"], 8,  2 * c1, 15 * c1),
        "bt1": tiled_bias(params["b1"], 32),
        "bt2": tiled_bias(params["b2"], 16),
        "bt3": tiled_bias(params["b3"], 8),
        "wf1": _fold_fc1(params["wf1"], c2),
        "bf1": pad_vec(params["bf1"], 128),
        "wf2": pad_mat(params["wf2"], 128, 128),
        "bf2": pad_vec(params["bf2"], 128),
        "wf3": pad_mat(params["wf3"], 128, 128),
        "bf3": pad_vec(params["bf3"], 128),
    }


# ---------------------------------------------------------------------------
# Pure-JAX reference (PyTorch CNN2 forward, eval mode)
# ---------------------------------------------------------------------------
def cnn2_reference(x_nchw, params):
    hi = lax.Precision.HIGHEST
    x = jnp.transpose(x_nchw, (0, 2, 3, 1)).astype(jnp.float32)   # NHWC

    def block(x, w, b):
        y = lax.conv_general_dilated(
            x, w, window_strides=(1, 1), padding="SAME",
            dimension_numbers=("NHWC", "HWIO", "NHWC"), precision=hi)
        y = jnp.maximum(y + b, 0.0)
        return lax.reduce_window(y, -jnp.inf, lax.max,
                                 (1, 2, 2, 1), (1, 2, 2, 1), "VALID")

    x = block(x, params["w1"], params["b1"])
    x = block(x, params["w2"], params["b2"])
    x = block(x, params["w3"], params["b3"])
    feat = jnp.transpose(x, (0, 3, 1, 2)).reshape(x.shape[0], -1)  # NCHW flatten
    h = jnp.maximum(jnp.dot(feat, params["wf1"], precision=hi) + params["bf1"], 0.0)
    h = jnp.maximum(jnp.dot(h, params["wf2"], precision=hi) + params["bf2"], 0.0)
    return jnp.dot(h, params["wf3"], precision=hi) + params["bf3"]


if __name__ == "__main__":
    conv_channels = (8, 16, 32)
    linear_sizes = (64, 32)

    key = jax.random.PRNGKey(0)
    pkey, xkey = jax.random.split(key)
    params = init_params(pkey, conv_channels, linear_sizes)
    kparams = prepare_params(params, conv_channels, linear_sizes)

    # PyTorch NCHW convention: (batch=2, 3, 32, 32); the 32x32 spatial size is
    # implied by fc1 = Linear(conv_channels[2] * 4 * 4, ...).
    x = jax.random.normal(xkey, (2, 3, 32, 32), dtype=jnp.float32)

    out = jax.block_until_ready(cnn2_forward(x, kparams))
    assert out.shape == (2, 10), out.shape

    ref = jax.block_until_ready(cnn2_reference(x, params))
    np.testing.assert_allclose(np.asarray(out), np.asarray(ref),
                               rtol=2e-2, atol=2e-3)
    print("KERNEL_OK")
</pallas_src>

<mosaic_0001>
module attributes {stable_mosaic.version = 11 : i64} {
  func.func @cnn2_fused_kernel(%arg0: i32, %arg1: memref<8x32x96xf32, #tpu.memory_space<vmem>>, %arg2: memref<3x96x256xf32, #tpu.memory_space<vmem>>, %arg3: memref<1x256xf32, #tpu.memory_space<vmem>>, %arg4: memref<3x248x256xf32, #tpu.memory_space<vmem>>, %arg5: memref<1x256xf32, #tpu.memory_space<vmem>>, %arg6: memref<3x240x256xf32, #tpu.memory_space<vmem>>, %arg7: memref<1x256xf32, #tpu.memory_space<vmem>>, %arg8: memref<4x224x128xf32, #tpu.memory_space<vmem>>, %arg9: memref<1x128xf32, #tpu.memory_space<vmem>>, %arg10: memref<128x128xf32, #tpu.memory_space<vmem>>, %arg11: memref<1x128xf32, #tpu.memory_space<vmem>>, %arg12: memref<128x128xf32, #tpu.memory_space<vmem>>, %arg13: memref<1x128xf32, #tpu.memory_space<vmem>>, %arg14: memref<8x128xf32, #tpu.memory_space<vmem>>, %arg15: memref<8x34x96xf32, #tpu.memory_space<vmem>>, %arg16: memref<8x18x248xf32, #tpu.memory_space<vmem>>, %arg17: memref<8x10x240xf32, #tpu.memory_space<vmem>>) attributes {dimension_semantics = [#tpu.dimension_semantics<parallel>], iteration_bounds = array<i64: 1>, scalar_prefetch = 0 : i64, scratch_operands = 3 : i64, tpu.core_type = #tpu.core_type<tc>, window_params = [{transform_indices = @transform_0, window_bounds = array<i64: 8, 32, 96>}, {pipeline_mode = #tpu.pipeline_mode<synchronous>, transform_indices = @transform_1, window_bounds = array<i64: 3, 96, 256>}, {pipeline_mode = #tpu.pipeline_mode<synchronous>, transform_indices = @transform_2, window_bounds = array<i64: 1, 256>}, {pipeline_mode = #tpu.pipeline_mode<synchronous>, transform_indices = @transform_3, window_bounds = array<i64: 3, 248, 256>}, {pipeline_mode = #tpu.pipeline_mode<synchronous>, transform_indices = @transform_4, window_bounds = array<i64: 1, 256>}, {pipeline_mode = #tpu.pipeline_mode<synchronous>, transform_indices = @transform_5, window_bounds = array<i64: 3, 240, 256>}, {pipeline_mode = #tpu.pipeline_mode<synchronous>, transform_indices = @transform_6, window_bounds = array<i64: 1, 256>}, {pipeline_mode = #tpu.pipeline_mode<synchronous>, transform_indices = @transform_7, window_bounds = array<i64: 4, 224, 128>}, {pipeline_mode = #tpu.pipeline_mode<synchronous>, transform_indices = @transform_8, window_bounds = array<i64: 1, 128>}, {pipeline_mode = #tpu.pipeline_mode<synchronous>, transform_indices = @transform_9, window_bounds = array<i64: 128, 128>}, {pipeline_mode = #tpu.pipeline_mode<synchronous>, transform_indices = @transform_10, window_bounds = array<i64: 1, 128>}, {pipeline_mode = #tpu.pipeline_mode<synchronous>, transform_indices = @transform_11, window_bounds = array<i64: 128, 128>}, {pipeline_mode = #tpu.pipeline_mode<synchronous>, transform_indices = @transform_12, window_bounds = array<i64: 1, 128>}, {transform_indices = @transform_13, window_bounds = array<i64: 8, 128>}]} {
    %c0 = arith.constant 0 : index
    %c0_0 = arith.constant 0 : index
    %c0_1 = arith.constant 0 : index
    %0 = vector.load %arg1[%c0, %c0_0, %c0_1] : memref<8x32x96xf32, #tpu.memory_space<vmem>>, vector<8x32x96xf32>
    %cst = arith.constant 0.000000e+00 : f32
    %1 = vector.broadcast %cst : f32 to vector<8x1x96xf32>
    %c0_2 = arith.constant 0 : index
    %c0_3 = arith.constant 0 : index
    %c0_4 = arith.constant 0 : index
    %2 = vector.load %arg15[%c0_2, %c0_3, %c0_4] : memref<8x34x96xf32, #tpu.memory_space<vmem>>, vector<8x1x96xf32>
    tpu.vector_store %arg15[%c0_2, %c0_3, %c0_4], %1 {strides = array<i32>} : memref<8x34x96xf32, #tpu.memory_space<vmem>>, vector<8x1x96xf32>,
    %c0_5 = arith.constant 0 : index
    %c33 = arith.constant 33 : index
    %c0_6 = arith.constant 0 : index
    %3 = vector.load %arg15[%c0_5, %c33, %c0_6] : memref<8x34x96xf32, #tpu.memory_space<vmem>>, vector<8x1x96xf32>
    tpu.vector_store %arg15[%c0_5, %c33, %c0_6], %1 {strides = array<i32>} : memref<8x34x96xf32, #tpu.memory_space<vmem>>, vector<8x1x96xf32>,
    %c0_7 = arith.constant 0 : index
    %c1 = arith.constant 1 : index
    %c0_8 = arith.constant 0 : index
    %4 = vector.load %arg15[%c0_7, %c1, %c0_8] : memref<8x34x96xf32, #tpu.memory_space<vmem>>, vector<8x32x96xf32>
    tpu.vector_store %arg15[%c0_7, %c1, %c0_8], %0 {strides = array<i32>} : memref<8x34x96xf32, #tpu.memory_space<vmem>>, vector<8x32x96xf32>,
    %c0_9 = arith.constant 0 : index
    %c0_10 = arith.constant 0 : index
    %5 = vector.load %arg3[%c0_9, %c0_10] : memref<1x256xf32, #tpu.memory_space<vmem>>, vector<1x256xf32>
    %c0_11 = arith.constant 0 : index
    %c0_12 = arith.constant 0 : index
    %c0_13 = arith.constant 0 : index
    %6 = vector.load %arg15[%c0_11, %c0_12, %c0_13] : memref<8x34x96xf32, #tpu.memory_space<vmem>>, vector<8x32x96xf32>
    %7 = vector.shape_cast %6 : vector<8x32x96xf32> to vector<256x96xf32>
    %c0_14 = arith.constant 0 : index
    %c0_15 = arith.constant 0 : index
    %c0_16 = arith.constant 0 : index
    %8 = vector.load %arg2[%c0_14, %c0_15, %c0_16] : memref<3x96x256xf32, #tpu.memory_space<vmem>>, vector<1x96x256xf32>
    %9 = vector.shape_cast %8 : vector<1x96x256xf32> to vector<96x256xf32>
    %cst_17 = arith.constant dense<0.000000e+00> : vector<256x256xf32>
    %10 = tpu.matmul %7, %9, %cst_17 {dimension_numbers = #tpu.dot_dimension_numbers<[1], [0], [0], [1], [0, 0, 1, 1], [], []>} : vector<256x96xf32>, vector<96x256xf32>, vector<256x256xf32> -> vector<256x256xf32>
    %11 = vector.broadcast %5 : vector<1x256xf32> to vector<256x256xf32>
    %12 = arith.addf %11, %10 : vector<256x256xf32>
    %c0_18 = arith.constant 0 : index
    %c1_19 = arith.constant 1 : index
    %c0_20 = arith.constant 0 : index
    %13 = vector.load %arg15[%c0_18, %c1_19, %c0_20] : memref<8x34x96xf32, #tpu.memory_space<vmem>>, vector<8x32x96xf32>
    %14 = vector.shape_cast %13 : vector<8x32x96xf32> to vector<256x96xf32>
    %c1_21 = arith.constant 1 : index
    %c0_22 = arith.constant 0 : index
    %c0_23 = arith.constant 0 : index
    %15 = vector.load %arg2[%c1_21, %c0_22, %c0_23] : memref<3x96x256xf32, #tpu.memory_space<vmem>>, vector<1x96x256xf32>
    %16 = vector.shape_cast %15 : vector<1x96x256xf32> to vector<96x256xf32>
    %cst_24 = arith.constant dense<0.000000e+00> : vector<256x256xf32>
    %17 = tpu.matmul %14, %16, %cst_24 {dimension_numbers = #tpu.dot_dimension_numbers<[1], [0], [0], [1], [0, 0, 1, 1], [], []>} : vector<256x96xf32>, vector<96x256xf32>, vector<256x256xf32> -> vector<256x256xf32>
    %18 = arith.addf %12, %17 : vector<256x256xf32>
    %c0_25 = arith.constant 0 : index
    %c2 = arith.constant 2 : index
    %c0_26 = arith.constant 0 : index
    %19 = vector.load %arg15[%c0_25, %c2, %c0_26] : memref<8x34x96xf32, #tpu.memory_space<vmem>>, vector<8x32x96xf32>
    %20 = vector.shape_cast %19 : vector<8x32x96xf32> to vector<256x96xf32>
    %c2_27 = arith.constant 2 : index
    %c0_28 = arith.constant 0 : index
    %c0_29 = arith.constant 0 : index
    %21 = vector.load %arg2[%c2_27, %c0_28, %c0_29] : memref<3x96x256xf32, #tpu.memory_space<vmem>>, vector<1x96x256xf32>
    %22 = vector.shape_cast %21 : vector<1x96x256xf32> to vector<96x256xf32>
    %cst_30 = arith.constant dense<0.000000e+00> : vector<256x256xf32>
    %23 = tpu.matmul %20, %22, %cst_30 {dimension_numbers = #tpu.dot_dimension_numbers<[1], [0], [0], [1], [0, 0, 1, 1], [], []>} : vector<256x96xf32>, vector<96x256xf32>, vector<256x256xf32> -> vector<256x256xf32>
    %24 = arith.addf %18, %23 : vector<256x256xf32>
    %cst_31 = arith.constant 0.000000e+00 : f32
    %25 = vector.broadcast %cst_31 : f32 to vector<256x256xf32>
    %26 = arith.maximumf %24, %25 : vector<256x256xf32>
    %27 = vector.shape_cast %26 : vector<256x256xf32> to vector<8x32x256xf32>
    %28 = vector.shape_cast %27 : vector<8x32x256xf32> to vector<8x16x2x256xf32>
    %29 = vector.extract_strided_slice %28 {offsets = [0, 0, 0, 0], sizes = [8, 16, 1, 256], strides = [1, 1, 1, 1]} : vector<8x16x2x256xf32> to vector<8x16x1x256xf32>
    %30 = vector.shape_cast %29 : vector<8x16x1x256xf32> to vector<8x16x256xf32>
    %31 = vector.extract_strided_slice %28 {offsets = [0, 0, 1, 0], sizes = [8, 16, 1, 256], strides = [1, 1, 1, 1]} : vector<8x16x2x256xf32> to vector<8x16x1x256xf32>
    %32 = vector.shape_cast %31 : vector<8x16x1x256xf32> to vector<8x16x256xf32>
    %33 = arith.maximumf %30, %32 : vector<8x16x256xf32>
    %34 = vector.extract_strided_slice %33 {offsets = [0, 0, 0], sizes = [8, 16, 248], strides = [1, 1, 1]} : vector<8x16x256xf32> to vector<8x16x248xf32>
    %35 = vector.extract_strided_slice %33 {offsets = [0, 0, 8], sizes = [8, 16, 248], strides = [1, 1, 1]} : vector<8x16x256xf32> to vector<8x16x248xf32>
    %36 = arith.maximumf %34, %35 : vector<8x16x248xf32>
    %cst_32 = arith.constant 0.000000e+00 : f32
    %37 = vector.broadcast %cst_32 : f32 to vector<8x1x248xf32>
    %c0_33 = arith.constant 0 : index
    %c0_34 = arith.constant 0 : index
    %c0_35 = arith.constant 0 : index
    %38 = vector.load %arg16[%c0_33, %c0_34, %c0_35] : memref<8x18x248xf32, #tpu.memory_space<vmem>>, vector<8x1x248xf32>
    tpu.vector_store %arg16[%c0_33, %c0_34, %c0_35], %37 {strides = array<i32>} : memref<8x18x248xf32, #tpu.memory_space<vmem>>, vector<8x1x248xf32>,
    %c0_36 = arith.constant 0 : index
    %c17 = arith.constant 17 : index
    %c0_37 = arith.constant 0 : index
    %39 = vector.load %arg16[%c0_36, %c17, %c0_37] : memref<8x18x248xf32, #tpu.memory_space<vmem>>, vector<8x1x248xf32>
    tpu.vector_store %arg16[%c0_36, %c17, %c0_37], %37 {strides = array<i32>} : memref<8x18x248xf32, #tpu.memory_space<vmem>>, vector<8x1x248xf32>,
    %c0_38 = arith.constant 0 : index
    %c1_39 = arith.constant 1 : index
    %c0_40 = arith.constant 0 : index
    %40 = vector.load %arg16[%c0_38, %c1_39, %c0_40] : memref<8x18x248xf32, #tpu.memory_space<vmem>>, vector<8x16x248xf32>
    tpu.vector_store %arg16[%c0_38, %c1_39, %c0_40], %36 {strides = array<i32>} : memref<8x18x248xf32, #tpu.memory_space<vmem>>, vector<8x16x248xf32>,
    %c0_41 = arith.constant 0 : index
    %c0_42 = arith.constant 0 : index
    %41 = vector.load %arg5[%c0_41, %c0_42] : memref<1x256xf32, #tpu.memory_space<vmem>>, vector<1x256xf32>
    %c0_43 = arith.constant 0 : index
    %c0_44 = arith.constant 0 : index
    %c0_45 = arith.constant 0 : index
    %42 = vector.load %arg16[%c0_43, %c0_44, %c0_45] : memref<8x18x248xf32, #tpu.memory_space<vmem>>, vector<8x16x248xf32>
    %43 = vector.shape_cast %42 : vector<8x16x248xf32> to vector<128x248xf32>
    %c0_46 = arith.constant 0 : index
    %c0_47 = arith.constant 0 : index
    %c0_48 = arith.constant 0 : index
    %44 = vector.load %arg4[%c0_46, %c0_47, %c0_48] : memref<3x248x256xf32, #tpu.memory_space<vmem>>, vector<1x248x256xf32>
    %45 = vector.shape_cast %44 : vector<1x248x256xf32> to vector<248x256xf32>
    %cst_49 = arith.constant dense<0.000000e+00> : vector<128x256xf32>
    %46 = tpu.matmul %43, %45, %cst_49 {dimension_numbers = #tpu.dot_dimension_numbers<[1], [0], [0], [1], [0, 0, 1, 1], [], []>} : vector<128x248xf32>, vector<248x256xf32>, vector<128x256xf32> -> vector<128x256xf32>
    %47 = vector.broadcast %41 : vector<1x256xf32> to vector<128x256xf32>
    %48 = arith.addf %47, %46 : vector<128x256xf32>
    %c0_50 = arith.constant 0 : index
    %c1_51 = arith.constant 1 : index
    %c0_52 = arith.constant 0 : index
    %49 = vector.load %arg16[%c0_50, %c1_51, %c0_52] : memref<8x18x248xf32, #tpu.memory_space<vmem>>, vector<8x16x248xf32>
    %50 = vector.shape_cast %49 : vector<8x16x248xf32> to vector<128x248xf32>
    %c1_53 = arith.constant 1 : index
    %c0_54 = arith.constant 0 : index
    %c0_55 = arith.constant 0 : index
    %51 = vector.load %arg4[%c1_53, %c0_54, %c0_55] : memref<3x248x256xf32, #tpu.memory_space<vmem>>, vector<1x248x256xf32>
    %52 = vector.shape_cast %51 : vector<1x248x256xf32> to vector<248x256xf32>
    %cst_56 = arith.constant dense<0.000000e+00> : vector<128x256xf32>
    %53 = tpu.matmul %50, %52, %cst_56 {dimension_numbers = #tpu.dot_dimension_numbers<[1], [0], [0], [1], [0, 0, 1, 1], [], []>} : vector<128x248xf32>, vector<248x256xf32>, vector<128x256xf32> -> vector<128x256xf32>
    %54 = arith.addf %48, %53 : vector<128x256xf32>
    %c0_57 = arith.constant 0 : index
    %c2_58 = arith.constant 2 : index
    %c0_59 = arith.constant 0 : index
    %55 = vector.load %arg16[%c0_57, %c2_58, %c0_59] : memref<8x18x248xf32, #tpu.memory_space<vmem>>, vector<8x16x248xf32>
    %56 = vector.shape_cast %55 : vector<8x16x248xf32> to vector<128x248xf32>
    %c2_60 = arith.constant 2 : index
    %c0_61 = arith.constant 0 : index
    %c0_62 = arith.constant 0 : index
    %57 = vector.load %arg4[%c2_60, %c0_61, %c0_62] : memref<3x248x256xf32, #tpu.memory_space<vmem>>, vector<1x248x256xf32>
    %58 = vector.shape_cast %57 : vector<1x248x256xf32> to vector<248x256xf32>
    %cst_63 = arith.constant dense<0.000000e+00> : vector<128x256xf32>
    %59 = tpu.matmul %56, %58, %cst_63 {dimension_numbers = #tpu.dot_dimension_numbers<[1], [0], [0], [1], [0, 0, 1, 1], [], []>} : vector<128x248xf32>, vector<248x256xf32>, vector<128x256xf32> -> vector<128x256xf32>
    %60 = arith.addf %54, %59 : vector<128x256xf32>
    %cst_64 = arith.constant 0.000000e+00 : f32
    %61 = vector.broadcast %cst_64 : f32 to vector<128x256xf32>
    %62 = arith.maximumf %60, %61 : vector<128x256xf32>
    %63 = vector.shape_cast %62 : vector<128x256xf32> to vector<8x16x256xf32>
    %64 = vector.shape_cast %63 : vector<8x16x256xf32> to vector<8x8x2x256xf32>
    %65 = vector.extract_strided_slice %64 {offsets = [0, 0, 0, 0], sizes = [8, 8, 1, 256], strides = [1, 1, 1, 1]} : vector<8x8x2x256xf32> to vector<8x8x1x256xf32>
    %66 = vector.shape_cast %65 : vector<8x8x1x256xf32> to vector<8x8x256xf32>
    %67 = vector.extract_strided_slice %64 {offsets = [0, 0, 1, 0], sizes = [8, 8, 1, 256], strides = [1, 1, 1, 1]} : vector<8x8x2x256xf32> to vector<8x8x1x256xf32>
    %68 = vector.shape_cast %67 : vector<8x8x1x256xf32> to vector<8x8x256xf32>
    %69 = arith.maximumf %66, %68 : vector<8x8x256xf32>
    %70 = vector.extract_strided_slice %69 {offsets = [0, 0, 0], sizes = [8, 8, 240], strides = [1, 1, 1]} : vector<8x8x256xf32> to vector<8x8x240xf32>
    %71 = vector.extract_strided_slice %69 {offsets = [0, 0, 16], sizes = [8, 8, 240], strides = [1, 1, 1]} : vector<8x8x256xf32> to vector<8x8x240xf32>
    %72 = arith.maximumf %70, %71 : vector<8x8x240xf32>
    %cst_65 = arith.constant 0.000000e+00 : f32
    %73 = vector.broadcast %cst_65 : f32 to vector<8x1x240xf32>
    %c0_66 = arith.constant 0 : index
    %c0_67 = arith.constant 0 : index
    %c0_68 = arith.constant 0 : index
    %74 = vector.load %arg17[%c0_66, %c0_67, %c0_68] : memref<8x10x240xf32, #tpu.memory_space<vmem>>, vector<8x1x240xf32>
    tpu.vector_store %arg17[%c0_66, %c0_67, %c0_68], %73 {strides = array<i32>} : memref<8x10x240xf32, #tpu.memory_space<vmem>>, vector<8x1x240xf32>,
    %c0_69 = arith.constant 0 : index
    %c9 = arith.constant 9 : index
    %c0_70 = arith.constant 0 : index
    %75 = vector.load %arg17[%c0_69, %c9, %c0_70] : memref<8x10x240xf32, #tpu.memory_space<vmem>>, vector<8x1x240xf32>
    tpu.vector_store %arg17[%c0_69, %c9, %c0_70], %73 {strides = array<i32>} : memref<8x10x240xf32, #tpu.memory_space<vmem>>, vector<8x1x240xf32>,
    %c0_71 = arith.constant 0 : index
    %c1_72 = arith.constant 1 : index
    %c0_73 = arith.constant 0 : index
    %76 = vector.load %arg17[%c0_71, %c1_72, %c0_73] : memref<8x10x240xf32, #tpu.memory_space<vmem>>, vector<8x8x240xf32>
    tpu.vector_store %arg17[%c0_71, %c1_72, %c0_73], %72 {strides = array<i32>} : memref<8x10x240xf32, #tpu.memory_space<vmem>>, vector<8x8x240xf32>,
    %c0_74 = arith.constant 0 : index
    %c0_75 = arith.constant 0 : index
    %77 = vector.load %arg7[%c0_74, %c0_75] : memref<1x256xf32, #tpu.memory_space<vmem>>, vector<1x256xf32>
    %c0_76 = arith.constant 0 : index
    %c0_77 = arith.constant 0 : index
    %c0_78 = arith.constant 0 : index
    %78 = vector.load %arg17[%c0_76, %c0_77, %c0_78] : memref<8x10x240xf32, #tpu.memory_space<vmem>>, vector<8x8x240xf32>
    %79 = vector.shape_cast %78 : vector<8x8x240xf32> to vector<64x240xf32>
    %c0_79 = arith.constant 0 : index
    %c0_80 = arith.constant 0 : index
    %c0_81 = arith.constant 0 : index
    %80 = vector.load %arg6[%c0_79, %c0_80, %c0_81] : memref<3x240x256xf32, #tpu.memory_space<vmem>>, vector<1x240x256xf32>
    %81 = vector.shape_cast %80 : vector<1x240x256xf32> to vector<240x256xf32>
    %cst_82 = arith.constant dense<0.000000e+00> : vector<64x256xf32>
    %82 = tpu.matmul %79, %81, %cst_82 {dimension_numbers = #tpu.dot_dimension_numbers<[1], [0], [0], [1], [0, 0, 1, 1], [], []>} : vector<64x240xf32>, vector<240x256xf32>, vector<64x256xf32> -> vector<64x256xf32>
    %83 = vector.broadcast %77 : vector<1x256xf32> to vector<64x256xf32>
    %84 = arith.addf %83, %82 : vector<64x256xf32>
    %c0_83 = arith.constant 0 : index
    %c1_84 = arith.constant 1 : index
    %c0_85 = arith.constant 0 : index
    %85 = vector.load %arg17[%c0_83, %c1_84, %c0_85] : memref<8x10x240xf32, #tpu.memory_space<vmem>>, vector<8x8x240xf32>
    %86 = vector.shape_cast %85 : vector<8x8x240xf32> to vector<64x240xf32>
    %c1_86 = arith.constant 1 : index
    %c0_87 = arith.constant 0 : index
    %c0_88 = arith.constant 0 : index
    %87 = vector.load %arg6[%c1_86, %c0_87, %c0_88] : memref<3x240x256xf32, #tpu.memory_space<vmem>>, vector<1x240x256xf32>
    %88 = vector.shape_cast %87 : vector<1x240x256xf32> to vector<240x256xf32>
    %cst_89 = arith.constant dense<0.000000e+00> : vector<64x256xf32>
    %89 = tpu.matmul %86, %88, %cst_89 {dimension_numbers = #tpu.dot_dimension_numbers<[1], [0], [0], [1], [0, 0, 1, 1], [], []>} : vector<64x240xf32>, vector<240x256xf32>, vector<64x256xf32> -> vector<64x256xf32>
    %90 = arith.addf %84, %89 : vector<64x256xf32>
    %c0_90 = arith.constant 0 : index
    %c2_91 = arith.constant 2 : index
    %c0_92 = arith.constant 0 : index
    %91 = vector.load %arg17[%c0_90, %c2_91, %c0_92] : memref<8x10x240xf32, #tpu.memory_space<vmem>>, vector<8x8x240xf32>
    %92 = vector.shape_cast %91 : vector<8x8x240xf32> to vector<64x240xf32>
    %c2_93 = arith.constant 2 : index
    %c0_94 = arith.constant 0 : index
    %c0_95 = arith.constant 0 : index
    %93 = vector.load %arg6[%c2_93, %c0_94, %c0_95] : memref<3x240x256xf32, #tpu.memory_space<vmem>>, vector<1x240x256xf32>
    %94 = vector.shape_cast %93 : vector<1x240x256xf32> to vector<240x256xf32>
    %cst_96 = arith.constant dense<0.000000e+00> : vector<64x256xf32>
    %95 = tpu.matmul %92, %94, %cst_96 {dimension_numbers = #tpu.dot_dimension_numbers<[1], [0], [0], [1], [0, 0, 1, 1], [], []>} : vector<64x240xf32>, vector<240x256xf32>, vector<64x256xf32> -> vector<64x256xf32>
    %96 = arith.addf %90, %95 : vector<64x256xf32>
    %cst_97 = arith.constant 0.000000e+00 : f32
    %97 = vector.broadcast %cst_97 : f32 to vector<64x256xf32>
    %98 = arith.maximumf %96, %97 : vector<64x256xf32>
    %99 = vector.shape_cast %98 : vector<64x256xf32> to vector<8x8x256xf32>
    %100 = vector.shape_cast %99 : vector<8x8x256xf32> to vector<8x4x2x256xf32>
    %101 = vector.extract_strided_slice %100 {offsets = [0, 0, 0, 0], sizes = [8, 4, 1, 256], strides = [1, 1, 1, 1]} : vector<8x4x2x256xf32> to vector<8x4x1x256xf32>
    %102 = vector.shape_cast %101 : vector<8x4x1x256xf32> to vector<8x4x256xf32>
    %103 = vector.extract_strided_slice %100 {offsets = [0, 0, 1, 0], sizes = [8, 4, 1, 256], strides = [1, 1, 1, 1]} : vector<8x4x2x256xf32> to vector<8x4x1x256xf32>
    %104 = vector.shape_cast %103 : vector<8x4x1x256xf32> to vector<8x4x256xf32>
    %105 = arith.maximumf %102, %104 : vector<8x4x256xf32>
    %106 = vector.extract_strided_slice %105 {offsets = [0, 0, 0], sizes = [8, 4, 224], strides = [1, 1, 1]} : vector<8x4x256xf32> to vector<8x4x224xf32>
    %107 = vector.extract_strided_slice %105 {offsets = [0, 0, 32], sizes = [8, 4, 224], strides = [1, 1, 1]} : vector<8x4x256xf32> to vector<8x4x224xf32>
    %108 = arith.maximumf %106, %107 : vector<8x4x224xf32>
    %c0_98 = arith.constant 0 : index
    %c0_99 = arith.constant 0 : index
    %109 = vector.load %arg9[%c0_98, %c0_99] : memref<1x128xf32, #tpu.memory_space<vmem>>, vector<1x128xf32>
    %110 = vector.extract_strided_slice %108 {offsets = [0, 0, 0], sizes = [8, 1, 224], strides = [1, 1, 1]} : vector<8x4x224xf32> to vector<8x1x224xf32>
    %111 = vector.shape_cast %110 : vector<8x1x224xf32> to vector<8x224xf32>
    %c0_100 = arith.constant 0 : index
    %c0_101 = arith.constant 0 : index
    %c0_102 = arith.constant 0 : index
    %112 = vector.load %arg8[%c0_100, %c0_101, %c0_102] : memref<4x224x128xf32, #tpu.memory_space<vmem>>, vector<1x224x128xf32>
    %113 = vector.shape_cast %112 : vector<1x224x128xf32> to vector<224x128xf32>
    %cst_103 = arith.constant dense<0.000000e+00> : vector<8x128xf32>
    %114 = tpu.matmul %111, %113, %cst_103 {dimension_numbers = #tpu.dot_dimension_numbers<[1], [0], [0], [1], [0, 0, 1, 1], [], []>} : vector<8x224xf32>, vector<224x128xf32>, vector<8x128xf32> -> vector<8x128xf32>
    %115 = vector.broadcast %109 : vector<1x128xf32> to vector<8x128xf32>
    %116 = arith.addf %115, %114 : vector<8x128xf32>
    %117 = vector.extract_strided_slice %108 {offsets = [0, 1, 0], sizes = [8, 1, 224], strides = [1, 1, 1]} : vector<8x4x224xf32> to vector<8x1x224xf32>
    %118 = vector.shape_cast %117 : vector<8x1x224xf32> to vector<8x224xf32>
    %c1_104 = arith.constant 1 : index
    %c0_105 = arith.constant 0 : index
    %c0_106 = arith.constant 0 : index
    %119 = vector.load %arg8[%c1_104, %c0_105, %c0_106] : memref<4x224x128xf32, #tpu.memory_space<vmem>>, vector<1x224x128xf32>
    %120 = vector.shape_cast %119 : vector<1x224x128xf32> to vector<224x128xf32>
    %cst_107 = arith.constant dense<0.000000e+00> : vector<8x128xf32>
    %121 = tpu.matmul %118, %120, %cst_107 {dimension_numbers = #tpu.dot_dimension_numbers<[1], [0], [0], [1], [0, 0, 1, 1], [], []>} : vector<8x224xf32>, vector<224x128xf32>, vector<8x128xf32> -> vector<8x128xf32>
    %122 = arith.addf %116, %121 : vector<8x128xf32>
    %123 = vector.extract_strided_slice %108 {offsets = [0, 2, 0], sizes = [8, 1, 224], strides = [1, 1, 1]} : vector<8x4x224xf32> to vector<8x1x224xf32>
    %124 = vector.shape_cast %123 : vector<8x1x224xf32> to vector<8x224xf32>
    %c2_108 = arith.constant 2 : index
    %c0_109 = arith.constant 0 : index
    %c0_110 = arith.constant 0 : index
    %125 = vector.load %arg8[%c2_108, %c0_109, %c0_110] : memref<4x224x128xf32, #tpu.memory_space<vmem>>, vector<1x224x128xf32>
    %126 = vector.shape_cast %125 : vector<1x224x128xf32> to vector<224x128xf32>
    %cst_111 = arith.constant dense<0.000000e+00> : vector<8x128xf32>
    %127 = tpu.matmul %124, %126, %cst_111 {dimension_numbers = #tpu.dot_dimension_numbers<[1], [0], [0], [1], [0, 0, 1, 1], [], []>} : vector<8x224xf32>, vector<224x128xf32>, vector<8x128xf32> -> vector<8x128xf32>
    %128 = arith.addf %122, %127 : vector<8x128xf32>
    %129 = vector.extract_strided_slice %108 {offsets = [0, 3, 0], sizes = [8, 1, 224], strides = [1, 1, 1]} : vector<8x4x224xf32> to vector<8x1x224xf32>
    %130 = vector.shape_cast %129 : vector<8x1x224xf32> to vector<8x224xf32>
    %c3 = arith.constant 3 : index
    %c0_112 = arith.constant 0 : index
    %c0_113 = arith.constant 0 : index
    %131 = vector.load %arg8[%c3, %c0_112, %c0_113] : memref<4x224x128xf32, #tpu.memory_space<vmem>>, vector<1x224x128xf32>
    %132 = vector.shape_cast %131 : vector<1x224x128xf32> to vector<224x128xf32>
    %cst_114 = arith.constant dense<0.000000e+00> : vector<8x128xf32>
    %133 = tpu.matmul %130, %132, %cst_114 {dimension_numbers = #tpu.dot_dimension_numbers<[1], [0], [0], [1], [0, 0, 1, 1], [], []>} : vector<8x224xf32>, vector<224x128xf32>, vector<8x128xf32> -> vector<8x128xf32>
    %134 = arith.addf %128, %133 : vector<8x128xf32>
    %cst_115 = arith.constant 0.000000e+00 : f32
    %135 = vector.broadcast %cst_115 : f32 to vector<8x128xf32>
    %136 = arith.maximumf %134, %135 : vector<8x128xf32>
    %c0_116 = arith.constant 0 : index
    %c0_117 = arith.constant 0 : index
    %137 = vector.load %arg10[%c0_116, %c0_117] : memref<128x128xf32, #tpu.memory_space<vmem>>, vector<128x128xf32>
    %cst_118 = arith.constant dense<0.000000e+00> : vector<8x128xf32>
    %138 = tpu.matmul %136, %137, %cst_118 {dimension_numbers = #tpu.dot_dimension_numbers<[1], [0], [0], [1], [0, 0, 1, 1], [], []>} : vector<8x128xf32>, vector<128x128xf32>, vector<8x128xf32> -> vector<8x128xf32>
    %c0_119 = arith.constant 0 : index
    %c0_120 = arith.constant 0 : index
    %139 = vector.load %arg11[%c0_119, %c0_120] : memref<1x128xf32, #tpu.memory_space<vmem>>, vector<1x128xf32>
    %140 = vector.broadcast %139 : vector<1x128xf32> to vector<8x128xf32>
    %141 = arith.addf %138, %140 : vector<8x128xf32>
    %cst_121 = arith.constant 0.000000e+00 : f32
    %142 = vector.broadcast %cst_121 : f32 to vector<8x128xf32>
    %143 = arith.maximumf %141, %142 : vector<8x128xf32>
    %c0_122 = arith.constant 0 : index
    %c0_123 = arith.constant 0 : index
    %144 = vector.load %arg12[%c0_122, %c0_123] : memref<128x128xf32, #tpu.memory_space<vmem>>, vector<128x128xf32>
    %cst_124 = arith.constant dense<0.000000e+00> : vector<8x128xf32>
    %145 = tpu.matmul %143, %144, %cst_124 {dimension_numbers = #tpu.dot_dimension_numbers<[1], [0], [0], [1], [0, 0, 1, 1], [], []>} : vector<8x128xf32>, vector<128x128xf32>, vector<8x128xf32> -> vector<8x128xf32>
    %c0_125 = arith.constant 0 : index
    %c0_126 = arith.constant 0 : index
    %146 = vector.load %arg13[%c0_125, %c0_126] : memref<1x128xf32, #tpu.memory_space<vmem>>, vector<1x128xf32>
    %147 = vector.broadcast %146 : vector<1x128xf32> to vector<8x128xf32>
    %148 = arith.addf %145, %147 : vector<8x128xf32>
    %c0_127 = arith.constant 0 : index
    %c0_128 = arith.constant 0 : index
    %149 = vector.load %arg14[%c0_127, %c0_128] : memref<8x128xf32, #tpu.memory_space<vmem>>, vector<8x128xf32>
    tpu.vector_store %arg14[%c0_127, %c0_128], %148 {strides = array<i32>} : memref<8x128xf32, #tpu.memory_space<vmem>>, vector<8x128xf32>,
    return
  }
  func.func @transform_0(%arg0: i32) -> (i32, i32, i32) {
    %c0_i32 = arith.constant 0 : i32
    %c0_i32_0 = arith.constant 0 : i32
    %c0_i32_1 = arith.constant 0 : i32
    return %arg0, %c0_i32, %c0_i32_0 : i32, i32, i32
  }
  func.func @transform_1(%arg0: i32) -> (i32, i32, i32) {
    %c0_i32 = arith.constant 0 : i32
    %c0_i32_0 = arith.constant 0 : i32
    %c0_i32_1 = arith.constant 0 : i32
    %c0_i32_2 = arith.constant 0 : i32
    return %c0_i32, %c0_i32_0, %c0_i32_1 : i32, i32, i32
  }
  func.func @transform_2(%arg0: i32) -> (i32, i32) {
    %c0_i32 = arith.constant 0 : i32
    %c0_i32_0 = arith.constant 0 : i32
    %c0_i32_1 = arith.constant 0 : i32
    return %c0_i32, %c0_i32_0 : i32, i32
  }
  func.func @transform_3(%arg0: i32) -> (i32, i32, i32) {
    %c0_i32 = arith.constant 0 : i32
    %c0_i32_0 = arith.constant 0 : i32
    %c0_i32_1 = arith.constant 0 : i32
    %c0_i32_2 = arith.constant 0 : i32
    return %c0_i32, %c0_i32_0, %c0_i32_1 : i32, i32, i32
  }
  func.func @transform_4(%arg0: i32) -> (i32, i32) {
    %c0_i32 = arith.constant 0 : i32
    %c0_i32_0 = arith.constant 0 : i32
    %c0_i32_1 = arith.constant 0 : i32
    return %c0_i32, %c0_i32_0 : i32, i32
  }
  func.func @transform_5(%arg0: i32) -> (i32, i32, i32) {
    %c0_i32 = arith.constant 0 : i32
    %c0_i32_0 = arith.constant 0 : i32
    %c0_i32_1 = arith.constant 0 : i32
    %c0_i32_2 = arith.constant 0 : i32
    return %c0_i32, %c0_i32_0, %c0_i32_1 : i32, i32, i32
  }
  func.func @transform_6(%arg0: i32) -> (i32, i32) {
    %c0_i32 = arith.constant 0 : i32
    %c0_i32_0 = arith.constant 0 : i32
    %c0_i32_1 = arith.constant 0 : i32
    return %c0_i32, %c0_i32_0 : i32, i32
  }
  func.func @transform_7(%arg0: i32) -> (i32, i32, i32) {
    %c0_i32 = arith.constant 0 : i32
    %c0_i32_0 = arith.constant 0 : i32
    %c0_i32_1 = arith.constant 0 : i32
    %c0_i32_2 = arith.constant 0 : i32
    return %c0_i32, %c0_i32_0, %c0_i32_1 : i32, i32, i32
  }
  func.func @transform_8(%arg0: i32) -> (i32, i32) {
    %c0_i32 = arith.constant 0 : i32
    %c0_i32_0 = arith.constant 0 : i32
    %c0_i32_1 = arith.constant 0 : i32
    return %c0_i32, %c0_i32_0 : i32, i32
  }
  func.func @transform_9(%arg0: i32) -> (i32, i32) {
    %c0_i32 = arith.constant 0 : i32
    %c0_i32_0 = arith.constant 0 : i32
    %c0_i32_1 = arith.constant 0 : i32
    return %c0_i32, %c0_i32_0 : i32, i32
  }
  func.func @transform_10(%arg0: i32) -> (i32, i32) {
    %c0_i32 = arith.constant 0 : i32
    %c0_i32_0 = arith.constant 0 : i32
    %c0_i32_1 = arith.constant 0 : i32
    return %c0_i32, %c0_i32_0 : i32, i32
  }
  func.func @transform_11(%arg0: i32) -> (i32, i32) {
    %c0_i32 = arith.constant 0 : i32
    %c0_i32_0 = arith.constant 0 : i32
    %c0_i32_1 = arith.constant 0 : i32
    return %c0_i32, %c0_i32_0 : i32, i32
  }
  func.func @transform_12(%arg0: i32) -> (i32, i32) {
    %c0_i32 = arith.constant 0 : i32
    %c0_i32_0 = arith.constant 0 : i32
    %c0_i32_1 = arith.constant 0 : i32
    return %c0_i32, %c0_i32_0 : i32, i32
  }
  func.func @transform_13(%arg0: i32) -> (i32, i32) {
    %c0_i32 = arith.constant 0 : i32
    %c0_i32_0 = arith.constant 0 : i32
    return %arg0, %c0_i32 : i32, i32
  }
}

</mosaic_0001>

<bundles_post_ra>
// kernel: tpu_custom_call.1
= control target key start
LH: loop header
LB: loop body
LE: loop exit
PB: predicated region body
PF: predicated region fallthrough
CT: control target
= control target key end

     0   :  { %18 = vsyncpa [#allocation6], 0  ;;  %s15610_s0 = inlined_call_operand.hbm [shape: f32[8,32,96], index: 0, kind: input, shape index: {}]   ;;  %s15611_s1 = inlined_call_operand.hbm [shape: f32[3,96,256], index: 1, kind: input, shape index: {}]   ;;  %s15612_s2 = inlined_call_operand.hbm [shape: f32[1,256], index: 2, kind: input, shape index: {}]   ;;  %s15613_s3 = inlined_call_operand.hbm [shape: f32[3,248,256], index: 3, kind: input, shape index: {}]   ;;  %s15614_s4 = inlined_call_operand.vmem [shape: f32[1,256], index: 4, kind: input, shape index: {}]   ;;  %s15615_s5 = inlined_call_operand.hbm [shape: f32[3,240,256], index: 5, kind: input, shape index: {}]   ;;  %s15616_s6 = inlined_call_operand.vmem [shape: f32[1,256], index: 6, kind: input, shape index: {}]   ;;  %s15617_s7 = inlined_call_operand.hbm [shape: f32[4,224,128], index: 7, kind: input, shape index: {}]   ;;  %s15618_s8 = inlined_call_operand.vmem [shape: f32[1,128], index: 8, kind: input, shape index: {}]   ;;  %s15619_s9 = inlined_call_operand.hbm [shape: f32[128,128], index: 9, kind: input, shape index: {}]   ;;  %s15620_s10 = inlined_call_operand.vmem [shape: f32[1,128], index: 10, kind: input, shape index: {}]   ;;  %s15621_s11 = inlined_call_operand.hbm [shape: f32[128,128], index: 11, kind: input, shape index: {}]   ;;  %s15622_s12 = inlined_call_operand.vmem [shape: f32[1,128], index: 12, kind: input, shape index: {}]   ;;  %s15623_s13 = inlined_call_operand.hbm [shape: f32[8,128], index: 13, kind: output, shape index: {}]  }
   0x1   :  { %19 = vsyncpa [#allocation9], 0 }
   0x2   :  { %20 = vsyncpa [#allocation12], 0 }
   0x3   :  { %21 = vsyncpa [#allocation15], 0 }
   0x4   :  { %22 = vsyncpa [#allocation18], 0  ;;  %s41_s27 = sshll.u32 %s15611_s1, 4  ;;  %s42_s27 = int_to_ptr.hbm [resolvable:$true] %s41_s27 }
   0x5   :  { %23 = vsyncpa [#allocation7], 0  ;;  %s10101_s28 = smov [#allocation8]   ;;  %s65_s15 = sshll.u32 %s15613_s3, 4  ;;  %s66_s15 = int_to_ptr.hbm [resolvable:$true] %s65_s15 }
   0x6   :  { %s43_s29 = sshll.u32 %s10101_s28, 4  ;;  %s10102_s16 = smov 256   ;;  %s44_s29 = int_to_ptr.vmem [resolvable:$true] %s43_s29 }
   0x7   :  { %s10103_s17 = smov 16   ;;  %s10104_s18 = smov [#allocation11]  }
   0x8   :  { %49 = dma.hbm_to_vmem [thread:$0]  %s42_s27, 9216, %s44_s29, [#allocation9], %s10102_s16, %s10102_s16, %s10103_s17  }
   0x9   :  { %s67_s19 = sshll.u32 %s10104_s18, 4  ;;  %s95_s21 = sshll.u32 %s15617_s7, 4  ;;  %s68_s19 = int_to_ptr.vmem [resolvable:$true] %s67_s19  ;;  %s96_s21 = int_to_ptr.hbm [resolvable:$true] %s95_s21 }
   0xa   :  { %73 = dma.hbm_to_vmem [thread:$0]  %s66_s15, 23808, %s68_s19, [#allocation12], %s10102_s16, %s10102_s16, %s10103_s17  }
   0xb   :  { %s10105_s3 = smov [#allocation14]   ;;  %s28_s25 = sshll.u32 %s15610_s0, 4  ;;  %s29_s25 = int_to_ptr.hbm [resolvable:$true] %s28_s25 }
   0xc   :  { %s97_s22 = sshll.u32 %s10105_s3, 4  ;;  %s10106_s26 = smov 128   ;;  %s98_s22 = int_to_ptr.vmem [resolvable:$true] %s97_s22 }
   0xd   :  { %s10107_s27 = smov 8   ;;  %s10108_s28 = smov [#allocation5]  }
   0xe   :  { %103 = dma.hbm_to_vmem [thread:$0]  %s96_s21, 14336, %s98_s22, [#allocation15], %s10106_s26, %s10106_s26, %s10107_s27  }
   0xf   :  { %s30_s29 = sshll.u32 %s10108_s28, 4  ;;  %s55_s7 = sshll.u32 %s15612_s2, 4  ;;  %s31_s29 = int_to_ptr.vmem [resolvable:$true] %s30_s29  ;;  %s56_s7 = int_to_ptr.hbm [resolvable:$true] %s55_s7 }
  0x10   :  { %36 = dma.hbm_to_vmem [thread:$0]  %s29_s25, 4096, %s31_s29, [#allocation6], %s10106_s26, %s10106_s26, %s10107_s27  }
  0x11   :  { %s80_s18 = sshll.u32 %s15615_s5, 4  ;;  %s10109_s19 = smov [#allocation10]   ;;  %s81_s18 = int_to_ptr.hbm [resolvable:$true] %s80_s18 }
  0x12   :  { %s57_s1 = sshll.u32 %s10109_s19, 4  ;;  %s10110_s20 = smov [#allocation13]   ;;  %s58_s1 = int_to_ptr.vmem [resolvable:$true] %s57_s1 }
  0x13   :  { %60 = dma.hbm_to_vmem [thread:$0]  %s56_s7, 32, %s58_s1, [#allocation9]  }
  0x14   :  { %s82_s21 = sshll.u32 %s10110_s20, 4  ;;  %s110_s2 = sshll.u32 %s15619_s9, 4  ;;  %s83_s21 = int_to_ptr.vmem [resolvable:$true] %s82_s21  ;;  %s111_s2 = int_to_ptr.hbm [resolvable:$true] %s110_s2 }
  0x15   :  { %88 = dma.hbm_to_vmem [thread:$0]  %s81_s18, 23040, %s83_s21, [#allocation12], %s10102_s16, %s10102_s16, %s10103_s17  }
  0x16   :  { %s125_s5 = sshll.u32 %s15621_s11, 4  ;;  %s10111_s25 = smov [#allocation16]   ;;  %s126_s5 = int_to_ptr.hbm [resolvable:$true] %s125_s5 }
  0x17   :  { %s112_s28 = sshll.u32 %s10111_s25, 4  ;;  %s10112_s29 = smov [#allocation17]   ;;  %s113_s28 = int_to_ptr.vmem [resolvable:$true] %s112_s28 }
  0x18   :  { %118 = dma.hbm_to_vmem [thread:$0]  %s111_s2, 2048, %s113_s28, [#allocation15], %s10106_s26, %s10106_s26, %s10107_s27  }
  0x19   :  { %s127_s9 = sshll.u32 %s10112_s29, 4  ;;  %s128_s9 = int_to_ptr.vmem [resolvable:$true] %s127_s9 }
  0x1a   :  { %133 = dma.hbm_to_vmem [thread:$0]  %s126_s5, 2048, %s128_s9, [#allocation18], %s10106_s26, %s10106_s26, %s10107_s27  }
  0x1b   :  { %10089 = dma.done.wait [#allocation6], 4096  }
  0x1c   :  { %10090 = vsyncadd [#allocation6], 4294963200 }
  0x1d   :  { %10091 = dma.done.wait [#allocation9], 9248  }
  0x1e   :  { %10092 = vsyncadd [#allocation9], 4294958048 }
  0x1f   :  { %10093 = dma.done.wait [#allocation12], 46848  }
  0x20   :  { %10094 = vsyncadd [#allocation12], 4294920448 }
  0x21   :  { %10095 = dma.done.wait [#allocation15], 16384  }
  0x22   :  { %10096 = vsyncadd [#allocation15], 4294950912 }
  0x23   :  { %10097 = dma.done.wait [#allocation18], 2048  }
  0x24   :  { %10098 = vsyncadd [#allocation18], 4294965248  ;;  %vm200_vm0 = vcmask 778240   ;;  %v15624_v0 = vmov 0.0   ;;  %v305_v1 = vld [vmem:[#allocation8 + $0xb0] sm:$0xff]  ;;  %v306_v2 = vld [vmem:[#allocation8 + $0xb8] sm:$0xff] }
  0x25   :  { %201 = vst.msk [vmem:[#allocation2] sm:$0x1] %vm200_vm0, %v15624_v0  ;;  %v753_v3 = vld [vmem:[#allocation8 + $0x170] sm:$0xff]  ;;  %407 = vmatpush.msra.mxu0 %v305_v1  ;;  %520 = vmatpush.msra.mxu1 %v306_v2  ;;  %v754_v4 = vld [vmem:[#allocation8 + $0x178] sm:$0xff]  ;;  %v303_v5 = vld [vmem:[#allocation8 + $0xa0] sm:$0xff]  ;;  %vm217_vm1 = vcmask 785408  }
  0x26   :  { %202 = vst.msk [vmem:[#allocation2 + $0x28] sm:$0x1] %vm200_vm0, %v15624_v0  ;;  %v304_v6 = vld [vmem:[#allocation8 + $0xa8] sm:$0xff]  ;;  %855 = vmatpush.msra.mxu2 %v753_v3  ;;  %968 = vmatpush.msra.mxu3 %v754_v4  ;;  %v751_v7 = vld [vmem:[#allocation8 + $0x160] sm:$0xff]  ;;  %v301_v9 = vld [vmem:[#allocation8 + $0x90] sm:$0xff]  ;;  %vm1744_vm2 = vcmask 1041408  }
  0x27   :  { %203 = vst.msk [vmem:[#allocation2 + $0x50] sm:$0x1] %vm200_vm0, %v15624_v0  ;;  %v752_v8 = vld [vmem:[#allocation8 + $0x168] sm:$0xff]  ;;  %408 = vmatpush.msra.mxu0 %v303_v5  ;;  %521 = vmatpush.msra.mxu1 %v304_v6  ;;  %v302_v10 = vld [vmem:[#allocation8 + $0x98] sm:$0xff]  ;;  %v749_v11 = vld [vmem:[#allocation8 + $0x150] sm:$0xff]  ;;  %vm1749_vm3 = vcmask 1045508  }
  0x28   :  { %204 = vst.msk [vmem:[#allocation2 + $0x78] sm:$0x1] %vm200_vm0, %v15624_v0  ;;  %v750_v12 = vld [vmem:[#allocation8 + $0x158] sm:$0xff]  ;;  %856 = vmatpush.msra.mxu2 %v751_v7  ;;  %969 = vmatpush.msra.mxu3 %v752_v8  ;;  %v299_v13 = vld [vmem:[#allocation8 + $0x80] sm:$0xff]  ;;  %v300_v14 = vld [vmem:[#allocation8 + $0x88] sm:$0xff]  ;;  %vm1746_vm4 = vcmask 1043458  }
  0x29   :  { %205 = vst.msk [vmem:[#allocation2 + $0xa0] sm:$0x1] %vm200_vm0, %v15624_v0  ;;  %409 = vmatpush.msra.mxu0 %v301_v9  ;;  %522 = vmatpush.msra.mxu1 %v302_v10  ;;  %v747_v15 = vld [vmem:[#allocation8 + $0x140] sm:$0xff]  ;;  %v748_v16 = vld [vmem:[#allocation8 + $0x148] sm:$0xff]  ;;  %v297_v17 = vld [vmem:[#allocation8 + $0x70] sm:$0xff]  ;;  %vm1752_vm5 = vcmask 1045504  }
  0x2a   :  { %206 = vst.msk [vmem:[#allocation2 + $0xc8] sm:$0x1] %vm200_vm0, %v15624_v0  ;;  %857 = vmatpush.msra.mxu2 %v749_v11  ;;  %970 = vmatpush.msra.mxu3 %v750_v12  ;;  %v298_v18 = vld [vmem:[#allocation8 + $0x78] sm:$0xff]  ;;  %v745_v19 = vld [vmem:[#allocation8 + $0x130] sm:$0xff]  ;;  %v295_v21 = vld [vmem:[#allocation8 + $0x60] sm:$0xff]  ;;  %s10114_s11 = smov 120  }
  0x2b   :  { %207 = vst.msk [vmem:[#allocation2 + $0xf0] sm:$0x1] %vm200_vm0, %v15624_v0  ;;  %410 = vmatpush.msra.mxu0 %v299_v13  ;;  %523 = vmatpush.msra.mxu1 %v300_v14  ;;  %v746_v20 = vld [vmem:[#allocation8 + $0x138] sm:$0xff]  ;;  %v296_v22 = vld [vmem:[#allocation8 + $0x68] sm:$0xff]  ;;  %v743_v23 = vld [vmem:[#allocation8 + $0x120] sm:$0xff]  ;;  %vm3124_vm6 = vcmask 982016  }
  0x2c   :  { %208 = vst.msk [vmem:[#allocation2 + $0x118] sm:$0x1] %vm200_vm0, %v15624_v0  ;;  %858 = vmatpush.msra.mxu2 %v747_v15  ;;  %971 = vmatpush.msra.mxu3 %v748_v16  ;;  %v744_v24 = vld [vmem:[#allocation8 + $0x128] sm:$0xff]  ;;  %v293_v25 = vld [vmem:[#allocation8 + $0x50] sm:$0xff]  ;;  %v294_v26 = vld [vmem:[#allocation8 + $0x58] sm:$0xff]  ;;  %vm3944_vm8 = vcmask 1042434  }
  0x2d   :  { %209 = vst.msk [vmem:[#allocation2 + $0x21] sm:$0x1] %vm200_vm0, %v15624_v0  ;;  %411 = vmatpush.msra.mxu0 %v297_v17  ;;  %524 = vmatpush.msra.mxu1 %v298_v18  ;;  %v741_v27 = vld [vmem:[#allocation8 + $0x110] sm:$0xff]  ;;  %v742_v28 = vld [vmem:[#allocation8 + $0x118] sm:$0xff]  ;;  %v291_v29 = vld [vmem:[#allocation8 + $0x40] sm:$0xff]  ;;  %vm3946_vm9 = vcmask 1043459  }
  0x2e   :  { %210 = vst.msk [vmem:[#allocation2 + $0x49] sm:$0x1] %vm200_vm0, %v15624_v0  ;;  %859 = vmatpush.msra.mxu2 %v745_v19  ;;  %972 = vmatpush.msra.mxu3 %v746_v20  ;;  %v292_v30 = vld [vmem:[#allocation8 + $0x48] sm:$0xff]  ;;  %v739_v31 = vld [vmem:[#allocation8 + $0x100] sm:$0xff]  ;;  %v289_v33 = vld [vmem:[#allocation8 + $0x30] sm:$0xff]  ;;  %vm3948_vm10 = vcmask 1044484  }
  0x2f   :  { %211 = vst.msk [vmem:[#allocation2 + $0x71] sm:$0x1] %vm200_vm0, %v15624_v0  ;;  %412 = vmatpush.msra.mxu0 %v295_v21  ;;  %525 = vmatpush.msra.mxu1 %v296_v22  ;;  %v740_v32 = vld [vmem:[#allocation8 + $0x108] sm:$0xff]  ;;  %v290_v34 = vld [vmem:[#allocation8 + $0x38] sm:$0xff]  ;;  %v737_v35 = vld [vmem:[#allocation8 + $0xf0] sm:$0xff]  ;;  %vm3950_vm11 = vcmask 1045509  }
  0x30   :  { %212 = vst.msk [vmem:[#allocation2 + $0x99] sm:$0x1] %vm200_vm0, %v15624_v0  ;;  %860 = vmatpush.msra.mxu2 %v743_v23  ;;  %973 = vmatpush.msra.mxu3 %v744_v24  ;;  %v738_v36 = vld [vmem:[#allocation8 + $0xf8] sm:$0xff]  ;;  %v287_v37 = vld [vmem:[#allocation8 + $0x20] sm:$0xff]  ;;  %v288_v38 = vld [vmem:[#allocation8 + $0x28] sm:$0xff]  ;;  %vm3952_vm12 = vcmask 1046534  }
  0x31   :  { %213 = vst.msk [vmem:[#allocation2 + $0xc1] sm:$0x1] %vm200_vm0, %v15624_v0  ;;  %413 = vmatpush.msra.mxu0 %v293_v25  ;;  %526 = vmatpush.msra.mxu1 %v294_v26  ;;  %v735_v39 = vld [vmem:[#allocation8 + $0xe0] sm:$0xff]  ;;  %v736_v40 = vld [vmem:[#allocation8 + $0xe8] sm:$0xff]  ;;  %v285_v41 = vld [vmem:[#allocation8 + $0x10] sm:$0xff]  ;;  %vm3954_vm13 = vcmask 1047559  }
  0x32   :  { %214 = vst.msk [vmem:[#allocation2 + $0xe9] sm:$0x1] %vm200_vm0, %v15624_v0  ;;  %861 = vmatpush.msra.mxu2 %v741_v27  ;;  %974 = vmatpush.msra.mxu3 %v742_v28  ;;  %v168_v42 = vld [vmem:[#allocation5] sm:$0xff]  ;;  %v286_v43 = vld [vmem:[#allocation8 + $0x18] sm:$0xff]  ;;  %v169_v44 = vld [vmem:[#allocation5 + $0x8] sm:$0xff]  ;;  %vm4208_vm14 = vcmask 982017  }
  0x33   :  { %215 = vst.msk [vmem:[#allocation2 + $0x111] sm:$0x1] %vm200_vm0, %v15624_v0  ;;  %414 = vmatpush.msra.mxu0 %v291_v29  ;;  %527 = vmatpush.msra.mxu1 %v292_v30  ;;  %v170_v45 = vld [vmem:[#allocation5 + $0x10] sm:$0xff]  ;;  %v171_v47 = vld [vmem:[#allocation5 + $0x18] sm:$0xff]  ;;  %v172_v48 = vld [vmem:[#allocation5 + $0x20] sm:$0xff]  ;;  %vm3962_vm15 = vcmask 1041409  }
  0x34   :  { %216 = vst.msk [vmem:[#allocation2 + $0x139] sm:$0x1] %vm200_vm0, %v15624_v0  ;;  %862 = vmatpush.msra.mxu2 %v739_v31  ;;  %975 = vmatpush.msra.mxu3 %v740_v32  ;;  %v733_v46 = vld [vmem:[#allocation8 + $0xd0] sm:$0xff]  ;;  %v734_v49 = vld [vmem:[#allocation8 + $0xd8] sm:$0xff]  ;;  %v283_v50 = vld [vmem:[#allocation8] sm:$0xff]  ;;  %vm4793_vm0 = vcmask 1046528  }
  0x35   :  { %415 = vmatpush.msra.mxu0 %v289_v33  ;;  %528 = vmatpush.msra.mxu1 %v290_v34  ;;  %218 = vst.msk [vmem:[#allocation2 + $0x1] sm:$0xff] %vm217_vm1, %v168_v42  ;;  %v284_v51 = vld [vmem:[#allocation8 + $0x8] sm:$0xff]  ;;  %v731_v52 = vld [vmem:[#allocation8 + $0xc0] sm:$0xff]  ;;  %v1197_v54 = vld [vmem:[#allocation8 + $0x238] sm:$0xff]  ;;  %s10117_s18 = smov [#allocation19]   ;;  %s9245_s21 = sshll.u32 %s15623_s13, 4  ;;  %s9246_s21 = int_to_ptr.hbm [resolvable:$true] %s9245_s21 }
  0x36   :  { %863 = vmatpush.msra.mxu2 %v737_v35  ;;  %976 = vmatpush.msra.mxu3 %v738_v36  ;;  %219 = vst.msk [vmem:[#allocation2 + $0x9] sm:$0xff] %vm217_vm1, %v169_v44  ;;  %v732_v53 = vld [vmem:[#allocation8 + $0xc8] sm:$0xff]  ;;  %v1196_v57 = vld [vmem:[#allocation8 + $0x230] sm:$0xff]  ;;  %v1194_v60 = vld [vmem:[#allocation8 + $0x220] sm:$0xff]  ;;  %s9243_s19 = sshll.u32 %s10117_s18, 4  ;;  %s9244_s19 = int_to_ptr.vmem [resolvable:$true] %s9243_s19 }
  0x37   :  { %416 = vmatpush.msra.mxu0 %v287_v37  ;;  %529 = vmatpush.msra.mxu1 %v288_v38  ;;  %220 = vst.msk [vmem:[#allocation2 + $0x11] sm:$0xff] %vm217_vm1, %v170_v45  ;;  %v173_v58 = vld [vmem:[#allocation5 + $0x28] sm:$0xff]  ;;  %v174_v63 = vld [vmem:[#allocation5 + $0x30] sm:$0xff]  ;;  %v1193_v1 = vld [vmem:[#allocation8 + $0x218] sm:$0xff] }
  0x38   :  { %864 = vmatpush.msra.mxu2 %v735_v39  ;;  %977 = vmatpush.msra.mxu3 %v736_v40  ;;  %221 = vst.msk [vmem:[#allocation2 + $0x19] sm:$0xff] %vm217_vm1, %v171_v47  ;;  %v1195_v59 = vld [vmem:[#allocation8 + $0x228] sm:$0xff]  ;;  %v1192_v2 = vld [vmem:[#allocation8 + $0x210] sm:$0xff]  ;;  %v175_v5 = vld [vmem:[#allocation5 + $0x38] sm:$0xff] }
  0x39   :  { %417 = vmatpush.msra.mxu0 %v285_v41  ;;  %530 = vmatpush.msra.mxu1 %v286_v43  ;;  %222 = vst.msk [vmem:[#allocation2 + $0x29] sm:$0xff] %vm217_vm1, %v172_v48  ;;  %v176_v8 = vld [vmem:[#allocation5 + $0x40] sm:$0xff]  ;;  %v177_v11 = vld [vmem:[#allocation5 + $0x48] sm:$0xff]  ;;  %v178_v16 = vld [vmem:[#allocation5 + $0x50] sm:$0xff] }
  0x3a   :  { %865 = vmatpush.msra.mxu2 %v733_v46  ;;  %978 = vmatpush.msra.mxu3 %v734_v49  ;;  %223 = vst.msk [vmem:[#allocation2 + $0x31] sm:$0xff] %vm217_vm1, %v173_v58  ;;  %v1191_v12 = vld [vmem:[#allocation8 + $0x208] sm:$0xff]  ;;  %v1190_v13 = vld [vmem:[#allocation8 + $0x200] sm:$0xff]  ;;  %v179_v19 = vld [vmem:[#allocation5 + $0x58] sm:$0xff] }
  0x3b   :  { %418 = vmatpush.msra.mxu0 %v283_v50  ;;  %531 = vmatpush.msra.mxu1 %v284_v51  ;;  %224 = vst.msk [vmem:[#allocation2 + $0x39] sm:$0xff] %vm217_vm1, %v174_v63  ;;  %v1189_v20 = vld [vmem:[#allocation8 + $0x1f8] sm:$0xff]  ;;  %v180_v23 = vld [vmem:[#allocation5 + $0x60] sm:$0xff]  ;;  %v1188_v24 = vld [vmem:[#allocation8 + $0x1f0] sm:$0xff] }
  0x3c   :  { %866 = vmatpush.msra.mxu2 %v731_v52  ;;  %979 = vmatpush.msra.mxu3 %v732_v53  ;;  %v251_v55 = vld [vmem:[#allocation2] sm:$0xff]  ;;  %225 = vst.msk [vmem:[#allocation2 + $0x41] sm:$0xff] %vm217_vm1, %v175_v5  ;;  %v181_v27 = vld [vmem:[#allocation5 + $0x68] sm:$0xff]  ;;  %v182_v30 = vld [vmem:[#allocation5 + $0x70] sm:$0xff] }
  0x3d   :  { %v698_v56 = vld [vmem:[#allocation2 + $0x1] sm:$0xff]  ;;  %9259 = vmatmul.msk.f32.vlgmr.msra.gmra.mxu0 %vm217_vm1, %v251_v55  ;;  %9291 = vmatmul.msk.f32.vlgmr.msra.gmra.mxu1 %vm217_vm1, %v251_v55  ;;  %v699_v62 = vld [vmem:[#allocation2 + $0x9] sm:$0xff]  ;;  %226 = vst.msk [vmem:[#allocation2 + $0x51] sm:$0xff] %vm217_vm1, %v176_v8  ;;  %v183_v35 = vld [vmem:[#allocation5 + $0x78] sm:$0xff] }
  0x3e   :  { %9323 = vmatmul.msk.f32.vlgmr.msra.gmra.mxu2 %vm217_vm1, %v698_v56  ;;  %9355 = vmatmul.msk.f32.vlgmr.msra.gmra.mxu3 %vm217_vm1, %v698_v56  ;;  %v252_v61 = vld [vmem:[#allocation2 + $0x8] sm:$0xff]  ;;  %v253_v3 = vld [vmem:[#allocation2 + $0x10] sm:$0xff]  ;;  %227 = vst.msk [vmem:[#allocation2 + $0x59] sm:$0xff] %vm217_vm1, %v177_v11  ;;  %v1186_v32 = vld [vmem:[#allocation8 + $0x1e0] sm:$0xff] }
  0x3f   :  { %1411 = vmatpush.msrb.mxu1 %v1197_v54  ;;  %1298 = vmatpush.msrb.mxu0 %v1196_v57  ;;  %v700_v4 = vld [vmem:[#allocation2 + $0x11] sm:$0xff]  ;;  %v701_v7 = vld [vmem:[#allocation2 + $0x19] sm:$0xff]  ;;  %228 = vst.msk [vmem:[#allocation2 + $0x61] sm:$0xff] %vm217_vm1, %v178_v16  ;;  %v1187_v31 = vld [vmem:[#allocation8 + $0x1e8] sm:$0xff] }
  0x40   :  { %v254_v6 = vld [vmem:[#allocation2 + $0x18] sm:$0xff]  ;;  %v255_v9 = vld [vmem:[#allocation2 + $0x28] sm:$0xff]  ;;  %229 = vst.msk [vmem:[#allocation2 + $0x69] sm:$0xff] %vm217_vm1, %v179_v19  ;;  %v184_v38 = vld [vmem:[#allocation5 + $0x80] sm:$0xff] }
  0x41   :  { %1412 = vmatpush.msrb.mxu1 %v1195_v59  ;;  %1299 = vmatpush.msrb.mxu0 %v1194_v60  ;;  %v702_v10 = vld [vmem:[#allocation2 + $0x29] sm:$0xff]  ;;  %v703_v15 = vld [vmem:[#allocation2 + $0x31] sm:$0xff]  ;;  %230 = vst.msk [vmem:[#allocation2 + $0x79] sm:$0xff] %vm217_vm1, %v180_v23  ;;  %v188_v53 = vld [vmem:[#allocation5 + $0xa0] sm:$0xff] }
  0x42   :  { %v256_v14 = vld [vmem:[#allocation2 + $0x30] sm:$0xff]  ;;  %v257_v17 = vld [vmem:[#allocation2 + $0x38] sm:$0xff]  ;;  %231 = vst.msk [vmem:[#allocation2 + $0x81] sm:$0xff] %vm217_vm1, %v181_v27  ;;  %v185_v41 = vld [vmem:[#allocation5 + $0x88] sm:$0xff] }
  0x43   :  { %1413 = vmatpush.msrb.mxu1 %v1193_v1  ;;  %1300 = vmatpush.msrb.mxu0 %v1192_v2  ;;  %v704_v18 = vld [vmem:[#allocation2 + $0x39] sm:$0xff]  ;;  %v705_v22 = vld [vmem:[#allocation2 + $0x41] sm:$0xff]  ;;  %232 = vst.msk [vmem:[#allocation2 + $0x89] sm:$0xff] %vm217_vm1, %v182_v30  ;;  %v1184_v43 = vld [vmem:[#allocation8 + $0x1d0] sm:$0xff] }
  0x44   :  { %v258_v21 = vld [vmem:[#allocation2 + $0x40] sm:$0xff]  ;;  %v259_v25 = vld [vmem:[#allocation2 + $0x50] sm:$0xff]  ;;  %233 = vst.msk [vmem:[#allocation2 + $0x91] sm:$0xff] %vm217_vm1, %v183_v35  ;;  %v1185_v42 = vld [vmem:[#allocation8 + $0x1d8] sm:$0xff] }
  0x45   :  { %9260 = vmatmul.msk.f32.gmra.mxu0 %vm217_vm1, %v252_v61  ;;  %9292 = vmatmul.msk.f32.gmra.mxu1 %vm217_vm1, %v252_v61  ;;  %v706_v26 = vld [vmem:[#allocation2 + $0x51] sm:$0xff]  ;;  %v707_v29 = vld [vmem:[#allocation2 + $0x59] sm:$0xff]  ;;  %234 = vst.msk [vmem:[#allocation2 + $0xa1] sm:$0xff] %vm217_vm1, %v184_v38  ;;  %v1183_v52 = vld [vmem:[#allocation8 + $0x1c8] sm:$0xff] }
  0x46   :  { %9324 = vmatmul.msk.f32.gmra.mxu2 %vm217_vm1, %v699_v62  ;;  %9356 = vmatmul.msk.f32.gmra.mxu3 %vm217_vm1, %v699_v62  ;;  %v260_v28 = vld [vmem:[#allocation2 + $0x58] sm:$0xff]  ;;  %v261_v33 = vld [vmem:[#allocation2 + $0x60] sm:$0xff]  ;;  %235 = vst.msk [vmem:[#allocation2 + $0xa9] sm:$0xff] %vm217_vm1, %v185_v41  ;;  %v186_v46 = vld [vmem:[#allocation5 + $0x90] sm:$0xff] }
  0x47   :  { %1414 = vmatpush.msrb.mxu1 %v1191_v12  ;;  %1301 = vmatpush.msrb.mxu0 %v1190_v13  ;;  %v708_v34 = vld [vmem:[#allocation2 + $0x61] sm:$0xff]  ;;  %v709_v37 = vld [vmem:[#allocation2 + $0x69] sm:$0xff]  ;;  %236 = vst.msk [vmem:[#allocation2 + $0xb1] sm:$0xff] %vm217_vm1, %v186_v46  ;;  %v187_v49 = vld [vmem:[#allocation5 + $0x98] sm:$0xff] }
  0x48   :  { %v262_v36 = vld [vmem:[#allocation2 + $0x68] sm:$0xff]  ;;  %v263_v39 = vld [vmem:[#allocation2 + $0x78] sm:$0xff]  ;;  %237 = vst.msk [vmem:[#allocation2 + $0xb9] sm:$0xff] %vm217_vm1, %v187_v49  ;;  %v1182_v54 = vld [vmem:[#allocation8 + $0x1c0] sm:$0xff] }
  0x49   :  { %1415 = vmatpush.msrb.mxu1 %v1189_v20  ;;  %1302 = vmatpush.msrb.mxu0 %v1188_v24  ;;  %v710_v40 = vld [vmem:[#allocation2 + $0x79] sm:$0xff]  ;;  %v711_v45 = vld [vmem:[#allocation2 + $0x81] sm:$0xff]  ;;  %238 = vst.msk [vmem:[#allocation2 + $0xc9] sm:$0xff] %vm217_vm1, %v188_v53  ;;  %v190_v1 = vld [vmem:[#allocation5 + $0xb0] sm:$0xff] }
  0x4a   :  { %v264_v44 = vld [vmem:[#allocation2 + $0x80] sm:$0xff]  ;;  %v265_v47 = vld [vmem:[#allocation2 + $0x88] sm:$0xff]  ;;  %240 = vst.msk [vmem:[#allocation2 + $0xd9] sm:$0xff] %vm217_vm1, %v190_v1  ;;  %v1181_v5 = vld [vmem:[#allocation8 + $0x1b8] sm:$0xff] }
  0x4b   :  { %1416 = vmatpush.msrb.mxu1 %v1187_v31  ;;  %1303 = vmatpush.msrb.mxu0 %v1186_v32  ;;  %v712_v48 = vld [vmem:[#allocation2 + $0x89] sm:$0xff]  ;;  %v713_v51 = vld [vmem:[#allocation2 + $0x91] sm:$0xff]  ;;  %v192_v13 = vld [vmem:[#allocation5 + $0xc0] sm:$0xff] }
  0x4c   :  { %v266_v50 = vld [vmem:[#allocation2 + $0x90] sm:$0xff]  ;;  %v267_v57 = vld [vmem:[#allocation2 + $0xa0] sm:$0xff]  ;;  %v189_v59 = vld [vmem:[#allocation5 + $0xa8] sm:$0xff]  ;;  %242 = vst.msk [vmem:[#allocation2 + $0xf1] sm:$0xff] %vm217_vm1, %v192_v13 }
  0x4d   :  { %9261 = vmatmul.msk.f32.gmra.mxu0 %vm217_vm1, %v253_v3  ;;  %9293 = vmatmul.msk.f32.gmra.mxu1 %vm217_vm1, %v253_v3  ;;  %v714_v58 = vld [vmem:[#allocation2 + $0xa1] sm:$0xff]  ;;  %239 = vst.msk [vmem:[#allocation2 + $0xd1] sm:$0xff] %vm217_vm1, %v189_v59  ;;  %v715_v63 = vld [vmem:[#allocation2 + $0xa9] sm:$0xff]  ;;  %v191_v8 = vld [vmem:[#allocation5 + $0xb8] sm:$0xff] }
  0x4e   :  { %9325 = vmatmul.msk.f32.gmra.mxu2 %vm217_vm1, %v700_v4  ;;  %9357 = vmatmul.msk.f32.gmra.mxu3 %vm217_vm1, %v700_v4  ;;  %v268_v62 = vld [vmem:[#allocation2 + $0xa8] sm:$0xff]  ;;  %v269_v4 = vld [vmem:[#allocation2 + $0xb0] sm:$0xff]  ;;  %241 = vst.msk [vmem:[#allocation2 + $0xe1] sm:$0xff] %vm217_vm1, %v191_v8  ;;  %v1178_v20 = vld [vmem:[#allocation8 + $0x1a0] sm:$0xff] }
  0x4f   :  { %1417 = vmatpush.msrb.mxu1 %v1185_v42  ;;  %1304 = vmatpush.msrb.mxu0 %v1184_v43  ;;  %v270_v11 = vld [vmem:[#allocation2 + $0xb8] sm:$0xff]  ;;  %v1179_v19 = vld [vmem:[#allocation8 + $0x1a8] sm:$0xff]  ;;  %v196_v38 = vld [vmem:[#allocation5 + $0xe0] sm:$0xff] }
  0x50   :  { %v717_v12 = vld [vmem:[#allocation2 + $0xb9] sm:$0xff]  ;;  %v271_v16 = vld [vmem:[#allocation2 + $0xc8] sm:$0xff]  ;;  %246 = vst.msk [vmem:[#allocation2 + $0x119] sm:$0xff] %vm217_vm1, %v196_v38  ;;  %v198_v53 = vld [vmem:[#allocation5 + $0xf0] sm:$0xff] }
  0x51   :  { %1418 = vmatpush.msrb.mxu1 %v1183_v52  ;;  %1305 = vmatpush.msrb.mxu0 %v1182_v54  ;;  %v195_v30 = vld [vmem:[#allocation5 + $0xd8] sm:$0xff]  ;;  %v197_v46 = vld [vmem:[#allocation5 + $0xe8] sm:$0xff]  ;;  %248 = vst.msk [vmem:[#allocation2 + $0x129] sm:$0xff] %vm217_vm1, %v198_v53 }
  0x52   :  { %245 = vst.msk [vmem:[#allocation2 + $0x109] sm:$0xff] %vm217_vm1, %v195_v30  ;;  %v1175_v59 = vld [vmem:[#allocation8 + $0x188] sm:$0xff] }
  0x53   :  { %1419 = vmatpush.msrb.mxu1 %v1181_v5  ;;  %247 = vst.msk [vmem:[#allocation2 + $0x121] sm:$0xff] %vm217_vm1, %v197_v46  ;;  %v199_v5 = vld [vmem:[#allocation5 + $0xf8] sm:$0xff] }
  0x54   :  { %v272_v23 = vld [vmem:[#allocation2 + $0xd0] sm:$0xff]  ;;  %249 = vst.msk [vmem:[#allocation2 + $0x131] sm:$0xff] %vm217_vm1, %v199_v5 }
  0x55   :  { %9262 = vmatmul.msk.f32.gmra.mxu0 %vm217_vm1, %v254_v6  ;;  %9294 = vmatmul.msk.f32.gmra.mxu1 %vm217_vm1, %v254_v6  ;;  %v716_v6 = vld [vmem:[#allocation2 + $0xb1] sm:$0xff]  ;;  %v274_v35 = vld [vmem:[#allocation2 + $0xe0] sm:$0xff] }
  0x56   :  { %9326 = vmatmul.msk.f32.gmra.mxu2 %vm217_vm1, %v701_v7  ;;  %9358 = vmatmul.msk.f32.gmra.mxu3 %vm217_vm1, %v701_v7  ;;  %v1180_v7 = vld [vmem:[#allocation8 + $0x1b0] sm:$0xff] }
  0x57   :  { %1306 = vmatpush.msrb.mxu0 %v1180_v7  ;;  %1420 = vmatpush.msrb.mxu1 %v1179_v19  ;;  %v719_v24 = vld [vmem:[#allocation2 + $0xd1] sm:$0xff]  ;;  %v726_v19 = vld [vmem:[#allocation2 + $0x119] sm:$0xff] }
  0x59   :  { %1307 = vmatpush.msrb.mxu0 %v1178_v20 }
  0x5b   :  { %v282_v46 = vld [vmem:[#allocation2 + $0x130] sm:$0xff] }
  0x5d   :  { %9263 = vmatmul.msk.f32.gmra.mxu0 %vm217_vm1, %v255_v9  ;;  %9295 = vmatmul.msk.f32.gmra.mxu1 %vm217_vm1, %v255_v9 }
  0x5e   :  { %9327 = vmatmul.msk.f32.gmra.mxu2 %vm217_vm1, %v702_v10  ;;  %9359 = vmatmul.msk.f32.gmra.mxu3 %vm217_vm1, %v702_v10 }
  0x65   :  { %9264 = vmatmul.msk.f32.gmra.mxu0 %vm217_vm1, %v256_v14  ;;  %9296 = vmatmul.msk.f32.gmra.mxu1 %vm217_vm1, %v256_v14 }
  0x66   :  { %9328 = vmatmul.msk.f32.gmra.mxu2 %vm217_vm1, %v703_v15  ;;  %9360 = vmatmul.msk.f32.gmra.mxu3 %vm217_vm1, %v703_v15 }
  0x6d   :  { %9265 = vmatmul.msk.f32.gmra.mxu0 %vm217_vm1, %v257_v17  ;;  %9297 = vmatmul.msk.f32.gmra.mxu1 %vm217_vm1, %v257_v17  ;;  %v718_v17 = vld [vmem:[#allocation2 + $0xc9] sm:$0xff] }
  0x6e   :  { %9329 = vmatmul.msk.f32.gmra.mxu2 %vm217_vm1, %v704_v18  ;;  %9361 = vmatmul.msk.f32.gmra.mxu3 %vm217_vm1, %v704_v18  ;;  %v193_v18 = vld [vmem:[#allocation5 + $0xc8] sm:$0xff] }
  0x6f   :  { %243 = vst.msk [vmem:[#allocation2 + $0xf9] sm:$0xff] %vm217_vm1, %v193_v18  ;;  %v279_v18 = vld [vmem:[#allocation2 + $0x118] sm:$0xff] }
  0x75   :  { %9266 = vmatmul.msk.f32.gmra.mxu0 %vm217_vm1, %v258_v21  ;;  %9298 = vmatmul.msk.f32.gmra.mxu1 %vm217_vm1, %v258_v21 }
  0x76   :  { %9330 = vmatmul.msk.f32.gmra.mxu2 %vm217_vm1, %v705_v22  ;;  %9362 = vmatmul.msk.f32.gmra.mxu3 %vm217_vm1, %v705_v22  ;;  %v276_v49 = vld [vmem:[#allocation2 + $0xf8] sm:$0xff] }
  0x77   :  { %v723_v52 = vld [vmem:[#allocation2 + $0xf9] sm:$0xff] }
  0x7d   :  { %9267 = vmatmul.msk.f32.gmra.mxu0 %vm217_vm1, %v259_v25  ;;  %9299 = vmatmul.msk.f32.gmra.mxu1 %vm217_vm1, %v259_v25  ;;  %v194_v25 = vld [vmem:[#allocation5 + $0xd0] sm:$0xff] }
  0x7e   :  { %9331 = vmatmul.msk.f32.gmra.mxu2 %vm217_vm1, %v706_v26  ;;  %9363 = vmatmul.msk.f32.gmra.mxu3 %vm217_vm1, %v706_v26  ;;  %244 = vst.msk [vmem:[#allocation2 + $0x101] sm:$0xff] %vm217_vm1, %v194_v25 }
  0x85   :  { %9268 = vmatmul.msk.f32.gmra.mxu0 %vm217_vm1, %v260_v28  ;;  %9300 = vmatmul.msk.f32.gmra.mxu1 %vm217_vm1, %v260_v28  ;;  %v273_v28 = vld [vmem:[#allocation2 + $0xd8] sm:$0xff]  ;;  %v278_v8 = vld [vmem:[#allocation2 + $0x108] sm:$0xff] }
  0x86   :  { %9332 = vmatmul.msk.f32.gmra.mxu2 %vm217_vm1, %v707_v29  ;;  %9364 = vmatmul.msk.f32.gmra.mxu3 %vm217_vm1, %v707_v29  ;;  %v720_v29 = vld [vmem:[#allocation2 + $0xd9] sm:$0xff] }
  0x8d   :  { %9269 = vmatmul.msk.f32.gmra.mxu0 %vm217_vm1, %v261_v33  ;;  %9301 = vmatmul.msk.f32.gmra.mxu1 %vm217_vm1, %v261_v33 }
  0x8e   :  { %9333 = vmatmul.msk.f32.gmra.mxu2 %vm217_vm1, %v708_v34  ;;  %9365 = vmatmul.msk.f32.gmra.mxu3 %vm217_vm1, %v708_v34 }
  0x95   :  { %9270 = vmatmul.msk.f32.gmra.mxu0 %vm217_vm1, %v262_v36  ;;  %9302 = vmatmul.msk.f32.gmra.mxu1 %vm217_vm1, %v262_v36  ;;  %v721_v36 = vld [vmem:[#allocation2 + $0xe1] sm:$0xff] }
  0x96   :  { %9334 = vmatmul.msk.f32.gmra.mxu2 %vm217_vm1, %v709_v37  ;;  %9366 = vmatmul.msk.f32.gmra.mxu3 %vm217_vm1, %v709_v37  ;;  %v1177_v37 = vld [vmem:[#allocation8 + $0x198] sm:$0xff] }
  0x97   :  { %1421 = vmatpush.msrb.mxu1 %v1177_v37 }
  0x99   :  { %1422 = vmatpush.msrb.mxu1 %v1175_v59 }
  0x9d   :  { %9271 = vmatmul.msk.f32.gmra.mxu0 %vm217_vm1, %v263_v39  ;;  %9303 = vmatmul.msk.f32.gmra.mxu1 %vm217_vm1, %v263_v39  ;;  %v1176_v39 = vld [vmem:[#allocation8 + $0x190] sm:$0xff] }
  0x9e   :  { %9335 = vmatmul.msk.f32.gmra.mxu2 %vm217_vm1, %v710_v40  ;;  %9367 = vmatmul.msk.f32.gmra.mxu3 %vm217_vm1, %v710_v40 }
  0x9f   :  { %1308 = vmatpush.msrb.mxu0 %v1176_v39  ;;  %v728_v39 = vld [vmem:[#allocation2 + $0x129] sm:$0xff] }
  0xa5   :  { %9272 = vmatmul.msk.f32.gmra.mxu0 %vm217_vm1, %v264_v44  ;;  %9304 = vmatmul.msk.f32.gmra.mxu1 %vm217_vm1, %v264_v44  ;;  %v275_v44 = vld [vmem:[#allocation2 + $0xf0] sm:$0xff] }
  0xa6   :  { %9336 = vmatmul.msk.f32.gmra.mxu2 %vm217_vm1, %v711_v45  ;;  %9368 = vmatmul.msk.f32.gmra.mxu3 %vm217_vm1, %v711_v45  ;;  %v722_v45 = vld [vmem:[#allocation2 + $0xf1] sm:$0xff] }
  0xad   :  { %9273 = vmatmul.msk.f32.gmra.mxu0 %vm217_vm1, %v265_v47  ;;  %9305 = vmatmul.msk.f32.gmra.mxu1 %vm217_vm1, %v265_v47 }
  0xae   :  { %9337 = vmatmul.msk.f32.gmra.mxu2 %vm217_vm1, %v712_v48  ;;  %9369 = vmatmul.msk.f32.gmra.mxu3 %vm217_vm1, %v712_v48 }
  0xb5   :  { %9274 = vmatmul.msk.f32.gmra.mxu0 %vm217_vm1, %v266_v50  ;;  %9306 = vmatmul.msk.f32.gmra.mxu1 %vm217_vm1, %v266_v50 }
  0xb6   :  { %9338 = vmatmul.msk.f32.gmra.mxu2 %vm217_vm1, %v713_v51  ;;  %9370 = vmatmul.msk.f32.gmra.mxu3 %vm217_vm1, %v713_v51 }
  0xba   :  { %v10350_v55 = vpop.f32.mrf.mxu0  ;;  %v10352_v56 = vpop.f32.mrf.mxu1 }
  0xbd   :  { %9275 = vmatmul.msk.f32.gmra.mxu0 %vm217_vm1, %v267_v57  ;;  %9307 = vmatmul.msk.f32.gmra.mxu1 %vm217_vm1, %v267_v57 }
  0xbe   :  { %9339 = vmatmul.msk.f32.gmra.mxu2 %vm217_vm1, %v714_v58  ;;  %9371 = vmatmul.msk.f32.gmra.mxu3 %vm217_vm1, %v714_v58  ;;  %v277_v58 = vld [vmem:[#allocation2 + $0x100] sm:$0xff] }
  0xc1   :  { %v10413_v31 = vpop.f32.mrf.mxu2  ;;  %v10415_v32 = vpop.f32.mrf.mxu3 }
  0xc2   :  { %v10359_v60 = vpop.f32.mrf.mxu0  ;;  %v10361_v61 = vpop.f32.mrf.mxu1 }
  0xc5   :  { %9276 = vmatmul.msk.f32.gmra.mxu0 %vm217_vm1, %v268_v62  ;;  %9308 = vmatmul.msk.f32.gmra.mxu1 %vm217_vm1, %v268_v62  ;;  %v724_v62 = vld [vmem:[#allocation2 + $0x101] sm:$0xff] }
  0xc6   :  { %9340 = vmatmul.msk.f32.gmra.mxu2 %vm217_vm1, %v715_v63  ;;  %9372 = vmatmul.msk.f32.gmra.mxu3 %vm217_vm1, %v715_v63  ;;  %v1174_v63 = vld [vmem:[#allocation8 + $0x180] sm:$0xff] }
  0xc7   :  { %1309 = vmatpush.msrb.mxu0 %v1174_v63 }
  0xc9   :  { %v10426_v40 = vpop.f32.mrf.mxu2  ;;  %v10428_v41 = vpop.f32.mrf.mxu3 }
  0xca   :  { %v10368_v2 = vpop.f32.mrf.mxu0  ;;  %v10370_v3 = vpop.f32.mrf.mxu1 }
  0xcd   :  { %9277 = vmatmul.msk.f32.gmra.mxu0 %vm217_vm1, %v269_v4  ;;  %9309 = vmatmul.msk.f32.gmra.mxu1 %vm217_vm1, %v269_v4 }
  0xce   :  { %9341 = vmatmul.msk.f32.gmra.mxu2 %vm217_vm1, %v716_v6  ;;  %9373 = vmatmul.msk.f32.gmra.mxu3 %vm217_vm1, %v716_v6 }
  0xd1   :  { %v10443_v50 = vpop.f32.mrf.mxu2  ;;  %v10445_v51 = vpop.f32.mrf.mxu3 }
  0xd2   :  { %v10377_v9 = vpop.f32.mrf.mxu0  ;;  %v10379_v10 = vpop.f32.mrf.mxu1 }
  0xd5   :  { %9278 = vmatmul.msk.f32.gmra.mxu0 %vm217_vm1, %v270_v11  ;;  %9310 = vmatmul.msk.f32.gmra.mxu1 %vm217_vm1, %v270_v11  ;;  %v725_v11 = vld [vmem:[#allocation2 + $0x109] sm:$0xff] }
  0xd6   :  { %9342 = vmatmul.msk.f32.gmra.mxu2 %vm217_vm1, %v717_v12  ;;  %9374 = vmatmul.msk.f32.gmra.mxu3 %vm217_vm1, %v717_v12 }
  0xd9   :  { %v10456_v1 = vpop.f32.mrf.mxu2  ;;  %v10458_v4 = vpop.f32.mrf.mxu3 }
  0xda   :  { %v10386_v14 = vpop.f32.mrf.mxu0  ;;  %v10388_v15 = vpop.f32.mrf.mxu1 }
  0xdd   :  { %9279 = vmatmul.msk.f32.gmra.mxu0 %vm217_vm1, %v271_v16  ;;  %9311 = vmatmul.msk.f32.gmra.mxu1 %vm217_vm1, %v271_v16 }
  0xde   :  { %9343 = vmatmul.msk.f32.gmra.mxu2 %vm217_vm1, %v718_v17  ;;  %9375 = vmatmul.msk.f32.gmra.mxu3 %vm217_vm1, %v718_v17 }
  0xe1   :  { %v10473_v12 = vpop.f32.mrf.mxu2  ;;  %v10475_v13 = vpop.f32.mrf.mxu3 }
  0xe2   :  { %v10395_v21 = vpop.f32.mrf.mxu0  ;;  %v10397_v22 = vpop.f32.mrf.mxu1 }
  0xe5   :  { %9280 = vmatmul.msk.f32.gmra.mxu0 %vm217_vm1, %v272_v23  ;;  %9312 = vmatmul.msk.f32.gmra.mxu1 %vm217_vm1, %v272_v23 }
  0xe6   :  { %9344 = vmatmul.msk.f32.gmra.mxu2 %vm217_vm1, %v719_v24  ;;  %9376 = vmatmul.msk.f32.gmra.mxu3 %vm217_vm1, %v719_v24 }
  0xe9   :  { %v10485_v20 = vpop.f32.mrf.mxu2  ;;  %v10487_v23 = vpop.f32.mrf.mxu3 }
  0xea   :  { %v10404_v26 = vpop.f32.mrf.mxu0  ;;  %v10406_v27 = vpop.f32.mrf.mxu1 }
  0xed   :  { %9281 = vmatmul.msk.f32.gmra.mxu0 %vm217_vm1, %v273_v28  ;;  %9313 = vmatmul.msk.f32.gmra.mxu1 %vm217_vm1, %v273_v28  ;;  %v280_v28 = vld [vmem:[#allocation2 + $0x120] sm:$0xff] }
  0xee   :  { %9345 = vmatmul.msk.f32.gmra.mxu2 %vm217_vm1, %v720_v29  ;;  %9377 = vmatmul.msk.f32.gmra.mxu3 %vm217_vm1, %v720_v29  ;;  %v727_v29 = vld [vmem:[#allocation2 + $0x121] sm:$0xff] }
  0xf1   :  { %v10501_v37 = vpop.f32.mrf.mxu2  ;;  %v10503_v38 = vpop.f32.mrf.mxu3 }
  0xf2   :  { %v10417_v33 = vpop.f32.mrf.mxu0  ;;  %v10419_v34 = vpop.f32.mrf.mxu1 }
  0xf5   :  { %9282 = vmatmul.msk.f32.gmra.mxu0 %vm217_vm1, %v274_v35  ;;  %9314 = vmatmul.msk.f32.gmra.mxu1 %vm217_vm1, %v274_v35 }
  0xf6   :  { %9346 = vmatmul.msk.f32.gmra.mxu2 %vm217_vm1, %v721_v36  ;;  %9378 = vmatmul.msk.f32.gmra.mxu3 %vm217_vm1, %v721_v36  ;;  %v281_v36 = vld [vmem:[#allocation2 + $0x128] sm:$0xff] }
  0xf9   :  { %v10515_v53 = vpop.f32.mrf.mxu3 }
  0xfa   :  { %v10430_v42 = vpop.f32.mrf.mxu0  ;;  %v10432_v43 = vpop.f32.mrf.mxu1 }
  0xfd   :  { %9283 = vmatmul.msk.f32.gmra.mxu0 %vm217_vm1, %v275_v44  ;;  %9315 = vmatmul.msk.f32.gmra.mxu1 %vm217_vm1, %v275_v44 }
  0xfe   :  { %9347 = vmatmul.msk.f32.gmra.mxu2 %vm217_vm1, %v722_v45  ;;  %9379 = vmatmul.msk.f32.gmra.mxu3 %vm217_vm1, %v722_v45 }
 0x101   :  { %v10529_v5 = vpop.f32.mrf.mxu3 }
 0x102   :  { %v10439_v47 = vpop.f32.mrf.mxu0  ;;  %v10441_v48 = vpop.f32.mrf.mxu1 }
 0x105   :  { %9284 = vmatmul.msk.f32.gmra.mxu0 %vm217_vm1, %v276_v49  ;;  %9316 = vmatmul.msk.f32.gmra.mxu1 %vm217_vm1, %v276_v49  ;;  %v729_v49 = vld [vmem:[#allocation2 + $0x131] sm:$0xff] }
 0x106   :  { %9348 = vmatmul.msk.f32.gmra.mxu2 %vm217_vm1, %v723_v52  ;;  %9380 = vmatmul.msk.f32.gmra.mxu3 %vm217_vm1, %v723_v52  ;;  %v10513_v52 = vpop.f32.mrf.mxu2 }
 0x10a   :  { %v10452_v54 = vpop.f32.mrf.mxu0  ;;  %v10454_v57 = vpop.f32.mrf.mxu1 }
 0x10d   :  { %9285 = vmatmul.msk.f32.gmra.mxu0 %vm217_vm1, %v277_v58  ;;  %9317 = vmatmul.msk.f32.gmra.mxu1 %vm217_vm1, %v277_v58 }
 0x10e   :  { %9349 = vmatmul.msk.f32.gmra.mxu2 %vm217_vm1, %v724_v62  ;;  %9381 = vmatmul.msk.f32.gmra.mxu3 %vm217_vm1, %v724_v62  ;;  %v1141_v62 = vld [vmem:[#allocation2 + $0x2] sm:$0xff]  ;;  %v10527_v63 = vpop.f32.mrf.mxu2 }
 0x112   :  { %v10465_v6 = vpop.f32.mrf.mxu0  ;;  %v10467_v7 = vpop.f32.mrf.mxu1 }
 0x115   :  { %9286 = vmatmul.msk.f32.gmra.mxu0 %vm217_vm1, %v278_v8  ;;  %9318 = vmatmul.msk.f32.gmra.mxu1 %vm217_vm1, %v278_v8 }
 0x116   :  { %9350 = vmatmul.msk.f32.gmra.mxu2 %vm217_vm1, %v725_v11  ;;  %9382 = vmatmul.msk.f32.gmra.mxu3 %vm217_vm1, %v725_v11 }
 0x11a   :  { %v10477_v16 = vpop.f32.mrf.mxu0  ;;  %v10479_v17 = vpop.f32.mrf.mxu1 }
 0x11b   :  { %15752 = vst [vmem:[#allocation26_spill] sm:$0xff] %v10479_v17 }
 0x11d   :  { %9287 = vmatmul.msk.f32.gmra.mxu0 %vm217_vm1, %v279_v18  ;;  %9319 = vmatmul.msk.f32.gmra.mxu1 %vm217_vm1, %v279_v18  ;;  %v1142_v18 = vld [vmem:[#allocation2 + $0xa] sm:$0xff] }
 0x11e   :  { %9351 = vmatmul.msk.f32.gmra.mxu2 %vm217_vm1, %v726_v19  ;;  %9383 = vmatmul.msk.f32.gmra.mxu3 %vm217_vm1, %v726_v19  ;;  %v10537_v19 = vpop.f32.mrf.mxu2 }
 0x122   :  { %v10489_v24 = vpop.f32.mrf.mxu0  ;;  %v10491_v25 = vpop.f32.mrf.mxu1 }
 0x123   :  { %15753 = vst [vmem:[#allocation27_spill] sm:$0xff] %v10489_v24 }
 0x124   :  { %15754 = vst [vmem:[#allocation28_spill] sm:$0xff] %v10491_v25  ;;  %v1157_v25 = vld [vmem:[#allocation2 + $0xa2] sm:$0xff] }
 0x125   :  { %9288 = vmatmul.msk.f32.gmra.mxu0 %vm217_vm1, %v280_v28  ;;  %9320 = vmatmul.msk.f32.gmra.mxu1 %vm217_vm1, %v280_v28  ;;  %v10539_v28 = vpop.f32.mrf.mxu3 }
 0x126   :  { %9352 = vmatmul.msk.f32.gmra.mxu2 %vm217_vm1, %v727_v29  ;;  %9384 = vmatmul.msk.f32.gmra.mxu3 %vm217_vm1, %v727_v29  ;;  %v10551_v0 = vpop.f32.mrf.mxu2 }
 0x12a   :  { %v10497_v30 = vpop.f32.mrf.mxu0  ;;  %v10499_v35 = vpop.f32.mrf.mxu1 }
 0x12b   :  { %15755 = vst [vmem:[#allocation29_spill] sm:$0xff] %v10497_v30 }
 0x12c   :  { %15756 = vst [vmem:[#allocation30_spill] sm:$0xff] %v10499_v35 }
 0x12d   :  { %9289 = vmatmul.msk.f32.gmra.mxu0 %vm217_vm1, %v281_v36  ;;  %9321 = vmatmul.msk.f32.gmra.mxu1 %vm217_vm1, %v281_v36 }
 0x12e   :  { %9353 = vmatmul.msk.f32.gmra.mxu2 %vm217_vm1, %v728_v39  ;;  %9385 = vmatmul.msk.f32.gmra.mxu3 %vm217_vm1, %v728_v39  ;;  %v1143_v39 = vld [vmem:[#allocation2 + $0x12] sm:$0xff] }
 0x132   :  { %v10509_v44 = vpop.f32.mrf.mxu0  ;;  %v10511_v45 = vpop.f32.mrf.mxu1 }
 0x133   :  { %15757 = vst [vmem:[#allocation31_spill] sm:$0xff] %v10509_v44  ;;  %v1148_v44 = vld [vmem:[#allocation2 + $0x42] sm:$0xff] }
 0x134   :  { %15758 = vst [vmem:[#allocation32_spill] sm:$0xff] %v10511_v45  ;;  %v1147_v45 = vld [vmem:[#allocation2 + $0x3a] sm:$0xff] }
 0x135   :  { %9290 = vmatmul.msk.f32.gmra.mxu0 %vm217_vm1, %v282_v46  ;;  %9322 = vmatmul.msk.f32.gmra.mxu1 %vm217_vm1, %v282_v46 }
 0x136   :  { %9354 = vmatmul.msk.f32.gmra.mxu2 %vm217_vm1, %v729_v49  ;;  %9386 = vmatmul.msk.f32.gmra.mxu3 %vm217_vm1, %v729_v49 }
 0x13a   :  { %v10521_v58 = vpop.f32.mrf.mxu0  ;;  %v10523_v59 = vpop.f32.mrf.mxu1 }
 0x13b   :  { %15759 = vst [vmem:[#allocation33_spill] sm:$0xff] %v10521_v58 }
 0x13c   :  { %15760 = vst [vmem:[#allocation34_spill] sm:$0xff] %v10523_v59  ;;  %v1146_v59 = vld [vmem:[#allocation2 + $0x32] sm:$0xff] }
 0x13d   :  { %9387 = vmatmul.msk.f32.vlgmr.msrb.gmra.mxu0 %vm217_vm1, %v1141_v62  ;;  %9419 = vmatmul.msk.f32.vlgmr.msrb.gmra.mxu1 %vm217_vm1, %v1141_v62  ;;  %v1144_v62 = vld [vmem:[#allocation2 + $0x1a] sm:$0xff] }
 0x142   :  { %v10531_v8 = vpop.f32.mrf.mxu0  ;;  %v10533_v11 = vpop.f32.mrf.mxu1 }
 0x143   :  { %15761 = vst [vmem:[#allocation35_spill] sm:$0xff] %v10531_v8  ;;  %v10561_v8 = vpop.f32.mrf.mxu2 }
 0x144   :  { %15762 = vst [vmem:[#allocation36_spill] sm:$0xff] %v10533_v11  ;;  %v1145_v11 = vld [vmem:[#allocation2 + $0x2a] sm:$0xff] }
 0x145   :  { %9388 = vmatmul.msk.f32.gmra.mxu0 %vm217_vm1, %v1142_v18  ;;  %9420 = vmatmul.msk.f32.gmra.mxu1 %vm217_vm1, %v1142_v18  ;;  %v10553_v18 = vpop.f32.mrf.mxu3 }
 0x14a   :  { %v10541_v29 = vpop.f32.mrf.mxu0  ;;  %v10543_v36 = vpop.f32.mrf.mxu1 }
 0x14b   :  { %15763 = vst [vmem:[#allocation37_spill] sm:$0xff] %v10541_v29 }
 0x14c   :  { %15764 = vst [vmem:[#allocation38_spill] sm:$0xff] %v10543_v36 }
 0x14d   :  { %9389 = vmatmul.msk.f32.gmra.mxu0 %vm217_vm1, %v1143_v39  ;;  %9421 = vmatmul.msk.f32.gmra.mxu1 %vm217_vm1, %v1143_v39  ;;  %v10563_v39 = vpop.f32.mrf.mxu3 }
 0x152   :  { %v10547_v46 = vpop.f32.mrf.mxu0  ;;  %v10549_v49 = vpop.f32.mrf.mxu1 }
 0x153   :  { %15765 = vst [vmem:[#allocation39_spill] sm:$0xff] %v10547_v46 }
 0x154   :  { %15766 = vst [vmem:[#allocation40_spill] sm:$0xff] %v10549_v49 }
 0x155   :  { %9390 = vmatmul.msk.f32.gmra.mxu0 %vm217_vm1, %v1144_v62  ;;  %9422 = vmatmul.msk.f32.gmra.mxu1 %vm217_vm1, %v1144_v62  ;;  %v10573_v62 = vpop.f32.mrf.mxu2 }
 0x156   :  { %15771 = vst [vmem:[#allocation45_spill] sm:$0xff] %v10573_v62 }
 0x15a   :  { %v10557_v29 = vpop.f32.mrf.mxu0  ;;  %v10559_v36 = vpop.f32.mrf.mxu1 }
 0x15b   :  { %15767 = vst [vmem:[#allocation41_spill] sm:$0xff] %v10557_v29 }
 0x15c   :  { %15768 = vst [vmem:[#allocation42_spill] sm:$0xff] %v10559_v36  ;;  %v10575_v36 = vpop.f32.mrf.mxu3 }
 0x15d   :  { %9391 = vmatmul.msk.f32.gmra.mxu0 %vm217_vm1, %v1145_v11  ;;  %9423 = vmatmul.msk.f32.gmra.mxu1 %vm217_vm1, %v1145_v11  ;;  %15772 = vst [vmem:[#allocation46_spill] sm:$0xff] %v10575_v36  ;;  %v10583_v11 = vpop.f32.mrf.mxu2  ;;  %v1149_v36 = vld [vmem:[#allocation2 + $0x52] sm:$0xff] }
 0x15e   :  { %15775 = vst [vmem:[#allocation49_spill] sm:$0xff] %v10583_v11 }
 0x162   :  { %v10567_v49 = vpop.f32.mrf.mxu0  ;;  %v10569_v46 = vpop.f32.mrf.mxu1 }
 0x163   :  { %15769 = vst [vmem:[#allocation43_spill] sm:$0xff] %v10567_v49 }
 0x164   :  { %15770 = vst [vmem:[#allocation44_spill] sm:$0xff] %v10569_v46  ;;  %v10585_v46 = vpop.f32.mrf.mxu3 }
 0x165   :  { %9392 = vmatmul.msk.f32.gmra.mxu0 %vm217_vm1, %v1146_v59  ;;  %9424 = vmatmul.msk.f32.gmra.mxu1 %vm217_vm1, %v1146_v59  ;;  %15776 = vst [vmem:[#allocation50_spill] sm:$0xff] %v10585_v46  ;;  %v10597_v35 = vpop.f32.mrf.mxu2  ;;  %v1150_v46 = vld [vmem:[#allocation2 + $0x5a] sm:$0xff] }
 0x166   :  { %15781 = vst [vmem:[#allocation55_spill] sm:$0xff] %v10597_v35 }
 0x16a   :  { %v10577_v29 = vpop.f32.mrf.mxu0  ;;  %v10579_v58 = vpop.f32.mrf.mxu1 }
 0x16b   :  { %15773 = vst [vmem:[#allocation47_spill] sm:$0xff] %v10577_v29 }
 0x16c   :  { %15774 = vst [vmem:[#allocation48_spill] sm:$0xff] %v10579_v58 }
 0x16d   :  { %9393 = vmatmul.msk.f32.gmra.mxu0 %vm217_vm1, %v1147_v45  ;;  %9425 = vmatmul.msk.f32.gmra.mxu1 %vm217_vm1, %v1147_v45  ;;  %v10599_v45 = vpop.f32.mrf.mxu3  ;;  %v10607_v11 = vpop.f32.mrf.mxu2 }
 0x16e   :  { %15782 = vst [vmem:[#allocation56_spill] sm:$0xff] %v10599_v45  ;;  %v1151_v45 = vld [vmem:[#allocation2 + $0x62] sm:$0xff] }
 0x16f   :  { %15785 = vst [vmem:[#allocation59_spill] sm:$0xff] %v10607_v11  ;;  %v1152_v11 = vld [vmem:[#allocation2 + $0x6a] sm:$0xff] }
 0x172   :  { %v10587_v49 = vpop.f32.mrf.mxu0  ;;  %v10589_v59 = vpop.f32.mrf.mxu1 }
 0x173   :  { %15777 = vst [vmem:[#allocation51_spill] sm:$0xff] %v10587_v49 }
 0x174   :  { %15778 = vst [vmem:[#allocation52_spill] sm:$0xff] %v10589_v59 }
 0x175   :  { %9394 = vmatmul.msk.f32.gmra.mxu0 %vm217_vm1, %v1148_v44  ;;  %9426 = vmatmul.msk.f32.gmra.mxu1 %vm217_vm1, %v1148_v44  ;;  %v10609_v44 = vpop.f32.mrf.mxu3 }
 0x176   :  { %15786 = vst [vmem:[#allocation60_spill] sm:$0xff] %v10609_v44 }
 0x17a   :  { %v10593_v29 = vpop.f32.mrf.mxu0  ;;  %v10595_v58 = vpop.f32.mrf.mxu1 }
 0x17b   :  { %15779 = vst [vmem:[#allocation53_spill] sm:$0xff] %v10593_v29 }
 0x17c   :  { %15780 = vst [vmem:[#allocation54_spill] sm:$0xff] %v10595_v58 }
 0x17d   :  { %9395 = vmatmul.msk.f32.gmra.mxu0 %vm217_vm1, %v1149_v36  ;;  %9427 = vmatmul.msk.f32.gmra.mxu1 %vm217_vm1, %v1149_v36  ;;  %v10619_v36 = vpop.f32.mrf.mxu2 }
 0x17e   :  { %15789 = vst [vmem:[#allocation63_spill] sm:$0xff] %v10619_v36  ;;  %v1153_v36 = vld [vmem:[#allocation2 + $0x7a] sm:$0xff] }
 0x182   :  { %v10603_v49 = vpop.f32.mrf.mxu0  ;;  %v10605_v59 = vpop.f32.mrf.mxu1 }
 0x183   :  { %15783 = vst [vmem:[#allocation57_spill] sm:$0xff] %v10603_v49 }
 0x184   :  { %15784 = vst [vmem:[#allocation58_spill] sm:$0xff] %v10605_v59  ;;  %v10621_v59 = vpop.f32.mrf.mxu3 }
 0x185   :  { %9396 = vmatmul.msk.f32.gmra.mxu0 %vm217_vm1, %v1150_v46  ;;  %9428 = vmatmul.msk.f32.gmra.mxu1 %vm217_vm1, %v1150_v46  ;;  %15790 = vst [vmem:[#allocation64_spill] sm:$0xff] %v10621_v59  ;;  %v10629_v46 = vpop.f32.mrf.mxu2  ;;  %v1154_v59 = vld [vmem:[#allocation2 + $0x82] sm:$0xff] }
 0x186   :  { %15793 = vst [vmem:[#allocation67_spill] sm:$0xff] %v10629_v46 }
 0x18a   :  { %v10613_v58 = vpop.f32.mrf.mxu0  ;;  %v10615_v29 = vpop.f32.mrf.mxu1 }
 0x18b   :  { %15787 = vst [vmem:[#allocation61_spill] sm:$0xff] %v10613_v58 }
 0x18c   :  { %15788 = vst [vmem:[#allocation62_spill] sm:$0xff] %v10615_v29  ;;  %v10631_v29 = vpop.f32.mrf.mxu3 }
 0x18d   :  { %9397 = vmatmul.msk.f32.gmra.mxu0 %vm217_vm1, %v1151_v45  ;;  %9429 = vmatmul.msk.f32.gmra.mxu1 %vm217_vm1, %v1151_v45  ;;  %15794 = vst [vmem:[#allocation68_spill] sm:$0xff] %v10631_v29  ;;  %v10643_v35 = vpop.f32.mrf.mxu2  ;;  %v1155_v29 = vld [vmem:[#allocation2 + $0x8a] sm:$0xff] }
 0x18e   :  { %15799 = vst [vmem:[#allocation73_spill] sm:$0xff] %v10643_v35  ;;  %v1156_v35 = vld [vmem:[#allocation2 + $0x92] sm:$0xff] }
 0x192   :  { %v10623_v49 = vpop.f32.mrf.mxu0  ;;  %v10625_v44 = vpop.f32.mrf.mxu1 }
 0x193   :  { %15791 = vst [vmem:[#allocation65_spill] sm:$0xff] %v10623_v49 }
 0x194   :  { %15792 = vst [vmem:[#allocation66_spill] sm:$0xff] %v10625_v44 }
 0x195   :  { %9398 = vmatmul.msk.f32.gmra.mxu0 %vm217_vm1, %v1152_v11  ;;  %9430 = vmatmul.msk.f32.gmra.mxu1 %vm217_vm1, %v1152_v11  ;;  %v10645_v11 = vpop.f32.mrf.mxu3  ;;  %v10653_v46 = vpop.f32.mrf.mxu2 }
 0x196   :  { %15800 = vst [vmem:[#allocation74_spill] sm:$0xff] %v10645_v11 }
 0x197   :  { %15803 = vst [vmem:[#allocation77_spill] sm:$0xff] %v10653_v46 }
 0x19a   :  { %v10633_v58 = vpop.f32.mrf.mxu0  ;;  %v10635_v45 = vpop.f32.mrf.mxu1 }
 0x19b   :  { %15795 = vst [vmem:[#allocation69_spill] sm:$0xff] %v10633_v58 }
 0x19c   :  { %15796 = vst [vmem:[#allocation70_spill] sm:$0xff] %v10635_v45 }
 0x19d   :  { %9399 = vmatmul.msk.f32.gmra.mxu0 %vm217_vm1, %v1153_v36  ;;  %9431 = vmatmul.msk.f32.gmra.mxu1 %vm217_vm1, %v1153_v36  ;;  %v10655_v36 = vpop.f32.mrf.mxu3 }
 0x19e   :  { %15804 = vst [vmem:[#allocation78_spill] sm:$0xff] %v10655_v36  ;;  %v10673_v36 = vpop.f32.mrf.mxu2 }
 0x19f   :  { %15807 = vst [vmem:[#allocation81_spill] sm:$0xff] %v10673_v36 }
 0x1a2   :  { %v10639_v49 = vpop.f32.mrf.mxu0  ;;  %v10641_v44 = vpop.f32.mrf.mxu1 }
 0x1a3   :  { %15797 = vst [vmem:[#allocation71_spill] sm:$0xff] %v10639_v49 }
 0x1a4   :  { %15798 = vst [vmem:[#allocation72_spill] sm:$0xff] %v10641_v44  ;;  %v250_v44 = vld [vmem:[#allocation10] sm:$0x3] }
 0x1a5   :  { %9400 = vmatmul.msk.f32.gmra.mxu0 %vm217_vm1, %v1154_v59  ;;  %9432 = vmatmul.msk.f32.gmra.mxu1 %vm217_vm1, %v1154_v59  ;;  %v10663_v59 = vperm.slane %v250_v44, 0 }
 0x1a7   :  { %v638_v36 = vadd.f32 %v10663_v59, %v10368_v2 }
 0x1aa   :  { %v10649_v58 = vpop.f32.mrf.mxu0  ;;  %v10651_v45 = vpop.f32.mrf.mxu1 }
 0x1ab   :  { %15801 = vst [vmem:[#allocation75_spill] sm:$0xff] %v10649_v58  ;;  %v10665_v58 = vperm.slane %v250_v44, 1 }
 0x1ac   :  { %15802 = vst [vmem:[#allocation76_spill] sm:$0xff] %v10651_v45  ;;  %v634_v45 = vadd.f32 %v10663_v59, %v10350_v55 }
 0x1ad   :  { %9401 = vmatmul.msk.f32.gmra.mxu0 %vm217_vm1, %v1155_v29  ;;  %9433 = vmatmul.msk.f32.gmra.mxu1 %vm217_vm1, %v1155_v29  ;;  %v635_v29 = vadd.f32 %v10665_v58, %v10352_v56  ;;  %v637_v55 = vadd.f32 %v10665_v58, %v10361_v61 }
 0x1af   :  { %v1078_v46 = vadd.f32 %v10415_v32, %v635_v29 }
 0x1b2   :  { %v10659_v49 = vpop.f32.mrf.mxu0  ;;  %v10661_v11 = vpop.f32.mrf.mxu1 }
 0x1b3   :  { %15805 = vst [vmem:[#allocation79_spill] sm:$0xff] %v10659_v49  ;;  %v10675_v49 = vpop.f32.mrf.mxu3 }
 0x1b4   :  { %15806 = vst [vmem:[#allocation80_spill] sm:$0xff] %v10661_v11  ;;  %v1077_v11 = vadd.f32 %v10413_v31, %v634_v45 }
 0x1b5   :  { %9402 = vmatmul.msk.f32.gmra.mxu0 %vm217_vm1, %v1156_v35  ;;  %9434 = vmatmul.msk.f32.gmra.mxu1 %vm217_vm1, %v1156_v35  ;;  %15808 = vst [vmem:[#allocation82_spill] sm:$0xff] %v10675_v49  ;;  %v636_v35 = vadd.f32 %v10663_v59, %v10359_v60 }
 0x1b7   :  { %v1079_v45 = vadd.f32 %v10426_v40, %v636_v35 }
 0x1ba   :  { %v1311_v44 = vpop.f32.mrf.mxu0  ;;  %v1424_v30 = vpop.f32.mrf.mxu1 }
 0x1bb   :  { %v1520_v24 = vadd.f32 %v1311_v44, %v1077_v11  ;;  %v1521_v62 = vadd.f32 %v1424_v30, %v1078_v46  ;;  %v1080_v30 = vadd.f32 %v10428_v41, %v637_v55  ;;  %v10687_v46 = vpop.f32.mrf.mxu2  ;;  %v10689_v60 = vpop.f32.mrf.mxu3 }
 0x1bc   :  { %15809 = vst [vmem:[#allocation83_spill] sm:$0xff] %v10687_v46 }
 0x1bd   :  { %v1585_v56 = vmax.f32 %v1521_v62, 0.0  ;;  %9403 = vmatmul.msk.f32.gmra.mxu0 %vm217_vm1, %v1157_v25  ;;  %9435 = vmatmul.msk.f32.gmra.mxu1 %vm217_vm1, %v1157_v25  ;;  %v1584_v31 = vmax.f32 %v1520_v24, 0.0  ;;  %15810 = vst [vmem:[#allocation84_spill] sm:$0xff] %v10689_v60  ;;  %v1158_v24 = vld [vmem:[#allocation2 + $0xaa] sm:$0xff] }
 0x1bf   :  { %v1712_v32 = vrot.slane %v1585_v56, 6 }
 0x1c1   :  { %v1745_v61 = vsel %vm1744_vm2, %v1584_v31, %v1712_v32  ;;  %v1750_v62 = vsel %vm1749_vm3, %v1584_v31, %v1712_v32  ;;  %v1747_v25 = vsel %vm1746_vm4, %v1584_v31, %v1712_v32  ;;  %v1753_v11 = vsel %vm1752_vm5, %v1712_v32, %v1584_v31 }
 0x1c2   :  { %v1314_v29 = vpop.f32.mrf.mxu0  ;;  %v1427_v44 = vpop.f32.mrf.mxu1  ;;  %v9451_v56 = vrot.slane %v1745_v61, 9  ;;  %v1751_v49 = vrot.slane %v1750_v62, 4  ;;  %v1748_v46 = vrot.slane %v1747_v25, 2  ;;  %v639_v31 = vadd.f32 %v10665_v58, %v10370_v3 }
 0x1c3   :  { %v1522_v40 = vadd.f32 %v1314_v29, %v1079_v45  ;;  %v1523_v35 = vadd.f32 %v1427_v44, %v1080_v30  ;;  %v1754_v45 = vrot.slane %v1753_v11, 6  ;;  %v1081_v62 = vadd.f32 %v10443_v50, %v638_v36  ;;  %v10715_v50 = vpop.f32.mrf.mxu2 }
 0x1c4   :  { %v10695_v41 = vmax.f32 %v1745_v61, %v9451_v56  ;;  %v9453_v55 = vrot.slane %v1751_v49, 9  ;;  %v1082_v25 = vadd.f32 %v10445_v51, %v639_v31  ;;  %v9452_v2 = vrot.slane %v1748_v46, 9  ;;  %v1159_v56 = vld [vmem:[#allocation2 + $0xb2] sm:$0xff]  ;;  %v10717_v51 = vpop.f32.mrf.mxu3 }
 0x1c5   :  { %v1587_v60 = vmax.f32 %v1523_v35, 0.0  ;;  %9404 = vmatmul.msk.f32.gmra.mxu0 %vm217_vm1, %v1158_v24  ;;  %9436 = vmatmul.msk.f32.gmra.mxu1 %vm217_vm1, %v1158_v24  ;;  %v1586_v30 = vmax.f32 %v1522_v40, 0.0  ;;  %v9454_v40 = vrot.slane %v1754_v45, 9 }
 0x1c6   :  { %15811 = vst [vmem:[#allocation85_spill] sm:$0xff] %v10695_v41  ;;  %2740 = vrot.lane.b32.xlu0 %v10695_v41, %s10114_s11  ;;  %v10705_v32 = vmax.f32 %v1751_v49, %v9453_v55  ;;  %v10719_v55 = vmax.f32 %v1748_v46, %v9452_v2 }
 0x1c7   :  { %v1713_v61 = vrot.slane %v1587_v60, 6  ;;  %v10733_v46 = vmax.f32 %v1754_v45, %v9454_v40 }
 0x1c8   :  { %15812 = vst [vmem:[#allocation86_spill] sm:$0xff] %v10705_v32  ;;  %2744 = vrot.lane.b32.xlu1 %v10705_v32, %s10114_s11 }
 0x1c9   :  { %v1755_v29 = vsel %vm1744_vm2, %v1586_v30, %v1713_v61  ;;  %v1758_v3 = vsel %vm1749_vm3, %v1586_v30, %v1713_v61  ;;  %v1756_v44 = vsel %vm1746_vm4, %v1586_v30, %v1713_v61  ;;  %v1760_v49 = vsel %vm1752_vm5, %v1713_v61, %v1586_v30  ;;  %15813 = vst [vmem:[#allocation87_spill] sm:$0xff] %v10719_v55 }
 0x1ca   :  { %v1317_v24 = vpop.f32.mrf.mxu0  ;;  %v1430_v11 = vpop.f32.mrf.mxu1  ;;  %v9455_v60 = vrot.slane %v1755_v29, 9  ;;  %v1759_v32 = vrot.slane %v1758_v3, 4  ;;  %v1757_v41 = vrot.slane %v1756_v44, 2  ;;  %v640_v30 = vadd.f32 %v10663_v59, %v10377_v9  ;;  %15814 = vst [vmem:[#allocation88_spill] sm:$0xff] %v10733_v46 }
 0x1cb   :  { %v1524_v36 = vadd.f32 %v1317_v24, %v1081_v62  ;;  %v1525_v35 = vadd.f32 %v1430_v11, %v1082_v25  ;;  %v641_v61 = vadd.f32 %v10665_v58, %v10379_v10  ;;  %v1761_v62 = vrot.slane %v1760_v49, 6 }
 0x1cc   :  { %v10721_v31 = vmax.f32 %v1755_v29, %v9455_v60  ;;  %v1083_v29 = vadd.f32 %v10456_v1, %v640_v30  ;;  %v9457_v9 = vrot.slane %v1759_v32, 9  ;;  %v9456_v10 = vrot.slane %v1757_v41, 9  ;;  %v10749_v30 = vpop.f32.mrf.mxu2 }
 0x1cd   :  { %v1589_v17 = vmax.f32 %v1525_v35, 0.0  ;;  %9405 = vmatmul.msk.f32.gmra.mxu0 %vm217_vm1, %v1159_v56  ;;  %9437 = vmatmul.msk.f32.gmra.mxu1 %vm217_vm1, %v1159_v56  ;;  %v1588_v25 = vmax.f32 %v1524_v36, 0.0  ;;  %v1084_v3 = vadd.f32 %v10458_v4, %v641_v61  ;;  %v1160_v56 = vld [vmem:[#allocation2 + $0xba] sm:$0xff]  ;;  %v9458_v1 = vrot.slane %v1761_v62, 9  ;;  %v10751_v61 = vpop.f32.mrf.mxu3 }
 0x1ce   :  { %2742 = vrot.lane.b32.xlu0 %v10719_v55, %s10114_s11  ;;  %2748 = vrot.lane.b32.xlu2 %v10721_v31, %s10114_s11  ;;  %v10745_v40 = vmax.f32 %v1759_v32, %v9457_v9  ;;  %v10747_v36 = vmax.f32 %v1757_v41, %v9456_v10  ;;  %v15852_v55 = vld [vmem:[#allocation63_spill] sm:$0xff] }
 0x1cf   :  { %v1714_v2 = vrot.slane %v1589_v17, 6  ;;  %v10761_v41 = vmax.f32 %v1761_v62, %v9458_v1 }
 0x1d0   :  { %2746 = vrot.lane.b32.xlu1 %v10733_v46, %s10114_s11  ;;  %15815 = vst [vmem:[#allocation89_spill] sm:$0xff] %v10745_v40 }
 0x1d1   :  { %v1763_v44 = vsel %vm1746_vm4, %v1588_v25, %v1714_v2  ;;  %v1762_v24 = vsel %vm1744_vm2, %v1588_v25, %v1714_v2  ;;  %v1765_v11 = vsel %vm1749_vm3, %v1588_v25, %v1714_v2  ;;  %v10743_v45 = vsel %vm1752_vm5, %v1714_v2, %v1588_v25  ;;  %15816 = vst [vmem:[#allocation90_spill] sm:$0xff] %v10761_v41 }
 0x1d2   :  { %v1320_v49 = vpop.f32.mrf.mxu0  ;;  %v1433_v17 = vpop.f32.mrf.mxu1  ;;  %v1764_v35 = vrot.slane %v1763_v44, 2  ;;  %v642_v25 = vadd.f32 %v10663_v59, %v10386_v14  ;;  %v1766_v32 = vrot.slane %v1765_v11, 4  ;;  %v643_v2 = vadd.f32 %v10665_v58, %v10388_v15 }
 0x1d3   :  { %v1526_v60 = vadd.f32 %v1320_v49, %v1083_v29  ;;  %v1527_v4 = vadd.f32 %v1433_v17, %v1084_v3  ;;  %v9459_v10 = vrot.slane %v1762_v24, 9  ;;  %v1161_v49 = vld [vmem:[#allocation2 + $0xca] sm:$0xff] }
 0x1d4   :  { %v1085_v9 = vadd.f32 %v10473_v12, %v642_v25  ;;  %v9460_v14 = vrot.slane %v1764_v35, 9  ;;  %v1086_v44 = vadd.f32 %v10475_v13, %v643_v2  ;;  %v9461_v17 = vrot.slane %v1766_v32, 9 }
 0x1d5   :  { %v1591_v46 = vmax.f32 %v1527_v4, 0.0  ;;  %9406 = vmatmul.msk.f32.gmra.mxu0 %vm217_vm1, %v1160_v56  ;;  %9438 = vmatmul.msk.f32.gmra.mxu1 %vm217_vm1, %v1160_v56  ;;  %v10765_v29 = vmax.f32 %v1526_v60, 0.0  ;;  %v10786_v60 = vmax.f32 %v1762_v24, %v9459_v10  ;;  %v1768_v4 = vrot.slane %v10743_v45, 6 }
 0x1d6   :  { %2752 = vrot.lane.b32.xlu0 %v10745_v40, %s10114_s11  ;;  %2750 = vrot.lane.b32.xlu2 %v10747_v36, %s10114_s11  ;;  %v10784_v13 = vmax.f32 %v1764_v35, %v9460_v14  ;;  %v644_v2 = vadd.f32 %v10663_v59, %v10395_v21  ;;  %v10799_v24 = vmax.f32 %v1766_v32, %v9461_v17  ;;  %v10801_v35 = vpop.f32.mrf.mxu2 }
 0x1d7   :  { %v10767_v3 = vrot.slane %v1591_v46, 6  ;;  %15818 = vst [vmem:[#allocation92_spill] sm:$0xff] %v10786_v60 }
 0x1d8   :  { %2754 = vrot.lane.b32.xlu1 %v10761_v41, %s10114_s11  ;;  %15817 = vst [vmem:[#allocation91_spill] sm:$0xff] %v10784_v13  ;;  %v645_v41 = vadd.f32 %v10665_v58, %v10397_v22  ;;  %v1087_v21 = vadd.f32 %v10485_v20, %v644_v2  ;;  %v9462_v22 = vrot.slane %v1768_v4, 9  ;;  %v1162_v20 = vld [vmem:[#allocation2 + $0xd2] sm:$0xff] }
 0x1d9   :  { %v1769_v62 = vsel %vm1744_vm2, %v10765_v29, %v10767_v3  ;;  %v1770_v15 = vsel %vm1746_vm4, %v10765_v29, %v10767_v3  ;;  %v10782_v46 = vsel %vm1749_vm3, %v10765_v29, %v10767_v3  ;;  %15819 = vst [vmem:[#allocation93_spill] sm:$0xff] %v10799_v24 }
 0x1da   :  { %v1323_v12 = vpop.f32.mrf.mxu0  ;;  %v1436_v11 = vpop.f32.mrf.mxu1  ;;  %v1771_v45 = vrot.slane %v1770_v15, 2 }
 0x1db   :  { %v1528_v56 = vadd.f32 %v1323_v12, %v1085_v9  ;;  %v1529_v1 = vadd.f32 %v1436_v11, %v1086_v44  ;;  %v10803_v9 = vpop.f32.mrf.mxu3  ;;  %v1088_v44 = vadd.f32 %v10487_v23, %v645_v41  ;;  %v9463_v12 = vrot.slane %v1769_v62, 9 }
 0x1dd   :  { %v1593_v25 = vmax.f32 %v1529_v1, 0.0  ;;  %9407 = vmatmul.msk.f32.gmra.mxu0 %vm217_vm1, %v1161_v49  ;;  %9439 = vmatmul.msk.f32.gmra.mxu1 %vm217_vm1, %v1161_v49  ;;  %v1592_v14 = vmax.f32 %v1528_v56, 0.0  ;;  %v9464_v1 = vrot.slane %v1771_v45, 9  ;;  %v10819_v2 = vmax.f32 %v1769_v62, %v9463_v12 }
 0x1de   :  { %2758 = vrot.lane.b32.xlu0 %v10784_v13, %s10114_s11  ;;  %2756 = vrot.lane.b32.xlu2 %v10786_v60, %s10114_s11  ;;  %v10838_v12 = vpop.f32.mrf.mxu2 }
 0x1df   :  { %v1716_v10 = vrot.slane %v1593_v25, 6  ;;  %v10817_v25 = vmax.f32 %v1768_v4, %v9462_v22  ;;  %15821 = vst [vmem:[#allocation95_spill] sm:$0xff] %v10819_v2  ;;  %v10832_v62 = vmax.f32 %v1771_v45, %v9464_v1 }
 0x1e0   :  { %2760 = vrot.lane.b32.xlu1 %v10799_v24, %s10114_s11  ;;  %v1773_v24 = vrot.slane %v10782_v46, 4 }
 0x1e1   :  { %v1776_v11 = vsel %vm1744_vm2, %v1592_v14, %v1716_v10  ;;  %v1777_v32 = vsel %vm1746_vm4, %v1592_v14, %v1716_v10  ;;  %v10812_v15 = vsel %vm1749_vm3, %v1592_v14, %v1716_v10  ;;  %v10815_v49 = vsel %vm1752_vm5, %v1716_v10, %v1592_v14  ;;  %15820 = vst [vmem:[#allocation94_spill] sm:$0xff] %v10817_v25 }
 0x1e2   :  { %v1326_v17 = vpop.f32.mrf.mxu0  ;;  %v1439_v56 = vpop.f32.mrf.mxu1  ;;  %v646_v14 = vadd.f32 %v10663_v59, %v10404_v26  ;;  %v647_v10 = vadd.f32 %v10665_v58, %v10406_v27  ;;  %15822 = vst [vmem:[#allocation96_spill] sm:$0xff] %v10832_v62  ;;  %v1778_v46 = vrot.slane %v1777_v32, 2  ;;  %v9465_v26 = vrot.slane %v1773_v24, 9 }
 0x1e3   :  { %v1530_v23 = vadd.f32 %v1326_v17, %v1087_v21  ;;  %v1531_v41 = vadd.f32 %v1439_v56, %v1088_v44  ;;  %v9467_v27 = vrot.slane %v1776_v11, 9  ;;  %v10840_v17 = vpop.f32.mrf.mxu3 }
 0x1e4   :  { %v1089_v44 = vadd.f32 %v10501_v37, %v646_v14  ;;  %v1090_v22 = vadd.f32 %v10503_v38, %v647_v10  ;;  %v9468_v1 = vrot.slane %v1778_v46, 9  ;;  %v10852_v14 = vmax.f32 %v1773_v24, %v9465_v26 }
 0x1e5   :  { %v1595_v13 = vmax.f32 %v1531_v41, 0.0  ;;  %9408 = vmatmul.msk.f32.gmra.mxu0 %vm217_vm1, %v1162_v20  ;;  %9440 = vmatmul.msk.f32.gmra.mxu1 %vm217_vm1, %v1162_v20  ;;  %v1594_v4 = vmax.f32 %v1530_v23, 0.0  ;;  %v1163_v20 = vld [vmem:[#allocation2 + $0xda] sm:$0xff]  ;;  %v10854_v10 = vmax.f32 %v1776_v11, %v9467_v27 }
 0x1e6   :  { %2762 = vrot.lane.b32.xlu2 %v10817_v25, %s10114_s11  ;;  %2764 = vrot.lane.b32.xlu0 %v10819_v2, %s10114_s11  ;;  %15823 = vst [vmem:[#allocation97_spill] sm:$0xff] %v10852_v14  ;;  %v1782_v2 = vrot.slane %v10815_v49, 6  ;;  %v10868_v24 = vmax.f32 %v1778_v46, %v9468_v1  ;;  %v4320_v49 = vld [vmem:[#allocation11 + $0xf0] sm:$0xff]  ;;  %v10886_v1 = vpop.f32.mrf.mxu2 }
 0x1e7   :  { %v1717_v21 = vrot.slane %v1595_v13, 6  ;;  %15824 = vst [vmem:[#allocation98_spill] sm:$0xff] %v10854_v10  ;;  %4400 = vmatpush.msrb.mxu2 %v4320_v49 }
 0x1e8   :  { %2766 = vrot.lane.b32.xlu1 %v10832_v62, %s10114_s11  ;;  %v1780_v62 = vrot.slane %v10812_v15, 4  ;;  %15825 = vst [vmem:[#allocation99_spill] sm:$0xff] %v10868_v24 }
 0x1e9   :  { %v1783_v56 = vsel %vm1744_vm2, %v1594_v4, %v1717_v21  ;;  %v10844_v45 = vsel %vm1749_vm3, %v1594_v4, %v1717_v21  ;;  %v10847_v13 = vsel %vm1746_vm4, %v1594_v4, %v1717_v21  ;;  %v10850_v37 = vsel %vm1752_vm5, %v1717_v21, %v1594_v4 }
 0x1ea   :  { %v1329_v38 = vpop.f32.mrf.mxu0  ;;  %v1442_v32 = vpop.f32.mrf.mxu1  ;;  %v648_v4 = vadd.f32 %v10663_v59, %v10417_v33  ;;  %v649_v21 = vadd.f32 %v10665_v58, %v10419_v34  ;;  %v9469_v33 = vrot.slane %v1780_v62, 9  ;;  %v9470_v34 = vrot.slane %v1782_v2, 9 }
 0x1eb   :  { %v1532_v23 = vadd.f32 %v1329_v38, %v1089_v44  ;;  %v1533_v41 = vadd.f32 %v1442_v32, %v1090_v22  ;;  %v4350_v44 = vld [vmem:[#allocation11 + $0x1e0] sm:$0xff] }
 0x1ec   :  { %v1091_v22 = vadd.f32 %v10513_v52, %v648_v4  ;;  %v1092_v26 = vadd.f32 %v10515_v53, %v649_v21  ;;  %4466 = vmatpush.msrb.mxu3 %v4350_v44  ;;  %v1164_v32 = vld [vmem:[#allocation2 + $0xe2] sm:$0xff]  ;;  %v10890_v21 = vmax.f32 %v1780_v62, %v9469_v33  ;;  %v10892_v49 = vmax.f32 %v1782_v2, %v9470_v34 }
 0x1ed   :  { %v1597_v40 = vmax.f32 %v1533_v41, 0.0  ;;  %9409 = vmatmul.msk.f32.gmra.mxu0 %vm217_vm1, %v1163_v20  ;;  %9441 = vmatmul.msk.f32.gmra.mxu1 %vm217_vm1, %v1163_v20  ;;  %v1596_v11 = vmax.f32 %v1532_v23, 0.0  ;;  %v9471_v20 = vrot.slane %v1783_v56, 9  ;;  %v10888_v23 = vpop.f32.mrf.mxu3  ;;  %v1785_v44 = vrot.slane %v10847_v13, 2 }
 0x1ee   :  { %2768 = vrot.lane.b32.xlu2 %v10852_v14, %s10114_s11  ;;  %2772 = vrot.lane.b32.xlu0 %v10854_v10, %s10114_s11  ;;  %15826 = vst [vmem:[#allocation100_spill] sm:$0xff] %v10890_v21  ;;  %v1789_v62 = vrot.slane %v10850_v37, 6  ;;  %v653_v33 = vadd.f32 %v10665_v58, %v10441_v48  ;;  %v15847_v14 = vld [vmem:[#allocation33_spill] sm:$0xff] }
 0x1ef   :  { %v1718_v15 = vrot.slane %v1597_v40, 6  ;;  %15827 = vst [vmem:[#allocation101_spill] sm:$0xff] %v10892_v49  ;;  %v10904_v2 = vmax.f32 %v1783_v56, %v9471_v20  ;;  %v9472_v37 = vrot.slane %v1785_v44, 9  ;;  %v1165_v20 = vld [vmem:[#allocation2 + $0xf2] sm:$0xff] }
 0x1f0   :  { %2774 = vrot.lane.b32.xlu1 %v10868_v24, %s10114_s11  ;;  %v1787_v24 = vrot.slane %v10844_v45, 4  ;;  %v651_v45 = vadd.f32 %v10665_v58, %v10432_v43  ;;  %v654_v43 = vadd.f32 %v10663_v59, %v10452_v54  ;;  %v10944_v54 = vadd.f32 %v10539_v28, %v653_v33  ;;  %v10971_v33 = vpop.f32.mrf.mxu2 }
 0x1f1   :  { %v10875_v27 = vsel %vm1746_vm4, %v1596_v11, %v1718_v15  ;;  %v10878_v46 = vsel %vm1744_vm2, %v1596_v11, %v1718_v15  ;;  %v10881_v40 = vsel %vm1749_vm3, %v1596_v11, %v1718_v15  ;;  %v10884_v52 = vsel %vm1752_vm5, %v1718_v15, %v1596_v11  ;;  %15828 = vst [vmem:[#allocation102_spill] sm:$0xff] %v10904_v2 }
 0x1f2   :  { %v1332_v53 = vpop.f32.mrf.mxu0  ;;  %v1445_v38 = vpop.f32.mrf.mxu1  ;;  %v650_v11 = vadd.f32 %v10663_v59, %v10430_v42  ;;  %v9473_v56 = vrot.slane %v1787_v24, 9  ;;  %v1094_v34 = vadd.f32 %v10529_v5, %v651_v45  ;;  %v657_v5 = vadd.f32 %v10665_v58, %v10467_v7 }
 0x1f3   :  { %v1534_v41 = vadd.f32 %v1332_v53, %v1091_v22  ;;  %v1535_v4 = vadd.f32 %v1445_v38, %v1092_v26  ;;  %v652_v26 = vadd.f32 %v10663_v59, %v10439_v47  ;;  %v10959_v45 = vmax.f32 %v1785_v44, %v9472_v37  ;;  %v15834_v44 = vld [vmem:[#allocation27_spill] sm:$0xff]  ;;  %v15835_v37 = vld [vmem:[#allocation28_spill] sm:$0xff] }
 0x1f4   :  { %v10910_v42 = vadd.f32 %v10527_v63, %v650_v11  ;;  %v10949_v11 = vadd.f32 %v10551_v0, %v654_v43  ;;  %v10957_v28 = vmax.f32 %v1787_v24, %v9473_v56  ;;  %v660_v56 = vadd.f32 %v10663_v59, %v15834_v44  ;;  %v15839_v44 = vld [vmem:[#allocation46_spill] sm:$0xff] }
 0x1f5   :  { %v1599_v15 = vmax.f32 %v1535_v4, 0.0  ;;  %9410 = vmatmul.msk.f32.gmra.mxu0 %vm217_vm1, %v1164_v32  ;;  %9442 = vmatmul.msk.f32.gmra.mxu1 %vm217_vm1, %v1164_v32  ;;  %v10912_v13 = vmax.f32 %v1534_v41, 0.0  ;;  %v10941_v53 = vadd.f32 %v10537_v19, %v652_v26  ;;  %v9474_v41 = vrot.slane %v1789_v62, 9  ;;  %15830 = vst [vmem:[#allocation104_spill] sm:$0xff] %v10959_v45  ;;  %v10973_v7 = vpop.f32.mrf.mxu3 }
 0x1f6   :  { %2776 = vrot.lane.b32.xlu2 %v10890_v21, %s10114_s11  ;;  %2778 = vrot.lane.b32.xlu0 %v10892_v49, %s10114_s11  ;;  %v655_v4 = vadd.f32 %v10665_v58, %v10454_v57  ;;  %v658_v19 = vadd.f32 %v10663_v59, %v10477_v16  ;;  %15829 = vst [vmem:[#allocation103_spill] sm:$0xff] %v10957_v28  ;;  %v1792_v26 = vrot.slane %v10875_v27, 2  ;;  %v15831_v16 = vld [vmem:[#allocation26_spill] sm:$0xff]  ;;  %v15832_v27 = vld [vmem:[#allocation45_spill] sm:$0xff]  ;;  %v1796_v25 = vrot.slane %v10884_v52, 6 }
 0x1f7   :  { %v10914_v22 = vrot.slane %v1599_v15, 6  ;;  %v656_v15 = vadd.f32 %v10663_v59, %v10465_v6  ;;  %v10969_v6 = vadd.f32 %v10563_v39, %v657_v5  ;;  %v659_v24 = vadd.f32 %v10665_v58, %v15831_v16  ;;  %v4318_v5 = vld [vmem:[#allocation11 + $0xe0] sm:$0xff]  ;;  %v15837_v16 = vld [vmem:[#allocation30_spill] sm:$0xff] }
 0x1f8   :  { %2780 = vrot.lane.b32.xlu1 %v10904_v2, %s10114_s11  ;;  %v10963_v57 = vadd.f32 %v10553_v18, %v655_v4  ;;  %v10980_v18 = vadd.f32 %v15832_v27, %v658_v19  ;;  %v1794_v39 = vrot.slane %v10881_v40, 4  ;;  %v661_v43 = vadd.f32 %v10665_v58, %v15835_v37  ;;  %v4348_v19 = vld [vmem:[#allocation11 + $0x1d0] sm:$0xff]  ;;  %4401 = vmatpush.msrb.mxu2 %v4318_v5  ;;  %v15845_v5 = vld [vmem:[#allocation59_spill] sm:$0xff] }
 0x1f9   :  { %v10927_v63 = vsel %vm1744_vm2, %v10912_v13, %v10914_v22  ;;  %v10932_v47 = vsel %vm1746_vm4, %v10912_v13, %v10914_v22  ;;  %v10937_v48 = vsel %vm1749_vm3, %v10912_v13, %v10914_v22  ;;  %v10966_v0 = vadd.f32 %v10561_v8, %v656_v15  ;;  %4467 = vmatpush.msrb.mxu3 %v4348_v19 }
 0x1fa   :  { %v1335_v38 = vpop.f32.mrf.mxu0  ;;  %v1448_v32 = vpop.f32.mrf.mxu1  ;;  %v10986_v8 = vmax.f32 %v1789_v62, %v9474_v41  ;;  %v663_v27 = vadd.f32 %v10665_v58, %v15837_v16  ;;  %v9476_v40 = vrot.slane %v1792_v26, 9  ;;  %v9475_v41 = vrot.slane %v10878_v46, 9  ;;  %v15842_v16 = vld [vmem:[#allocation32_spill] sm:$0xff] }
 0x1fb   :  { %v1537_v15 = vadd.f32 %v1448_v32, %v1094_v34  ;;  %v11003_v37 = vadd.f32 %v15839_v44, %v659_v24  ;;  %v15841_v32 = vld [vmem:[#allocation50_spill] sm:$0xff]  ;;  %v665_v49 = vadd.f32 %v10665_v58, %v15842_v16  ;;  %v666_v19 = vadd.f32 %v10663_v59, %v15847_v14 }
 0x1fc   :  { %15833 = vst [vmem:[#allocation26_spill] sm:$0xff] %v10986_v8  ;;  %v11009_v2 = vadd.f32 %v15841_v32, %v661_v43  ;;  %v1166_v44 = vld [vmem:[#allocation2 + $0xfa] sm:$0xff]  ;;  %v15846_v43 = vld [vmem:[#allocation60_spill] sm:$0xff]  ;;  %v1536_v60 = vadd.f32 %v1335_v38, %v10910_v42  ;;  %v1799_v52 = vrot.slane %v10932_v47, 2 }
 0x1fd   :  { %9411 = vmatmul.msk.f32.gmra.mxu0 %vm217_vm1, %v1165_v20  ;;  %9443 = vmatmul.msk.f32.gmra.mxu1 %vm217_vm1, %v1165_v20  ;;  %v15836_v20 = vld [vmem:[#allocation29_spill] sm:$0xff]  ;;  %v11025_v32 = vadd.f32 %v15846_v43, %v665_v49  ;;  %v15848_v16 = vld [vmem:[#allocation34_spill] sm:$0xff]  ;;  %v11040_v49 = vadd.f32 %v15852_v55, %v666_v19  ;;  %v15854_v43 = vld [vmem:[#allocation36_spill] sm:$0xff] }
 0x1fe   :  { %2784 = vrot.lane.b32.xlu0 %v10957_v28, %s10114_s11  ;;  %2782 = vrot.lane.b32.xlu2 %v10959_v45, %s10114_s11  ;;  %v662_v4 = vadd.f32 %v10663_v59, %v15836_v20  ;;  %v15838_v28 = vld [vmem:[#allocation31_spill] sm:$0xff]  ;;  %v15840_v20 = vld [vmem:[#allocation49_spill] sm:$0xff]  ;;  %v669_v14 = vadd.f32 %v10665_v58, %v15854_v43  ;;  %v15860_v42 = vld [vmem:[#allocation68_spill] sm:$0xff] }
 0x1ff   :  { %v664_v62 = vadd.f32 %v10663_v59, %v15838_v28  ;;  %v11006_v34 = vadd.f32 %v15840_v20, %v660_v56  ;;  %v15843_v28 = vld [vmem:[#allocation55_spill] sm:$0xff]  ;;  %v9477_v20 = vrot.slane %v1794_v39, 9  ;;  %15853 = vst [vmem:[#allocation28_spill] sm:$0xff] %v11040_v49  ;;  %v15863_v19 = vld [vmem:[#allocation38_spill] sm:$0xff] }
 0x200   :  { %2786 = vrot.lane.b32.xlu1 %v10986_v8, %s10114_s11  ;;  %v11014_v10 = vadd.f32 %v15843_v28, %v662_v4  ;;  %v15844_v8 = vld [vmem:[#allocation56_spill] sm:$0xff]  ;;  %v667_v4 = vadd.f32 %v10665_v58, %v15848_v16  ;;  %v1601_v28 = vmax.f32 %v1537_v15, 0.0  ;;  %v11061_v38 = vadd.f32 %v15860_v42, %v669_v14  ;;  %v15864_v43 = vld [vmem:[#allocation39_spill] sm:$0xff] }
 0x201   :  { %v11017_v45 = vadd.f32 %v15844_v8, %v663_v27  ;;  %v11020_v21 = vadd.f32 %v15845_v5, %v664_v62  ;;  %v15849_v8 = vld [vmem:[#allocation35_spill] sm:$0xff]  ;;  %v11033_v62 = vmax.f32 %v1792_v26, %v9476_v40  ;;  %v11036_v5 = vmax.f32 %v10878_v46, %v9475_v41  ;;  %v15855_v15 = vld [vmem:[#allocation64_spill] sm:$0xff]  ;;  %v15862_v41 = vld [vmem:[#allocation37_spill] sm:$0xff] }
 0x202   :  { %v11022_v24 = vpop.f32.mrf.mxu0  ;;  %v1451_v56 = vpop.f32.mrf.mxu1  ;;  %v668_v27 = vadd.f32 %v10663_v59, %v15849_v8  ;;  %v11048_v26 = vadd.f32 %v15855_v15, %v667_v4  ;;  %v15857_v40 = vld [vmem:[#allocation67_spill] sm:$0xff]  ;;  %v11057_v55 = vmax.f32 %v1794_v39, %v9477_v20  ;;  %15861 = vst [vmem:[#allocation46_spill] sm:$0xff] %v11061_v38  ;;  %v671_v16 = vadd.f32 %v10665_v58, %v15863_v19  ;;  %v15865_v20 = vld [vmem:[#allocation40_spill] sm:$0xff] }
 0x203   :  { %15850 = vst [vmem:[#allocation45_spill] sm:$0xff] %v11033_v62  ;;  %v11067_v4 = vpop.f32.mrf.mxu2  ;;  %v11069_v8 = vpop.f32.mrf.mxu3  ;;  %v672_v39 = vadd.f32 %v10663_v59, %v15864_v43  ;;  %v673_v47 = vadd.f32 %v10665_v58, %v15865_v20  ;;  %v9478_v14 = vrot.slane %v1796_v25, 9  ;;  %v9479_v15 = vrot.slane %v10927_v63, 9  ;;  %v15870_v43 = vld [vmem:[#allocation77_spill] sm:$0xff]  ;;  %v15872_v20 = vld [vmem:[#allocation78_spill] sm:$0xff] }
 0x204   :  { %15851 = vst [vmem:[#allocation27_spill] sm:$0xff] %v11036_v5  ;;  %v11051_v46 = vadd.f32 %v15857_v40, %v668_v27  ;;  %v1720_v27 = vrot.slane %v1601_v28, 6  ;;  %v15866_v40 = vld [vmem:[#allocation73_spill] sm:$0xff] }
 0x205   :  { %9412 = vmatmul.msk.f32.gmra.mxu0 %vm217_vm1, %v1166_v44  ;;  %9444 = vmatmul.msk.f32.gmra.mxu1 %vm217_vm1, %v1166_v44  ;;  %15856 = vst [vmem:[#allocation29_spill] sm:$0xff] %v11048_v26  ;;  %v670_v44 = vadd.f32 %v10663_v59, %v15862_v41  ;;  %v15868_v41 = vld [vmem:[#allocation74_spill] sm:$0xff]  ;;  %v11090_v38 = vadd.f32 %v15872_v20, %v673_v47  ;;  %v15877_v47 = vld [vmem:[#allocation43_spill] sm:$0xff] }
 0x206   :  { %15858 = vst [vmem:[#allocation30_spill] sm:$0xff] %v11051_v46  ;;  %2790 = vrot.lane.b32.xlu0 %v11033_v62, %s10114_s11  ;;  %2788 = vrot.lane.b32.xlu2 %v11036_v5, %s10114_s11  ;;  %v11082_v19 = vadd.f32 %v15868_v41, %v671_v16  ;;  %v15869_v62 = vld [vmem:[#allocation41_spill] sm:$0xff]  ;;  %v1600_v5 = vmax.f32 %v1536_v60, 0.0  ;;  %v11087_v46 = vadd.f32 %v15870_v43, %v672_v39 }
 0x207   :  { %15859 = vst [vmem:[#allocation31_spill] sm:$0xff] %v11057_v55  ;;  %v11079_v42 = vadd.f32 %v15866_v40, %v670_v44  ;;  %v674_v28 = vadd.f32 %v10663_v59, %v15869_v62  ;;  %v1167_v40 = vld [vmem:[#allocation2 + $0x102] sm:$0xff]  ;;  %v15874_v16 = vld [vmem:[#allocation81_spill] sm:$0xff]  ;;  %v1539_v62 = vadd.f32 %v1451_v56, %v10944_v54  ;;  %v11104_v39 = vsel %vm1752_vm5, %v10767_v3, %v10765_v29  ;;  %v15882_v3 = vld [vmem:[#allocation82_spill] sm:$0xff] }
 0x208   :  { %2792 = vrot.lane.b32.xlu1 %v11057_v55, %s10114_s11  ;;  %15871 = vst [vmem:[#allocation50_spill] sm:$0xff] %v11087_v46  ;;  %v15873_v55 = vld [vmem:[#allocation42_spill] sm:$0xff]  ;;  %v1805_v60 = vsel %vm1746_vm4, %v1600_v5, %v1720_v27  ;;  %v11108_v43 = vmax.f32 %v1796_v25, %v9478_v14  ;;  %v11111_v20 = vmax.f32 %v10927_v63, %v9479_v15  ;;  %v15881_v56 = vld [vmem:[#allocation47_spill] sm:$0xff]  ;;  %v15884_v14 = vld [vmem:[#allocation48_spill] sm:$0xff] }
 0x209   :  { %15867 = vst [vmem:[#allocation49_spill] sm:$0xff] %v11079_v42  ;;  %v675_v49 = vadd.f32 %v10665_v58, %v15873_v55  ;;  %v9480_v42 = vrot.slane %v1799_v52, 9  ;;  %v11097_v41 = vadd.f32 %v15874_v16, %v674_v28  ;;  %v676_v55 = vadd.f32 %v10663_v59, %v15877_v47  ;;  %v15880_v16 = vld [vmem:[#allocation44_spill] sm:$0xff]  ;;  %v15886_v47 = vld [vmem:[#allocation83_spill] sm:$0xff] }
 0x20a   :  { %v11094_v26 = vpop.f32.mrf.mxu0  ;;  %v1454_v44 = vpop.f32.mrf.mxu1  ;;  %15876 = vst [vmem:[#allocation55_spill] sm:$0xff] %v11104_v39  ;;  %v1801_v28 = vrot.slane %v10937_v48, 4  ;;  %v677_v54 = vadd.f32 %v10665_v58, %v15880_v16  ;;  %v1804_v29 = vsel %vm1744_vm2, %v1600_v5, %v1720_v27  ;;  %v679_v63 = vadd.f32 %v10665_v58, %v15884_v14  ;;  %v4316_v14 = vld [vmem:[#allocation11 + $0xd0] sm:$0xff]  ;;  %v4346_v39 = vld [vmem:[#allocation11 + $0x1c0] sm:$0xff] }
 0x20b   :  { %15875 = vst [vmem:[#allocation32_spill] sm:$0xff] %v11097_v41  ;;  %v678_v41 = vadd.f32 %v10663_v59, %v15881_v56  ;;  %v11122_v25 = vadd.f32 %v15882_v3, %v675_v49  ;;  %v11130_v48 = vmax.f32 %v1799_v52, %v9480_v42  ;;  %v1806_v15 = vrot.slane %v1805_v60, 2  ;;  %4402 = vmatpush.msrb.mxu2 %v4316_v14  ;;  %v15896_v14 = vld [vmem:[#allocation54_spill] sm:$0xff] }
 0x20c   :  { %15878 = vst [vmem:[#allocation56_spill] sm:$0xff] %v11108_v43  ;;  %v11133_v16 = vadd.f32 %v15886_v47, %v676_v55  ;;  %v1603_v3 = vmax.f32 %v1539_v62, 0.0  ;;  %v9481_v42 = vrot.slane %v1801_v28, 9  ;;  %v9483_v60 = vrot.slane %v1804_v29, 9  ;;  %v15893_v55 = vld [vmem:[#allocation52_spill] sm:$0xff]  ;;  %4468 = vmatpush.msrb.mxu3 %v4346_v39  ;;  %v15895_v47 = vld [vmem:[#allocation53_spill] sm:$0xff] }
 0x20d   :  { %15879 = vst [vmem:[#allocation59_spill] sm:$0xff] %v11111_v20  ;;  %9413 = vmatmul.msk.f32.gmra.mxu0 %vm217_vm1, %v1167_v40  ;;  %9445 = vmatmul.msk.f32.gmra.mxu1 %vm217_vm1, %v1167_v40  ;;  %v15888_v40 = vld [vmem:[#allocation84_spill] sm:$0xff]  ;;  %v11139_v49 = vadd.f32 %v10715_v50, %v678_v41  ;;  %v11150_v50 = vpop.f32.mrf.mxu2  ;;  %v11152_v41 = vpop.f32.mrf.mxu3  ;;  %v1807_v62 = vsel %vm1749_vm3, %v1600_v5, %v1720_v27 }
 0x20e   :  { %15883 = vst [vmem:[#allocation60_spill] sm:$0xff] %v11122_v25  ;;  %2794 = vrot.lane.b32.xlu2 %v11108_v43, %s10114_s11  ;;  %2796 = vrot.lane.b32.xlu0 %v11111_v20, %s10114_s11  ;;  %v11136_v56 = vadd.f32 %v15888_v40, %v677_v54  ;;  %v11142_v43 = vadd.f32 %v10717_v51, %v679_v63  ;;  %v15892_v25 = vld [vmem:[#allocation51_spill] sm:$0xff] }
 0x20f   :  { %15885 = vst [vmem:[#allocation33_spill] sm:$0xff] %v11130_v48  ;;  %v680_v52 = vadd.f32 %v10663_v59, %v15892_v25  ;;  %v681_v54 = vadd.f32 %v10665_v58, %v15893_v55  ;;  %v1538_v51 = vadd.f32 %v11022_v24, %v10941_v53  ;;  %v1809_v25 = vsel %vm1752_vm5, %v1720_v27, %v1600_v5  ;;  %v15897_v53 = vld [vmem:[#allocation57_spill] sm:$0xff] }
 0x210   :  { %15887 = vst [vmem:[#allocation34_spill] sm:$0xff] %v11133_v16  ;;  %2798 = vrot.lane.b32.xlu1 %v11130_v48, %s10114_s11  ;;  %v682_v40 = vadd.f32 %v10663_v59, %v15895_v47  ;;  %v683_v55 = vadd.f32 %v10665_v58, %v15896_v14  ;;  %v9484_v16 = vrot.slane %v1806_v15, 9  ;;  %v684_v24 = vadd.f32 %v10663_v59, %v15897_v53 }
 0x211   :  { %15889 = vst [vmem:[#allocation35_spill] sm:$0xff] %v11136_v56  ;;  %v11159_v63 = vadd.f32 %v10749_v30, %v680_v52  ;;  %v1721_v27 = vrot.slane %v1603_v3, 6  ;;  %v1541_v30 = vadd.f32 %v1454_v44, %v10963_v57  ;;  %v11172_v39 = vmax.f32 %v1801_v28, %v9481_v42  ;;  %v15902_v3 = vld [vmem:[#allocation66_spill] sm:$0xff] }
 0x212   :  { %15890 = vst [vmem:[#allocation63_spill] sm:$0xff] %v11139_v49  ;;  %v11165_v48 = vpop.f32.mrf.mxu0  ;;  %v1457_v20 = vpop.f32.mrf.mxu1  ;;  %v1168_v49 = vld [vmem:[#allocation2 + $0x10a] sm:$0xff]  ;;  %v11174_v52 = vmax.f32 %v1804_v29, %v9483_v60  ;;  %v1808_v47 = vrot.slane %v1807_v62, 4  ;;  %v1810_v14 = vrot.slane %v1809_v25, 6  ;;  %v11180_v56 = vadd.f32 %v10801_v35, %v682_v40  ;;  %v15899_v35 = vld [vmem:[#allocation61_spill] sm:$0xff] }
 0x213   :  { %15891 = vst [vmem:[#allocation36_spill] sm:$0xff] %v11142_v43  ;;  %v15898_v43 = vld [vmem:[#allocation58_spill] sm:$0xff]  ;;  %v11183_v53 = vadd.f32 %v10803_v9, %v683_v55  ;;  %v1602_v46 = vmax.f32 %v1538_v51, 0.0  ;;  %v11188_v57 = vadd.f32 %v10838_v12, %v684_v24  ;;  %v686_v9 = vadd.f32 %v10663_v59, %v15899_v35 }
 0x214   :  { %15894 = vst [vmem:[#allocation64_spill] sm:$0xff] %v11159_v63  ;;  %v685_v5 = vadd.f32 %v10665_v58, %v15898_v43  ;;  %v11177_v63 = vadd.f32 %v10751_v61, %v681_v54  ;;  %v11197_v61 = vmax.f32 %v1806_v15, %v9484_v16  ;;  %v15900_v43 = vld [vmem:[#allocation62_spill] sm:$0xff]  ;;  %v1605_v29 = vmax.f32 %v1541_v30, 0.0 }
 0x215   :  { %9414 = vmatmul.msk.f32.gmra.mxu0 %vm217_vm1, %v1168_v49  ;;  %9446 = vmatmul.msk.f32.gmra.mxu1 %vm217_vm1, %v1168_v49  ;;  %v687_v28 = vadd.f32 %v10665_v58, %v15900_v43  ;;  %v1811_v12 = vsel %vm1744_vm2, %v1602_v46, %v1721_v27  ;;  %v15901_v49 = vld [vmem:[#allocation65_spill] sm:$0xff]  ;;  %v689_v42 = vadd.f32 %v10665_v58, %v15902_v3  ;;  %v9485_v15 = vrot.slane %v1808_v47, 9  ;;  %v958_v35 = vpop.f32.mrf.mxu2  ;;  %v15906_v3 = vld [vmem:[#allocation70_spill] sm:$0xff] }
 0x216   :  { %v11191_v44 = vadd.f32 %v10840_v17, %v685_v5  ;;  %2800 = vrot.lane.b32.xlu2 %v11172_v39, %s10114_s11  ;;  %2804 = vrot.lane.b32.xlu0 %v11174_v52, %s10114_s11  ;;  %v688_v17 = vadd.f32 %v10663_v59, %v15901_v49  ;;  %v9486_v16 = vrot.slane %v1810_v14, 9  ;;  %v11211_v60 = vadd.f32 %v10886_v1, %v686_v9  ;;  %v1169_v5 = vld [vmem:[#allocation2 + $0x11a] sm:$0xff]  ;;  %v11232_v9 = vpop.f32.mrf.mxu3 }
 0x217   :  { %v1540_v54 = vadd.f32 %v11094_v26, %v10949_v11  ;;  %v11216_v51 = vsel %vm1749_vm3, %v1602_v46, %v1721_v27  ;;  %v11219_v62 = vsel %vm1746_vm4, %v1602_v46, %v1721_v27  ;;  %v11222_v25 = vadd.f32 %v10888_v23, %v687_v28  ;;  %v15905_v11 = vld [vmem:[#allocation69_spill] sm:$0xff] }
 0x218   :  { %2806 = vrot.lane.b32.xlu1 %v11197_v61, %s10114_s11  ;;  %v11225_v40 = vadd.f32 %v10971_v33, %v688_v17  ;;  %v11228_v55 = vadd.f32 %v10973_v7, %v689_v42  ;;  %v9487_v30 = vrot.slane %v1811_v12, 9  ;;  %v690_v26 = vadd.f32 %v10663_v59, %v15905_v11  ;;  %v15907_v11 = vld [vmem:[#allocation71_spill] sm:$0xff] }
 0x219   :  { %v1722_v43 = vrot.slane %v1605_v29, 6  ;;  %v1543_v23 = vadd.f32 %v1457_v20, %v10969_v6  ;;  %v11236_v28 = vsel %vm1752_vm5, %v1721_v27, %v1602_v46  ;;  %v11238_v33 = vmax.f32 %v1808_v47, %v9485_v15  ;;  %v15909_v20 = vld [vmem:[#allocation72_spill] sm:$0xff] }
 0x21a   :  { %15903 = vst [vmem:[#allocation67_spill] sm:$0xff] %v11225_v40  ;;  %v1347_v1 = vpop.f32.mrf.mxu0  ;;  %v1460_v24 = vpop.f32.mrf.mxu1  ;;  %v11240_v7 = vmax.f32 %v1810_v14, %v9486_v16  ;;  %v1815_v49 = vrot.slane %v11216_v51, 4  ;;  %v1813_v17 = vrot.slane %v11219_v62, 2  ;;  %v691_v42 = vadd.f32 %v10665_v58, %v15906_v3  ;;  %v1170_v3 = vld [vmem:[#allocation2 + $0x122] sm:$0xff] }
 0x21b   :  { %15904 = vst [vmem:[#allocation68_spill] sm:$0xff] %v11228_v55  ;;  %v692_v40 = vadd.f32 %v10663_v59, %v15907_v11  ;;  %v1604_v29 = vmax.f32 %v1540_v54, 0.0  ;;  %v1545_v6 = vadd.f32 %v1460_v24, %v11003_v37  ;;  %v11252_v46 = vadd.f32 %v11067_v4, %v690_v26  ;;  %v4344_v26 = vld [vmem:[#allocation11 + $0x1b0] sm:$0xff] }
 0x21c   :  { %v693_v27 = vadd.f32 %v10665_v58, %v15909_v20  ;;  %v11260_v47 = vmax.f32 %v1811_v12, %v9487_v30  ;;  %v1817_v37 = vrot.slane %v11236_v28, 6  ;;  %v11264_v14 = vadd.f32 %v11069_v8, %v691_v42  ;;  %v15913_v8 = vld [vmem:[#allocation75_spill] sm:$0xff]  ;;  %4469 = vmatpush.msrb.mxu3 %v4344_v26  ;;  %v4308_v26 = vld [vmem:[#allocation11 + $0x90] sm:$0xff] }
 0x21d   :  { %9415 = vmatmul.msk.f32.gmra.mxu0 %vm217_vm1, %v1169_v5  ;;  %9447 = vmatmul.msk.f32.gmra.mxu1 %vm217_vm1, %v1169_v5  ;;  %15908 = vst [vmem:[#allocation37_spill] sm:$0xff] %v11252_v46  ;;  %v11267_v15 = vadd.f32 %v11150_v50, %v692_v40  ;;  %v1607_v4 = vmax.f32 %v1543_v23, 0.0  ;;  %v11270_v16 = vsel %vm1746_vm4, %v1604_v29, %v1722_v43  ;;  %v9489_v12 = vrot.slane %v1815_v49, 9  ;;  %v15914_v50 = vld [vmem:[#allocation76_spill] sm:$0xff]  ;;  %v15917_v46 = vld [vmem:[#allocation79_spill] sm:$0xff] }
 0x21e   :  { %2808 = vrot.lane.b32.xlu2 %v11238_v33, %s10114_s11  ;;  %2810 = vrot.lane.b32.xlu0 %v11240_v7, %s10114_s11  ;;  %15910 = vst [vmem:[#allocation38_spill] sm:$0xff] %v11264_v14  ;;  %v11273_v54 = vadd.f32 %v11152_v41, %v693_v27  ;;  %v9488_v51 = vrot.slane %v1813_v17, 9  ;;  %v11278_v62 = vsel %vm1749_vm3, %v1604_v29, %v1722_v43  ;;  %v1609_v30 = vmax.f32 %v1545_v6, 0.0  ;;  %v4314_v41 = vld [vmem:[#allocation11 + $0xc0] sm:$0xff] }
 0x21f   :  { %15911 = vst [vmem:[#allocation39_spill] sm:$0xff] %v11267_v15  ;;  %v694_v24 = vadd.f32 %v10663_v59, %v15913_v8  ;;  %v695_v40 = vadd.f32 %v10665_v58, %v15914_v50  ;;  %v1542_v5 = vadd.f32 %v11165_v48, %v10966_v0  ;;  %v9490_v42 = vrot.slane %v1817_v37, 9  ;;  %4403 = vmatpush.msrb.mxu2 %v4314_v41  ;;  %v4312_v50 = vld [vmem:[#allocation11 + $0xb0] sm:$0xff] }
 0x220   :  { %15912 = vst [vmem:[#allocation40_spill] sm:$0xff] %v11273_v54  ;;  %2812 = vrot.lane.b32.xlu1 %v11260_v47, %s10114_s11  ;;  %v1818_v20 = vsel %vm1744_vm2, %v1604_v29, %v1722_v43  ;;  %v11289_v27 = vsel %vm1752_vm5, %v1722_v43, %v1604_v29  ;;  %v11291_v8 = vrot.slane %v1607_v4, 6  ;;  %v1544_v0 = vadd.f32 %v1347_v1, %v10980_v18  ;;  %v961_v29 = vpop.f32.mrf.mxu2  ;;  %v1074_v4 = vpop.f32.mrf.mxu3 }
 0x221   :  { %v1822_v6 = vrot.slane %v11278_v62, 4  ;;  %v11296_v15 = vadd.f32 %v958_v35, %v694_v24  ;;  %v696_v11 = vadd.f32 %v10663_v59, %v15917_v46  ;;  %v11300_v54 = vmax.f32 %v1815_v49, %v9489_v12  ;;  %4404 = vmatpush.msrb.mxu2 %v4312_v50  ;;  %v4310_v35 = vld [vmem:[#allocation11 + $0xa0] sm:$0xff]  ;;  %v15919_v59 = vld [vmem:[#allocation80_spill] sm:$0xff] }
 0x222   :  { %v1350_v23 = vpop.f32.mrf.mxu0  ;;  %v1463_v28 = vpop.f32.mrf.mxu1  ;;  %15915 = vst [vmem:[#allocation73_spill] sm:$0xff] %v11291_v8  ;;  %v11302_v43 = vmax.f32 %v1813_v17, %v9488_v51  ;;  %v11304_v41 = vmax.f32 %v1542_v5, 0.0  ;;  %v1724_v18 = vrot.slane %v1609_v30, 6  ;;  %v1824_v1 = vrot.slane %v11289_v27, 6  ;;  %v4342_v62 = vld [vmem:[#allocation11 + $0x1a0] sm:$0xff] }
 0x223   :  { %v1547_v48 = vadd.f32 %v1463_v28, %v11009_v2  ;;  %15916 = vst [vmem:[#allocation74_spill] sm:$0xff] %v11296_v15  ;;  %v9491_v2 = vrot.slane %v1818_v20, 9  ;;  %v697_v49 = vadd.f32 %v10665_v58, %v15919_v59  ;;  %v11315_v46 = vmax.f32 %v1817_v37, %v9490_v42  ;;  %4405 = vmatpush.msrb.mxu2 %v4310_v35  ;;  %v4340_v37 = vld [vmem:[#allocation11 + $0x190] sm:$0xff]  ;;  %v4921_v59 = vld [vmem:[#allocation11 + $0x2e0] sm:$0xff] }
 0x224   :  { %15918 = vst [vmem:[#allocation41_spill] sm:$0xff] %v11304_v41  ;;  %v15921_v12 = vrot.slane %v11270_v16, 2  ;;  %v1608_v24 = vmax.f32 %v1544_v0, 0.0  ;;  %v9493_v5 = vrot.slane %v1822_v6, 9  ;;  %v11322_v30 = vsel %vm1746_vm4, %v11304_v41, %v11291_v8  ;;  %4470 = vmatpush.msrb.mxu3 %v4342_v62  ;;  %v4304_v62 = vld [vmem:[#allocation11 + $0x70] sm:$0xff]  ;;  %4985 = vmatpush.msra.mxu0 %v4921_v59 }
 0x225   :  { %9416 = vmatmul.msk.f32.gmra.mxu0 %vm217_vm1, %v1170_v3  ;;  %9448 = vmatmul.msk.f32.gmra.mxu1 %vm217_vm1, %v1170_v3  ;;  %v1611_v17 = vmax.f32 %v1547_v48, 0.0  ;;  %15920 = vst [vmem:[#allocation77_spill] sm:$0xff] %v11315_v46  ;;  %v11327_v58 = vsel %vm1749_vm3, %v11304_v41, %v11291_v8  ;;  %v11330_v28 = vadd.f32 %v11232_v9, %v695_v40  ;;  %v9494_v50 = vrot.slane %v1824_v1, 9  ;;  %v4306_v40 = vld [vmem:[#allocation11 + $0x80] sm:$0xff] }
 0x226   :  { %2816 = vrot.lane.b32.xlu0 %v11300_v54, %s10114_s11  ;;  %2814 = vrot.lane.b32.xlu2 %v11302_v43, %s10114_s11  ;;  %v9492_v51 = vrot.slane %v15921_v12, 9  ;;  %v11332_v3 = vadd.f32 %v961_v29, %v696_v11  ;;  %v11334_v42 = vadd.f32 %v1074_v4, %v697_v49  ;;  %v1546_v27 = vadd.f32 %v1350_v23, %v11006_v34  ;;  %v4338_v11 = vld [vmem:[#allocation11 + $0x180] sm:$0xff]  ;;  %v1171_v4 = vld [vmem:[#allocation2 + $0x12a] sm:$0xff] }
 0x227   :  { %15922 = vst [vmem:[#allocation78_spill] sm:$0xff] %v11330_v28  ;;  %v11341_v48 = vmax.f32 %v1818_v20, %v9491_v2  ;;  %v11344_v35 = vsel %vm1746_vm4, %v1608_v24, %v1724_v18  ;;  %4406 = vmatpush.msrb.mxu2 %v4308_v26  ;;  %4471 = vmatpush.msrb.mxu3 %v4340_v37  ;;  %v1725_v29 = vrot.slane %v1611_v17, 6 }
 0x228   :  { %15923 = vst [vmem:[#allocation42_spill] sm:$0xff] %v11332_v3  ;;  %v11337_v0 = vpop.permute.xlu2 %2748  ;;  %2818 = vrot.lane.b32.xlu1 %v11315_v46, %s10114_s11  ;;  %v11347_v9 = vsel %vm1749_vm3, %v1608_v24, %v1724_v18  ;;  %v1825_v20 = vsel %vm1744_vm2, %v11304_v41, %v11291_v8  ;;  %v11357_v26 = vmax.f32 %v15921_v12, %v9492_v51  ;;  %v1610_v37 = vmax.f32 %v1546_v27, 0.0  ;;  %v4336_v41 = vld [vmem:[#allocation11 + $0x170] sm:$0xff] }
 0x229   :  { %15924 = vst [vmem:[#allocation81_spill] sm:$0xff] %v11334_v42  ;;  %v11359_v17 = vmax.f32 %v1822_v6, %v9493_v5  ;;  %4407 = vmatpush.msrb.mxu2 %v4306_v40  ;;  %4472 = vmatpush.msrb.mxu3 %v4338_v11  ;;  %v1834_v3 = vrot.slane %v11344_v35, 2  ;;  %v1836_v8 = vrot.slane %v11347_v9, 4  ;;  %v11364_v2 = vsel %vm1752_vm5, %v1724_v18, %v1608_v24  ;;  %v4919_v5 = vld [vmem:[#allocation11 + $0x2d0] sm:$0xff] }
 0x22a   :  { %v1353_v34 = vpop.f32.mrf.mxu0  ;;  %v1466_v23 = vpop.f32.mrf.mxu1  ;;  %15925 = vst [vmem:[#allocation43_spill] sm:$0xff] %v11357_v26  ;;  %v11368_v16 = vmax.f32 %v1824_v1, %v9494_v50  ;;  %v9495_v6 = vrot.slane %v1825_v20, 9  ;;  %v1832_v51 = vsel %vm1744_vm2, %v1608_v24, %v1724_v18  ;;  %v15928_v35 = vrot.slane %v11322_v30, 2  ;;  %v4302_v1 = vld [vmem:[#allocation11 + $0x60] sm:$0xff]  ;;  %v4300_v12 = vld [vmem:[#allocation11 + $0x50] sm:$0xff]  ;;  %4986 = vmatpush.msra.mxu0 %v4919_v5 }
 0x22b   :  { %v1549_v49 = vadd.f32 %v1466_v23, %v11017_v45  ;;  %15926 = vst [vmem:[#allocation44_spill] sm:$0xff] %v11359_v17  ;;  %v1548_v27 = vadd.f32 %v1353_v34, %v11014_v10  ;;  %v15929_v40 = vrot.slane %v11327_v58, 4  ;;  %v4334_v50 = vld [vmem:[#allocation11 + $0x160] sm:$0xff]  ;;  %v11381_v23 = vsel %vm1749_vm3, %v1610_v37, %v1725_v29  ;;  %4408 = vmatpush.msrb.mxu2 %v4304_v62 }
 0x22c   :  { %15927 = vst [vmem:[#allocation47_spill] sm:$0xff] %v11368_v16  ;;  %v9496_v9 = vrot.slane %v15928_v35, 9  ;;  %v1838_v18 = vrot.slane %v11364_v2, 6  ;;  %4473 = vmatpush.msrb.mxu3 %v4336_v41  ;;  %v11385_v10 = vsel %vm1746_vm4, %v1610_v37, %v1725_v29  ;;  %v11388_v24 = vsel %vm1752_vm5, %v1725_v29, %v1610_v37  ;;  %v4917_v34 = vld [vmem:[#allocation11 + $0x2c0] sm:$0xff]  ;;  %v4332_v35 = vld [vmem:[#allocation11 + $0x150] sm:$0xff] }
 0x22d   :  { %v1613_v45 = vmax.f32 %v1549_v49, 0.0  ;;  %9417 = vmatmul.msk.f32.gmra.mxu0 %vm217_vm1, %v1171_v4  ;;  %9449 = vmatmul.msk.f32.gmra.mxu1 %vm217_vm1, %v1171_v4  ;;  %v9497_v11 = vrot.slane %v15929_v40, 9  ;;  %v11393_v4 = vsel %vm1752_vm5, %v10914_v22, %v10912_v13  ;;  %v9499_v41 = vrot.slane %v1832_v51, 9 }
 0x22e   :  { %2822 = vrot.lane.b32.xlu0 %v11357_v26, %s10114_s11  ;;  %2820 = vrot.lane.b32.xlu2 %v11341_v48, %s10114_s11  ;;  %15930 = vst [vmem:[#allocation82_spill] sm:$0xff] %v11393_v4  ;;  %v9500_v2 = vrot.slane %v1834_v3, 9  ;;  %v9501_v62 = vrot.slane %v1836_v8, 9  ;;  %v3000_v40 = vrot.slane %v11337_v0, 2  ;;  %v11402_v15 = vmax.f32 %v1825_v20, %v9495_v6  ;;  %v4330_v20 = vld [vmem:[#allocation11 + $0x140] sm:$0xff] }
 0x22f   :  { %v11395_v59 = vrot.slane %v1613_v45, 6  ;;  %v11405_v13 = vsel %vm1744_vm2, %v1610_v37, %v1725_v29  ;;  %4409 = vmatpush.msrb.mxu2 %v4302_v1  ;;  %4474 = vmatpush.msrb.mxu3 %v4334_v50  ;;  %v4915_v45 = vld [vmem:[#allocation11 + $0x2b0] sm:$0xff]  ;;  %v11408_v4 = vmax.f32 %v1548_v27, 0.0  ;;  %v15932_v29 = vrot.slane %v11322_v30, 2 }
 0x230   :  { %v11397_v49 = vpop.permute.xlu2 %2750  ;;  %2824 = vrot.lane.b32.xlu1 %v11359_v17, %s10114_s11  ;;  %15931 = vst [vmem:[#allocation48_spill] sm:$0xff] %v11402_v15  ;;  %v1172_v17 = vld [vmem:[#allocation2 + $0x132] sm:$0xff]  ;;  %4987 = vmatpush.msra.mxu0 %v4917_v34  ;;  %v15934_v1 = vrot.slane %v11327_v58, 4  ;;  %v9502_v27 = vrot.slane %v1838_v18, 9  ;;  %v11421_v22 = vmax.f32 %v1832_v51, %v9499_v41  ;;  %v11423_v14 = vmax.f32 %v1834_v3, %v9500_v2  ;;  %v4298_v34 = vld [vmem:[#allocation11 + $0x40] sm:$0xff]  ;;  %v15970_v51 = vld [vmem:[#allocation30_spill] sm:$0xff] }
 0x231   :  { %v11415_v37 = vmax.f32 %v15932_v29, %v9496_v9  ;;  %4410 = vmatpush.msrb.mxu2 %v4300_v12  ;;  %4475 = vmatpush.msrb.mxu3 %v4332_v35  ;;  %v11425_v5 = vmax.f32 %v1836_v8, %v9501_v62  ;;  %v3129_v30 = vsel %vm3124_vm6, %v11337_v0, %v3000_v40  ;;  %v3001_v58 = vrot.slane %v11397_v49, 2  ;;  %v4296_v12 = vld [vmem:[#allocation11 + $0x30] sm:$0xff] }
 0x232   :  { %v1356_v42 = vpop.f32.mrf.mxu0  ;;  %v1469_v28 = vpop.f32.mrf.mxu1  ;;  %v11419_v50 = vmax.f32 %v15934_v1, %v9497_v11  ;;  %15936 = vst [vmem:[#allocation51_spill] sm:$0xff] %v11421_v22  ;;  %4988 = vmatpush.msra.mxu0 %v4915_v45  ;;  %v9503_v8 = vrot.slane %v11405_v13, 9  ;;  %v15938_v3 = vlaneseq  ;;  %v15941_v0 = vrot.slane %v11381_v23, 4  ;;  %v4328_v35 = vld [vmem:[#allocation11 + $0x130] sm:$0xff]  ;;  %v4913_v1 = vld [vmem:[#allocation11 + $0x2a0] sm:$0xff] }
 0x233   :  { %v1551_v6 = vadd.f32 %v1469_v28, %v11025_v32  ;;  %15933 = vst [vmem:[#allocation83_spill] sm:$0xff] %v11415_v37  ;;  %v11430_v32 = vsel %vm1746_vm4, %v11408_v4, %v11395_v59  ;;  %v4951_v28 = vld [vmem:[#allocation11 + $0x3d0] sm:$0xff]  ;;  %v15943_v2 = vrot.slane %v11388_v24, 6  ;;  %v1550_v40 = vadd.f32 %v1356_v42, %v11020_v21  ;;  %4411 = vmatpush.msrb.mxu2 %v4298_v34  ;;  %v4294_v21 = vld [vmem:[#allocation11 + $0x20] sm:$0xff] }
 0x234   :  { %15935 = vst [vmem:[#allocation84_spill] sm:$0xff] %v11419_v50  ;;  %vm11439_vm7 = vcmp.lt.s32.totalorder %v15938_v3, 248  ;;  %v9505_v11 = vrot.slane %v15941_v0, 9  ;;  %v11456_v45 = vmax.f32 %v1838_v18, %v9502_v27  ;;  %4476 = vmatpush.msrb.mxu3 %v4330_v20  ;;  %v15945_v0 = vmov 0.0   ;;  %5051 = vmatpush.msra.mxu1 %v4951_v28  ;;  %v4326_v42 = vld [vmem:[#allocation11 + $0x120] sm:$0xff]  ;;  %v4947_v29 = vld [vmem:[#allocation11 + $0x3b0] sm:$0xff] }
 0x235   :  { %15937 = vst [vmem:[#allocation52_spill] sm:$0xff] %v11423_v14  ;;  %9418 = vmatmul.msk.f32.gmra.mxu0 %vm217_vm1, %v1172_v17  ;;  %9450 = vmatmul.msk.f32.gmra.mxu1 %vm217_vm1, %v1172_v17  ;;  %v1615_v9 = vmax.f32 %v1551_v6, 0.0  ;;  %v15942_v17 = vrot.slane %v11385_v10, 2  ;;  %v11453_v62 = vrot.slane %v15943_v2, 9  ;;  %v4949_v6 = vld [vmem:[#allocation11 + $0x3c0] sm:$0xff]  ;;  %v1846_v18 = vsel %vm1744_vm2, %v11408_v4, %v11395_v59 }
 0x236   :  { %2826 = vrot.lane.b32.xlu2 %v11368_v16, %s10114_s11  ;;  %2828 = vrot.lane.b32.xlu0 %v11402_v15, %s10114_s11  ;;  %15944 = vst [vmem:[#allocation53_spill] sm:$0xff] %v11456_v45  ;;  %v11473_v20 = vsel %vm1749_vm3, %v11408_v4, %v11395_v59  ;;  %v3130_v27 = vsel %vm3124_vm6, %v11397_v49, %v3001_v58  ;;  %v15948_v46 = vrot.slane %v11381_v23, 4  ;;  %v4292_v49 = vld [vmem:[#allocation11 + $0x10] sm:$0xff] }
 0x237   :  { %v9504_v41 = vrot.slane %v15942_v17, 9  ;;  %3513 = vst.msk [vmem:[#allocation3] ss:$8 sm:$0x3] %vm11439_vm7, %v15945_v0  ;;  %v11463_v17 = vmax.f32 %v10721_v31, %v3129_v30  ;;  %v4911_v31 = vld [vmem:[#allocation11 + $0x290] sm:$0xff]  ;;  %v11481_v28 = vmax.f32 %v11405_v13, %v9503_v8  ;;  %4412 = vmatpush.msrb.mxu2 %v4296_v12  ;;  %4477 = vmatpush.msrb.mxu3 %v4328_v35  ;;  %v11500_v8 = vmax.f32 %v1550_v40, 0.0 }
 0x238   :  { %v2741_v2 = vpop.permute.xlu0 %2740  ;;  %v2757_v3 = vpop.permute.xlu2 %2756  ;;  %2830 = vrot.lane.b32.xlu1 %v11415_v37, %s10114_s11  ;;  %3516 = vst.msk [vmem:[#allocation3 + $0x30] ss:$8 sm:$0x3] %vm11439_vm7, %v15945_v0  ;;  %v11486_v37 = vrot.slane %v1615_v9, 6  ;;  %v11490_v55 = vmax.f32 %v15948_v46, %v9505_v11  ;;  %5052 = vmatpush.msra.mxu1 %v4949_v6  ;;  %v4324_v58 = vld [vmem:[#allocation11 + $0x110] sm:$0xff]  ;;  %v11498_v13 = vsel %vm1752_vm5, %v11395_v59, %v11408_v4  ;;  %v9507_v46 = vrot.slane %v1846_v18, 9 }
 0x239   :  { %v2996_v34 = vrot.slane %v2741_v2, 2  ;;  %v3004_v30 = vrot.slane %v2757_v3, 2  ;;  %15946 = vst [vmem:[#allocation54_spill] sm:$0xff] %v11481_v28  ;;  %4989 = vmatpush.msra.mxu0 %v4913_v1  ;;  %4413 = vmatpush.msrb.mxu2 %v4294_v21  ;;  %v15662_v11 = vrot.slane %v11473_v20, 4  ;;  %v11505_v12 = vmax.f32 %v10747_v36, %v3130_v27  ;;  %v4290_v1 = vld [vmem:[#allocation11] sm:$0xff]  ;;  %v15951_v40 = vld [vmem:[#allocation29_spill] sm:$0xff] }
 0x23a   :  { %3519 = vst.msk [vmem:[#allocation3 + $0x60] ss:$8 sm:$0x3] %vm11439_vm7, %v15945_v0  ;;  %v1472_v15 = vpop.f32.mrf.mxu1  ;;  %v2745_v26 = vpop.permute.xlu1 %2744  ;;  %4478 = vmatpush.msrb.mxu3 %v4326_v42  ;;  %5053 = vmatpush.msra.mxu1 %v4947_v29  ;;  %v4322_v4 = vld [vmem:[#allocation11 + $0x100] sm:$0xff]  ;;  %v15952_v36 = vrot.slane %v11385_v10, 2  ;;  %v15661_v29 = vrot.slane %v11498_v13, 6 }
 0x23b   :  { %15947 = vst [vmem:[#allocation57_spill] sm:$0xff] %v11486_v37  ;;  %v3125_v9 = vsel %vm3124_vm6, %v2741_v2, %v2996_v34  ;;  %v1359_v23 = vpop.f32.mrf.mxu0  ;;  %v3133_v35 = vsel %vm3124_vm6, %v2757_v3, %v3004_v30  ;;  %v2998_v6 = vrot.slane %v2745_v26, 2  ;;  %4990 = vmatpush.msra.mxu0 %v4911_v31  ;;  %v11513_v2 = vadd.f32 %v1472_v15, %v15951_v40  ;;  %v4945_v3 = vld [vmem:[#allocation11 + $0x3a0] sm:$0xff]  ;;  %v15954_v42 = vld [vmem:[#allocation85_spill] sm:$0xff] }
 0x23c   :  { %15949 = vst [vmem:[#allocation58_spill] sm:$0xff] %v11490_v55  ;;  %v11517_v21 = vmax.f32 %v15952_v36, %v9504_v41  ;;  %4414 = vmatpush.msrb.mxu2 %v4292_v49  ;;  %4479 = vmatpush.msrb.mxu3 %v4324_v58  ;;  %v11524_v31 = vmax.f32 %v15954_v42, %v3125_v9  ;;  %v15955_v15 = vrot.slane %v11388_v24, 6  ;;  %v15957_v41 = vrot.slane %v11430_v32, 2  ;;  %v4909_v34 = vld [vmem:[#allocation11 + $0x280] sm:$0xff]  ;;  %v15958_v58 = vld [vmem:[#allocation92_spill] sm:$0xff] }
 0x23d   :  { %3522 = vst.msk [vmem:[#allocation3 + $0x90] ss:$8 sm:$0x3] %vm11439_vm7, %v15945_v0  ;;  %v11540_v30 = vsel %vm1744_vm2, %v11500_v8, %v11486_v37  ;;  %v11544_v9 = vmax.f32 %v15958_v58, %v3133_v35  ;;  %v11546_v40 = vmax.f32 %v1846_v18, %v9507_v46  ;;  %v9509_v24 = vrot.slane %v15662_v11, 9  ;;  %v15959_v35 = vld [vmem:[#allocation28_spill] sm:$0xff]  ;;  %5054 = vmatpush.msra.mxu1 %v4945_v3 }
 0x23e   :  { %15950 = vst [vmem:[#allocation61_spill] sm:$0xff] %v11500_v8  ;;  %2832 = vrot.lane.b32.xlu2 %v11419_v50, %s10114_s11  ;;  %2836 = vrot.lane.b32.xlu0 %v11421_v22, %s10114_s11  ;;  %v11533_v10 = vmax.f32 %v15955_v15, %v11453_v62  ;;  %v9508_v27 = vrot.slane %v15957_v41, 9  ;;  %v4943_v62 = vld [vmem:[#allocation11 + $0x390] sm:$0xff]  ;;  %v3127_v15 = vsel %vm3124_vm6, %v2745_v26, %v2998_v6  ;;  %v4941_v26 = vld [vmem:[#allocation11 + $0x380] sm:$0xff]  ;;  %v9511_v6 = vrot.slane %v11540_v30, 9 }
 0x23f   :  { %3525 = vst.msk [vmem:[#allocation3 + $0xc0] ss:$8 sm:$0x3] %vm11439_vm7, %v15945_v0  ;;  %4415 = vmatpush.msrb.mxu2 %v4290_v1  ;;  %4480 = vmatpush.msrb.mxu3 %v4322_v4  ;;  %v1552_v41 = vadd.f32 %v1359_v23, %v15959_v35  ;;  %v4907_v1 = vld [vmem:[#allocation11 + $0x270] sm:$0xff]  ;;  %v1617_v4 = vmax.f32 %v11513_v2, 0.0  ;;  %v9510_v23 = vrot.slane %v15661_v29, 9 }
 0x240   :  { %15953 = vst [vmem:[#allocation62_spill] sm:$0xff] %v11517_v21  ;;  %v2743_v18 = vpop.permute.xlu0 %2742  ;;  %v11557_v46 = vpop.permute.xlu2 %2762  ;;  %2838 = vrot.lane.b32.xlu1 %v11423_v14, %s10114_s11  ;;  %4991 = vmatpush.msra.mxu0 %v4909_v34  ;;  %v3688_v35 = vperm.slane %v11524_v31, 0  ;;  %v3689_v42 = vperm.slane %v11524_v31, 2  ;;  %v15960_v49 = vrot.slane %v11430_v32, 2  ;;  %v4905_v2 = vld [vmem:[#allocation11 + $0x260] sm:$0xff]  ;;  %v11582_v34 = vsel %vm1746_vm4, %v11500_v8, %v11486_v37  ;;  %v15961_v29 = vld [vmem:[#allocation86_spill] sm:$0xff] }
 0x241   :  { %3528 = vst.msk [vmem:[#allocation3 + $0xf0] ss:$8 sm:$0x3] %vm11439_vm7, %v15945_v0  ;;  %v2997_v58 = vrot.slane %v2743_v18, 2  ;;  %5055 = vmatpush.msra.mxu1 %v4943_v62  ;;  %v3383_v11 = vmax.f32 %v15961_v29, %v3127_v15  ;;  %v3007_v22 = vrot.slane %v11557_v46, 2  ;;  %v15963_v50 = vrot.slane %v11473_v20, 4 }
 0x242   :  { %15956 = vst [vmem:[#allocation65_spill] sm:$0xff] %v11533_v10  ;;  %v11570_v3 = vpop.f32.mrf.mxu1  ;;  %v2747_v36 = vpop.permute.xlu1 %2746  ;;  %v11574_v59 = vmax.f32 %v15960_v49, %v9508_v27  ;;  %4992 = vmatpush.msra.mxu0 %v4907_v1  ;;  %v15962_v49 = vld [vmem:[#allocation87_spill] sm:$0xff]  ;;  %v4939_v29 = vld [vmem:[#allocation11 + $0x370] sm:$0xff]  ;;  %v11607_v1 = vrot.slane %v1617_v4, 6 }
 0x243   :  { %3531 = vst.msk [vmem:[#allocation3 + $0x120] ss:$8 sm:$0x3] %vm11439_vm7, %v15945_v0  ;;  %v3126_v14 = vsel %vm3124_vm6, %v2743_v18, %v2997_v58  ;;  %v2999_v32 = vrot.slane %v2747_v36, 2  ;;  %v11587_v27 = vpop.f32.mrf.mxu0  ;;  %v11596_v16 = vmax.f32 %v15963_v50, %v9509_v24  ;;  %5056 = vmatpush.msra.mxu1 %v4941_v26  ;;  %v4903_v15 = vld [vmem:[#allocation11 + $0x250] sm:$0xff]  ;;  %v11604_v18 = vsel %vm1749_vm3, %v11500_v8, %v11486_v37  ;;  %v4901_v26 = vld [vmem:[#allocation11 + $0x240] sm:$0xff] }
 0x244   :  { %3534 = vst.msk [vmem:[#allocation3 + $0x150] ss:$8 sm:$0x3] %vm11439_vm7, %v15945_v0  ;;  %v3382_v62 = vmax.f32 %v15962_v49, %v3126_v14  ;;  %v11609_v58 = vmax.f32 %v1552_v41, 0.0  ;;  %4993 = vmatpush.msra.mxu0 %v4905_v2  ;;  %v15965_v41 = vrot.slane %v11498_v13, 6  ;;  %v3693_v49 = vperm.slane %v3383_v11, 2 }
 0x245   :  { %3537 = vst.msk [vmem:[#allocation3 + $0x21] ss:$8 sm:$0x3] %vm11439_vm7, %v15945_v0  ;;  %v3128_v50 = vsel %vm3124_vm6, %v2747_v36, %v2999_v32  ;;  %v1855_v36 = vrot.slane %v11582_v34, 2  ;;  %v3692_v32 = vperm.slane %v3383_v11, 0  ;;  %v15966_v14 = vld [vmem:[#allocation88_spill] sm:$0xff]  ;;  %5057 = vmatpush.msra.mxu1 %v4939_v29  ;;  %v3136_v34 = vsel %vm3124_vm6, %v11557_v46, %v3007_v22 }
 0x246   :  { %3540 = vst.msk [vmem:[#allocation3 + $0x51] ss:$8 sm:$0x3] %vm11439_vm7, %v15945_v0  ;;  %v3690_v20 = vperm.slane %v3382_v62, 0  ;;  %v3691_v24 = vperm.slane %v3382_v62, 2  ;;  %2840 = vrot.lane.b32.xlu2 %v11425_v5, %s10114_s11  ;;  %2842 = vrot.lane.b32.xlu0 %v11456_v45, %s10114_s11  ;;  %v11621_v4 = vmax.f32 %v15965_v41, %v9510_v23  ;;  %v3384_v2 = vmax.f32 %v15966_v14, %v3128_v50  ;;  %v4937_v31 = vld [vmem:[#allocation11 + $0x360] sm:$0xff] }
 0x247   :  { %15964 = vst [vmem:[#allocation66_spill] sm:$0xff] %v11596_v16  ;;  %v11629_v62 = vmax.f32 %v11540_v30, %v9511_v6  ;;  %4994 = vmatpush.msra.mxu0 %v4903_v15  ;;  %v4935_v30 = vld [vmem:[#allocation11 + $0x350] sm:$0xff]  ;;  %5058 = vmatpush.msra.mxu1 %v4937_v31  ;;  %v15968_v46 = vld [vmem:[#allocation46_spill] sm:$0xff]  ;;  %v1554_v29 = vadd.f32 %v11587_v27, %v15970_v51  ;;  %v15974_v27 = vrot.slane %v11604_v18, 4 }
 0x248   :  { %3543 = vst.msk [vmem:[#allocation3 + $0x81] ss:$8 sm:$0x3] %vm11439_vm7, %v15945_v0  ;;  %v3945_v13 = vsel %vm3944_vm8, %v3690_v20, %v3688_v35  ;;  %v3956_v23 = vsel %vm3944_vm8, %v3691_v24, %v3689_v42  ;;  %v2753_v11 = vpop.permute.xlu0 %2752  ;;  %v2769_v14 = vpop.permute.xlu2 %2768  ;;  %2844 = vrot.lane.b32.xlu1 %v11481_v28, %s10114_s11  ;;  %v4899_v6 = vld [vmem:[#allocation11 + $0x230] sm:$0xff]  ;;  %v3694_v35 = vperm.slane %v3384_v2, 0  ;;  %v3695_v15 = vperm.slane %v3384_v2, 2 }
 0x249   :  { %3546 = vst.msk [vmem:[#allocation3 + $0xb1] ss:$8 sm:$0x3] %vm11439_vm7, %v15945_v0  ;;  %v3947_v42 = vsel %vm3946_vm9, %v3692_v32, %v3945_v13  ;;  %v3957_v22 = vsel %vm3946_vm9, %v3693_v49, %v3956_v23  ;;  %4995 = vmatpush.msra.mxu0 %v4901_v26  ;;  %v1555_v50 = vadd.f32 %v11570_v3, %v15968_v46  ;;  %v3002_v20 = vrot.slane %v2753_v11, 2  ;;  %v15969_v2 = vld [vmem:[#allocation94_spill] sm:$0xff]  ;;  %v4933_v46 = vld [vmem:[#allocation11 + $0x340] sm:$0xff] }
 0x24a   :  { %3549 = vst.msk [vmem:[#allocation3 + $0xe1] ss:$8 sm:$0x3] %vm11439_vm7, %v15945_v0  ;;  %v11648_v24 = vpop.f32.mrf.mxu1  ;;  %v2755_v41 = vpop.permute.xlu1 %2754  ;;  %v9512_v32 = vrot.slane %v1855_v36, 9  ;;  %v11656_v49 = vsel %vm1746_vm4, %v11609_v58, %v11607_v1  ;;  %v11659_v31 = vmax.f32 %v15969_v2, %v3136_v34  ;;  %v3949_v26 = vsel %vm3948_vm10, %v3694_v35, %v3947_v42  ;;  %5059 = vmatpush.msra.mxu1 %v4935_v30  ;;  %v4931_v8 = vld [vmem:[#allocation11 + $0x330] sm:$0xff]  ;;  %v4897_v35 = vld [vmem:[#allocation11 + $0x220] sm:$0xff] }
 0x24b   :  { %15967 = vst [vmem:[#allocation69_spill] sm:$0xff] %v11629_v62  ;;  %v3958_v3 = vsel %vm3948_vm10, %v3695_v15, %v3957_v22  ;;  %v3003_v13 = vrot.slane %v2755_v41, 2  ;;  %v11663_v23 = vpop.f32.mrf.mxu0  ;;  %4996 = vmatpush.msra.mxu0 %v4899_v6  ;;  %v3010_v37 = vrot.slane %v2769_v14, 2  ;;  %v1860_v34 = vsel %vm1744_vm2, %v11609_v58, %v11607_v1  ;;  %v15973_v22 = vld [vmem:[#allocation89_spill] sm:$0xff] }
 0x24c   :  { %3552 = vst.msk [vmem:[#allocation3 + $0x111] ss:$8 sm:$0x3] %vm11439_vm7, %v15945_v0  ;;  %v15971_v15 = vperm.slane %v11463_v17, 0  ;;  %v15972_v30 = vperm.slane %v11463_v17, 2  ;;  %5060 = vmatpush.msra.mxu1 %v4933_v46  ;;  %v4929_v17 = vld [vmem:[#allocation11 + $0x320] sm:$0xff] }
 0x24d   :  { %3555 = vst.msk [vmem:[#allocation3 + $0x141] ss:$8 sm:$0x3] %vm11439_vm7, %v15945_v0  ;;  %v3132_v51 = vsel %vm3124_vm6, %v2755_v41, %v3003_v13  ;;  %4997 = vmatpush.msra.mxu0 %v4897_v35  ;;  %v15976_v41 = vperm.slane %v11505_v12, 0  ;;  %v4891_v45 = vld [vmem:[#allocation11 + $0x1f0] sm:$0xff] }
 0x24e   :  { %3558 = vst.msk [vmem:[#allocation3 + $0x171] ss:$8 sm:$0x3] %vm11439_vm7, %v15945_v0  ;;  %v3131_v0 = vsel %vm3124_vm6, %v2753_v11, %v3002_v20  ;;  %v3951_v42 = vsel %vm3950_vm11, %v15971_v15, %v3949_v26  ;;  %v3959_v6 = vsel %vm3950_vm11, %v15972_v30, %v3958_v3  ;;  %v9513_v11 = vrot.slane %v15974_v27, 9  ;;  %2848 = vrot.lane.b32.xlu0 %v11490_v55, %s10114_s11  ;;  %v15978_v27 = vld [vmem:[#allocation90_spill] sm:$0xff] }
 0x24f   :  { %v3387_v2 = vmax.f32 %v15973_v22, %v3131_v0  ;;  %v1619_v20 = vmax.f32 %v1555_v50, 0.0  ;;  %2846 = vrot.lane.b32.xlu2 %v11517_v21, %s10114_s11  ;;  %v11685_v26 = vmax.f32 %v1855_v36, %v9512_v32  ;;  %v1862_v3 = vrot.slane %v11656_v49, 2  ;;  %v4895_v0 = vld [vmem:[#allocation11 + $0x210] sm:$0xff]  ;;  %5061 = vmatpush.msra.mxu1 %v4931_v8 }
 0x250   :  { %v9515_v50 = vrot.slane %v1860_v34, 9  ;;  %v3953_v13 = vsel %vm3952_vm12, %v15976_v41, %v3951_v42  ;;  %v15977_v22 = vperm.slane %v11505_v12, 2  ;;  %v3139_v32 = vsel %vm3124_vm6, %v2769_v14, %v3010_v37  ;;  %v2759_v55 = vpop.permute.xlu0 %2758  ;;  %v2777_v28 = vpop.permute.xlu2 %2776  ;;  %2850 = vrot.lane.b32.xlu1 %v11533_v10, %s10114_s11  ;;  %v4927_v8 = vld [vmem:[#allocation11 + $0x310] sm:$0xff]  ;;  %4998 = vmatpush.msra.mxu0 %v4895_v0  ;;  %v4893_v12 = vld [vmem:[#allocation11 + $0x200] sm:$0xff] }
 0x251   :  { %15975 = vst [vmem:[#allocation70_spill] sm:$0xff] %v11685_v26  ;;  %v3700_v15 = vperm.slane %v3387_v2, 0  ;;  %v3701_v30 = vperm.slane %v3387_v2, 2  ;;  %v3388_v49 = vmax.f32 %v15978_v27, %v3132_v51  ;;  %v3005_v46 = vrot.slane %v2759_v55, 2  ;;  %5062 = vmatpush.msra.mxu1 %v4929_v17  ;;  %v4925_v10 = vld [vmem:[#allocation11 + $0x300] sm:$0xff]  ;;  %v4923_v21 = vld [vmem:[#allocation11 + $0x2f0] sm:$0xff] }
 0x252   :  { %v3960_v36 = vsel %vm3952_vm12, %v15977_v22, %v3959_v6  ;;  %v11704_v37 = vsel %vm1749_vm3, %v11609_v58, %v11607_v1  ;;  %v11707_v42 = vrot.slane %v1619_v20, 6  ;;  %v3014_v6 = vrot.slane %v2777_v28, 2  ;;  %v1481_v51 = vpop.f32.mrf.mxu1  ;;  %v2761_v41 = vpop.permute.xlu1 %2760  ;;  %4999 = vmatpush.msra.mxu0 %v4893_v12 }
 0x253   :  { %v3955_v35 = vsel %vm3954_vm13, %v3700_v15, %v3953_v13  ;;  %v3961_v2 = vsel %vm3954_vm13, %v3701_v30, %v3960_v36  ;;  %v9516_v15 = vrot.slane %v1862_v3, 9  ;;  %v15979_v30 = vld [vmem:[#allocation97_spill] sm:$0xff]  ;;  %v1557_v0 = vadd.f32 %v11648_v24, %v11082_v19  ;;  %v1368_v36 = vpop.f32.mrf.mxu0  ;;  %5063 = vmatpush.msra.mxu1 %v4927_v8 }
 0x254   :  { %4207 = vst [vmem:[#allocation3] sm:$0xfe] %v3955_v35  ;;  %v11711_v17 = vmax.f32 %v15979_v30, %v3139_v32  ;;  %v3134_v13 = vsel %vm3124_vm6, %v2759_v55, %v3005_v46  ;;  %v3006_v22 = vrot.slane %v2761_v41, 2  ;;  %v3702_v20 = vperm.slane %v3388_v49, 0  ;;  %v15980_v35 = vld [vmem:[#allocation91_spill] sm:$0xff]  ;;  %v15983_v46 = vld [vmem:[#allocation49_spill] sm:$0xff]  ;;  %5000 = vmatpush.msra.mxu0 %v4891_v45 }
 0x255   :  { %4209 = vst.msk [vmem:[#allocation3 + $0x8] sm:$0xfe] %vm4208_vm14, %v3961_v2  ;;  %v3703_v27 = vperm.slane %v3388_v49, 2  ;;  %v3390_v14 = vmax.f32 %v15980_v35, %v3134_v13  ;;  %v1864_v2 = vrot.slane %v11704_v37, 4  ;;  %v11718_v32 = vmax.f32 %v1554_v29, 0.0  ;;  %5064 = vmatpush.msra.mxu1 %v4925_v10 }
 0x256   :  { %v3135_v30 = vsel %vm3124_vm6, %v2761_v41, %v3006_v22  ;;  %v15981_v19 = vrot.slane %v11604_v18, 4  ;;  %v11725_v24 = vmax.f32 %v1860_v34, %v9515_v50  ;;  %v1556_v49 = vadd.f32 %v11663_v23, %v15983_v46  ;;  %2854 = vrot.lane.b32.xlu0 %v11574_v59, %s10114_s11 }
 0x257   :  { %v3706_v8 = vperm.slane %v3390_v14, 0  ;;  %v3707_v12 = vperm.slane %v3390_v14, 2  ;;  %v3143_v13 = vsel %vm3124_vm6, %v2777_v28, %v3014_v6  ;;  %2852 = vrot.lane.b32.xlu2 %v11546_v40, %s10114_s11  ;;  %v1621_v29 = vmax.f32 %v1557_v0, 0.0  ;;  %5065 = vmatpush.msra.mxu1 %v4923_v21 }
 0x258   :  { %v11723_v55 = vmax.f32 %v15981_v19, %v9513_v11  ;;  %15982 = vst [vmem:[#allocation71_spill] sm:$0xff] %v11725_v24  ;;  %v1559_v18 = vadd.f32 %v1481_v51, %v11090_v38  ;;  %v15984_v11 = vld [vmem:[#allocation93_spill] sm:$0xff]  ;;  %v11736_v50 = vmax.f32 %v1862_v3, %v9516_v15  ;;  %v3716_v10 = vperm.slane %v11711_v17, 0  ;;  %v2765_v6 = vpop.permute.xlu0 %2764  ;;  %v2783_v41 = vpop.permute.xlu2 %2782  ;;  %2856 = vrot.lane.b32.xlu1 %v11596_v16, %s10114_s11  ;;  %v15988_v3 = vld [vmem:[#allocation100_spill] sm:$0xff] }
 0x259   :  { %v3391_v34 = vmax.f32 %v15984_v11, %v3135_v30  ;;  %v15986_v23 = vperm.slane %v11544_v9, 0  ;;  %v15987_v37 = vperm.slane %v11544_v9, 2  ;;  %v9517_v38 = vrot.slane %v1864_v2, 9 }
 0x25a   :  { %15985 = vst [vmem:[#allocation72_spill] sm:$0xff] %v11736_v50  ;;  %v11748_v51 = vmax.f32 %v15988_v3, %v3143_v13  ;;  %v3008_v15 = vrot.slane %v2765_v6, 2  ;;  %v3717_v22 = vperm.slane %v11711_v17, 2  ;;  %v1484_v35 = vpop.f32.mrf.mxu1  ;;  %v2767_v30 = vpop.permute.xlu1 %2766  ;;  %v1865_v19 = vsel %vm1752_vm5, %v11607_v1, %v11609_v58  ;;  %v15989_v13 = vld [vmem:[#allocation50_spill] sm:$0xff] }
 0x25b   :  { %v3963_v28 = vsel %vm3962_vm15, %v15986_v23, %v3702_v20  ;;  %v3970_v14 = vsel %vm3962_vm15, %v15987_v37, %v3703_v27  ;;  %v3708_v45 = vperm.slane %v3391_v34, 0  ;;  %v3709_v21 = vperm.slane %v3391_v34, 2  ;;  %v4258_v0 = vld [vmem:[#allocation3] sm:$0xff]  ;;  %v1371_v37 = vpop.f32.mrf.mxu0 }
 0x25c   :  { %v3964_v20 = vsel %vm3944_vm8, %v3706_v8, %v3963_v28  ;;  %v3971_v9 = vsel %vm3944_vm8, %v3707_v12, %v3970_v14  ;;  %4416 = vmatmul.f32.vlgmr.msrb.gmra.mxu2 %v4258_v0  ;;  %v4259_v27 = vld [vmem:[#allocation3 + $0x8] sm:$0xff]  ;;  %v1623_v46 = vmax.f32 %v1559_v18, 0.0  ;;  %v1558_v11 = vadd.f32 %v1368_v36, %v15989_v13  ;;  %v4697_v16 = vld [vmem:[#allocation3] sm:$0xfe] }
 0x25d   :  { %v3137_v34 = vsel %vm3124_vm6, %v2765_v6, %v3008_v15  ;;  %v3017_v23 = vrot.slane %v2783_v41, 2  ;;  %9579 = vmatmul.msk.f32.vlgmr.msrb.gmra.mxu3 %vm3124_vm6, %v4259_v27  ;;  %v11759_v8 = vrot.slane %v1621_v29, 6  ;;  %v11761_v12 = vmax.f32 %v1556_v49, 0.0  ;;  %v15990_v28 = vld [vmem:[#allocation95_spill] sm:$0xff]  ;;  %v15994_v13 = vld [vmem:[#allocation96_spill] sm:$0xff] }
 0x25e   :  { %v3393_v14 = vmax.f32 %v15990_v28, %v3137_v34  ;;  %v11764_v3 = vmax.f32 %v1864_v2, %v9517_v38  ;;  %v3965_v1 = vsel %vm3946_vm9, %v3708_v45, %v3964_v20  ;;  %v3972_v58 = vsel %vm3946_vm9, %v3709_v21, %v3971_v9  ;;  %2860 = vrot.lane.b32.xlu0 %v11629_v62, %s10114_s11 }
 0x25f   :  { %v3009_v36 = vrot.slane %v2767_v30, 2  ;;  %2858 = vrot.lane.b32.xlu2 %v11621_v4, %s10114_s11  ;;  %v1866_v49 = vrot.slane %v1865_v19, 6  ;;  %v11774_v2 = vrot.slane %v1623_v46, 6  ;;  %v11776_v29 = vmax.f32 %v1558_v11, 0.0 }
 0x260   :  { %15991 = vst [vmem:[#allocation75_spill] sm:$0xff] %v11764_v3  ;;  %v3712_v6 = vperm.slane %v3393_v14, 0  ;;  %v3713_v15 = vperm.slane %v3393_v14, 2  ;;  %v3146_v38 = vsel %vm3124_vm6, %v2783_v41, %v3017_v23  ;;  %v15992_v21 = vperm.slane %v11659_v31, 0  ;;  %v2773_v28 = vpop.permute.xlu0 %2772  ;;  %v2789_v19 = vpop.permute.xlu2 %2788  ;;  %2862 = vrot.lane.b32.xlu1 %v11685_v26, %s10114_s11  ;;  %v15995_v23 = vld [vmem:[#allocation104_spill] sm:$0xff] }
 0x261   :  { %v3138_v45 = vsel %vm3124_vm6, %v2767_v30, %v3009_v36  ;;  %v15993_v9 = vperm.slane %v11659_v31, 2  ;;  %v11792_v41 = vsel %vm1744_vm2, %v11718_v32, %v11707_v42  ;;  %v3012_v11 = vrot.slane %v2773_v28, 2 }
 0x262   :  { %v3966_v20 = vsel %vm3948_vm10, %v15992_v21, %v3965_v1  ;;  %v3394_v34 = vmax.f32 %v15994_v13, %v3138_v45  ;;  %v3020_v31 = vrot.slane %v2789_v19, 2  ;;  %v11797_v14 = vmax.f32 %v15995_v23, %v3146_v38  ;;  %v1487_v36 = vpop.f32.mrf.mxu1  ;;  %v2775_v45 = vpop.permute.xlu1 %2774 }
 0x263   :  { %v3973_v27 = vsel %vm3948_vm10, %v15993_v9, %v3972_v58  ;;  %v3967_v30 = vsel %vm3950_vm11, %v3712_v6, %v3966_v20  ;;  %v9518_v21 = vrot.slane %v1866_v49, 9  ;;  %v15996_v9 = vld [vmem:[#allocation60_spill] sm:$0xff]  ;;  %v3013_v18 = vrot.slane %v2775_v45, 2  ;;  %v11800_v0 = vpop.f32.mrf.mxu0 }
 0x264   :  { %v3974_v46 = vsel %vm3950_vm11, %v3713_v15, %v3973_v27  ;;  %v3714_v1 = vperm.slane %v3394_v34, 0  ;;  %v3715_v58 = vperm.slane %v3394_v34, 2  ;;  %v1561_v13 = vadd.f32 %v1484_v35, %v15996_v9  ;;  %v15997_v27 = vld [vmem:[#allocation32_spill] sm:$0xff] }
 0x265   :  { %v11805_v6 = vsel %vm1749_vm3, %v11718_v32, %v11707_v42  ;;  %v11810_v15 = vsel %vm1746_vm4, %v11718_v32, %v11707_v42  ;;  %v1560_v34 = vadd.f32 %v1371_v37, %v15997_v27  ;;  %v3141_v35 = vsel %vm3124_vm6, %v2773_v28, %v3012_v11  ;;  %v16000_v37 = vld [vmem:[#allocation98_spill] sm:$0xff]  ;;  %v16001_v28 = vld [vmem:[#allocation99_spill] sm:$0xff] }
 0x266   :  { %v3968_v38 = vsel %vm3952_vm12, %v3714_v1, %v3967_v30  ;;  %v3975_v20 = vsel %vm3952_vm12, %v3715_v58, %v3974_v46  ;;  %v3149_v26 = vsel %vm3124_vm6, %v2789_v19, %v3020_v31  ;;  %v3142_v62 = vsel %vm3124_vm6, %v2775_v45, %v3013_v18  ;;  %2868 = vrot.lane.b32.xlu0 %v11725_v24, %s10114_s11  ;;  %v16002_v31 = vld [vmem:[#allocation27_spill] sm:$0xff] }
 0x267   :  { %v11819_v23 = vsel %vm3954_vm13, %v3716_v10, %v3968_v38  ;;  %v3976_v9 = vsel %vm3954_vm13, %v3717_v22, %v3975_v20  ;;  %2864 = vrot.lane.b32.xlu2 %v11723_v55, %s10114_s11  ;;  %v11830_v17 = vmax.f32 %v1866_v49, %v9518_v21  ;;  %v11835_v10 = vsel %vm1752_vm5, %v11707_v42, %v11718_v32  ;;  %v11843_v49 = vld [vmem:[#allocation3 + $0x8] sm:$0xfe] }
 0x268   :  { %15998 = vst [vmem:[#allocation76_spill] sm:$0xff] %v11819_v23  ;;  %v3397_v18 = vmax.f32 %v16000_v37, %v3141_v35  ;;  %v3398_v19 = vmax.f32 %v16001_v28, %v3142_v62  ;;  %4419 = vmatmul.f32.gmra.mxu2 %v11819_v23  ;;  %v15678_v46 = vrot.slane %v11819_v23, 1  ;;  %v1625_v11 = vmax.f32 %v1561_v13, 0.0  ;;  %v16003_v42 = vld [vmem:[#allocation35_spill] sm:$0xff]  ;;  %v2779_v58 = vpop.permute.xlu0 %2778  ;;  %v11851_v45 = vpop.permute.xlu2 %2794  ;;  %2870 = vrot.lane.b32.xlu1 %v11736_v50, %s10114_s11 }
 0x269   :  { %4210 = vst [vmem:[#allocation3 + $0x10] sm:$0xff] %v11819_v23  ;;  %v11846_v1 = vmax.f32 %v16002_v31, %v3149_v26  ;;  %v11849_v32 = vadd.f32 %v1487_v36, %v16003_v42  ;;  %v4794_v62 = vrot.slane %v4697_v16, 1  ;;  %v11855_v21 = vmax.f32 %v1560_v34, 0.0 }
 0x26a   :  { %15999 = vst [vmem:[#allocation79_spill] sm:$0xff] %v11830_v17  ;;  %v3722_v38 = vperm.slane %v3398_v19, 0  ;;  %v3723_v20 = vperm.slane %v3398_v19, 2  ;;  %v3015_v27 = vrot.slane %v2779_v58, 2  ;;  %v1490_v35 = vpop.f32.mrf.mxu1  ;;  %v2781_v13 = vpop.permute.xlu1 %2780  ;;  %v4797_v36 = vrot.slane %v11843_v49, 1 }
 0x26b   :  { %4211 = vst.msk [vmem:[#allocation3 + $0x18] sm:$0xff] %vm3124_vm6, %v3976_v9  ;;  %v11860_v26 = vsel %vm4793_vm0, %v4794_v62, %v15678_v46  ;;  %v9519_v9 = vrot.slane %v11792_v41, 9  ;;  %v1871_v37 = vrot.slane %v11805_v6, 4  ;;  %v3720_v28 = vperm.slane %v3397_v18, 0  ;;  %v16005_v46 = vld [vmem:[#allocation101_spill] sm:$0xff] }
 0x26c   :  { %16004 = vst [vmem:[#allocation80_spill] sm:$0xff] %v11860_v26  ;;  %v3721_v16 = vperm.slane %v3397_v18, 2  ;;  %v3144_v34 = vsel %vm3124_vm6, %v2779_v58, %v3015_v27  ;;  %5001 = vmatmul.f32.vlgmr.msra.gmra.mxu0 %v11860_v26  ;;  %v1869_v19 = vrot.slane %v11810_v15, 2  ;;  %v11868_v31 = vrot.slane %v1625_v11, 6  ;;  %v11876_v58 = vpop.f32.mrf.mxu0 }
 0x26d   :  { %v3400_v49 = vmax.f32 %v16005_v46, %v3144_v34  ;;  %v3977_v6 = vsel %vm3944_vm8, %v3722_v38, %v3720_v28  ;;  %v3016_v30 = vrot.slane %v2781_v13, 2  ;;  %v11885_v46 = vmax.f32 %v11792_v41, %v9519_v9  ;;  %v16010_v9 = vld [vmem:[#allocation102_spill] sm:$0xff] }
 0x26e   :  { %v3983_v18 = vsel %vm3944_vm8, %v3723_v20, %v3721_v16  ;;  %2874 = vrot.lane.b32.xlu0 %v11830_v17, %s10114_s11  ;;  %v1873_v11 = vrot.slane %v11835_v10, 6  ;;  %v3023_v38 = vrot.slane %v11851_v45, 2  ;;  %v9521_v28 = vrot.slane %v1871_v37, 9 }
 0x26f   :  { %v3726_v27 = vperm.slane %v3400_v49, 0  ;;  %v3727_v26 = vperm.slane %v3400_v49, 2  ;;  %2872 = vrot.lane.b32.xlu2 %v11764_v3, %s10114_s11  ;;  %16007 = vst [vmem:[#allocation85_spill] sm:$0xff] %v11885_v46  ;;  %v3145_v20 = vsel %vm3124_vm6, %v2781_v13, %v3016_v30  ;;  %v9520_v16 = vrot.slane %v1869_v19, 9 }
 0x270   :  { %v16008_v34 = vperm.slane %v11748_v51, 0  ;;  %v16009_v22 = vperm.slane %v11748_v51, 2  ;;  %v3401_v42 = vmax.f32 %v16010_v9, %v3145_v20  ;;  %v2785_v10 = vpop.permute.xlu0 %2784  ;;  %v2801_v62 = vpop.permute.xlu2 %2800  ;;  %2876 = vrot.lane.b32.xlu1 %v11885_v46, %s10114_s11  ;;  %v1875_v30 = vsel %vm1746_vm4, %v11761_v12, %v11759_v8 }
 0x271   :  { %v3018_v51 = vrot.slane %v2785_v10, 2  ;;  %v9522_v17 = vrot.slane %v1873_v11, 9  ;;  %v11913_v3 = vmax.f32 %v1871_v37, %v9521_v28  ;;  %v11920_v24 = vmax.f32 %v1869_v19, %v9520_v16 }
 0x272   :  { %v11878_v15 = vld [vmem:[#allocation3 + $0x18] sm:$0xff]  ;;  %v3978_v49 = vsel %vm3946_vm9, %v16008_v34, %v3977_v6  ;;  %v3984_v41 = vsel %vm3946_vm9, %v16009_v22, %v3983_v18  ;;  %v3728_v34 = vperm.slane %v3401_v42, 0  ;;  %v3729_v22 = vperm.slane %v3401_v42, 2  ;;  %v1493_v20 = vpop.f32.mrf.mxu1  ;;  %v2787_v9 = vpop.permute.xlu1 %2786  ;;  %v16013_v42 = vld [vmem:[#allocation103_spill] sm:$0xff] }
 0x273   :  { %16006 = vst [vmem:[#allocation29_spill] sm:$0xff] %v11878_v15  ;;  %9580 = vmatmul.msk.f32.gmra.mxu3 %vm3124_vm6, %v11878_v15  ;;  %v3979_v13 = vsel %vm3948_vm10, %v3726_v27, %v3978_v49  ;;  %v3985_v23 = vsel %vm3948_vm10, %v3727_v26, %v3984_v41  ;;  %v15686_v6 = vrot.slane %v11878_v15, 1  ;;  %v3026_v18 = vrot.slane %v2801_v62, 2 }
 0x274   :  { %v3147_v50 = vsel %vm3124_vm6, %v2785_v10, %v3018_v51  ;;  %16012 = vst [vmem:[#allocation28_spill] sm:$0xff] %v11913_v3  ;;  %v1876_v27 = vrot.slane %v1875_v30, 2  ;;  %v3980_v26 = vsel %vm3950_vm11, %v3728_v34, %v3979_v13  ;;  %v3986_v49 = vsel %vm3950_vm11, %v3729_v22, %v3985_v23  ;;  %v11942_v13 = vpop.f32.mrf.mxu0  ;;  %v16018_v34 = vld [vmem:[#allocation26_spill] sm:$0xff] }
 0x275   :  { %v11910_v46 = vsel %vm4793_vm0, %v4797_v36, %v15686_v6  ;;  %v3403_v41 = vmax.f32 %v16013_v42, %v3147_v50  ;;  %v3152_v36 = vsel %vm3124_vm6, %v11851_v45, %v3023_v38  ;;  %v16014_v6 = vld [vmem:[#allocation36_spill] sm:$0xff]  ;;  %v3019_v10 = vrot.slane %v2787_v9, 2 }
 0x276   :  { %16011 = vst [vmem:[#allocation92_spill] sm:$0xff] %v11910_v46  ;;  %9611 = vmatmul.msk.f32.vlgmr.msra.gmra.mxu1 %vm3124_vm6, %v11910_v46  ;;  %v1565_v15 = vadd.f32 %v1490_v35, %v16014_v6  ;;  %v1874_v37 = vsel %vm1744_vm2, %v11761_v12, %v11759_v8  ;;  %v3155_v23 = vsel %vm3124_vm6, %v2801_v62, %v3026_v18  ;;  %v16016_v45 = vperm.slane %v11797_v14, 0  ;;  %v16021_v42 = vld [vmem:[#allocation56_spill] sm:$0xff] }
 0x277   :  { %v3732_v28 = vperm.slane %v3403_v41, 0  ;;  %v3733_v30 = vperm.slane %v3403_v41, 2  ;;  %2880 = vrot.lane.b32.xlu0 %v11913_v3, %s10114_s11  ;;  %2878 = vrot.lane.b32.xlu2 %v11920_v24, %s10114_s11  ;;  %v11933_v50 = vmax.f32 %v1873_v11, %v9522_v17  ;;  %v16017_v19 = vperm.slane %v11797_v14, 2 }
 0x278   :  { %v3981_v35 = vsel %vm3952_vm12, %v16016_v45, %v3980_v26  ;;  %v3148_v16 = vsel %vm3124_vm6, %v2787_v9, %v3019_v10  ;;  %v9524_v62 = vrot.slane %v1876_v27, 9  ;;  %v2791_v11 = vpop.permute.xlu0 %2790  ;;  %v11947_v22 = vpop.permute.xlu2 %2808  ;;  %v9523_v14 = vrot.slane %v1874_v37, 9  ;;  %v16020_v9 = vld [vmem:[#allocation34_spill] sm:$0xff] }
 0x279   :  { %16015 = vst [vmem:[#allocation86_spill] sm:$0xff] %v11933_v50  ;;  %v3987_v38 = vsel %vm3952_vm12, %v16017_v19, %v3986_v49  ;;  %v3982_v6 = vsel %vm3954_vm13, %v3732_v28, %v3981_v35  ;;  %v3404_v17 = vmax.f32 %v16018_v34, %v3148_v16  ;;  %2882 = vrot.lane.b32.xlu1 %v11933_v50, %s10114_s11  ;;  %v16019_v18 = vmax.f32 %v11849_v32, 0.0  ;;  %v16024_v34 = vld [vmem:[#allocation45_spill] sm:$0xff]  ;;  %v16029_v50 = vld [vmem:[#allocation64_spill] sm:$0xff] }
 0x27a   :  { %v3988_v51 = vsel %vm3954_vm13, %v3733_v30, %v3987_v38  ;;  %v1562_v49 = vadd.f32 %v11800_v0, %v16020_v9  ;;  %v11958_v41 = vmax.f32 %v16021_v42, %v3152_v36  ;;  %4215 = vst [vmem:[#allocation3 + $0x30] sm:$0xfe] %v3982_v6  ;;  %v3021_v10 = vrot.slane %v2791_v11, 2  ;;  %v16022_v30 = vld [vmem:[#allocation63_spill] sm:$0xff]  ;;  %v1496_v19 = vpop.f32.mrf.mxu1  ;;  %v2793_v32 = vpop.permute.xlu1 %2792 }
 0x27b   :  { %v11953_v26 = vrot.slane %v16019_v18, 6  ;;  %v1629_v28 = vmax.f32 %v1565_v15, 0.0  ;;  %v1564_v45 = vadd.f32 %v11876_v58, %v16022_v30  ;;  %4216 = vst.msk [vmem:[#allocation3 + $0x38] sm:$0xfe] %vm4208_vm14, %v3988_v51  ;;  %v1567_v35 = vadd.f32 %v1493_v20, %v11177_v63 }
 0x27c   :  { %v1877_v38 = vsel %vm1749_vm3, %v11761_v12, %v11759_v8  ;;  %v11968_v0 = vmax.f32 %v11172_v39, %v3155_v23  ;;  %v3150_v36 = vsel %vm3124_vm6, %v2791_v11, %v3021_v10  ;;  %v3022_v16 = vrot.slane %v2793_v32, 2 }
 0x27d   :  { %v11971_v15 = vmax.f32 %v1876_v27, %v9524_v62  ;;  %v3734_v6 = vperm.slane %v3404_v17, 0  ;;  %v3735_v58 = vperm.slane %v3404_v17, 2  ;;  %v3406_v51 = vmax.f32 %v16024_v34, %v3150_v36  ;;  %v16025_v17 = vld [vmem:[#allocation31_spill] sm:$0xff] }
 0x27e   :  { %v11974_v18 = vmax.f32 %v1874_v37, %v9523_v14  ;;  %v11976_v63 = vmax.f32 %v1562_v49, 0.0  ;;  %v3742_v20 = vperm.slane %v11958_v41, 0  ;;  %v3151_v9 = vsel %vm3124_vm6, %v2793_v32, %v3022_v16 }
 0x27f   :  { %16023 = vst [vmem:[#allocation87_spill] sm:$0xff] %v11971_v15  ;;  %v1878_v42 = vrot.slane %v1877_v38, 4  ;;  %v3743_v39 = vperm.slane %v11958_v41, 2  ;;  %v11981_v23 = vrot.slane %v1629_v28, 6  ;;  %v3738_v11 = vperm.slane %v3406_v51, 0  ;;  %2886 = vrot.lane.b32.xlu0 %v11971_v15, %s10114_s11 }
 0x280   :  { %v3739_v27 = vperm.slane %v3406_v51, 2  ;;  %2884 = vrot.lane.b32.xlu2 %v11974_v18, %s10114_s11  ;;  %v11987_v37 = vmax.f32 %v1564_v45, 0.0  ;;  %v1631_v62 = vmax.f32 %v1567_v35, 0.0  ;;  %v3407_v14 = vmax.f32 %v16025_v17, %v3151_v9  ;;  %v2797_v38 = vpop.permute.xlu0 %2796  ;;  %v2815_v36 = vpop.permute.xlu2 %2814 }
 0x281   :  { %v9525_v49 = vrot.slane %v1878_v42, 9  ;;  %v16026_v41 = vperm.slane %v11846_v1, 0  ;;  %v16027_v30 = vperm.slane %v11846_v1, 2  ;;  %v4262_v16 = vld [vmem:[#allocation3 + $0x30] sm:$0xff]  ;;  %v1879_v45 = vsel %vm1752_vm5, %v11759_v8, %v11761_v12  ;;  %v1383_v51 = vpop.f32.mrf.mxu0 }
 0x282   :  { %v3740_v35 = vperm.slane %v3407_v14, 0  ;;  %v3741_v34 = vperm.slane %v3407_v14, 2  ;;  %v3024_v9 = vrot.slane %v2797_v38, 2  ;;  %4422 = vmatmul.f32.gmra.mxu2 %v4262_v16  ;;  %v4263_v17 = vld [vmem:[#allocation3 + $0x38] sm:$0xff]  ;;  %v2799_v8 = vpop.permute.xlu1 %2798  ;;  %v1880_v12 = vrot.slane %v1879_v45, 6 }
 0x283   :  { %v3989_v28 = vsel %vm3962_vm15, %v16026_v41, %v3734_v6  ;;  %v3996_v32 = vsel %vm3962_vm15, %v16027_v30, %v3735_v58  ;;  %v1881_v6 = vsel %vm1744_vm2, %v11776_v29, %v11774_v2  ;;  %v12005_v41 = vmax.f32 %v1878_v42, %v9525_v49  ;;  %9581 = vmatmul.msk.f32.gmra.mxu3 %vm3124_vm6, %v4263_v17  ;;  %v1499_v30 = vpop.f32.mrf.mxu1 }
 0x284   :  { %v3990_v1 = vsel %vm3944_vm8, %v3738_v11, %v3989_v28  ;;  %v3997_v58 = vsel %vm3944_vm8, %v3739_v27, %v3996_v32  ;;  %v3749_v14 = vperm.slane %v11968_v0, 2  ;;  %v3030_v16 = vrot.slane %v11947_v22, 2  ;;  %v16030_v27 = vld [vmem:[#allocation59_spill] sm:$0xff] }
 0x285   :  { %16028 = vst [vmem:[#allocation88_spill] sm:$0xff] %v12005_v41  ;;  %v3153_v10 = vsel %vm3124_vm6, %v2797_v38, %v3024_v9  ;;  %v3033_v46 = vrot.slane %v2815_v36, 2  ;;  %v12011_v15 = vrot.slane %v1631_v62, 6  ;;  %v1566_v11 = vadd.f32 %v11942_v13, %v16029_v50  ;;  %2888 = vrot.lane.b32.xlu1 %v12005_v41, %s10114_s11 }
 0x286   :  { %v3409_v42 = vmax.f32 %v16030_v27, %v3153_v10  ;;  %v9527_v49 = vrot.slane %v1881_v6, 9  ;;  %v3991_v28 = vsel %vm3946_vm9, %v3740_v35, %v3990_v1  ;;  %v3998_v32 = vsel %vm3946_vm9, %v3741_v34, %v3997_v58 }
 0x287   :  { %v3025_v45 = vrot.slane %v2799_v8, 2  ;;  %v9526_v17 = vrot.slane %v1880_v12, 9  ;;  %v1569_v38 = vadd.f32 %v1496_v19, %v11183_v53  ;;  %v1882_v50 = vsel %vm1746_vm4, %v11776_v29, %v11774_v2  ;;  %v16031_v53 = vld [vmem:[#allocation33_spill] sm:$0xff] }
 0x288   :  { %v3744_v9 = vperm.slane %v3409_v42, 0  ;;  %v3745_v62 = vperm.slane %v3409_v42, 2  ;;  %v3159_v13 = vsel %vm3124_vm6, %v11947_v22, %v3030_v16  ;;  %v3162_v10 = vsel %vm3124_vm6, %v2815_v36, %v3033_v46  ;;  %v2805_v42 = vpop.permute.xlu0 %2804  ;;  %v12035_v41 = vpop.permute.xlu2 %2820 }
 0x289   :  { %v3154_v27 = vsel %vm3124_vm6, %v2799_v8, %v3025_v45  ;;  %v12028_v35 = vmax.f32 %v1880_v12, %v9526_v17  ;;  %v3992_v34 = vsel %vm3948_vm10, %v3742_v20, %v3991_v28  ;;  %v3999_v1 = vsel %vm3948_vm10, %v3743_v39, %v3998_v32  ;;  %v1386_v45 = vpop.f32.mrf.mxu0 }
 0x28a   :  { %v3410_v19 = vmax.f32 %v16031_v53, %v3154_v27  ;;  %v12033_v58 = vmax.f32 %v1881_v6, %v9527_v49  ;;  %v3993_v3 = vsel %vm3950_vm11, %v3744_v9, %v3992_v34  ;;  %v4000_v22 = vsel %vm3950_vm11, %v3745_v62, %v3999_v1  ;;  %v2807_v16 = vpop.permute.xlu1 %2806 }
 0x28b   :  { %2890 = vrot.lane.b32.xlu2 %v12028_v35, %s10114_s11  ;;  %v3028_v46 = vrot.slane %v2805_v42, 2  ;;  %v1883_v36 = vrot.slane %v1882_v50, 2  ;;  %v12042_v20 = vmax.f32 %v11238_v33, %v3159_v13  ;;  %v1633_v39 = vmax.f32 %v1569_v38, 0.0  ;;  %v12046_v6 = vpop.f32.mrf.mxu1 }
 0x28c   :  { %v3746_v8 = vperm.slane %v3410_v19, 0  ;;  %v3747_v12 = vperm.slane %v3410_v19, 2  ;;  %2892 = vrot.lane.b32.xlu0 %v12033_v58, %s10114_s11  ;;  %v1568_v49 = vadd.f32 %v1383_v51, %v11180_v56  ;;  %v12050_v28 = vmax.f32 %v11302_v43, %v3162_v10 }
 0x28d   :  { %v1571_v32 = vadd.f32 %v1499_v30, %v11191_v44  ;;  %v9528_v17 = vrot.slane %v1883_v36, 9  ;;  %v3157_v9 = vsel %vm3124_vm6, %v2805_v42, %v3028_v46  ;;  %v1884_v62 = vsel %vm1749_vm3, %v11776_v29, %v11774_v2 }
 0x28e   :  { %v3994_v33 = vsel %vm3952_vm12, %v3746_v8, %v3993_v3  ;;  %v4001_v38 = vsel %vm3952_vm12, %v3747_v12, %v4000_v22  ;;  %v16032_v50 = vperm.slane %v11968_v0, 0  ;;  %v1888_v44 = vsel %vm1744_vm2, %v11855_v21, %v11868_v31 }
 0x28f   :  { %v4002_v43 = vsel %vm3954_vm13, %v3749_v14, %v4001_v38  ;;  %v12063_v51 = vmax.f32 %v1883_v36, %v9528_v17  ;;  %v12068_v3 = vmax.f32 %v1566_v11, 0.0  ;;  %v3756_v30 = vperm.slane %v12042_v20, 0 }
 0x290   :  { %v3995_v56 = vsel %vm3954_vm13, %v16032_v50, %v3994_v33  ;;  %v3757_v13 = vperm.slane %v12042_v20, 2  ;;  %v12072_v10 = vrot.slane %v1633_v39, 6  ;;  %v12074_v0 = vmax.f32 %v1568_v49, 0.0  ;;  %4218 = vst.msk [vmem:[#allocation3 + $0x48] sm:$0xff] %vm3124_vm6, %v4002_v43  ;;  %v2811_v19 = vpop.permute.xlu0 %2810  ;;  %v2827_v42 = vpop.permute.xlu2 %2826 }
 0x291   :  { %4217 = vst [vmem:[#allocation3 + $0x40] sm:$0xff] %v3995_v56  ;;  %4425 = vmatmul.f32.gmra.mxu2 %v3995_v56  ;;  %v3413_v14 = vmax.f32 %v11174_v52, %v3157_v9  ;;  %2894 = vrot.lane.b32.xlu1 %v12063_v51, %s10114_s11  ;;  %v3029_v27 = vrot.slane %v2807_v16, 2  ;;  %v1885_v11 = vrot.slane %v1884_v62, 4  ;;  %v3762_v34 = vperm.slane %v12050_v28, 0 }
 0x292   :  { %v1570_v1 = vadd.f32 %v1386_v45, %v11188_v57  ;;  %v9531_v53 = vrot.slane %v1888_v44, 9  ;;  %v1889_v22 = vsel %vm1746_vm4, %v11855_v21, %v11868_v31  ;;  %v1635_v46 = vmax.f32 %v1571_v32, 0.0  ;;  %v2813_v57 = vpop.permute.xlu1 %2812 }
 0x293   :  { %v3158_v36 = vsel %vm3124_vm6, %v2807_v16, %v3029_v27  ;;  %v9529_v52 = vrot.slane %v1885_v11, 9  ;;  %v3031_v20 = vrot.slane %v2811_v19, 2  ;;  %v3036_v39 = vrot.slane %v12035_v41, 2  ;;  %v1505_v38 = vpop.f32.mrf.mxu1 }
 0x294   :  { %v3414_v8 = vmax.f32 %v11197_v61, %v3158_v36  ;;  %v12088_v12 = vmax.f32 %v1888_v44, %v9531_v53  ;;  %v1890_v49 = vrot.slane %v1889_v22, 2  ;;  %v3752_v45 = vperm.slane %v3413_v14, 0  ;;  %v1389_v61 = vpop.f32.mrf.mxu0 }
 0x295   :  { %v12090_v17 = vmax.f32 %v1885_v11, %v9529_v52  ;;  %v3160_v33 = vsel %vm3124_vm6, %v2811_v19, %v3031_v20  ;;  %v3032_v9 = vrot.slane %v2813_v57, 2  ;;  %v3753_v32 = vperm.slane %v3413_v14, 2 }
 0x296   :  { %v3754_v62 = vperm.slane %v3414_v8, 0  ;;  %v3755_v16 = vperm.slane %v3414_v8, 2  ;;  %2900 = vrot.lane.b32.xlu0 %v12088_v12, %s10114_s11  ;;  %v3416_v50 = vmax.f32 %v11240_v7, %v3160_v33  ;;  %v9532_v56 = vrot.slane %v1890_v49, 9 }
 0x297   :  { %2896 = vrot.lane.b32.xlu2 %v12090_v17, %s10114_s11  ;;  %v3161_v43 = vsel %vm3124_vm6, %v2813_v57, %v3032_v9  ;;  %v1891_v44 = vsel %vm1749_vm3, %v11855_v21, %v11868_v31  ;;  %v1893_v14 = vsel %vm1752_vm5, %v11868_v31, %v11855_v21  ;;  %v4265_v19 = vld [vmem:[#allocation3 + $0x48] sm:$0xff]  ;;  %v3763_v22 = vperm.slane %v12050_v28, 2 }
 0x298   :  { %v4003_v27 = vsel %vm3944_vm8, %v3754_v62, %v3752_v45  ;;  %v4009_v11 = vsel %vm3944_vm8, %v3755_v16, %v3753_v32  ;;  %v3758_v7 = vperm.slane %v3416_v50, 0  ;;  %v3759_v53 = vperm.slane %v3416_v50, 2  ;;  %9582 = vmatmul.msk.f32.gmra.mxu3 %vm3124_vm6, %v4265_v19  ;;  %v2817_v45 = vpop.permute.xlu0 %2816  ;;  %v12122_v33 = vpop.permute.xlu2 %2832 }
 0x299   :  { %v12108_v36 = vrot.slane %v1635_v46, 6  ;;  %v12110_v52 = vmax.f32 %v1570_v1, 0.0  ;;  %v3165_v20 = vsel %vm3124_vm6, %v12035_v41, %v3036_v39  ;;  %v12117_v21 = vadd.f32 %v12046_v6, %v11222_v25 }
 0x29a   :  { %v4004_v31 = vsel %vm3946_vm9, %v3756_v30, %v4003_v27  ;;  %v3039_v8 = vrot.slane %v2827_v42, 2  ;;  %v12120_v57 = vmax.f32 %v1890_v49, %v9532_v56  ;;  %v4010_v1 = vsel %vm3946_vm9, %v3757_v13, %v4009_v11  ;;  %v2819_v30 = vpop.permute.xlu1 %2818 }
 0x29b   :  { %v3417_v46 = vmax.f32 %v11260_v47, %v3161_v43  ;;  %v1892_v9 = vrot.slane %v1891_v44, 4  ;;  %v1894_v41 = vrot.slane %v1893_v14, 6  ;;  %v4005_v39 = vsel %vm3948_vm10, %v3758_v7, %v4004_v31  ;;  %v1508_v7 = vpop.f32.mrf.mxu1 }
 0x29c   :  { %v4011_v32 = vsel %vm3948_vm10, %v3759_v53, %v4010_v1  ;;  %2902 = vrot.lane.b32.xlu1 %v12120_v57, %s10114_s11  ;;  %v3034_v25 = vrot.slane %v2817_v45, 2  ;;  %v1895_v6 = vsel %vm1744_vm2, %v11976_v63, %v11953_v26  ;;  %v12134_v49 = vmax.f32 %v11341_v48, %v3165_v20  ;;  %v16033_v20 = vld [vmem:[#allocation47_spill] sm:$0xff]  ;;  %v1392_v1 = vpop.f32.mrf.mxu0 }
 0x29d   :  { %v3760_v13 = vperm.slane %v3417_v46, 0  ;;  %v3761_v47 = vperm.slane %v3417_v46, 2  ;;  %v9533_v62 = vrot.slane %v1892_v9, 9  ;;  %v3168_v16 = vsel %vm3124_vm6, %v2827_v42, %v3039_v8  ;;  %v16034_v8 = vld [vmem:[#allocation68_spill] sm:$0xff] }
 0x29e   :  { %v9534_v50 = vrot.slane %v1894_v41, 9  ;;  %v3163_v56 = vsel %vm3124_vm6, %v2817_v45, %v3034_v25  ;;  %v9535_v43 = vrot.slane %v1895_v6, 9  ;;  %v1637_v48 = vmax.f32 %v12117_v21, 0.0 }
 0x29f   :  { %v4006_v44 = vsel %vm3950_vm11, %v3760_v13, %v4005_v39  ;;  %v4012_v14 = vsel %vm3950_vm11, %v3761_v47, %v4011_v32  ;;  %v12140_v27 = vmax.f32 %v1892_v9, %v9533_v62  ;;  %v3419_v11 = vmax.f32 %v11300_v54, %v3163_v56 }
 0x2a0   :  { %v1572_v53 = vadd.f32 %v1389_v61, %v11211_v60  ;;  %v12145_v19 = vmax.f32 %v1894_v41, %v9534_v50  ;;  %v1898_v42 = vsel %vm1749_vm3, %v11976_v63, %v11953_v26  ;;  %v12151_v31 = vmax.f32 %v16033_v20, %v3168_v16  ;;  %v2823_v41 = vpop.permute.xlu0 %2822  ;;  %v16035_v16 = vld [vmem:[#allocation77_spill] sm:$0xff] }
 0x2a1   :  { %v1575_v45 = vadd.f32 %v1505_v38, %v16034_v8  ;;  %2904 = vrot.lane.b32.xlu2 %v12140_v27, %s10114_s11  ;;  %v3764_v54 = vperm.slane %v3419_v11, 0  ;;  %v3765_v46 = vperm.slane %v3419_v11, 2  ;;  %v4007_v60 = vsel %vm3952_vm12, %v3762_v34, %v4006_v44  ;;  %v2841_v38 = vpop.permute.xlu2 %2840 }
 0x2a2   :  { %2906 = vrot.lane.b32.xlu0 %v12145_v19, %s10114_s11  ;;  %v4013_v61 = vsel %vm3952_vm12, %v3763_v22, %v4012_v14  ;;  %v12162_v21 = vmax.f32 %v1895_v6, %v9535_v43  ;;  %v3035_v9 = vrot.slane %v2819_v30, 2  ;;  %v3042_v25 = vrot.slane %v12122_v33, 2  ;;  %v2825_v6 = vpop.permute.xlu1 %2824 }
 0x2a3   :  { %v4008_v39 = vsel %vm3954_vm13, %v3764_v54, %v4007_v60  ;;  %v4014_v32 = vsel %vm3954_vm13, %v3765_v46, %v4013_v61  ;;  %v1899_v13 = vrot.slane %v1898_v42, 4  ;;  %v3768_v47 = vperm.slane %v12134_v49, 0  ;;  %v16036_v46 = vld [vmem:[#allocation43_spill] sm:$0xff] }
 0x2a4   :  { %4221 = vst [vmem:[#allocation3 + $0x60] sm:$0xfe] %v4008_v39  ;;  %2908 = vrot.lane.b32.xlu1 %v12162_v21, %s10114_s11  ;;  %v3164_v28 = vsel %vm3124_vm6, %v2819_v30, %v3035_v9  ;;  %v1896_v34 = vsel %vm1746_vm4, %v11976_v63, %v11953_v26  ;;  %v3037_v22 = vrot.slane %v2823_v41, 2  ;;  %v1639_v62 = vmax.f32 %v1575_v45, 0.0 }
 0x2a5   :  { %4222 = vst.msk [vmem:[#allocation3 + $0x68] sm:$0xfe] %vm4208_vm14, %v4014_v32  ;;  %v3420_v50 = vmax.f32 %v16035_v16, %v3164_v28  ;;  %v9537_v56 = vrot.slane %v1899_v13, 9  ;;  %v1897_v43 = vrot.slane %v1896_v34, 2  ;;  %v3769_v44 = vperm.slane %v12134_v49, 2  ;;  %v16038_v32 = vld [vmem:[#allocation84_spill] sm:$0xff]  ;;  %v1395_v16 = vpop.f32.mrf.mxu0 }
 0x2a6   :  { %v12177_v14 = vrot.slane %v1637_v48, 6  ;;  %v3166_v11 = vsel %vm3124_vm6, %v2823_v41, %v3037_v22  ;;  %v1900_v30 = vsel %vm1752_vm5, %v11953_v26, %v11976_v63  ;;  %v12183_v42 = vmax.f32 %v1572_v53, 0.0  ;;  %v1511_v63 = vpop.f32.mrf.mxu1  ;;  %v16037_v53 = vld [vmem:[#allocation67_spill] sm:$0xff]  ;;  %v16039_v22 = vld [vmem:[#allocation38_spill] sm:$0xff] }
 0x2a7   :  { %v3171_v8 = vsel %vm3124_vm6, %v12122_v33, %v3042_v25  ;;  %v9536_v45 = vrot.slane %v1897_v43, 9  ;;  %v12188_v54 = vmax.f32 %v1899_v13, %v9537_v56  ;;  %v3422_v49 = vmax.f32 %v16036_v46, %v3166_v11 }
 0x2a8   :  { %v3046_v48 = vrot.slane %v2841_v38, 2  ;;  %v1901_v60 = vrot.slane %v1900_v30, 6  ;;  %v12192_v9 = vrot.slane %v1639_v62, 6  ;;  %v3766_v41 = vperm.slane %v3420_v50, 0  ;;  %v2829_v28 = vpop.permute.xlu0 %2828 }
 0x2a9   :  { %v12194_v26 = vmax.f32 %v1897_v43, %v9536_v45  ;;  %v12197_v39 = vadd.f32 %v1392_v1, %v16037_v53  ;;  %v12200_v33 = vmax.f32 %v16038_v32, %v3171_v8  ;;  %v3767_v25 = vperm.slane %v3420_v50, 2  ;;  %v12204_v34 = vpop.permute.xlu2 %2846  ;;  %v16041_v8 = vld [vmem:[#allocation40_spill] sm:$0xff] }
 0x2aa   :  { %2912 = vrot.lane.b32.xlu0 %v12188_v54, %s10114_s11  ;;  %v9538_v13 = vrot.slane %v1901_v60, 9  ;;  %v12207_v62 = vadd.f32 %v1508_v7, %v16039_v22  ;;  %v3770_v1 = vperm.slane %v3422_v49, 0  ;;  %v3771_v56 = vperm.slane %v3422_v49, 2  ;;  %v2831_v53 = vpop.permute.xlu1 %2830 }
 0x2ab   :  { %2910 = vrot.lane.b32.xlu2 %v12194_v26, %s10114_s11  ;;  %v3038_v43 = vrot.slane %v2825_v6, 2  ;;  %v4266_v11 = vld [vmem:[#allocation3 + $0x60] sm:$0xff]  ;;  %v3175_v50 = vsel %vm3124_vm6, %v2841_v38, %v3046_v48  ;;  %v12215_v45 = vadd.f32 %v1511_v63, %v16041_v8  ;;  %v1903_v7 = vsel %vm1746_vm4, %v11987_v37, %v11981_v23 }
 0x2ac   :  { %v12212_v30 = vmax.f32 %v1901_v60, %v9538_v13  ;;  %4428 = vmatmul.f32.gmra.mxu2 %v4266_v11  ;;  %v4267_v46 = vld [vmem:[#allocation3 + $0x68] sm:$0xff]  ;;  %v4015_v32 = vsel %vm3962_vm15, %v3768_v47, %v3766_v41  ;;  %v1904_v22 = vrot.slane %v1903_v7, 2  ;;  %v1902_v38 = vsel %vm1744_vm2, %v11987_v37, %v11981_v23 }
 0x2ad   :  { %v3167_v49 = vsel %vm3124_vm6, %v2825_v6, %v3038_v43  ;;  %9583 = vmatmul.msk.f32.gmra.mxu3 %vm3124_vm6, %v4267_v46  ;;  %v4022_v48 = vsel %vm3962_vm15, %v3769_v44, %v3767_v25  ;;  %v16042_v60 = vld [vmem:[#allocation44_spill] sm:$0xff]  ;;  %v9539_v13 = vrot.slane %v1902_v38, 9  ;;  %v3040_v11 = vrot.slane %v2829_v28, 2 }
 0x2ae   :  { %16040 = vst [vmem:[#allocation46_spill] sm:$0xff] %v12212_v30  ;;  %2914 = vrot.lane.b32.xlu1 %v12212_v30, %s10114_s11  ;;  %v3423_v63 = vmax.f32 %v16042_v60, %v3167_v49  ;;  %v4016_v47 = vsel %vm3944_vm8, %v3770_v1, %v4015_v32  ;;  %v4023_v6 = vsel %vm3944_vm8, %v3771_v56, %v4022_v48  ;;  %v9540_v41 = vrot.slane %v1904_v22, 9  ;;  %v16045_v49 = vld [vmem:[#allocation48_spill] sm:$0xff] }
 0x2af   :  { %v1905_v43 = vsel %vm1749_vm3, %v11987_v37, %v11981_v23  ;;  %v3169_v44 = vsel %vm3124_vm6, %v2829_v28, %v3040_v11  ;;  %v3041_v25 = vrot.slane %v2831_v53, 2  ;;  %v12238_v61 = vmax.f32 %v1902_v38, %v9539_v13 }
 0x2b0   :  { %v3772_v8 = vperm.slane %v3423_v63, 0  ;;  %v3773_v7 = vperm.slane %v3423_v63, 2  ;;  %v12236_v46 = vmax.f32 %v1904_v22, %v9540_v41  ;;  %v3425_v60 = vmax.f32 %v16045_v49, %v3169_v44  ;;  %v2837_v30 = vpop.permute.xlu0 %2836  ;;  %v16046_v22 = vld [vmem:[#allocation37_spill] sm:$0xff] }
 0x2b1   :  { %16044 = vst [vmem:[#allocation30_spill] sm:$0xff] %v12238_v61  ;;  %v1906_v20 = vrot.slane %v1905_v43, 4  ;;  %v3780_v1 = vperm.slane %v12200_v33, 0  ;;  %v3781_v56 = vperm.slane %v12200_v33, 2  ;;  %v12245_v63 = vpop.permute.xlu2 %2852  ;;  %v1641_v28 = vmax.f32 %v12207_v62, 0.0 }
 0x2b2   :  { %16043 = vst [vmem:[#allocation94_spill] sm:$0xff] %v12236_v46  ;;  %v4017_v32 = vsel %vm3946_vm9, %v3772_v8, %v4016_v47  ;;  %v4024_v48 = vsel %vm3946_vm9, %v3773_v7, %v4023_v6  ;;  %v1576_v11 = vadd.f32 %v1395_v16, %v16046_v22  ;;  %2918 = vrot.lane.b32.xlu0 %v12236_v46, %s10114_s11  ;;  %v3776_v38 = vperm.slane %v3425_v60, 0  ;;  %v2839_v43 = vpop.permute.xlu1 %2838  ;;  %v1398_v16 = vpop.f32.mrf.mxu0 }
 0x2b3   :  { %2916 = vrot.lane.b32.xlu2 %v12238_v61, %s10114_s11  ;;  %v3777_v13 = vperm.slane %v3425_v60, 2  ;;  %v12254_v33 = vmax.f32 %v11425_v5, %v3175_v50  ;;  %v1643_v47 = vmax.f32 %v12215_v45, 0.0  ;;  %v16047_v6 = vperm.slane %v12151_v31, 0  ;;  %v16050_v45 = vld [vmem:[#allocation83_spill] sm:$0xff] }
 0x2b4   :  { %v9541_v62 = vrot.slane %v1906_v20, 9  ;;  %v16048_v8 = vperm.slane %v12151_v31, 2  ;;  %v3049_v49 = vrot.slane %v12204_v34, 2  ;;  %v3170_v5 = vsel %vm3124_vm6, %v2831_v53, %v3041_v25 }
 0x2b5   :  { %v4018_v41 = vsel %vm3948_vm10, %v16047_v6, %v4017_v32  ;;  %v3426_v60 = vmax.f32 %v16050_v45, %v3170_v5  ;;  %v1907_v32 = vsel %vm1752_vm5, %v11981_v23, %v11987_v37  ;;  %v1909_v31 = vsel %vm1744_vm2, %v12068_v3, %v12011_v15 }
 0x2b6   :  { %v4025_v7 = vsel %vm3948_vm10, %v16048_v8, %v4024_v48  ;;  %v4019_v44 = vsel %vm3950_vm11, %v3776_v38, %v4018_v41  ;;  %v12266_v50 = vmax.f32 %v1906_v20, %v9541_v62  ;;  %v1908_v22 = vrot.slane %v1907_v32, 6  ;;  %v16051_v41 = vld [vmem:[#allocation39_spill] sm:$0xff] }
 0x2b7   :  { %v4026_v48 = vsel %vm3950_vm11, %v3777_v13, %v4025_v7  ;;  %v9543_v38 = vrot.slane %v1909_v31, 9  ;;  %v3044_v6 = vrot.slane %v2837_v30, 2  ;;  %v1578_v8 = vadd.f32 %v1398_v16, %v16051_v41 }
 0x2b8   :  { %16049 = vst [vmem:[#allocation89_spill] sm:$0xff] %v12266_v50  ;;  %2920 = vrot.lane.b32.xlu1 %v12266_v50, %s10114_s11  ;;  %v3778_v20 = vperm.slane %v3426_v60, 0  ;;  %v3779_v53 = vperm.slane %v3426_v60, 2  ;;  %v1910_v23 = vsel %vm1746_vm4, %v12068_v3, %v12011_v15  ;;  %v9542_v37 = vrot.slane %v1908_v22, 9  ;;  %v2843_v60 = vpop.permute.xlu0 %2842 }
 0x2b9   :  { %v12282_v25 = vmax.f32 %v1909_v31, %v9543_v38  ;;  %v3173_v62 = vsel %vm3124_vm6, %v2837_v30, %v3044_v6  ;;  %v1911_v13 = vrot.slane %v1910_v23, 2  ;;  %v12286_v7 = vmax.f32 %v12197_v39, 0.0  ;;  %v2859_v32 = vpop.permute.xlu2 %2858 }
 0x2ba   :  { %v12288_v5 = vmax.f32 %v1576_v11, 0.0  ;;  %v4020_v16 = vsel %vm3952_vm12, %v3778_v20, %v4019_v44  ;;  %v4027_v45 = vsel %vm3952_vm12, %v3779_v53, %v4026_v48  ;;  %v3178_v41 = vsel %vm3124_vm6, %v12204_v34, %v3049_v49  ;;  %v16054_v44 = vld [vmem:[#allocation51_spill] sm:$0xff]  ;;  %v2845_v20 = vpop.permute.xlu1 %2844 }
 0x2bb   :  { %16052 = vst [vmem:[#allocation90_spill] sm:$0xff] %v12282_v25  ;;  %v4021_v31 = vsel %vm3954_vm13, %v3780_v1, %v4020_v16  ;;  %v4028_v38 = vsel %vm3954_vm13, %v3781_v56, %v4027_v45  ;;  %v12296_v30 = vmax.f32 %v1908_v22, %v9542_v37  ;;  %2924 = vrot.lane.b32.xlu0 %v12282_v25, %s10114_s11  ;;  %v12300_v39 = vrot.slane %v1641_v28, 6  ;;  %v1514_v16 = vpop.f32.mrf.mxu1 }
 0x2bc   :  { %v12302_v11 = vrot.slane %v1643_v47, 6  ;;  %4223 = vst [vmem:[#allocation3 + $0x70] sm:$0xff] %v4021_v31  ;;  %v3429_v48 = vmax.f32 %v16054_v44, %v3173_v62  ;;  %v9544_v6 = vrot.slane %v1911_v13, 9  ;;  %4431 = vmatmul.f32.gmra.mxu2 %v4021_v31  ;;  %v3788_v34 = vperm.slane %v12254_v33, 0  ;;  %v16055_v47 = vld [vmem:[#allocation62_spill] sm:$0xff] }
 0x2bd   :  { %16053 = vst [vmem:[#allocation97_spill] sm:$0xff] %v12296_v30  ;;  %v3789_v1 = vperm.slane %v12254_v33, 2  ;;  %v12307_v56 = vmax.f32 %v1578_v8, 0.0  ;;  %2922 = vrot.lane.b32.xlu2 %v12296_v30, %s10114_s11  ;;  %v3045_v28 = vrot.slane %v2839_v43, 2  ;;  %v12313_v49 = vmax.f32 %v16055_v47, %v3178_v41 }
 0x2be   :  { %4224 = vst.msk [vmem:[#allocation3 + $0x78] sm:$0xff] %vm3124_vm6, %v4028_v38  ;;  %v12315_v22 = vmax.f32 %v1911_v13, %v9544_v6  ;;  %v1912_v53 = vsel %vm1749_vm3, %v12068_v3, %v12011_v15  ;;  %v1916_v33 = vsel %vm1744_vm2, %v12074_v0, %v12072_v10  ;;  %v3052_v8 = vrot.slane %v12245_v63, 2  ;;  %v16057_v13 = vld [vmem:[#allocation52_spill] sm:$0xff] }
 0x2bf   :  { %v3174_v23 = vsel %vm3124_vm6, %v2839_v43, %v3045_v28  ;;  %v1913_v37 = vrot.slane %v1912_v53, 4  ;;  %v9547_v62 = vrot.slane %v1916_v33, 9  ;;  %v3784_v45 = vperm.slane %v3429_v48, 0 }
 0x2c0   :  { %16056 = vst [vmem:[#allocation91_spill] sm:$0xff] %v12315_v22  ;;  %v3785_v41 = vperm.slane %v3429_v48, 2  ;;  %2926 = vrot.lane.b32.xlu1 %v12315_v22, %s10114_s11  ;;  %v3430_v31 = vmax.f32 %v16057_v13, %v3174_v23  ;;  %v3047_v38 = vrot.slane %v2843_v60, 2  ;;  %v1917_v47 = vsel %vm1746_vm4, %v12074_v0, %v12072_v10  ;;  %v2849_v48 = vpop.permute.xlu0 %2848  ;;  %v16059_v22 = vld [vmem:[#allocation78_spill] sm:$0xff] }
 0x2c1   :  { %v9545_v44 = vrot.slane %v1913_v37, 9  ;;  %v12328_v6 = vmax.f32 %v1916_v33, %v9547_v62  ;;  %v3048_v25 = vrot.slane %v2845_v20, 2  ;;  %v3055_v30 = vrot.slane %v2859_v32, 2  ;;  %v12334_v50 = vpop.permute.xlu2 %2864  ;;  %v16061_v33 = vld [vmem:[#allocation53_spill] sm:$0xff] }
 0x2c2   :  { %v3786_v43 = vperm.slane %v3430_v31, 0  ;;  %v3787_v28 = vperm.slane %v3430_v31, 2  ;;  %v3176_v53 = vsel %vm3124_vm6, %v2843_v60, %v3047_v38  ;;  %v12337_v46 = vadd.f32 %v1514_v16, %v16059_v22  ;;  %v2851_v16 = vpop.permute.xlu1 %2850 }
 0x2c3   :  { %16058 = vst [vmem:[#allocation49_spill] sm:$0xff] %v12328_v6  ;;  %v12339_v23 = vmax.f32 %v1913_v37, %v9545_v44  ;;  %2932 = vrot.lane.b32.xlu0 %v12328_v6, %s10114_s11  ;;  %v3432_v62 = vmax.f32 %v16061_v33, %v3176_v53  ;;  %v1918_v13 = vrot.slane %v1917_v47, 2  ;;  %v3177_v60 = vsel %vm3124_vm6, %v2845_v20, %v3048_v25 }
 0x2c4   :  { %v4029_v61 = vsel %vm3944_vm8, %v3786_v43, %v3784_v45  ;;  %v4035_v31 = vsel %vm3944_vm8, %v3787_v28, %v3785_v41  ;;  %v1919_v22 = vsel %vm1749_vm3, %v12074_v0, %v12072_v10  ;;  %v3794_v37 = vperm.slane %v12313_v49, 0  ;;  %v16062_v43 = vld [vmem:[#allocation54_spill] sm:$0xff] }
 0x2c5   :  { %16060 = vst [vmem:[#allocation93_spill] sm:$0xff] %v12339_v23  ;;  %v4269_v38 = vld [vmem:[#allocation3 + $0x78] sm:$0xff]  ;;  %v3181_v44 = vsel %vm3124_vm6, %v12245_v63, %v3052_v8  ;;  %2928 = vrot.lane.b32.xlu2 %v12339_v23, %s10114_s11  ;;  %v3790_v47 = vperm.slane %v3432_v62, 0  ;;  %v3791_v45 = vperm.slane %v3432_v62, 2  ;;  %v4030_v25 = vsel %vm3946_vm9, %v3788_v34, %v4029_v61 }
 0x2c6   :  { %9584 = vmatmul.msk.f32.gmra.mxu3 %vm3124_vm6, %v4269_v38  ;;  %v3184_v20 = vsel %vm3124_vm6, %v2859_v32, %v3055_v30  ;;  %v9548_v41 = vrot.slane %v1918_v13, 9  ;;  %v3433_v28 = vmax.f32 %v16062_v43, %v3177_v60  ;;  %v4036_v53 = vsel %vm3946_vm9, %v3789_v1, %v4035_v31 }
 0x2c7   :  { %v4031_v33 = vsel %vm3948_vm10, %v3790_v47, %v4030_v25  ;;  %v1920_v6 = vrot.slane %v1919_v22, 4  ;;  %v1921_v63 = vsel %vm1752_vm5, %v12072_v10, %v12074_v0  ;;  %v4037_v61 = vsel %vm3948_vm10, %v3791_v45, %v4036_v53  ;;  %v16063_v25 = vld [vmem:[#allocation58_spill] sm:$0xff] }
 0x2c8   :  { %v12364_v8 = vmax.f32 %v1918_v13, %v9548_v41  ;;  %v3792_v62 = vperm.slane %v3433_v28, 0  ;;  %v3793_v38 = vperm.slane %v3433_v28, 2  ;;  %v1922_v23 = vrot.slane %v1921_v63, 6  ;;  %v2855_v13 = vpop.permute.xlu0 %2854 }
 0x2c9   :  { %v9549_v32 = vrot.slane %v1920_v6, 9  ;;  %v3050_v30 = vrot.slane %v2849_v48, 2  ;;  %v1923_v34 = vsel %vm1744_vm2, %v12110_v52, %v12108_v36  ;;  %v3795_v1 = vperm.slane %v12313_v49, 2  ;;  %v12377_v60 = vpop.permute.xlu2 %2872 }
 0x2ca   :  { %v12372_v31 = vmax.f32 %v11546_v40, %v3181_v44  ;;  %2934 = vrot.lane.b32.xlu1 %v12364_v8, %s10114_s11  ;;  %v4032_v10 = vsel %vm3950_vm11, %v3792_v62, %v4031_v33  ;;  %v9550_v0 = vrot.slane %v1922_v23, 9  ;;  %v12380_v22 = vmax.f32 %v11621_v4, %v3184_v20  ;;  %v2857_v28 = vpop.permute.xlu1 %2856 }
 0x2cb   :  { %v12382_v47 = vmax.f32 %v1920_v6, %v9549_v32  ;;  %v3179_v45 = vsel %vm3124_vm6, %v2849_v48, %v3050_v30  ;;  %v9551_v49 = vrot.slane %v1923_v34, 9  ;;  %v4038_v40 = vsel %vm3950_vm11, %v3793_v38, %v4037_v61 }
 0x2cc   :  { %v12386_v44 = vmax.f32 %v1922_v23, %v9550_v0  ;;  %v3435_v41 = vmax.f32 %v16063_v25, %v3179_v45  ;;  %v3058_v43 = vrot.slane %v12334_v50, 2  ;;  %v4033_v4 = vsel %vm3952_vm12, %v3794_v37, %v4032_v10  ;;  %v16065_v10 = vld [vmem:[#allocation65_spill] sm:$0xff] }
 0x2cd   :  { %2936 = vrot.lane.b32.xlu2 %v12382_v47, %s10114_s11  ;;  %v3051_v20 = vrot.slane %v2851_v16, 2  ;;  %v1926_v6 = vsel %vm1749_vm3, %v12110_v52, %v12108_v36  ;;  %v1924_v48 = vsel %vm1746_vm4, %v12110_v52, %v12108_v36  ;;  %v4039_v62 = vsel %vm3952_vm12, %v3795_v1, %v4038_v40 }
 0x2ce   :  { %2938 = vrot.lane.b32.xlu0 %v12386_v44, %s10114_s11  ;;  %v3796_v23 = vperm.slane %v3435_v41, 0  ;;  %v3797_v53 = vperm.slane %v3435_v41, 2  ;;  %v1927_v33 = vrot.slane %v1926_v6, 4  ;;  %v1925_v63 = vrot.slane %v1924_v48, 2 }
 0x2cf   :  { %v12402_v38 = vmax.f32 %v1923_v34, %v9551_v49  ;;  %v3180_v37 = vsel %vm3124_vm6, %v2851_v16, %v3051_v20  ;;  %v3053_v61 = vrot.slane %v2855_v13, 2  ;;  %v3800_v25 = vperm.slane %v12372_v31, 0 }
 0x2d0   :  { %v4034_v32 = vsel %vm3954_vm13, %v3796_v23, %v4033_v4  ;;  %v4040_v30 = vsel %vm3954_vm13, %v3797_v53, %v4039_v62  ;;  %v3436_v0 = vmax.f32 %v16065_v10, %v3180_v37  ;;  %v9553_v45 = vrot.slane %v1927_v33, 9  ;;  %v2861_v4 = vpop.permute.xlu0 %2860 }
 0x2d1   :  { %16064 = vst [vmem:[#allocation100_spill] sm:$0xff] %v12402_v38  ;;  %v9552_v41 = vrot.slane %v1925_v63, 9  ;;  %v3182_v6 = vsel %vm3124_vm6, %v2855_v13, %v3053_v61  ;;  %v1928_v34 = vsel %vm1752_vm5, %v12108_v36, %v12110_v52  ;;  %v3187_v16 = vsel %vm3124_vm6, %v12334_v50, %v3058_v43  ;;  %v12422_v36 = vpop.permute.xlu2 %2878 }
 0x2d2   :  { %4227 = vst [vmem:[#allocation3 + $0x90] sm:$0xfe] %v4034_v32  ;;  %2940 = vrot.lane.b32.xlu1 %v12402_v38, %s10114_s11  ;;  %v3798_v1 = vperm.slane %v3436_v0, 0  ;;  %v3799_v49 = vperm.slane %v3436_v0, 2  ;;  %v3438_v40 = vmax.f32 %v11574_v59, %v3182_v6  ;;  %v3801_v20 = vperm.slane %v12372_v31, 2  ;;  %v2863_v62 = vpop.permute.xlu1 %2862  ;;  %v16067_v32 = vld [vmem:[#allocation66_spill] sm:$0xff] }
 0x2d3   :  { %4228 = vst.msk [vmem:[#allocation3 + $0x98] sm:$0xfe] %vm4208_vm14, %v4040_v30  ;;  %v12420_v13 = vmax.f32 %v1925_v63, %v9552_v41  ;;  %v1929_v48 = vrot.slane %v1928_v34, 6  ;;  %v3054_v23 = vrot.slane %v2857_v28, 2  ;;  %v3806_v52 = vperm.slane %v12380_v22, 0  ;;  %v12448_v41 = vpop.f32.mrf.mxu0 }
 0x2d4   :  { %v12425_v53 = vmax.f32 %v1927_v33, %v9553_v45  ;;  %v3802_v50 = vperm.slane %v3438_v40, 0  ;;  %v3803_v43 = vperm.slane %v3438_v40, 2  ;;  %v12428_v37 = vmax.f32 %v11723_v55, %v3187_v16 }
 0x2d5   :  { %2942 = vrot.lane.b32.xlu2 %v12420_v13, %s10114_s11  ;;  %v9554_v59 = vrot.slane %v1929_v48, 9  ;;  %v3183_v31 = vsel %vm3124_vm6, %v2857_v28, %v3054_v23  ;;  %v1931_v63 = vsel %vm1746_vm4, %v12183_v42, %v12177_v14  ;;  %v4041_v61 = vsel %vm3962_vm15, %v3800_v25, %v3798_v1 }
 0x2d6   :  { %16066 = vst [vmem:[#allocation50_spill] sm:$0xff] %v12425_v53  ;;  %v4048_v33 = vsel %vm3962_vm15, %v3801_v20, %v3799_v49  ;;  %2944 = vrot.lane.b32.xlu0 %v12425_v53, %s10114_s11  ;;  %v3439_v55 = vmax.f32 %v16067_v32, %v3183_v31  ;;  %v1932_v30 = vrot.slane %v1931_v63, 2  ;;  %v4042_v10 = vsel %vm3944_vm8, %v3802_v50, %v4041_v61 }
 0x2d7   :  { %v4049_v0 = vsel %vm3944_vm8, %v3803_v43, %v4048_v33  ;;  %v12443_v45 = vmax.f32 %v1929_v48, %v9554_v59  ;;  %v1930_v28 = vsel %vm1744_vm2, %v12183_v42, %v12177_v14  ;;  %v3807_v49 = vperm.slane %v12380_v22, 2 }
 0x2d8   :  { %v3804_v25 = vperm.slane %v3439_v55, 0  ;;  %v3805_v6 = vperm.slane %v3439_v55, 2  ;;  %v9556_v34 = vrot.slane %v1932_v30, 9  ;;  %v9555_v16 = vrot.slane %v1930_v28, 9  ;;  %v2869_v22 = vpop.permute.xlu0 %2868 }
 0x2d9   :  { %16068 = vst [vmem:[#allocation95_spill] sm:$0xff] %v12443_v45  ;;  %v4270_v1 = vld [vmem:[#allocation3 + $0x90] sm:$0xff]  ;;  %v3056_v40 = vrot.slane %v2861_v4, 2  ;;  %v1933_v20 = vsel %vm1749_vm3, %v12183_v42, %v12177_v14  ;;  %v3057_v23 = vrot.slane %v2863_v62, 2  ;;  %v3812_v50 = vperm.slane %v12428_v37, 0 }
 0x2da   :  { %4434 = vmatmul.f32.gmra.mxu2 %v4270_v1  ;;  %v4271_v48 = vld [vmem:[#allocation3 + $0x98] sm:$0xff]  ;;  %v3813_v43 = vperm.slane %v12428_v37, 2  ;;  %v3062_v59 = vrot.slane %v12377_v60, 2  ;;  %2946 = vrot.lane.b32.xlu1 %v12443_v45, %s10114_s11  ;;  %v3065_v31 = vrot.slane %v12422_v36, 2  ;;  %v4043_v63 = vsel %vm3946_vm9, %v3804_v25, %v4042_v10  ;;  %v2871_v38 = vpop.permute.xlu1 %2870 }
 0x2db   :  { %v4050_v61 = vsel %vm3946_vm9, %v3805_v6, %v4049_v0  ;;  %v12462_v33 = vmax.f32 %v1930_v28, %v9555_v16  ;;  %v3185_v32 = vsel %vm3124_vm6, %v2861_v4, %v3056_v40  ;;  %9585 = vmatmul.msk.f32.gmra.mxu3 %vm3124_vm6, %v4271_v48  ;;  %v12466_v55 = vmax.f32 %v1932_v30, %v9556_v34  ;;  %v16070_v37 = vld [vmem:[#allocation69_spill] sm:$0xff]  ;;  %v16071_v10 = vld [vmem:[#allocation70_spill] sm:$0xff]  ;;  %v12479_v28 = vpop.permute.xlu2 %2884  ;;  %v1517_v16 = vpop.f32.mrf.mxu1 }
 0x2dc   :  { %v3441_v1 = vmax.f32 %v16070_v37, %v3185_v32  ;;  %v1934_v53 = vrot.slane %v1933_v20, 4  ;;  %v3186_v45 = vsel %vm3124_vm6, %v2863_v62, %v3057_v23  ;;  %v1935_v0 = vsel %vm1752_vm5, %v12177_v14, %v12183_v42 }
 0x2dd   :  { %16069 = vst [vmem:[#allocation96_spill] sm:$0xff] %v12466_v55  ;;  %2948 = vrot.lane.b32.xlu2 %v12462_v33, %s10114_s11  ;;  %v3442_v25 = vmax.f32 %v16071_v10, %v3186_v45  ;;  %v1937_v4 = vsel %vm1744_vm2, %v12286_v7, %v12192_v9  ;;  %v3060_v30 = vrot.slane %v2869_v22, 2  ;;  %v4044_v62 = vsel %vm3948_vm10, %v3806_v52, %v4043_v63 }
 0x2de   :  { %2950 = vrot.lane.b32.xlu0 %v12466_v55, %s10114_s11  ;;  %v4051_v6 = vsel %vm3948_vm10, %v3807_v49, %v4050_v61  ;;  %v3808_v34 = vperm.slane %v3441_v1, 0  ;;  %v3809_v45 = vperm.slane %v3441_v1, 2  ;;  %v9557_v40 = vrot.slane %v1934_v53, 9  ;;  %v16072_v61 = vld [vmem:[#allocation81_spill] sm:$0xff]  ;;  %v1404_v55 = vpop.f32.mrf.mxu0 }
 0x2df   :  { %v3810_v20 = vperm.slane %v3442_v25, 0  ;;  %v3811_v14 = vperm.slane %v3442_v25, 2  ;;  %v1936_v42 = vrot.slane %v1935_v0, 6  ;;  %v9559_v32 = vrot.slane %v1937_v4, 9 }
 0x2e0   :  { %v4045_v48 = vsel %vm3950_vm11, %v3808_v34, %v4044_v62  ;;  %v4052_v23 = vsel %vm3950_vm11, %v3809_v45, %v4051_v6  ;;  %v3189_v37 = vsel %vm3124_vm6, %v2869_v22, %v3060_v30  ;;  %v12488_v10 = vmax.f32 %v1934_v53, %v9557_v40  ;;  %v2875_v6 = vpop.permute.xlu0 %2874  ;;  %v16074_v40 = vld [vmem:[#allocation74_spill] sm:$0xff] }
 0x2e1   :  { %v4046_v52 = vsel %vm3952_vm12, %v3810_v20, %v4045_v48  ;;  %v4053_v49 = vsel %vm3952_vm12, %v3811_v14, %v4052_v23  ;;  %v9558_v63 = vrot.slane %v1936_v42, 9  ;;  %v12493_v1 = vadd.f32 %v1517_v16, %v16072_v61  ;;  %v16075_v14 = vld [vmem:[#allocation42_spill] sm:$0xff] }
 0x2e2   :  { %v3191_v25 = vsel %vm3124_vm6, %v12377_v60, %v3062_v59  ;;  %v4047_v0 = vsel %vm3954_vm13, %v3812_v50, %v4046_v52  ;;  %v4054_v62 = vsel %vm3954_vm13, %v3813_v43, %v4053_v49  ;;  %2952 = vrot.lane.b32.xlu1 %v12488_v10, %s10114_s11  ;;  %v1938_v30 = vsel %vm1746_vm4, %v12286_v7, %v12192_v9  ;;  %v16073_v43 = vld [vmem:[#allocation71_spill] sm:$0xff]  ;;  %v2877_v16 = vpop.permute.xlu1 %2876 }
 0x2e3   :  { %4229 = vst [vmem:[#allocation3 + $0xa0] sm:$0xff] %v4047_v0  ;;  %v12502_v22 = vmax.f32 %v1936_v42, %v9558_v63  ;;  %v3061_v34 = vrot.slane %v2871_v38, 2  ;;  %4437 = vmatmul.f32.gmra.mxu2 %v4047_v0  ;;  %v3194_v60 = vsel %vm3124_vm6, %v12422_v36, %v3065_v31  ;;  %v12510_v50 = vmax.f32 %v1937_v4, %v9559_v32  ;;  %v16076_v4 = vld [vmem:[#allocation75_spill] sm:$0xff] }
 0x2e4   :  { %4230 = vst.msk [vmem:[#allocation3 + $0xa8] sm:$0xff] %vm3124_vm6, %v4054_v62  ;;  %v3445_v59 = vmax.f32 %v16073_v43, %v3189_v37  ;;  %v1939_v45 = vrot.slane %v1938_v30, 2  ;;  %v12515_v20 = vadd.f32 %v12448_v41, %v16074_v40  ;;  %v12518_v42 = vadd.f32 %v1404_v55, %v16075_v14  ;;  %v16077_v41 = vld [vmem:[#allocation72_spill] sm:$0xff] }
 0x2e5   :  { %2954 = vrot.lane.b32.xlu2 %v12502_v22, %s10114_s11  ;;  %v3190_v36 = vsel %vm3124_vm6, %v2871_v38, %v3061_v34  ;;  %v1940_v31 = vsel %vm1749_vm3, %v12286_v7, %v12192_v9  ;;  %v3447_v48 = vmax.f32 %v16076_v4, %v3191_v25  ;;  %v12532_v52 = vmax.f32 %v11920_v24, %v3194_v60  ;;  %v12537_v63 = vpop.permute.xlu2 %2890  ;;  %v16079_v60 = vld [vmem:[#allocation79_spill] sm:$0xff] }
 0x2e6   :  { %2956 = vrot.lane.b32.xlu0 %v12510_v50, %s10114_s11  ;;  %v9560_v23 = vrot.slane %v1939_v45, 9  ;;  %v3446_v32 = vmax.f32 %v16077_v41, %v3190_v36  ;;  %v1941_v37 = vrot.slane %v1940_v31, 4  ;;  %v1944_v38 = vsel %vm1744_vm2, %v12288_v5, %v12300_v39 }
 0x2e7   :  { %v3063_v49 = vrot.slane %v2875_v6, 2  ;;  %v3816_v61 = vperm.slane %v3445_v59, 0  ;;  %v3817_v25 = vperm.slane %v3445_v59, 2  ;;  %v9563_v43 = vrot.slane %v1944_v38, 9 }
 0x2e8   :  { %v12539_v0 = vmax.f32 %v1939_v45, %v9560_v23  ;;  %v3818_v62 = vperm.slane %v3446_v32, 0  ;;  %v3819_v30 = vperm.slane %v3446_v32, 2  ;;  %v9561_v34 = vrot.slane %v1941_v37, 9 }
 0x2e9   :  { %v3192_v40 = vsel %vm3124_vm6, %v2875_v6, %v3063_v49  ;;  %v3820_v14 = vperm.slane %v3447_v48, 0  ;;  %v3068_v24 = vrot.slane %v12479_v28, 2  ;;  %v1945_v31 = vsel %vm1746_vm4, %v12288_v5, %v12300_v39  ;;  %v2881_v4 = vpop.permute.xlu0 %2880 }
 0x2ea   :  { %16078 = vst [vmem:[#allocation104_spill] sm:$0xff] %v12539_v0  ;;  %v3448_v36 = vmax.f32 %v16079_v60, %v3192_v40  ;;  %v3821_v41 = vperm.slane %v3447_v48, 2  ;;  %2958 = vrot.lane.b32.xlu1 %v12539_v0, %s10114_s11  ;;  %v4055_v59 = vsel %vm3944_vm8, %v3818_v62, %v3816_v61  ;;  %v4061_v45 = vsel %vm3944_vm8, %v3819_v30, %v3817_v25 }
 0x2eb   :  { %v12551_v23 = vmax.f32 %v1941_v37, %v9561_v34  ;;  %v4273_v6 = vld [vmem:[#allocation3 + $0xa8] sm:$0xff]  ;;  %v3826_v32 = vperm.slane %v12532_v52, 0  ;;  %v12554_v49 = vmax.f32 %v1944_v38, %v9563_v43  ;;  %v1946_v48 = vrot.slane %v1945_v31, 2  ;;  %v2883_v25 = vpop.permute.xlu1 %2882 }
 0x2ec   :  { %v3822_v40 = vperm.slane %v3448_v36, 0  ;;  %v3823_v60 = vperm.slane %v3448_v36, 2  ;;  %9586 = vmatmul.msk.f32.gmra.mxu3 %vm3124_vm6, %v4273_v6  ;;  %v3064_v55 = vrot.slane %v2877_v16, 2  ;;  %v1947_v61 = vsel %vm1749_vm3, %v12288_v5, %v12300_v39 }
 0x2ed   :  { %16080 = vst [vmem:[#allocation60_spill] sm:$0xff] %v12551_v23  ;;  %2960 = vrot.lane.b32.xlu2 %v12551_v23, %s10114_s11  ;;  %v1949_v37 = vsel %vm1752_vm5, %v12300_v39, %v12288_v5  ;;  %v3197_v38 = vsel %vm3124_vm6, %v12479_v28, %v3068_v24  ;;  %v4056_v62 = vsel %vm3946_vm9, %v3820_v14, %v4055_v59  ;;  %v3071_v34 = vrot.slane %v12537_v63, 2  ;;  %v16082_v39 = vld [vmem:[#allocation85_spill] sm:$0xff] }
 0x2ee   :  { %16081 = vst [vmem:[#allocation32_spill] sm:$0xff] %v12554_v49  ;;  %2964 = vrot.lane.b32.xlu0 %v12554_v49, %s10114_s11  ;;  %v4062_v30 = vsel %vm3946_vm9, %v3821_v41, %v4061_v45  ;;  %v9564_v43 = vrot.slane %v1946_v48, 9  ;;  %v3193_v36 = vsel %vm3124_vm6, %v2877_v16, %v3064_v55  ;;  %v1948_v31 = vrot.slane %v1947_v61, 4 }
 0x2ef   :  { %v1950_v6 = vrot.slane %v1949_v37, 6  ;;  %v4057_v5 = vsel %vm3948_vm10, %v3822_v40, %v4056_v62  ;;  %v3449_v53 = vmax.f32 %v16082_v39, %v3193_v36  ;;  %v3066_v0 = vrot.slane %v2881_v4, 2 }
 0x2f0   :  { %v3067_v28 = vrot.slane %v2883_v25, 2  ;;  %v4063_v24 = vsel %vm3948_vm10, %v3823_v60, %v4062_v30  ;;  %v12576_v49 = vmax.f32 %v1946_v48, %v9564_v43  ;;  %v9565_v14 = vrot.slane %v1948_v31, 9  ;;  %v16083_v48 = vld [vmem:[#allocation28_spill] sm:$0xff] }
 0x2f1   :  { %v9566_v59 = vrot.slane %v1950_v6, 9  ;;  %v12578_v41 = vpop.permute.xlu2 %2896  ;;  %v3824_v45 = vperm.slane %v3449_v53, 0  ;;  %v3825_v23 = vperm.slane %v3449_v53, 2  ;;  %v3195_v16 = vsel %vm3124_vm6, %v2881_v4, %v3066_v0  ;;  %v2887_v30 = vpop.permute.xlu0 %2886 }
 0x2f2   :  { %v1951_v55 = vsel %vm1744_vm2, %v12307_v56, %v12302_v11  ;;  %v3827_v40 = vperm.slane %v12532_v52, 2  ;;  %v12586_v61 = vmax.f32 %v11974_v18, %v3197_v38  ;;  %2966 = vrot.lane.b32.xlu1 %v12576_v49, %s10114_s11  ;;  %v12590_v60 = vmax.f32 %v1948_v31, %v9565_v14  ;;  %v16084_v31 = vld [vmem:[#allocation86_spill] sm:$0xff] }
 0x2f3   :  { %v3451_v37 = vmax.f32 %v16083_v48, %v3195_v16  ;;  %v4058_v53 = vsel %vm3950_vm11, %v3824_v45, %v4057_v5  ;;  %v4064_v0 = vsel %vm3950_vm11, %v3825_v23, %v4063_v24  ;;  %v12595_v4 = vmax.f32 %v1950_v6, %v9566_v59 }
 0x2f4   :  { %v3196_v62 = vsel %vm3124_vm6, %v2883_v25, %v3067_v28  ;;  %v3200_v18 = vsel %vm3124_vm6, %v12537_v63, %v3071_v34  ;;  %v9567_v43 = vrot.slane %v1951_v55, 9  ;;  %v4059_v36 = vsel %vm3952_vm12, %v3826_v32, %v4058_v53 }
 0x2f5   :  { %2968 = vrot.lane.b32.xlu2 %v12590_v60, %s10114_s11  ;;  %v3828_v52 = vperm.slane %v3451_v37, 0  ;;  %v3829_v38 = vperm.slane %v3451_v37, 2  ;;  %v4065_v23 = vsel %vm3952_vm12, %v3827_v40, %v4064_v0  ;;  %v3452_v6 = vmax.f32 %v16084_v31, %v3196_v62 }
 0x2f6   :  { %2970 = vrot.lane.b32.xlu0 %v12595_v4, %s10114_s11  ;;  %v1954_v25 = vsel %vm1749_vm3, %v12307_v56, %v12302_v11  ;;  %v1952_v39 = vsel %vm1746_vm4, %v12307_v56, %v12302_v11  ;;  %v16085_v28 = vmax.f32 %v12337_v46, 0.0  ;;  %v12620_v24 = vmax.f32 %v12515_v20, 0.0 }
 0x2f7   :  { %v4060_v63 = vsel %vm3954_vm13, %v3828_v52, %v4059_v36  ;;  %v4066_v34 = vsel %vm3954_vm13, %v3829_v38, %v4065_v23  ;;  %v1955_v5 = vrot.slane %v1954_v25, 4  ;;  %v16086_v14 = vmax.f32 %v12493_v1, 0.0  ;;  %v2889_v37 = vpop.permute.xlu1 %2888 }
 0x2f8   :  { %v12617_v32 = vrot.slane %v16085_v28, 6  ;;  %v12627_v45 = vmax.f32 %v12518_v42, 0.0  ;;  %4233 = vst [vmem:[#allocation3 + $0xc0] sm:$0xfe] %v4060_v63  ;;  %v3832_v16 = vperm.slane %v12586_v61, 0  ;;  %v12631_v40 = vmax.f32 %v1951_v55, %v9567_v43 }
 0x2f9   :  { %v12624_v59 = vrot.slane %v16086_v14, 6  ;;  %4234 = vst.msk [vmem:[#allocation3 + $0xc8] sm:$0xfe] %vm4208_vm14, %v4066_v34  ;;  %v9569_v46 = vrot.slane %v1955_v5, 9  ;;  %v1953_v48 = vrot.slane %v1952_v39, 2  ;;  %v3833_v20 = vperm.slane %v12586_v61, 2 }
 0x2fa   :  { %v12635_v53 = vmax.f32 %v12028_v35, %v3200_v18  ;;  %v3069_v1 = vrot.slane %v2887_v30, 2  ;;  %v1956_v42 = vsel %vm1752_vm5, %v12302_v11, %v12307_v56  ;;  %2972 = vrot.lane.b32.xlu1 %v12631_v40, %s10114_s11  ;;  %v3830_v0 = vperm.slane %v3452_v6, 0  ;;  %v16087_v11 = vld [vmem:[#allocation87_spill] sm:$0xff]  ;;  %v4351_v39 = vld [vmem:[#allocation11 + $0x1e8] sm:$0xff] }
 0x2fb   :  { %v3831_v62 = vperm.slane %v3452_v6, 2  ;;  %v9568_v55 = vrot.slane %v1953_v48, 9  ;;  %v12642_v52 = vpop.permute.xlu2 %2904  ;;  %v1957_v38 = vrot.slane %v1956_v42, 6  ;;  %v12644_v43 = vmax.f32 %v1955_v5, %v9569_v46  ;;  %v4321_v5 = vld [vmem:[#allocation11 + $0xf8] sm:$0xff]  ;;  %v16088_v42 = vld [vmem:[#allocation88_spill] sm:$0xff]  ;;  %4596 = vmatpush.msra.mxu3 %v4351_v39 }
 0x2fc   :  { %v3198_v61 = vsel %vm3124_vm6, %v2887_v30, %v3069_v1  ;;  %v3070_v35 = vrot.slane %v2889_v37, 2  ;;  %v1959_v18 = vsel %vm1746_vm4, %v12620_v24, %v12617_v32  ;;  %v3838_v6 = vperm.slane %v12635_v53, 0  ;;  %4530 = vmatpush.msra.mxu2 %v4321_v5 }
 0x2fd   :  { %v12650_v36 = vmax.f32 %v1953_v48, %v9568_v55  ;;  %v3454_v56 = vmax.f32 %v16087_v11, %v3198_v61  ;;  %v9570_v23 = vrot.slane %v1957_v38, 9  ;;  %v1960_v31 = vrot.slane %v1959_v18, 2 }
 0x2fe   :  { %v3074_v25 = vrot.slane %v12578_v41, 2  ;;  %2976 = vrot.lane.b32.xlu0 %v12644_v43, %s10114_s11  ;;  %v3199_v30 = vsel %vm3124_vm6, %v2889_v37, %v3070_v35  ;;  %v1958_v63 = vsel %vm1744_vm2, %v12620_v24, %v12617_v32  ;;  %v2893_v34 = vpop.permute.xlu0 %2892  ;;  %v4067_v28 = vsel %vm3962_vm15, %v3832_v16, %v3830_v0 }
 0x2ff   :  { %v4074_v14 = vsel %vm3962_vm15, %v3833_v20, %v3831_v62  ;;  %2974 = vrot.lane.b32.xlu2 %v12650_v36, %s10114_s11  ;;  %v3834_v46 = vperm.slane %v3454_v56, 0  ;;  %v3835_v48 = vperm.slane %v3454_v56, 2  ;;  %v4274_v1 = vld [vmem:[#allocation3 + $0xc0] sm:$0xff]  ;;  %v3455_v37 = vmax.f32 %v16088_v42, %v3199_v30 }
 0x300   :  { %v9572_v55 = vrot.slane %v1960_v31, 9  ;;  %v3072_v61 = vrot.slane %v2893_v34, 2  ;;  %v1961_v35 = vsel %vm1749_vm3, %v12620_v24, %v12617_v32  ;;  %4440 = vmatmul.f32.gmra.mxu2 %v4274_v1  ;;  %v4275_v18 = vld [vmem:[#allocation3 + $0xc8] sm:$0xff]  ;;  %v12671_v0 = vmax.f32 %v1957_v38, %v9570_v23 }
 0x301   :  { %v4068_v16 = vsel %vm3944_vm8, %v3834_v46, %v4067_v28  ;;  %v4075_v20 = vsel %vm3944_vm8, %v3835_v48, %v4074_v14  ;;  %v9571_v62 = vrot.slane %v1958_v63, 9  ;;  %9587 = vmatmul.msk.f32.gmra.mxu3 %vm3124_vm6, %v4275_v18  ;;  %v3839_v11 = vperm.slane %v12635_v53, 2 }
 0x302   :  { %v3203_v56 = vsel %vm3124_vm6, %v12578_v41, %v3074_v25  ;;  %v3836_v30 = vperm.slane %v3455_v37, 0  ;;  %v3837_v5 = vperm.slane %v3455_v37, 2  ;;  %2978 = vrot.lane.b32.xlu1 %v12671_v0, %s10114_s11  ;;  %v12679_v39 = vmax.f32 %v1960_v31, %v9572_v55 }
 0x303   :  { %v3201_v28 = vsel %vm3124_vm6, %v2893_v34, %v3072_v61  ;;  %v1962_v14 = vrot.slane %v1961_v35, 4  ;;  %v2895_v38 = vpop.permute.xlu1 %2894  ;;  %v1963_v23 = vsel %vm1752_vm5, %v12617_v32, %v12620_v24  ;;  %v12688_v48 = vmax.f32 %v1958_v63, %v9571_v62  ;;  %v4319_v62 = vld [vmem:[#allocation11 + $0xe8] sm:$0xff] }
 0x304   :  { %v4069_v53 = vsel %vm3946_vm9, %v3836_v30, %v4068_v16  ;;  %v4076_v46 = vsel %vm3946_vm9, %v3837_v5, %v4075_v20  ;;  %v3457_v41 = vmax.f32 %v12033_v58, %v3201_v28  ;;  %v3073_v25 = vrot.slane %v2895_v38, 2  ;;  %4531 = vmatpush.msra.mxu2 %v4319_v62 }
 0x305   :  { %v12690_v1 = vpop.permute.xlu2 %2910  ;;  %v9573_v31 = vrot.slane %v1962_v14, 9  ;;  %v1964_v42 = vrot.slane %v1963_v23, 6  ;;  %v1965_v34 = vsel %vm1744_vm2, %v12627_v45, %v12624_v59  ;;  %v3459_v37 = vmax.f32 %v12090_v17, %v3203_v56  ;;  %v4349_v56 = vld [vmem:[#allocation11 + $0x1d8] sm:$0xff] }
 0x306   :  { %2982 = vrot.lane.b32.xlu0 %v12679_v39, %s10114_s11  ;;  %v3840_v32 = vperm.slane %v3457_v41, 0  ;;  %v3841_v24 = vperm.slane %v3457_v41, 2  ;;  %v3202_v58 = vsel %vm3124_vm6, %v2895_v38, %v3073_v25  ;;  %v4070_v63 = vsel %vm3948_vm10, %v3838_v6, %v4069_v53  ;;  %4597 = vmatpush.msra.mxu3 %v4349_v56 }
 0x307   :  { %2980 = vrot.lane.b32.xlu2 %v12688_v48, %s10114_s11  ;;  %v4077_v55 = vsel %vm3948_vm10, %v3839_v11, %v4076_v46  ;;  %v3458_v61 = vmax.f32 %v12063_v51, %v3202_v58  ;;  %v9575_v18 = vrot.slane %v1965_v34, 9  ;;  %v1966_v20 = vsel %vm1746_vm4, %v12627_v45, %v12624_v59 }
 0x308   :  { %v4071_v35 = vsel %vm3950_vm11, %v3840_v32, %v4070_v63  ;;  %v4078_v17 = vsel %vm3950_vm11, %v3841_v24, %v4077_v55  ;;  %v2901_v16 = vpop.permute.xlu0 %2900  ;;  %v12709_v30 = vmax.f32 %v1962_v14, %v9573_v31  ;;  %v9574_v28 = vrot.slane %v1964_v42, 9  ;;  %v16089_v32 = vld [vmem:[#allocation55_spill] sm:$0xff] }
 0x309   :  { %v3842_v5 = vperm.slane %v3458_v61, 0  ;;  %v3843_v6 = vperm.slane %v3458_v61, 2  ;;  %v3844_v51 = vperm.slane %v3459_v37, 0  ;;  %v3845_v11 = vperm.slane %v3459_v37, 2 }
 0x30a   :  { %v1967_v38 = vrot.slane %v1966_v20, 2  ;;  %v3078_v23 = vrot.slane %v12642_v52, 2  ;;  %2984 = vrot.lane.b32.xlu1 %v12709_v30, %s10114_s11  ;;  %v3076_v41 = vrot.slane %v2901_v16, 2  ;;  %v12718_v31 = vmax.f32 %v1965_v34, %v9575_v18  ;;  %v16090_v18 = vld [vmem:[#allocation41_spill] sm:$0xff] }
 0x30b   :  { %v4072_v53 = vsel %vm3952_vm12, %v3842_v5, %v4071_v35  ;;  %v4079_v46 = vsel %vm3952_vm12, %v3843_v6, %v4078_v17  ;;  %v1775_v24 = vrot.slane %v16089_v32, 6  ;;  %v12721_v37 = vmax.f32 %v1964_v42, %v9574_v28  ;;  %v16091_v20 = vld [vmem:[#allocation73_spill] sm:$0xff]  ;;  %v16092_v6 = vld [vmem:[#allocation82_spill] sm:$0xff] }
 0x30c   :  { %v4073_v14 = vsel %vm3954_vm13, %v3844_v51, %v4072_v53  ;;  %v4080_v25 = vsel %vm3954_vm13, %v3845_v11, %v4079_v46  ;;  %v9576_v63 = vrot.slane %v1967_v38, 9  ;;  %v1968_v55 = vsel %vm1749_vm3, %v12627_v45, %v12624_v59  ;;  %v16093_v51 = vld [vmem:[#allocation61_spill] sm:$0xff] }
 0x30d   :  { %4235 = vst [vmem:[#allocation3 + $0xd0] sm:$0xff] %v4073_v14  ;;  %v12723_v58 = vpop.permute.xlu2 %2916  ;;  %4443 = vmatmul.f32.gmra.mxu2 %v4073_v14  ;;  %v1969_v61 = vrot.slane %v1968_v55, 4  ;;  %v3207_v35 = vsel %vm3124_vm6, %v12642_v52, %v3078_v23  ;;  %v3205_v42 = vsel %vm3124_vm6, %v2901_v16, %v3076_v41  ;;  %v1830_v62 = vsel %vm1752_vm5, %v16091_v20, %v16090_v18  ;;  %v16094_v11 = vld [vmem:[#allocation57_spill] sm:$0xff]  ;;  %v4317_v55 = vld [vmem:[#allocation11 + $0xd8] sm:$0xff]  ;;  %v4347_v18 = vld [vmem:[#allocation11 + $0x1c8] sm:$0xff] }
 0x30e   :  { %4236 = vst.msk [vmem:[#allocation3 + $0xd8] sm:$0xff] %vm3124_vm6, %v4080_v25  ;;  %2988 = vrot.lane.b32.xlu0 %v12718_v31, %s10114_s11  ;;  %v2903_v34 = vpop.permute.xlu1 %2902  ;;  %v3081_v56 = vrot.slane %v12690_v1, 2  ;;  %v9466_v5 = vrot.slane %v1775_v24, 9  ;;  %v1803_v28 = vrot.slane %v16092_v6, 6  ;;  %v1858_v53 = vsel %vm1752_vm5, %v16094_v11, %v16093_v51  ;;  %4532 = vmatpush.msra.mxu2 %v4317_v55 }
 0x30f   :  { %2986 = vrot.lane.b32.xlu2 %v12721_v37, %s10114_s11  ;;  %v3077_v17 = vrot.slane %v2903_v34, 2  ;;  %v12744_v52 = vmax.f32 %v1967_v38, %v9576_v63  ;;  %v9577_v46 = vrot.slane %v1969_v61, 9  ;;  %v3463_v16 = vmax.f32 %v12140_v27, %v3207_v35  ;;  %4598 = vmatpush.msra.mxu3 %v4347_v18 }
 0x310   :  { %v3461_v41 = vmax.f32 %v12088_v12, %v3205_v42  ;;  %v1831_v25 = vrot.slane %v1830_v62, 6  ;;  %v1859_v32 = vrot.slane %v1858_v53, 6  ;;  %v3210_v38 = vsel %vm3124_vm6, %v12690_v1, %v3081_v56 }
 0x311   :  { %v3206_v23 = vsel %vm3124_vm6, %v2903_v34, %v3077_v17  ;;  %v12754_v63 = vmax.f32 %v1775_v24, %v9466_v5  ;;  %v9482_v17 = vrot.slane %v1803_v28, 9  ;;  %v12759_v12 = vsel %vm1752_vm5, %v11774_v2, %v11776_v29 }
 0x312   :  { %v3462_v14 = vmax.f32 %v12120_v57, %v3206_v23  ;;  %2990 = vrot.lane.b32.xlu1 %v12744_v52, %s10114_s11  ;;  %v12761_v35 = vmax.f32 %v1969_v61, %v9577_v46  ;;  %v3852_v62 = vperm.slane %v3463_v16, 0  ;;  %v3848_v6 = vperm.slane %v3461_v41, 0 }
 0x313   :  { %v3849_v1 = vperm.slane %v3461_v41, 2  ;;  %v9498_v56 = vrot.slane %v1831_v25, 9  ;;  %v9514_v5 = vrot.slane %v1859_v32, 9  ;;  %v1887_v51 = vrot.slane %v12759_v12, 6 }
 0x314   :  { %v2907_v34 = vpop.permute.xlu0 %2906  ;;  %v3850_v57 = vperm.slane %v3462_v14, 0  ;;  %v3851_v27 = vperm.slane %v3462_v14, 2  ;;  %v3853_v11 = vperm.slane %v3463_v16, 2  ;;  %v3466_v53 = vmax.f32 %v12194_v26, %v3210_v38 }
 0x315   :  { %v3079_v42 = vrot.slane %v2907_v34, 2  ;;  %v4277_v20 = vld [vmem:[#allocation3 + $0xd8] sm:$0xff]  ;;  %v1942_v46 = vsel %vm1752_vm5, %v12192_v9, %v12286_v7  ;;  %v12779_v55 = vmax.f32 %v1803_v28, %v9482_v17  ;;  %v12788_v9 = vmax.f32 %v1831_v25, %v9498_v56 }
 0x316   :  { %2770 = vrot.lane.b32.xlu0 %v12754_v63, %s10114_s11  ;;  %v2909_v24 = vpop.permute.xlu1 %2908  ;;  %9588 = vmatmul.msk.f32.gmra.mxu3 %vm3124_vm6, %v4277_v20  ;;  %v4081_v41 = vsel %vm3944_vm8, %v3850_v57, %v3848_v6  ;;  %v4087_v14 = vsel %vm3944_vm8, %v3851_v27, %v3849_v1  ;;  %v12790_v26 = vmax.f32 %v1859_v32, %v9514_v5  ;;  %v9530_v7 = vrot.slane %v1887_v51, 9  ;;  %v4315_v32 = vld [vmem:[#allocation11 + $0xc8] sm:$0xff] }
 0x317   :  { %2992 = vrot.lane.b32.xlu2 %v12761_v35, %s10114_s11  ;;  %v3208_v2 = vsel %vm3124_vm6, %v2907_v34, %v3079_v42  ;;  %v12769_v29 = vpop.permute.xlu2 %2922  ;;  %v3080_v61 = vrot.slane %v2909_v24, 2  ;;  %v1943_v28 = vrot.slane %v1942_v46, 6  ;;  %v4082_v38 = vsel %vm3946_vm9, %v3852_v62, %v4081_v41  ;;  %v4345_v62 = vld [vmem:[#allocation11 + $0x1b8] sm:$0xff]  ;;  %4533 = vmatpush.msra.mxu2 %v4315_v32 }
 0x318   :  { %v3464_v23 = vmax.f32 %v12145_v19, %v3208_v2  ;;  %v1914_v19 = vsel %vm1752_vm5, %v12011_v15, %v12068_v3  ;;  %v4088_v17 = vsel %vm3946_vm9, %v3853_v11, %v4087_v14  ;;  %v1970_v25 = vsel %vm1752_vm5, %v12624_v59, %v12627_v45  ;;  %4599 = vmatpush.msra.mxu3 %v4345_v62 }
 0x319   :  { %v3209_v18 = vsel %vm3124_vm6, %v2909_v24, %v3080_v61  ;;  %v1915_v20 = vrot.slane %v1914_v19, 6  ;;  %v3858_v6 = vperm.slane %v3466_v53, 0  ;;  %v3859_v1 = vperm.slane %v3466_v53, 2 }
 0x31a   :  { %v3854_v34 = vperm.slane %v3464_v23, 0  ;;  %v3855_v42 = vperm.slane %v3464_v23, 2  ;;  %v3465_v16 = vmax.f32 %v12162_v21, %v3209_v18  ;;  %2802 = vrot.lane.b32.xlu1 %v12779_v55, %s10114_s11  ;;  %v9562_v23 = vrot.slane %v1943_v28, 9 }
 0x31b   :  { %v12809_v59 = vmax.f32 %v1887_v51, %v9530_v7  ;;  %v9546_v53 = vrot.slane %v1915_v20, 9  ;;  %v1971_v46 = vrot.slane %v1970_v25, 6  ;;  %v3084_v41 = vrot.slane %v12723_v58, 2  ;;  %v4313_v7 = vld [vmem:[#allocation11 + $0xb8] sm:$0xff] }
 0x31c   :  { %v3856_v12 = vperm.slane %v3465_v16, 0  ;;  %v3857_v57 = vperm.slane %v3465_v16, 2  ;;  %v2913_v21 = vpop.permute.xlu0 %2912  ;;  %v4083_v27 = vsel %vm3948_vm10, %v3854_v34, %v4082_v38  ;;  %v4089_v15 = vsel %vm3948_vm10, %v3855_v42, %v4088_v17  ;;  %v4343_v38 = vld [vmem:[#allocation11 + $0x1a8] sm:$0xff]  ;;  %4534 = vmatpush.msra.mxu2 %v4313_v7  ;;  %v16096_v25 = vld [vmem:[#allocation30_spill] sm:$0xff] }
 0x31d   :  { %v3082_v3 = vrot.slane %v2913_v21, 2  ;;  %v12819_v19 = vmax.f32 %v1943_v28, %v9562_v23  ;;  %v12821_v17 = vmax.f32 %v1915_v20, %v9546_v53  ;;  %4600 = vmatpush.msra.mxu3 %v4343_v38  ;;  %v16095_v28 = vld [vmem:[#allocation46_spill] sm:$0xff]  ;;  %v3087_v62 = vrot.slane %v12769_v29, 2  ;;  %v16098_v38 = vld [vmem:[#allocation89_spill] sm:$0xff] }
 0x31e   :  { %2866 = vrot.lane.b32.xlu0 %v12790_v26, %s10114_s11  ;;  %v4084_v2 = vsel %vm3950_vm11, %v3856_v12, %v4083_v27  ;;  %v4090_v61 = vsel %vm3950_vm11, %v3857_v57, %v4089_v15  ;;  %v9578_v57 = vrot.slane %v1971_v46, 9  ;;  %vm4213_vm7 = vcmask 974848  }
 0x31f   :  { %2834 = vrot.lane.b32.xlu2 %v12788_v9, %s10114_s11  ;;  %v3211_v24 = vsel %vm3124_vm6, %v2913_v21, %v3082_v3  ;;  %v12804_v56 = vpop.permute.xlu2 %2928  ;;  %v4085_v34 = vsel %vm3952_vm12, %v3858_v6, %v4084_v2  ;;  %v4091_v42 = vsel %vm3952_vm12, %v3859_v1, %v4090_v61  ;;  %v3213_v21 = vsel %vm3124_vm6, %v12723_v58, %v3084_v41  ;;  %v16097_v58 = vld [vmem:[#allocation94_spill] sm:$0xff] }
 0x320   :  { %v3467_v5 = vmax.f32 %v12188_v54, %v3211_v24  ;;  %v2915_v11 = vpop.permute.xlu1 %2914  ;;  %v3469_v32 = vmax.f32 %v16096_v25, %v3213_v21  ;;  %v12837_v1 = vmax.f32 %v1971_v46, %v9578_v57  ;;  %v3216_v53 = vsel %vm3124_vm6, %v12769_v29, %v3087_v62  ;;  %v4341_v46 = vld [vmem:[#allocation11 + $0x198] sm:$0xff]  ;;  %v16099_v57 = vld [vmem:[#allocation97_spill] sm:$0xff] }
 0x321   :  { %v3083_v45 = vrot.slane %v2915_v11, 2  ;;  %4601 = vmatpush.msra.mxu3 %v4341_v46  ;;  %v3472_v21 = vmax.f32 %v16099_v57, %v3216_v53  ;;  %v16100_v62 = vld [vmem:[#allocation90_spill] sm:$0xff] }
 0x322   :  { %v3860_v14 = vperm.slane %v3467_v5, 0  ;;  %v3861_v18 = vperm.slane %v3467_v5, 2  ;;  %2898 = vrot.lane.b32.xlu1 %v12809_v59, %s10114_s11  ;;  %v4309_v46 = vld [vmem:[#allocation11 + $0x98] sm:$0xff] }
 0x323   :  { %v3212_v51 = vsel %vm3124_vm6, %v2915_v11, %v3083_v45  ;;  %v3864_v45 = vperm.slane %v3469_v32, 0  ;;  %v3871_v53 = vperm.slane %v3472_v21, 2 }
 0x324   :  { %v4086_v54 = vsel %vm3954_vm13, %v3860_v14, %v4085_v34  ;;  %v4092_v16 = vsel %vm3954_vm13, %v3861_v18, %v4091_v42  ;;  %v2919_v12 = vpop.permute.xlu0 %2918  ;;  %v3468_v15 = vmax.f32 %v16095_v28, %v3212_v51  ;;  %v4311_v34 = vld [vmem:[#allocation11 + $0xa8] sm:$0xff]  ;;  %v3865_v42 = vperm.slane %v3469_v32, 2 }
 0x325   :  { %4239 = vst [vmem:[#allocation3 + $0xf0] sm:$0xfe] %v4086_v54  ;;  %v3085_v27 = vrot.slane %v2919_v12, 2  ;;  %4535 = vmatpush.msra.mxu2 %v4311_v34  ;;  %v3090_v51 = vrot.slane %v12804_v56, 2 }
 0x326   :  { %4240 = vst.msk [vmem:[#allocation3 + $0xf8] sm:$0xfe] %vm4208_vm14, %v4092_v16  ;;  %2962 = vrot.lane.b32.xlu0 %v12819_v19, %s10114_s11  ;;  %v3862_v2 = vperm.slane %v3468_v15, 0  ;;  %v3863_v5 = vperm.slane %v3468_v15, 2 }
 0x327   :  { %2930 = vrot.lane.b32.xlu2 %v12821_v17, %s10114_s11  ;;  %v12831_v3 = vpop.permute.xlu2 %2936  ;;  %v3214_v20 = vsel %vm3124_vm6, %v2919_v12, %v3085_v27  ;;  %4536 = vmatpush.msra.mxu2 %v4309_v46 }
 0x328   :  { %v3470_v6 = vmax.f32 %v16097_v58, %v3214_v20  ;;  %v4093_v7 = vsel %vm3962_vm15, %v3864_v45, %v3862_v2  ;;  %v4100_v27 = vsel %vm3962_vm15, %v3865_v42, %v3863_v5  ;;  %v4339_v42 = vld [vmem:[#allocation11 + $0x188] sm:$0xff] }
 0x329   :  { %4602 = vmatpush.msra.mxu3 %v4339_v42 }
 0x32a   :  { %v2921_v24 = vpop.permute.xlu1 %2920  ;;  %2994 = vrot.lane.b32.xlu1 %v12837_v1, %s10114_s11  ;;  %v3866_v11 = vperm.slane %v3470_v6, 0  ;;  %v3867_v41 = vperm.slane %v3470_v6, 2 }
 0x32b   :  { %v3086_v61 = vrot.slane %v2921_v24, 2 }
 0x32c   :  { %v4278_v23 = vld [vmem:[#allocation3 + $0xf0] sm:$0xff]  ;;  %v4094_v28 = vsel %vm3944_vm8, %v3866_v11, %v4093_v7  ;;  %v4101_v20 = vsel %vm3944_vm8, %v3867_v41, %v4100_v27  ;;  %v3870_v11 = vperm.slane %v3472_v21, 0 }
 0x32d   :  { %v2925_v14 = vpop.permute.xlu0 %2924  ;;  %4446 = vmatmul.f32.gmra.mxu2 %v4278_v23  ;;  %v4279_v18 = vld [vmem:[#allocation3 + $0xf8] sm:$0xff]  ;;  %v3215_v54 = vsel %vm3124_vm6, %v2921_v24, %v3086_v61  ;;  %v3219_v24 = vsel %vm3124_vm6, %v12804_v56, %v3090_v51 }
 0x32e   :  { %v3088_v16 = vrot.slane %v2925_v14, 2  ;;  %9589 = vmatmul.msk.f32.gmra.mxu3 %vm3124_vm6, %v4279_v18  ;;  %v3471_v12 = vmax.f32 %v16098_v38, %v3215_v54  ;;  %v16101_v18 = vld [vmem:[#allocation93_spill] sm:$0xff] }
 0x32f   :  { %v12848_v29 = vpop.permute.xlu2 %2942  ;;  %v3475_v41 = vmax.f32 %v16101_v18, %v3219_v24 }
 0x330   :  { %v3217_v15 = vsel %vm3124_vm6, %v2925_v14, %v3088_v16  ;;  %v3868_v25 = vperm.slane %v3471_v12, 0  ;;  %v3869_v32 = vperm.slane %v3471_v12, 2  ;;  %v16102_v16 = vld [vmem:[#allocation91_spill] sm:$0xff] }
 0x331   :  { %v3473_v58 = vmax.f32 %v16100_v62, %v3217_v15  ;;  %v3877_v15 = vperm.slane %v3475_v41, 2 }
 0x332   :  { %v2927_v6 = vpop.permute.xlu1 %2926  ;;  %v4095_v2 = vsel %vm3946_vm9, %v3868_v25, %v4094_v28  ;;  %v4102_v61 = vsel %vm3946_vm9, %v3869_v32, %v4101_v20  ;;  %v3876_v28 = vperm.slane %v3475_v41, 0  ;;  %v3094_v32 = vrot.slane %v12831_v3, 2 }
 0x333   :  { %v3872_v23 = vperm.slane %v3473_v58, 0  ;;  %v3873_v5 = vperm.slane %v3473_v58, 2  ;;  %v3089_v45 = vrot.slane %v2927_v6, 2  ;;  %v4096_v54 = vsel %vm3948_vm10, %v3870_v11, %v4095_v2 }
 0x334   :  { %v4103_v56 = vsel %vm3948_vm10, %v3871_v53, %v4102_v61  ;;  %v4307_v61 = vld [vmem:[#allocation11 + $0x88] sm:$0xff]  ;;  %v3223_v18 = vsel %vm3124_vm6, %v12831_v3, %v3094_v32 }
 0x335   :  { %v2933_v14 = vpop.permute.xlu0 %2932  ;;  %v3218_v34 = vsel %vm3124_vm6, %v2927_v6, %v3089_v45  ;;  %v4097_v38 = vsel %vm3950_vm11, %v3872_v23, %v4096_v54  ;;  %v4104_v12 = vsel %vm3950_vm11, %v3873_v5, %v4103_v56  ;;  %v4337_v23 = vld [vmem:[#allocation11 + $0x178] sm:$0xff]  ;;  %v16103_v5 = vld [vmem:[#allocation49_spill] sm:$0xff]  ;;  %4537 = vmatpush.msra.mxu2 %v4307_v61  ;;  %v3479_v56 = vmax.f32 %v12382_v47, %v3223_v18 }
 0x336   :  { %v3474_v51 = vmax.f32 %v16102_v16, %v3218_v34  ;;  %v3092_v57 = vrot.slane %v2933_v14, 2  ;;  %4603 = vmatpush.msra.mxu3 %v4337_v23  ;;  %v3097_v34 = vrot.slane %v12848_v29, 2 }
 0x337   :  { %v12865_v7 = vpop.permute.xlu2 %2948  ;;  %v3884_v47 = vperm.slane %v3479_v56, 0 }
 0x338   :  { %v3874_v21 = vperm.slane %v3474_v51, 0  ;;  %v3875_v27 = vperm.slane %v3474_v51, 2  ;;  %v3221_v6 = vsel %vm3124_vm6, %v2933_v14, %v3092_v57  ;;  %v3226_v3 = vsel %vm3124_vm6, %v12848_v29, %v3097_v34  ;;  %v16105_v34 = vld [vmem:[#allocation50_spill] sm:$0xff] }
 0x339   :  { %v3477_v45 = vmax.f32 %v16103_v5, %v3221_v6 }
 0x33a   :  { %v4098_v20 = vsel %vm3952_vm12, %v3874_v21, %v4097_v38  ;;  %v4105_v25 = vsel %vm3952_vm12, %v3875_v27, %v4104_v12 }
 0x33b   :  { %v4099_v62 = vsel %vm3954_vm13, %v3876_v28, %v4098_v20  ;;  %v4106_v58 = vsel %vm3954_vm13, %v3877_v15, %v4105_v25  ;;  %v3880_v16 = vperm.slane %v3477_v45, 0  ;;  %v3881_v38 = vperm.slane %v3477_v45, 2  ;;  %v4305_v45 = vld [vmem:[#allocation11 + $0x78] sm:$0xff] }
 0x33c   :  { %v2935_v24 = vpop.permute.xlu1 %2934  ;;  %4241 = vst [vmem:[#allocation3 + $0x100] sm:$0xff] %v4099_v62  ;;  %4449 = vmatmul.f32.gmra.mxu2 %v4099_v62  ;;  %v3885_v25 = vperm.slane %v3479_v56, 2  ;;  %v3100_v56 = vrot.slane %v12865_v7, 2 }
 0x33d   :  { %v3093_v2 = vrot.slane %v2935_v24, 2  ;;  %4242 = vst.msk [vmem:[#allocation3 + $0x108] sm:$0xff] %vm3124_vm6, %v4106_v58  ;;  %4538 = vmatpush.msra.mxu2 %v4305_v45  ;;  %v4301_v45 = vld [vmem:[#allocation11 + $0x58] sm:$0xff] }
 0x33f   :  { %v3222_v11 = vsel %vm3124_vm6, %v2935_v24, %v3093_v2  ;;  %v12878_v53 = vpop.permute.xlu2 %2954  ;;  %v16104_v24 = vld [vmem:[#allocation100_spill] sm:$0xff] }
 0x340   :  { %v3478_v14 = vmax.f32 %v12364_v8, %v3222_v11  ;;  %v2939_v41 = vpop.permute.xlu0 %2938  ;;  %v4335_v11 = vld [vmem:[#allocation11 + $0x168] sm:$0xff] }
 0x341   :  { %v3095_v46 = vrot.slane %v2939_v41, 2  ;;  %4604 = vmatpush.msra.mxu3 %v4335_v11 }
 0x342   :  { %v3882_v42 = vperm.slane %v3478_v14, 0  ;;  %v3883_v54 = vperm.slane %v3478_v14, 2 }
 0x343   :  { %v3224_v51 = vsel %vm3124_vm6, %v2939_v41, %v3095_v46 }
 0x344   :  { %v3480_v12 = vmax.f32 %v12386_v44, %v3224_v51  ;;  %v2941_v57 = vpop.permute.xlu1 %2940  ;;  %v4107_v8 = vsel %vm3944_vm8, %v3882_v42, %v3880_v16  ;;  %v4281_v21 = vld [vmem:[#allocation3 + $0x108] sm:$0xff]  ;;  %v4113_v27 = vsel %vm3944_vm8, %v3883_v54, %v3881_v38  ;;  %v3482_v44 = vmax.f32 %v12420_v13, %v3226_v3 }
 0x345   :  { %v3096_v20 = vrot.slane %v2941_v57, 2  ;;  %9590 = vmatmul.msk.f32.gmra.mxu3 %vm3124_vm6, %v4281_v21  ;;  %v4108_v29 = vsel %vm3946_vm9, %v3884_v47, %v4107_v8  ;;  %v4114_v6 = vsel %vm3946_vm9, %v3885_v25, %v4113_v27  ;;  %v4303_v38 = vld [vmem:[#allocation11 + $0x68] sm:$0xff]  ;;  %v4333_v47 = vld [vmem:[#allocation11 + $0x158] sm:$0xff]  ;;  %v3229_v25 = vsel %vm3124_vm6, %v12865_v7, %v3100_v56 }
 0x346   :  { %v3886_v28 = vperm.slane %v3480_v12, 0  ;;  %v3887_v15 = vperm.slane %v3480_v12, 2  ;;  %v3890_v41 = vperm.slane %v3482_v44, 0  ;;  %v3891_v54 = vperm.slane %v3482_v44, 2  ;;  %4539 = vmatpush.msra.mxu2 %v4303_v38  ;;  %4605 = vmatpush.msra.mxu3 %v4333_v47 }
 0x347   :  { %v12892_v32 = vpop.permute.xlu2 %2960  ;;  %v3225_v62 = vsel %vm3124_vm6, %v2941_v57, %v3096_v20 }
 0x348   :  { %v2945_v58 = vpop.permute.xlu0 %2944  ;;  %v3481_v2 = vmax.f32 %v16104_v24, %v3225_v62  ;;  %v4109_v23 = vsel %vm3948_vm10, %v3886_v28, %v4108_v29  ;;  %v4115_v5 = vsel %vm3948_vm10, %v3887_v15, %v4114_v6  ;;  %v3485_v24 = vmax.f32 %v12462_v33, %v3229_v25  ;;  %4540 = vmatpush.msra.mxu2 %v4301_v45  ;;  %v16108_v45 = vld [vmem:[#allocation60_spill] sm:$0xff] }
 0x349   :  { %v3098_v61 = vrot.slane %v2945_v58, 2 }
 0x34a   :  { %v3888_v18 = vperm.slane %v3481_v2, 0  ;;  %v3889_v14 = vperm.slane %v3481_v2, 2  ;;  %v16107_v2 = vld [vmem:[#allocation96_spill] sm:$0xff] }
 0x34b   :  { %v3227_v13 = vsel %vm3124_vm6, %v2945_v58, %v3098_v61  ;;  %v16106_v58 = vld [vmem:[#allocation95_spill] sm:$0xff] }
 0x34c   :  { %v3483_v46 = vmax.f32 %v16105_v34, %v3227_v13  ;;  %v2947_v42 = vpop.permute.xlu1 %2946  ;;  %v4110_v16 = vsel %vm3950_vm11, %v3888_v18, %v4109_v23  ;;  %v4116_v51 = vsel %vm3950_vm11, %v3889_v14, %v4115_v5  ;;  %v3103_v5 = vrot.slane %v12878_v53, 2 }
 0x34d   :  { %v4111_v3 = vsel %vm3952_vm12, %v3890_v41, %v4110_v16  ;;  %v4117_v8 = vsel %vm3952_vm12, %v3891_v54, %v4116_v51  ;;  %v3099_v21 = vrot.slane %v2947_v42, 2  ;;  %v3896_v14 = vperm.slane %v3485_v24, 0 }
 0x34e   :  { %v3892_v12 = vperm.slane %v3483_v46, 0  ;;  %v3893_v57 = vperm.slane %v3483_v46, 2  ;;  %v3897_v46 = vperm.slane %v3485_v24, 2  ;;  %v3232_v51 = vsel %vm3124_vm6, %v12878_v53, %v3103_v5 }
 0x34f   :  { %v12908_v27 = vpop.permute.xlu2 %2968  ;;  %v3228_v44 = vsel %vm3124_vm6, %v2947_v42, %v3099_v21 }
 0x350   :  { %v4112_v28 = vsel %vm3954_vm13, %v3892_v12, %v4111_v3  ;;  %v4118_v15 = vsel %vm3954_vm13, %v3893_v57, %v4117_v8  ;;  %v2951_v20 = vpop.permute.xlu0 %2950  ;;  %v3484_v29 = vmax.f32 %v16106_v58, %v3228_v44  ;;  %v4331_v12 = vld [vmem:[#allocation11 + $0x148] sm:$0xff]  ;;  %v3106_v57 = vrot.slane %v12892_v32, 2 }
 0x351   :  { %4245 = vst [vmem:[#allocation3 + $0x120] sm:$0xfe] %v4112_v28  ;;  %v3101_v62 = vrot.slane %v2951_v20, 2  ;;  %4606 = vmatpush.msra.mxu3 %v4331_v12  ;;  %v4299_v58 = vld [vmem:[#allocation11 + $0x48] sm:$0xff] }
 0x352   :  { %4246 = vst.msk [vmem:[#allocation3 + $0x128] sm:$0xfe] %vm4208_vm14, %v4118_v15  ;;  %v3894_v7 = vperm.slane %v3484_v29, 0  ;;  %v3895_v11 = vperm.slane %v3484_v29, 2  ;;  %v3235_v44 = vsel %vm3124_vm6, %v12892_v32, %v3106_v57  ;;  %4541 = vmatpush.msra.mxu2 %v4299_v58  ;;  %v4329_v32 = vld [vmem:[#allocation11 + $0x138] sm:$0xff] }
 0x353   :  { %v3230_v6 = vsel %vm3124_vm6, %v2951_v20, %v3101_v62  ;;  %4607 = vmatpush.msra.mxu3 %v4329_v32 }
 0x354   :  { %v3486_v61 = vmax.f32 %v16107_v2, %v3230_v6  ;;  %v2953_v23 = vpop.permute.xlu1 %2952  ;;  %v4119_v3 = vsel %vm3962_vm15, %v3896_v14, %v3894_v7  ;;  %v4126_v8 = vsel %vm3962_vm15, %v3897_v46, %v3895_v11  ;;  %v3491_v7 = vmax.f32 %v16108_v45, %v3235_v44 }
 0x355   :  { %v3102_v18 = vrot.slane %v2953_v23, 2 }
 0x356   :  { %v3898_v13 = vperm.slane %v3486_v61, 0  ;;  %v3899_v42 = vperm.slane %v3486_v61, 2  ;;  %v3908_v12 = vperm.slane %v3491_v7, 0  ;;  %v3909_v57 = vperm.slane %v3491_v7, 2 }
 0x357   :  { %v3231_v54 = vsel %vm3124_vm6, %v2953_v23, %v3102_v18 }
 0x358   :  { %v2957_v41 = vpop.permute.xlu0 %2956  ;;  %v4282_v34 = vld [vmem:[#allocation3 + $0x120] sm:$0xff]  ;;  %v3487_v38 = vmax.f32 %v12488_v10, %v3231_v54  ;;  %v4120_v28 = vsel %vm3944_vm8, %v3898_v13, %v4119_v3  ;;  %v3488_v10 = vmax.f32 %v12502_v22, %v3232_v51  ;;  %v4127_v47 = vsel %vm3944_vm8, %v3899_v42, %v4126_v8  ;;  %v16109_v13 = vld [vmem:[#allocation104_spill] sm:$0xff] }
 0x359   :  { %v3104_v56 = vrot.slane %v2957_v41, 2  ;;  %v12922_v33 = vpop.permute.xlu2 %2974  ;;  %4452 = vmatmul.f32.gmra.mxu2 %v4282_v34  ;;  %v4283_v16 = vld [vmem:[#allocation3 + $0x128] sm:$0xff]  ;;  %v3110_v42 = vrot.slane %v12908_v27, 2 }
 0x35a   :  { %9591 = vmatmul.msk.f32.gmra.mxu3 %vm3124_vm6, %v4283_v16  ;;  %v3900_v15 = vperm.slane %v3487_v38, 0  ;;  %v3901_v20 = vperm.slane %v3487_v38, 2  ;;  %v3902_v23 = vperm.slane %v3488_v10, 0  ;;  %v4297_v38 = vld [vmem:[#allocation11 + $0x38] sm:$0xff] }
 0x35b   :  { %v3233_v21 = vsel %vm3124_vm6, %v2957_v41, %v3104_v56  ;;  %4542 = vmatpush.msra.mxu2 %v4297_v38 }
 0x35c   :  { %v3489_v53 = vmax.f32 %v12510_v50, %v3233_v21  ;;  %v2959_v25 = vpop.permute.xlu1 %2958  ;;  %v4121_v62 = vsel %vm3946_vm9, %v3900_v15, %v4120_v28  ;;  %v4128_v29 = vsel %vm3946_vm9, %v3901_v20, %v4127_v47  ;;  %v3903_v50 = vperm.slane %v3488_v10, 2  ;;  %v16110_v20 = vld [vmem:[#allocation32_spill] sm:$0xff] }
 0x35d   :  { %v3105_v2 = vrot.slane %v2959_v25, 2  ;;  %v4122_v18 = vsel %vm3948_vm10, %v3902_v23, %v4121_v62 }
 0x35e   :  { %v3904_v6 = vperm.slane %v3489_v53, 0  ;;  %v3905_v24 = vperm.slane %v3489_v53, 2  ;;  %v4129_v14 = vsel %vm3948_vm10, %v3903_v50, %v4128_v29  ;;  %v3113_v29 = vrot.slane %v12922_v33, 2 }
 0x35f   :  { %v3234_v11 = vsel %vm3124_vm6, %v2959_v25, %v3105_v2  ;;  %v3239_v25 = vsel %vm3124_vm6, %v12908_v27, %v3110_v42 }
 0x360   :  { %v2965_v61 = vpop.permute.xlu0 %2964  ;;  %v3490_v41 = vmax.f32 %v16109_v13, %v3234_v11  ;;  %v4123_v34 = vsel %vm3950_vm11, %v3904_v6, %v4122_v18  ;;  %v4130_v46 = vsel %vm3950_vm11, %v3905_v24, %v4129_v14 }
 0x361   :  { %v3108_v5 = vrot.slane %v2965_v61, 2  ;;  %v12940_v22 = vpop.permute.xlu2 %2980 }
 0x362   :  { %v3906_v54 = vperm.slane %v3490_v41, 0  ;;  %v3907_v56 = vperm.slane %v3490_v41, 2 }
 0x363   :  { %v3237_v16 = vsel %vm3124_vm6, %v2965_v61, %v3108_v5  ;;  %v3495_v61 = vmax.f32 %v12590_v60, %v3239_v25  ;;  %v3242_v5 = vsel %vm3124_vm6, %v12922_v33, %v3113_v29  ;;  %v4327_v33 = vld [vmem:[#allocation11 + $0x128] sm:$0xff]  ;;  %v4325_v29 = vld [vmem:[#allocation11 + $0x118] sm:$0xff] }
 0x364   :  { %v2967_v51 = vpop.permute.xlu1 %2966  ;;  %v4124_v8 = vsel %vm3952_vm12, %v3906_v54, %v4123_v34  ;;  %v4131_v21 = vsel %vm3952_vm12, %v3907_v56, %v4130_v46  ;;  %v3493_v53 = vmax.f32 %v16110_v20, %v3237_v16  ;;  %v3498_v60 = vmax.f32 %v12650_v36, %v3242_v5  ;;  %v4295_v54 = vld [vmem:[#allocation11 + $0x28] sm:$0xff]  ;;  %4608 = vmatpush.msra.mxu3 %v4327_v33 }
 0x365   :  { %v3109_v3 = vrot.slane %v2967_v51, 2  ;;  %v12954_v28 = vsel %vm3954_vm13, %v3908_v12, %v4124_v8  ;;  %v4132_v15 = vsel %vm3954_vm13, %v3909_v57, %v4131_v21  ;;  %v3916_v14 = vperm.slane %v3495_v61, 0  ;;  %4543 = vmatpush.msra.mxu2 %v4295_v54  ;;  %v4291_v33 = vld [vmem:[#allocation11 + $0x8] sm:$0xff] }
 0x366   :  { %4247 = vst [vmem:[#allocation3 + $0x130] sm:$0xff] %v12954_v28  ;;  %4455 = vmatmul.f32.gmra.mxu2 %v12954_v28  ;;  %v3912_v27 = vperm.slane %v3493_v53, 0  ;;  %v3913_v50 = vperm.slane %v3493_v53, 2  ;;  %v3917_v13 = vperm.slane %v3495_v61, 2  ;;  %v3116_v57 = vrot.slane %v12940_v22, 2  ;;  %4609 = vmatpush.msra.mxu3 %v4325_v29 }
 0x367   :  { %v3238_v10 = vsel %vm3124_vm6, %v2967_v51, %v3109_v3  ;;  %4248 = vst.msk [vmem:[#allocation3 + $0x138] sm:$0xff] %vm3124_vm6, %v4132_v15  ;;  %v3922_v15 = vperm.slane %v3498_v60, 0  ;;  %v3923_v20 = vperm.slane %v3498_v60, 2 }
 0x368   :  { %v2971_v47 = vpop.permute.xlu0 %2970  ;;  %v3494_v44 = vmax.f32 %v12576_v49, %v3238_v10 }
 0x369   :  { %v3111_v62 = vrot.slane %v2971_v47, 2  ;;  %v12963_v58 = vpop.permute.xlu2 %2986 }
 0x36a   :  { %v3914_v6 = vperm.slane %v3494_v44, 0  ;;  %v3915_v24 = vperm.slane %v3494_v44, 2 }
 0x36b   :  { %v3240_v2 = vsel %vm3124_vm6, %v2971_v47, %v3111_v62 }
 0x36c   :  { %v3496_v23 = vmax.f32 %v12595_v4, %v3240_v2  ;;  %v2973_v49 = vpop.permute.xlu1 %2972  ;;  %v4133_v45 = vsel %vm3944_vm8, %v3914_v6, %v3912_v27  ;;  %v4139_v7 = vsel %vm3944_vm8, %v3915_v24, %v3913_v50  ;;  %v4293_v6 = vld [vmem:[#allocation11 + $0x18] sm:$0xff]  ;;  %v3245_v24 = vsel %vm3124_vm6, %v12940_v22, %v3116_v57 }
 0x36d   :  { %v3112_v18 = vrot.slane %v2973_v49, 2  ;;  %v4134_v56 = vsel %vm3946_vm9, %v3916_v14, %v4133_v45  ;;  %v4140_v16 = vsel %vm3946_vm9, %v3917_v13, %v4139_v7  ;;  %4544 = vmatpush.msra.mxu2 %v4293_v6  ;;  %v3501_v45 = vmax.f32 %v12688_v48, %v3245_v24  ;;  %v4323_v48 = vld [vmem:[#allocation11 + $0x108] sm:$0xff] }
 0x36e   :  { %v3918_v11 = vperm.slane %v3496_v23, 0  ;;  %v3919_v32 = vperm.slane %v3496_v23, 2  ;;  %v12977_v4 = vld [vmem:[#allocation3 + $0x138] sm:$0xff]  ;;  %4610 = vmatpush.msra.mxu3 %v4323_v48 }
 0x36f   :  { %v3241_v34 = vsel %vm3124_vm6, %v2973_v49, %v3112_v18  ;;  %9592 = vmatmul.msk.f32.gmra.mxu3 %vm3124_vm6, %v12977_v4  ;;  %v3119_v18 = vrot.slane %v12963_v58, 2  ;;  %v3928_v54 = vperm.slane %v3501_v45, 0  ;;  %4545 = vmatpush.msra.mxu2 %v4291_v33 }
 0x370   :  { %v2977_v41 = vpop.permute.xlu0 %2976  ;;  %v3497_v51 = vmax.f32 %v12631_v40, %v3241_v34  ;;  %v4135_v36 = vsel %vm3948_vm10, %v3918_v11, %v4134_v56  ;;  %v4141_v38 = vsel %vm3948_vm10, %v3919_v32, %v4140_v16 }
 0x371   :  { %v3114_v46 = vrot.slane %v2977_v41, 2  ;;  %v12979_v42 = vpop.permute.xlu2 %2992 }
 0x372   :  { %v3920_v3 = vperm.slane %v3497_v51, 0  ;;  %v3921_v8 = vperm.slane %v3497_v51, 2 }
 0x373   :  { %v3243_v12 = vsel %vm3124_vm6, %v2977_v41, %v3114_v46 }
 0x374   :  { %v3499_v21 = vmax.f32 %v12644_v43, %v3243_v12  ;;  %v2979_v40 = vpop.permute.xlu1 %2978  ;;  %v4136_v53 = vsel %vm3950_vm11, %v3920_v3, %v4135_v36  ;;  %v4142_v10 = vsel %vm3950_vm11, %v3921_v8, %v4141_v38 }
 0x375   :  { %v4137_v44 = vsel %vm3952_vm12, %v3922_v15, %v4136_v53  ;;  %v4143_v62 = vsel %vm3952_vm12, %v3923_v20, %v4142_v10  ;;  %v3115_v61 = vrot.slane %v2979_v40, 2  ;;  %v3122_v15 = vrot.slane %v12979_v42, 2 }
 0x376   :  { %v3924_v47 = vperm.slane %v3499_v21, 0  ;;  %v3925_v25 = vperm.slane %v3499_v21, 2 }
 0x377   :  { %v3244_v49 = vsel %vm3124_vm6, %v2979_v40, %v3115_v61  ;;  %v3251_v24 = vsel %vm3124_vm6, %v12979_v42, %v3122_v15 }
 0x378   :  { %v4138_v43 = vsel %vm3954_vm13, %v3924_v47, %v4137_v44  ;;  %v4144_v2 = vsel %vm3954_vm13, %v3925_v25, %v4143_v62  ;;  %v2983_v27 = vpop.permute.xlu0 %2982  ;;  %v3500_v22 = vmax.f32 %v12671_v0, %v3244_v49 }
 0x379   :  { %4251 = vst [vmem:[#allocation3 + $0x150] sm:$0xfe] %v4138_v43  ;;  %v3117_v23 = vrot.slane %v2983_v27, 2  ;;  %v2835_v50 = vpop.permute.xlu2 %2834 }
 0x37a   :  { %4252 = vst.msk [vmem:[#allocation3 + $0x158] sm:$0xfe] %vm4208_vm14, %v4144_v2  ;;  %v3043_v5 = vrot.slane %v2835_v50, 2  ;;  %v3926_v14 = vperm.slane %v3500_v22, 0  ;;  %v3927_v60 = vperm.slane %v3500_v22, 2  ;;  %v3507_v22 = vmax.f32 %v12761_v35, %v3251_v24 }
 0x37b   :  { %v3246_v7 = vsel %vm3124_vm6, %v2983_v27, %v3117_v23  ;;  %v4922_v27 = vld [vmem:[#allocation11 + $0x2e8] sm:$0xff]  ;;  %v4952_v23 = vld [vmem:[#allocation11 + $0x3d8] sm:$0xff] }
 0x37c   :  { %v3502_v11 = vmax.f32 %v12679_v39, %v3246_v7  ;;  %v3172_v32 = vsel %vm3124_vm6, %v2835_v50, %v3043_v5  ;;  %v2985_v41 = vpop.permute.xlu1 %2984  ;;  %v3929_v39 = vperm.slane %v3501_v45, 2  ;;  %v4145_v12 = vsel %vm3962_vm15, %v3928_v54, %v3926_v14  ;;  %5115 = vmatpush.msrb.mxu2 %v4922_v27  ;;  %5181 = vmatpush.msrb.mxu3 %v4952_v23  ;;  %v4946_v27 = vld [vmem:[#allocation11 + $0x3a8] sm:$0xff]  ;;  %v13066_v23 = vpop.f32.mrf.mxu2 }
 0x37d   :  { %v3428_v13 = vmax.f32 %v12788_v9, %v3172_v32  ;;  %v3118_v46 = vrot.slane %v2985_v41, 2  ;;  %v3248_v9 = vsel %vm3124_vm6, %v12963_v58, %v3119_v18  ;;  %v4950_v32 = vld [vmem:[#allocation11 + $0x3c8] sm:$0xff]  ;;  %v3940_v48 = vperm.slane %v3507_v22, 0 }
 0x37e   :  { %v3930_v34 = vperm.slane %v3502_v11, 0  ;;  %v3931_v0 = vperm.slane %v3502_v11, 2  ;;  %v4152_v20 = vsel %vm3962_vm15, %v3929_v39, %v3927_v60  ;;  %v3504_v25 = vmax.f32 %v12721_v37, %v3248_v9  ;;  %v4920_v11 = vld [vmem:[#allocation11 + $0x2d8] sm:$0xff]  ;;  %5182 = vmatpush.msrb.mxu3 %v4950_v32 }
 0x37f   :  { %v3782_v56 = vperm.slane %v3428_v13, 0  ;;  %v3783_v16 = vperm.slane %v3428_v13, 2  ;;  %v3247_v51 = vsel %vm3124_vm6, %v2985_v41, %v3118_v46  ;;  %5116 = vmatpush.msrb.mxu2 %v4920_v11  ;;  %v3941_v54 = vperm.slane %v3507_v22, 2  ;;  %v13081_v32 = vld [vmem:[#allocation3 + $0x40] sm:$0xff] }
 0x380   :  { %v2989_v36 = vpop.permute.xlu0 %2988  ;;  %v13009_v38 = vld [vmem:[#allocation3 + $0x150] sm:$0xff]  ;;  %v3503_v57 = vmax.f32 %v12709_v30, %v3247_v51  ;;  %v4146_v40 = vsel %vm3944_vm8, %v3930_v34, %v4145_v12  ;;  %v4153_v30 = vsel %vm3944_vm8, %v3931_v0, %v4152_v20  ;;  %v3935_v45 = vperm.slane %v3504_v25, 2 }
 0x381   :  { %4225 = vst [vmem:[#allocation3 + $0x80] sm:$0x1] %v3782_v56  ;;  %v2931_v3 = vpop.permute.xlu2 %2930  ;;  %v3120_v8 = vrot.slane %v2989_v36, 2  ;;  %4458 = vmatmul.f32.gmra.mxu2 %v13009_v38  ;;  %v13016_v21 = vld [vmem:[#allocation3 + $0x158] sm:$0xff] }
 0x382   :  { %4226 = vst.msk [vmem:[#allocation3 + $0x88] sm:$0x1] %vm4213_vm7, %v3783_v16  ;;  %v3091_v58 = vrot.slane %v2931_v3, 2  ;;  %9593 = vmatmul.msk.f32.gmra.mxu3 %vm3124_vm6, %v13016_v21  ;;  %v3932_v53 = vperm.slane %v3503_v57, 0  ;;  %v3933_v10 = vperm.slane %v3503_v57, 2 }
 0x383   :  { %v3249_v47 = vsel %vm3124_vm6, %v2989_v36, %v3120_v8  ;;  %v4948_v8 = vld [vmem:[#allocation11 + $0x3b8] sm:$0xff] }
 0x384   :  { %v3220_v44 = vsel %vm3124_vm6, %v2931_v3, %v3091_v58  ;;  %v3505_v62 = vmax.f32 %v12718_v31, %v3249_v47  ;;  %v2991_v6 = vpop.permute.xlu1 %2990  ;;  %v4147_v43 = vsel %vm3946_vm9, %v3932_v53, %v4146_v40  ;;  %v4154_v2 = vsel %vm3946_vm9, %v3933_v10, %v4153_v30  ;;  %v4918_v3 = vld [vmem:[#allocation11 + $0x2c8] sm:$0xff]  ;;  %5183 = vmatpush.msrb.mxu3 %v4948_v8 }
 0x385   :  { %v3476_v29 = vmax.f32 %v12821_v17, %v3220_v44  ;;  %v3121_v5 = vrot.slane %v2991_v6, 2  ;;  %v3934_v31 = vperm.slane %v3504_v25, 0  ;;  %v4155_v14 = vsel %vm3948_vm10, %v3935_v45, %v4154_v2  ;;  %5117 = vmatpush.msrb.mxu2 %v4918_v3 }
 0x386   :  { %v3936_v61 = vperm.slane %v3505_v62, 0  ;;  %v3937_v37 = vperm.slane %v3505_v62, 2  ;;  %5184 = vmatpush.msrb.mxu3 %v4946_v27  ;;  %v4940_v27 = vld [vmem:[#allocation11 + $0x378] sm:$0xff] }
 0x387   :  { %v3878_v50 = vperm.slane %v3476_v29, 0  ;;  %v3879_v49 = vperm.slane %v3476_v29, 2  ;;  %v3250_v42 = vsel %vm3124_vm6, %v2991_v6, %v3121_v5  ;;  %v4148_v18 = vsel %vm3948_vm10, %v3934_v31, %v4147_v43  ;;  %v9843_v29 = vld [vmem:[#allocation3] sm:$0xff]  ;;  %v16111_v31 = vld [vmem:[#allocation76_spill] sm:$0xff] }
 0x388   :  { %v2771_v17 = vpop.permute.xlu0 %2770  ;;  %v3506_v13 = vmax.f32 %v12744_v52, %v3250_v42  ;;  %v4149_v41 = vsel %vm3950_vm11, %v3936_v61, %v4148_v18  ;;  %v4156_v35 = vsel %vm3950_vm11, %v3937_v37, %v4155_v14  ;;  %v4916_v43 = vld [vmem:[#allocation11 + $0x2b8] sm:$0xff]  ;;  %v16112_v45 = vrot.slane %v16111_v31, 1  ;;  %v16113_v42 = vld [vmem:[#allocation29_spill] sm:$0xff] }
 0x389   :  { %4243 = vst [vmem:[#allocation3 + $0x110] sm:$0x1] %v3878_v50  ;;  %v3011_v7 = vrot.slane %v2771_v17, 2  ;;  %5118 = vmatpush.msrb.mxu2 %v4916_v43  ;;  %v9849_v43 = vld [vmem:[#allocation3 + $0x38] sm:$0xff] }
 0x38a   :  { %4244 = vst.msk [vmem:[#allocation3 + $0x118] sm:$0x1] %vm4213_vm7, %v3879_v49  ;;  %v3938_v34 = vperm.slane %v3506_v13, 0  ;;  %v3939_v46 = vperm.slane %v3506_v13, 2  ;;  %v13086_v13 = vld [vmem:[#allocation3 + $0x48] sm:$0xff] }
 0x38b   :  { %v3140_v60 = vsel %vm3124_vm6, %v2771_v17, %v3011_v7  ;;  %v16114_v7 = vrot.slane %v16113_v42, 1 }
 0x38c   :  { %v3396_v33 = vmax.f32 %v12754_v63, %v3140_v60  ;;  %v2803_v0 = vpop.permute.xlu1 %2802  ;;  %v4150_v56 = vsel %vm3952_vm12, %v3938_v34, %v4149_v41  ;;  %v4157_v16 = vsel %vm3952_vm12, %v3939_v46, %v4156_v35  ;;  %v4703_v41 = vld [vmem:[#allocation3 + $0x30] sm:$0xfe]  ;;  %v4805_v60 = vrot.slane %v13081_v32, 1  ;;  %v4704_v34 = vld [vmem:[#allocation3 + $0x38] sm:$0xfe] }
 0x38d   :  { %v13047_v39 = vsel %vm3954_vm13, %v3940_v48, %v4150_v56  ;;  %v4158_v51 = vsel %vm3954_vm13, %v3941_v54, %v4157_v16  ;;  %v3027_v9 = vrot.slane %v2803_v0, 2  ;;  %v13090_v46 = vld [vmem:[#allocation3 + $0x10] sm:$0xff]  ;;  %v9845_v48 = vld [vmem:[#allocation3 + $0x8] sm:$0xff]  ;;  %v4808_v54 = vrot.slane %v13086_v13, 1  ;;  %v4944_v56 = vld [vmem:[#allocation11 + $0x398] sm:$0xff] }
 0x38e   :  { %v3718_v52 = vperm.slane %v3396_v33, 0  ;;  %v3719_v36 = vperm.slane %v3396_v33, 2  ;;  %4253 = vst [vmem:[#allocation3 + $0x160] sm:$0xff] %v13047_v39  ;;  %4461 = vmatmul.f32.gmra.mxu2 %v13047_v39  ;;  %v4804_v16 = vrot.slane %v4703_v41, 1  ;;  %5185 = vmatpush.msrb.mxu3 %v4944_v56  ;;  %v4938_v41 = vld [vmem:[#allocation11 + $0x368] sm:$0xff] }
 0x38f   :  { %4254 = vst.msk [vmem:[#allocation3 + $0x168] sm:$0xff] %vm3124_vm6, %v4158_v51  ;;  %v3156_v63 = vsel %vm3124_vm6, %v2803_v0, %v3027_v9  ;;  %v4914_v0 = vld [vmem:[#allocation11 + $0x2a8] sm:$0xff]  ;;  %v4807_v9 = vrot.slane %v4704_v34, 1 }
 0x390   :  { %v2867_v12 = vpop.permute.xlu0 %2866  ;;  %4212 = vst [vmem:[#allocation3 + $0x20] sm:$0x1] %v3718_v52  ;;  %v3412_v15 = vmax.f32 %v12779_v55, %v3156_v63  ;;  %5119 = vmatpush.msrb.mxu2 %v4914_v0  ;;  %v13097_v52 = vpop.f32.mrf.mxu2  ;;  %v13102_v63 = vsel %vm4793_vm0, %v4804_v16, %v4805_v60  ;;  %v4715_v0 = vld [vmem:[#allocation3 + $0x90] sm:$0xfe]  ;;  %v4716_v16 = vld [vmem:[#allocation3 + $0x98] sm:$0xfe] }
 0x391   :  { %v3059_v57 = vrot.slane %v2867_v12, 2  ;;  %4214 = vst.msk [vmem:[#allocation3 + $0x28] sm:$0x1] %vm4213_vm7, %v3719_v36 }
 0x392   :  { %v3750_v40 = vperm.slane %v3412_v15, 0  ;;  %v3751_v58 = vperm.slane %v3412_v15, 2  ;;  %v9846_v15 = vld [vmem:[#allocation3 + $0x30] sm:$0xff] }
 0x393   :  { %v3188_v20 = vsel %vm3124_vm6, %v2867_v12, %v3059_v57  ;;  %v13099_v12 = vpop.f32.mrf.mxu3 }
 0x394   :  { %v3444_v30 = vmax.f32 %v12790_v26, %v3188_v20  ;;  %v2899_v53 = vpop.permute.xlu1 %2898  ;;  %4219 = vst [vmem:[#allocation3 + $0x50] sm:$0x1] %v3750_v40  ;;  %v13111_v20 = vld [vmem:[#allocation3 + $0x18] sm:$0xff] }
 0x395   :  { %v3075_v25 = vrot.slane %v2899_v53, 2  ;;  %4220 = vst.msk [vmem:[#allocation3 + $0x58] sm:$0x1] %vm4213_vm7, %v3751_v58  ;;  %v4912_v58 = vld [vmem:[#allocation11 + $0x298] sm:$0xff] }
 0x396   :  { %v3814_v10 = vperm.slane %v3444_v30, 0  ;;  %v3815_v47 = vperm.slane %v3444_v30, 2  ;;  %v13060_v44 = vld [vmem:[#allocation3 + $0x168] sm:$0xff]  ;;  %4546 = vmatmul.f32.vlgmr.msra.gmra.mxu2 %v9843_v29  ;;  %v4709_v29 = vld [vmem:[#allocation3 + $0x60] sm:$0xfe] }
 0x397   :  { %v3204_v55 = vsel %vm3124_vm6, %v2899_v53, %v3075_v25  ;;  %9594 = vmatmul.msk.f32.gmra.mxu3 %vm3124_vm6, %v13060_v44  ;;  %v4701_v24 = vld [vmem:[#allocation3 + $0x20] sm:$0x1]  ;;  %5120 = vmatpush.msrb.mxu2 %v4912_v58 }
 0x398   :  { %4231 = vst [vmem:[#allocation3 + $0xb0] sm:$0x1] %v3814_v10  ;;  %v2963_v62 = vpop.permute.xlu0 %2962  ;;  %v3460_v6 = vmax.f32 %v12809_v59, %v3204_v55  ;;  %v4800_v2 = vrot.slane %v4701_v24, 1  ;;  %v4702_v61 = vld [vmem:[#allocation3 + $0x28] sm:$0x1]  ;;  %v13115_v30 = vpop.f32.mrf.mxu2  ;;  %v13126_v55 = vld [vmem:[#allocation3 + $0x70] sm:$0xff] }
 0x399   :  { %4232 = vst.msk [vmem:[#allocation3 + $0xb8] sm:$0x1] %vm4213_vm7, %v3815_v47  ;;  %v3107_v26 = vrot.slane %v2963_v62, 2  ;;  %v4802_v5 = vrot.slane %v4702_v61, 1  ;;  %v4942_v47 = vld [vmem:[#allocation11 + $0x388] sm:$0xff]  ;;  %v9848_v24 = vld [vmem:[#allocation3 + $0x40] sm:$0xff] }
 0x39a   :  { %v3846_v50 = vperm.slane %v3460_v6, 0  ;;  %v3847_v49 = vperm.slane %v3460_v6, 2  ;;  %v13073_v17 = vsel %vm4793_vm0, %v16112_v45, %v4800_v2  ;;  %16115 = vst [vmem:[#allocation98_spill] sm:$0xff] %v13115_v30  ;;  %5186 = vmatpush.msrb.mxu3 %v4942_v47  ;;  %v4815_v6 = vrot.slane %v13126_v55, 1  ;;  %v4910_v61 = vld [vmem:[#allocation11 + $0x288] sm:$0xff] }
 0x39b   :  { %v3236_v37 = vsel %vm3124_vm6, %v2963_v62, %v3107_v26  ;;  %5004 = vmatmul.f32.gmra.mxu0 %v13073_v17  ;;  %v13079_v11 = vsel %vm4793_vm0, %v16114_v7, %v4802_v5  ;;  %v4707_v57 = vld [vmem:[#allocation3 + $0x50] sm:$0x1]  ;;  %v13117_v53 = vpop.f32.mrf.mxu3  ;;  %v13130_v62 = vld [vmem:[#allocation3 + $0x78] sm:$0xff]  ;;  %v4710_v26 = vld [vmem:[#allocation3 + $0x68] sm:$0xfe]  ;;  %5121 = vmatpush.msrb.mxu2 %v4910_v61 }
 0x39c   :  { %v3492_v59 = vmax.f32 %v12819_v19, %v3236_v37  ;;  %4237 = vst [vmem:[#allocation3 + $0xe0] sm:$0x1] %v3846_v50  ;;  %v2995_v22 = vpop.permute.xlu1 %2994  ;;  %9612 = vmatmul.msk.f32.gmra.mxu1 %vm3124_vm6, %v13079_v11  ;;  %v4708_v3 = vld [vmem:[#allocation3 + $0x58] sm:$0x1]  ;;  %v4810_v8 = vrot.slane %v4707_v57, 1  ;;  %v4818_v2 = vrot.slane %v13130_v62, 1  ;;  %5187 = vmatpush.msrb.mxu3 %v4940_v27 }
 0x39d   :  { %4238 = vst.msk [vmem:[#allocation3 + $0xe8] sm:$0x1] %vm4213_vm7, %v3847_v49  ;;  %v3123_v14 = vrot.slane %v2995_v22, 2  ;;  %v4812_v40 = vrot.slane %v4708_v3, 1  ;;  %v4814_v50 = vrot.slane %v4709_v29, 1  ;;  %v4817_v37 = vrot.slane %v4710_v26, 1 }
 0x39e   :  { %v3910_v18 = vperm.slane %v3492_v59, 0  ;;  %v3911_v19 = vperm.slane %v3492_v59, 2  ;;  %4549 = vmatmul.f32.gmra.mxu2 %v13090_v46  ;;  %16116 = vst [vmem:[#allocation99_spill] sm:$0xff] %v13117_v53  ;;  %v13120_v10 = vsel %vm4793_vm0, %v4805_v60, %v4810_v8  ;;  %v4713_v45 = vld [vmem:[#allocation3 + $0x80] sm:$0x1]  ;;  %5188 = vmatpush.msrb.mxu3 %v4938_v41  ;;  %v4906_v57 = vld [vmem:[#allocation11 + $0x268] sm:$0xff] }
 0x39f   :  { %v3252_v35 = vsel %vm3124_vm6, %v2995_v22, %v3123_v14  ;;  %9595 = vmatmul.msk.f32.vlgmr.msra.gmra.mxu3 %vm3124_vm6, %v9845_v48  ;;  %v13124_v25 = vsel %vm4793_vm0, %v4808_v54, %v4812_v40  ;;  %v13140_v59 = vsel %vm4793_vm0, %v4814_v50, %v4815_v6  ;;  %v13144_v31 = vsel %vm4793_vm0, %v4817_v37, %v4818_v2  ;;  %v4714_v22 = vld [vmem:[#allocation3 + $0x88] sm:$0x1]  ;;  %v9850_v7 = vld [vmem:[#allocation3 + $0x60] sm:$0xff]  ;;  %v4934_v50 = vld [vmem:[#allocation11 + $0x348] sm:$0xff] }
 0x3a0   :  { %4249 = vst [vmem:[#allocation3 + $0x140] sm:$0x1] %v3910_v18  ;;  %v3508_v33 = vmax.f32 %v12837_v1, %v3252_v35  ;;  %v13106_v1 = vsel %vm4793_vm0, %v4807_v9, %v4808_v54  ;;  %v13135_v49 = vpop.f32.mrf.mxu2  ;;  %v4820_v42 = vrot.slane %v4713_v45, 1  ;;  %v9851_v18 = vld [vmem:[#allocation3 + $0x48] sm:$0xff]  ;;  %v4908_v14 = vld [vmem:[#allocation11 + $0x278] sm:$0xff]  ;;  %v4824_v8 = vrot.slane %v4715_v0, 1 }
 0x3a1   :  { %4250 = vst.msk [vmem:[#allocation3 + $0x148] sm:$0x1] %vm4213_vm7, %v3911_v19  ;;  %v4822_v19 = vrot.slane %v4714_v22, 1  ;;  %5122 = vmatpush.msrb.mxu2 %v4908_v14  ;;  %v13160_v48 = vld [vmem:[#allocation3 + $0xa0] sm:$0xff]  ;;  %v13164_v54 = vld [vmem:[#allocation3 + $0xa8] sm:$0xff]  ;;  %v4827_v40 = vrot.slane %v4716_v16, 1 }
 0x3a2   :  { %v3942_v51 = vperm.slane %v3508_v33, 0  ;;  %v3943_v36 = vperm.slane %v3508_v33, 2  ;;  %16117 = vst [vmem:[#allocation27_spill] sm:$0xff] %v13135_v49  ;;  %v13154_v34 = vsel %vm4793_vm0, %v4815_v6, %v4820_v42  ;;  %v4825_v56 = vrot.slane %v13160_v48, 1  ;;  %v4936_v3 = vld [vmem:[#allocation11 + $0x358] sm:$0xff] }
 0x3a3   :  { %5007 = vmatmul.f32.gmra.mxu0 %v13102_v63  ;;  %v13137_v5 = vpop.f32.mrf.mxu3  ;;  %v13158_v33 = vsel %vm4793_vm0, %v4818_v2, %v4822_v19  ;;  %v4828_v9 = vrot.slane %v13164_v54, 1  ;;  %5123 = vmatpush.msrb.mxu2 %v4906_v57  ;;  %v4719_v6 = vld [vmem:[#allocation3 + $0xb0] sm:$0x1]  ;;  %v4720_v26 = vld [vmem:[#allocation3 + $0xb8] sm:$0x1]  ;;  %v4904_v27 = vld [vmem:[#allocation11 + $0x258] sm:$0xff] }
 0x3a4   :  { %4255 = vst [vmem:[#allocation3 + $0x170] sm:$0x1] %v3942_v51  ;;  %9613 = vmatmul.msk.f32.gmra.mxu1 %vm3124_vm6, %v13106_v1  ;;  %v9852_v51 = vld [vmem:[#allocation3 + $0x70] sm:$0xff]  ;;  %5189 = vmatpush.msrb.mxu3 %v4936_v3  ;;  %v13174_v47 = vsel %vm4793_vm0, %v4824_v8, %v4825_v56  ;;  %v9855_v2 = vld [vmem:[#allocation3 + $0x78] sm:$0xff]  ;;  %v4832_v61 = vrot.slane %v4720_v26, 1  ;;  %v9856_v0 = vld [vmem:[#allocation3 + $0xa0] sm:$0xff] }
 0x3a5   :  { %4256 = vst.msk [vmem:[#allocation3 + $0x178] sm:$0x1] %vm4213_vm7, %v3943_v36  ;;  %v9853_v36 = vld [vmem:[#allocation3 + $0x68] sm:$0xff]  ;;  %v13178_v29 = vsel %vm4793_vm0, %v4827_v40, %v4828_v9  ;;  %5124 = vmatpush.msrb.mxu2 %v4904_v27  ;;  %v4721_v19 = vld [vmem:[#allocation3 + $0xc0] sm:$0xfe]  ;;  %vm7155_vm7 = vcmask 916481  }
 0x3a6   :  { %4552 = vmatmul.f32.gmra.mxu2 %v9846_v15  ;;  %16118 = vst [vmem:[#allocation35_spill] sm:$0xff] %v13137_v5  ;;  %5190 = vmatpush.msrb.mxu3 %v4934_v50  ;;  %v13192_v42 = vsel %vm4793_vm0, %v4828_v9, %v4832_v61  ;;  %v4722_v41 = vld [vmem:[#allocation3 + $0xc8] sm:$0xfe]  ;;  %v4726_v26 = vld [vmem:[#allocation3 + $0xe8] sm:$0x1]  ;;  %v4900_v50 = vld [vmem:[#allocation11 + $0x238] sm:$0xff] }
 0x3a7   :  { %9596 = vmatmul.msk.f32.gmra.mxu3 %vm3124_vm6, %v13111_v20  ;;  %v4837_v57 = vrot.slane %v4722_v41, 1  ;;  %v9859_v61 = vld [vmem:[#allocation3 + $0xa8] sm:$0xff]  ;;  %v4842_v27 = vrot.slane %v4726_v26, 1 }
 0x3a8   :  { %v13149_v35 = vpop.f32.mrf.mxu2  ;;  %v5498_v41 = vld [vmem:[#allocation11 + $0x5c0] sm:$0xff] }
 0x3a9   :  { %16119 = vst [vmem:[#allocation101_spill] sm:$0xff] %v13149_v35  ;;  %5598 = vmatpush.msrb.mxu1 %v5498_v41  ;;  %v9860_v41 = vld [vmem:[#allocation3 + $0xd0] sm:$0xff] }
 0x3ab   :  { %5010 = vmatmul.f32.gmra.mxu0 %v13120_v10  ;;  %v13151_v60 = vpop.f32.mrf.mxu3 }
 0x3ac   :  { %9614 = vmatmul.msk.f32.gmra.mxu1 %vm3124_vm6, %v13124_v25  ;;  %16120 = vst [vmem:[#allocation102_spill] sm:$0xff] %v13151_v60  ;;  %v5442_v60 = vld [vmem:[#allocation11 + $0x400] sm:$0xff] }
 0x3ae   :  { %4555 = vmatmul.f32.gmra.mxu2 %v9848_v24  ;;  %v4830_v24 = vrot.slane %v4719_v6, 1  ;;  %v4725_v6 = vld [vmem:[#allocation3 + $0xe0] sm:$0x1] }
 0x3af   :  { %9597 = vmatmul.msk.f32.gmra.mxu3 %vm3124_vm6, %v9849_v43  ;;  %v9854_v43 = vld [vmem:[#allocation3 + $0x90] sm:$0xff] }
 0x3b0   :  { %v13169_v15 = vpop.f32.mrf.mxu2  ;;  %v13188_v22 = vsel %vm4793_vm0, %v4825_v56, %v4830_v24  ;;  %v9857_v56 = vld [vmem:[#allocation3 + $0x98] sm:$0xff]  ;;  %v4840_v24 = vrot.slane %v4725_v6, 1 }
 0x3b1   :  { %16121 = vst [vmem:[#allocation103_spill] sm:$0xff] %v13169_v15  ;;  %v5452_v15 = vld [vmem:[#allocation11 + $0x450] sm:$0xff] }
 0x3b3   :  { %5013 = vmatmul.f32.gmra.mxu0 %v13140_v59  ;;  %v13171_v58 = vpop.f32.mrf.mxu3 }
 0x3b4   :  { %9615 = vmatmul.msk.f32.gmra.mxu1 %vm3124_vm6, %v13144_v31  ;;  %16122 = vst [vmem:[#allocation36_spill] sm:$0xff] %v13171_v58  ;;  %v5484_v58 = vld [vmem:[#allocation11 + $0x550] sm:$0xff] }
 0x3b6   :  { %4558 = vmatmul.f32.gmra.mxu2 %v9850_v7  ;;  %v13194_v7 = vld [vmem:[#allocation3 + $0xd0] sm:$0xff] }
 0x3b7   :  { %9598 = vmatmul.msk.f32.gmra.mxu3 %vm3124_vm6, %v9851_v18  ;;  %v13198_v18 = vld [vmem:[#allocation3 + $0xd8] sm:$0xff]  ;;  %v4835_v14 = vrot.slane %v13194_v7, 1 }
 0x3b8   :  { %v13183_v37 = vpop.f32.mrf.mxu2  ;;  %v4838_v16 = vrot.slane %v13198_v18, 1 }
 0x3b9   :  { %16123 = vst [vmem:[#allocation26_spill] sm:$0xff] %v13183_v37  ;;  %v13222_v6 = vsel %vm4793_vm0, %v4835_v14, %v4840_v24  ;;  %v4728_v24 = vld [vmem:[#allocation3 + $0xf8] sm:$0xfe] }
 0x3ba   :  { %v13212_v40 = vsel %vm4793_vm0, %v4837_v57, %v4838_v16  ;;  %v13226_v26 = vsel %vm4793_vm0, %v4838_v16, %v4842_v27  ;;  %v13234_v16 = vld [vmem:[#allocation3 + $0x108] sm:$0xff]  ;;  %v5488_v37 = vld [vmem:[#allocation11 + $0x570] sm:$0xff] }
 0x3bb   :  { %5016 = vmatmul.f32.gmra.mxu0 %v13154_v34  ;;  %v13185_v45 = vpop.f32.mrf.mxu3  ;;  %v4848_v27 = vrot.slane %v13234_v16, 1 }
 0x3bc   :  { %9616 = vmatmul.msk.f32.gmra.mxu1 %vm3124_vm6, %v13158_v33  ;;  %16124 = vst [vmem:[#allocation34_spill] sm:$0xff] %v13185_v45 }
 0x3be   :  { %4561 = vmatmul.f32.gmra.mxu2 %v9852_v51  ;;  %v4902_v51 = vld [vmem:[#allocation11 + $0x248] sm:$0xff] }
 0x3bf   :  { %9599 = vmatmul.msk.f32.gmra.mxu3 %vm3124_vm6, %v9853_v36  ;;  %v4834_v36 = vrot.slane %v4721_v19, 1  ;;  %5125 = vmatpush.msrb.mxu2 %v4902_v51  ;;  %v5468_v19 = vld [vmem:[#allocation11 + $0x4d0] sm:$0xff]  ;;  %v5466_v51 = vld [vmem:[#allocation11 + $0x4c0] sm:$0xff] }
 0x3c0   :  { %v13203_v9 = vpop.f32.mrf.mxu2  ;;  %5532 = vmatpush.msrb.mxu0 %v5468_v19  ;;  %v5462_v19 = vld [vmem:[#allocation11 + $0x4a0] sm:$0xff] }
 0x3c1   :  { %16125 = vst [vmem:[#allocation56_spill] sm:$0xff] %v13203_v9  ;;  %v13208_v8 = vsel %vm4793_vm0, %v4834_v36, %v4835_v14  ;;  %5126 = vmatpush.msrb.mxu2 %v4900_v50  ;;  %v4930_v36 = vld [vmem:[#allocation11 + $0x328] sm:$0xff] }
 0x3c2   :  { %5533 = vmatpush.msrb.mxu0 %v5466_v51  ;;  %v4727_v50 = vld [vmem:[#allocation3 + $0xf0] sm:$0xfe] }
 0x3c3   :  { %5019 = vmatmul.f32.gmra.mxu0 %v13174_v47  ;;  %v13205_v3 = vpop.f32.mrf.mxu3  ;;  %v4844_v51 = vrot.slane %v4727_v50, 1  ;;  %v4731_v50 = vld [vmem:[#allocation3 + $0x110] sm:$0x1] }
 0x3c4   :  { %9617 = vmatmul.msk.f32.gmra.mxu1 %vm3124_vm6, %v13178_v29  ;;  %16126 = vst [vmem:[#allocation63_spill] sm:$0xff] %v13205_v3  ;;  %v4847_v3 = vrot.slane %v4728_v24, 1  ;;  %v5486_v24 = vld [vmem:[#allocation11 + $0x560] sm:$0xff] }
 0x3c6   :  { %4564 = vmatmul.f32.gmra.mxu2 %v9854_v43  ;;  %v9858_v43 = vld [vmem:[#allocation3 + $0xc0] sm:$0xff]  ;;  %v13246_v45 = vsel %vm4793_vm0, %v4847_v3, %v4848_v27 }
 0x3c7   :  { %9600 = vmatmul.msk.f32.gmra.mxu3 %vm3124_vm6, %v9855_v2  ;;  %v4932_v2 = vld [vmem:[#allocation11 + $0x338] sm:$0xff] }
 0x3c8   :  { %5191 = vmatpush.msrb.mxu3 %v4932_v2  ;;  %v13228_v2 = vld [vmem:[#allocation3 + $0x100] sm:$0xff] }
 0x3c9   :  { %v4845_v14 = vrot.slane %v13228_v2, 1 }
 0x3ca   :  { %5192 = vmatpush.msrb.mxu3 %v4930_v36  ;;  %v9861_v36 = vld [vmem:[#allocation3 + $0xc8] sm:$0xff] }
 0x3cb   :  { %5022 = vmatmul.f32.gmra.mxu0 %v13188_v22  ;;  %v13219_v57 = vpop.f32.mrf.mxu3 }
 0x3cc   :  { %9618 = vmatmul.msk.f32.gmra.mxu1 %vm3124_vm6, %v13192_v42  ;;  %16128 = vst [vmem:[#allocation31_spill] sm:$0xff] %v13219_v57  ;;  %v5492_v57 = vld [vmem:[#allocation11 + $0x590] sm:$0xff] }
 0x3ce   :  { %4567 = vmatmul.f32.gmra.mxu2 %v9856_v0  ;;  %v5496_v0 = vld [vmem:[#allocation11 + $0x5b0] sm:$0xff] }
 0x3cf   :  { %9601 = vmatmul.msk.f32.gmra.mxu3 %vm3124_vm6, %v9857_v56  ;;  %v13217_v56 = vpop.f32.mrf.mxu2  ;;  %5599 = vmatpush.msrb.mxu1 %v5496_v0  ;;  %v4898_v0 = vld [vmem:[#allocation11 + $0x228] sm:$0xff] }
 0x3d0   :  { %16127 = vst [vmem:[#allocation45_spill] sm:$0xff] %v13217_v56  ;;  %v5460_v56 = vld [vmem:[#allocation11 + $0x490] sm:$0xff]  ;;  %5127 = vmatpush.msrb.mxu2 %v4898_v0  ;;  %v4928_v0 = vld [vmem:[#allocation11 + $0x318] sm:$0xff] }
 0x3d1   :  { %5193 = vmatpush.msrb.mxu3 %v4928_v0 }
 0x3d3   :  { %5025 = vmatmul.f32.gmra.mxu0 %v13208_v8 }
 0x3d4   :  { %9619 = vmatmul.msk.f32.gmra.mxu1 %vm3124_vm6, %v13212_v40 }
 0x3d6   :  { %4570 = vmatmul.f32.gmra.mxu2 %v9858_v43  ;;  %v5494_v43 = vld [vmem:[#allocation11 + $0x5a0] sm:$0xff] }
 0x3d7   :  { %9602 = vmatmul.msk.f32.gmra.mxu3 %vm3124_vm6, %v9859_v61  ;;  %v5464_v61 = vld [vmem:[#allocation11 + $0x4b0] sm:$0xff]  ;;  %5600 = vmatpush.msrb.mxu1 %v5494_v43  ;;  %v5490_v43 = vld [vmem:[#allocation11 + $0x580] sm:$0xff]  ;;  %v13237_v9 = vpop.f32.mrf.mxu2 }
 0x3d8   :  { %5534 = vmatpush.msrb.mxu0 %v5464_v61  ;;  %16129 = vst [vmem:[#allocation64_spill] sm:$0xff] %v13237_v9  ;;  %v13239_v61 = vpop.f32.mrf.mxu3  ;;  %v9863_v9 = vld [vmem:[#allocation3 + $0xf0] sm:$0xff] }
 0x3d9   :  { %5601 = vmatpush.msrb.mxu1 %v5492_v57  ;;  %16130 = vst [vmem:[#allocation59_spill] sm:$0xff] %v13239_v61  ;;  %v4732_v57 = vld [vmem:[#allocation3 + $0x118] sm:$0x1] }
 0x3da   :  { %5535 = vmatpush.msrb.mxu0 %v5462_v19  ;;  %v5456_v19 = vld [vmem:[#allocation11 + $0x470] sm:$0xff]  ;;  %v4852_v3 = vrot.slane %v4732_v57, 1  ;;  %v4926_v57 = vld [vmem:[#allocation11 + $0x308] sm:$0xff] }
 0x3db   :  { %5028 = vmatmul.f32.gmra.mxu0 %v13222_v6  ;;  %5602 = vmatpush.msrb.mxu1 %v5490_v43  ;;  %v9864_v61 = vld [vmem:[#allocation3 + $0xd8] sm:$0xff] }
 0x3dc   :  { %9620 = vmatmul.msk.f32.gmra.mxu1 %vm3124_vm6, %v13226_v26  ;;  %5536 = vmatpush.msrb.mxu0 %v5460_v56  ;;  %v4850_v56 = vrot.slane %v4731_v50, 1  ;;  %v4896_v43 = vld [vmem:[#allocation11 + $0x218] sm:$0xff]  ;;  %v5480_v50 = vld [vmem:[#allocation11 + $0x530] sm:$0xff] }
 0x3dd   :  { %5603 = vmatpush.msrb.mxu1 %v5488_v37  ;;  %5128 = vmatpush.msrb.mxu2 %v4896_v43  ;;  %v5450_v37 = vld [vmem:[#allocation11 + $0x440] sm:$0xff]  ;;  %v4894_v43 = vld [vmem:[#allocation11 + $0x208] sm:$0xff] }
 0x3de   :  { %4573 = vmatmul.f32.gmra.mxu2 %v9860_v41  ;;  %v5458_v41 = vld [vmem:[#allocation11 + $0x480] sm:$0xff]  ;;  %5194 = vmatpush.msrb.mxu3 %v4926_v57 }
 0x3df   :  { %9603 = vmatmul.msk.f32.gmra.mxu3 %vm3124_vm6, %v9861_v36  ;;  %v13242_v36 = vsel %vm4793_vm0, %v4844_v51, %v4845_v14  ;;  %5537 = vmatpush.msrb.mxu0 %v5458_v41  ;;  %v5454_v51 = vld [vmem:[#allocation11 + $0x460] sm:$0xff]  ;;  %v13251_v35 = vpop.f32.mrf.mxu2 }
 0x3e0   :  { %5604 = vmatpush.msrb.mxu1 %v5486_v24  ;;  %v5482_v41 = vld [vmem:[#allocation11 + $0x540] sm:$0xff]  ;;  %16131 = vst [vmem:[#allocation33_spill] sm:$0xff] %v13251_v35  ;;  %v13253_v0 = vpop.f32.mrf.mxu3  ;;  %5129 = vmatpush.msrb.mxu2 %v4894_v43 }
 0x3e1   :  { %5538 = vmatpush.msrb.mxu0 %v5456_v19  ;;  %16132 = vst [vmem:[#allocation47_spill] sm:$0xff] %v13253_v0  ;;  %v5448_v19 = vld [vmem:[#allocation11 + $0x430] sm:$0xff]  ;;  %v4733_v24 = vld [vmem:[#allocation3 + $0x120] sm:$0xfe] }
 0x3e2   :  { %5605 = vmatpush.msrb.mxu1 %v5484_v58  ;;  %v5478_v58 = vld [vmem:[#allocation11 + $0x520] sm:$0xff]  ;;  %v4854_v35 = vrot.slane %v4733_v24, 1  ;;  %v4737_v24 = vld [vmem:[#allocation3 + $0x140] sm:$0x1] }
 0x3e3   :  { %5031 = vmatmul.f32.gmra.mxu0 %v13242_v36  ;;  %v5470_v43 = vld [vmem:[#allocation11 + $0x4e0] sm:$0xff] }
 0x3e4   :  { %9621 = vmatmul.msk.f32.gmra.mxu1 %vm3124_vm6, %v13246_v45  ;;  %5539 = vmatpush.msrb.mxu0 %v5454_v51  ;;  %v5446_v51 = vld [vmem:[#allocation11 + $0x420] sm:$0xff] }
 0x3e5   :  { %5606 = vmatpush.msrb.mxu1 %v5482_v41  ;;  %v5444_v41 = vld [vmem:[#allocation11 + $0x410] sm:$0xff] }
 0x3e6   :  { %4576 = vmatmul.f32.gmra.mxu2 %v9863_v9  ;;  %v13256_v9 = vsel %vm4793_vm0, %v4845_v14, %v4850_v56  ;;  %5540 = vmatpush.msrb.mxu0 %v5452_v15  ;;  %v4855_v15 = vrot.slane %v12954_v28, 1  ;;  %v4734_v14 = vld [vmem:[#allocation3 + $0x128] sm:$0xfe]  ;;  %v9865_v56 = vld [vmem:[#allocation3 + $0x100] sm:$0xff] }
 0x3e7   :  { %9604 = vmatmul.msk.f32.gmra.mxu3 %vm3124_vm6, %v9864_v61  ;;  %v13260_v61 = vsel %vm4793_vm0, %v4848_v27, %v4852_v3  ;;  %5607 = vmatpush.msrb.mxu1 %v5480_v50  ;;  %v9866_v27 = vld [vmem:[#allocation3 + $0xf8] sm:$0xff]  ;;  %v4858_v3 = vrot.slane %v12977_v4, 1  ;;  %v5474_v50 = vld [vmem:[#allocation11 + $0x500] sm:$0xff]  ;;  %v13267_v57 = vpop.f32.mrf.mxu2  ;;  %v4857_v0 = vrot.slane %v4734_v14, 1 }
 0x3e8   :  { %5541 = vmatpush.msrb.mxu0 %v5450_v37  ;;  %v5476_v37 = vld [vmem:[#allocation11 + $0x510] sm:$0xff]  ;;  %16133 = vst [vmem:[#allocation68_spill] sm:$0xff] %v13267_v57  ;;  %v4738_v14 = vld [vmem:[#allocation3 + $0x148] sm:$0x1]  ;;  %v9867_v57 = vld [vmem:[#allocation3 + $0x120] sm:$0xff] }
 0x3e9   :  { %5608 = vmatpush.msrb.mxu1 %v5478_v58  ;;  %v13276_v58 = vsel %vm4793_vm0, %v4857_v0, %v4858_v3  ;;  %v4862_v0 = vrot.slane %v4738_v14, 1  ;;  %v4740_v14 = vld [vmem:[#allocation3 + $0x158] sm:$0xfe] }
 0x3ea   :  { %5542 = vmatpush.msrb.mxu0 %v5448_v19  ;;  %v13272_v19 = vsel %vm4793_vm0, %v4854_v35, %v4855_v15  ;;  %v4860_v35 = vrot.slane %v4737_v24, 1  ;;  %v4739_v24 = vld [vmem:[#allocation3 + $0x150] sm:$0xfe] }
 0x3eb   :  { %5034 = vmatmul.f32.gmra.mxu0 %v13256_v9  ;;  %5609 = vmatpush.msrb.mxu1 %v5476_v37  ;;  %v5438_v37 = vld [vmem:[#allocation11 + $0x3e0] sm:$0xff] }
 0x3ec   :  { %9622 = vmatmul.msk.f32.gmra.mxu1 %vm3124_vm6, %v13260_v61  ;;  %5543 = vmatpush.msrb.mxu0 %v5446_v51  ;;  %v5440_v51 = vld [vmem:[#allocation11 + $0x3f0] sm:$0xff] }
 0x3ed   :  { %5610 = vmatpush.msrb.mxu1 %v5474_v50  ;;  %v4924_v50 = vld [vmem:[#allocation11 + $0x2f8] sm:$0xff] }
 0x3ee   :  { %4579 = vmatmul.f32.gmra.mxu2 %v9865_v56  ;;  %v13269_v56 = vpop.f32.mrf.mxu3  ;;  %5544 = vmatpush.msrb.mxu0 %v5444_v41  ;;  %v4892_v41 = vld [vmem:[#allocation11 + $0x1f8] sm:$0xff] }
 0x3ef   :  { %9605 = vmatmul.msk.f32.gmra.mxu3 %vm3124_vm6, %v9866_v27  ;;  %16134 = vst [vmem:[#allocation77_spill] sm:$0xff] %v13269_v56  ;;  %v5472_v27 = vld [vmem:[#allocation11 + $0x4f0] sm:$0xff]  ;;  %5130 = vmatpush.msrb.mxu2 %v4892_v41  ;;  %v13282_v56 = vpop.f32.mrf.mxu2  ;;  %v4864_v41 = vrot.slane %v4739_v24, 1 }
 0x3f0   :  { %5545 = vmatpush.msrb.mxu0 %v5442_v60  ;;  %5611 = vmatpush.msrb.mxu1 %v5472_v27  ;;  %16135 = vst [vmem:[#allocation43_spill] sm:$0xff] %v13282_v56  ;;  %v13287_v27 = vsel %vm4793_vm0, %v4855_v15, %v4860_v35  ;;  %v4868_v15 = vrot.slane %v13060_v44, 1  ;;  %v5499_v35 = vld [vmem:[#allocation11 + $0x5c8] sm:$0xff]  ;;  %v4744_v24 = vld [vmem:[#allocation3 + $0x178] sm:$0x1] }
 0x3f1   :  { %5195 = vmatpush.msrb.mxu3 %v4924_v50 }
 0x3f2   :  { %5546 = vmatpush.msrb.mxu0 %v5440_v51  ;;  %5612 = vmatpush.msrb.mxu1 %v5470_v43  ;;  %v4865_v51 = vrot.slane %v13047_v39, 1  ;;  %v9868_v43 = vld [vmem:[#allocation3 + $0x128] sm:$0xff] }
 0x3f3   :  { %5037 = vmatmul.f32.gmra.mxu0 %v13272_v19  ;;  %5728 = vmatpush.msra.mxu3 %v5499_v35  ;;  %v5467_v35 = vld [vmem:[#allocation11 + $0x4c8] sm:$0xff] }
 0x3f4   :  { %9623 = vmatmul.msk.f32.gmra.mxu1 %vm3124_vm6, %v13276_v58  ;;  %5547 = vmatpush.msrb.mxu0 %v5438_v37  ;;  %v5469_v37 = vld [vmem:[#allocation11 + $0x4d8] sm:$0xff]  ;;  %v13304_v56 = vsel %vm4793_vm0, %v4864_v41, %v4865_v51 }
 0x3f5   :  { %5662 = vmatpush.msra.mxu2 %v5469_v37  ;;  %v5497_v41 = vld [vmem:[#allocation11 + $0x5b8] sm:$0xff] }
 0x3f6   :  { %4582 = vmatmul.f32.gmra.mxu2 %v9867_v57  ;;  %v13284_v60 = vpop.f32.mrf.mxu3  ;;  %v13291_v57 = vsel %vm4793_vm0, %v4858_v3, %v4862_v0  ;;  %v4867_v0 = vrot.slane %v4740_v14, 1  ;;  %v4872_v14 = vrot.slane %v4744_v24, 1  ;;  %5729 = vmatpush.msra.mxu3 %v5497_v41  ;;  %v5278_v24 = vld [vmem:[#allocation3 + $0x8] sm:$0xfc] }
 0x3f7   :  { %9606 = vmatmul.msk.f32.gmra.mxu3 %vm3124_vm6, %v13234_v16  ;;  %16136 = vst [vmem:[#allocation67_spill] sm:$0xff] %v13284_v60  ;;  %v13299_v3 = vpop.f32.mrf.mxu2  ;;  %5663 = vmatpush.msra.mxu2 %v5467_v35  ;;  %v5495_v35 = vld [vmem:[#allocation11 + $0x5a8] sm:$0xff] }
 0x3f8   :  { %16137 = vst [vmem:[#allocation84_spill] sm:$0xff] %v13299_v3  ;;  %5730 = vmatpush.msra.mxu3 %v5495_v35  ;;  %v5493_v35 = vld [vmem:[#allocation11 + $0x598] sm:$0xff] }
 0x3fa   :  { %5731 = vmatpush.msra.mxu3 %v5493_v35 }
 0x3fb   :  { %5040 = vmatmul.f32.gmra.mxu0 %v13287_v27 }
 0x3fc   :  { %9624 = vmatmul.msk.f32.gmra.mxu1 %vm3124_vm6, %v13291_v57 }
 0x3fe   :  { %4585 = vmatmul.f32.gmra.mxu2 %v12954_v28  ;;  %v13301_v50 = vpop.f32.mrf.mxu3  ;;  %v13308_v28 = vsel %vm4793_vm0, %v4867_v0, %v4868_v15 }
 0x3ff   :  { %9607 = vmatmul.msk.f32.gmra.mxu3 %vm3124_vm6, %v9868_v43  ;;  %16138 = vst [vmem:[#allocation38_spill] sm:$0xff] %v13301_v50  ;;  %v4743_v43 = vld [vmem:[#allocation3 + $0x170] sm:$0x1] }
 0x400   :  { %v4870_v37 = vrot.slane %v4743_v43, 1  ;;  %v13324_v43 = vsel %vm4793_vm0, %v4868_v15, %v4872_v14  ;;  %v5344_v15 = vrot.slane %v5278_v24, 2 }
 0x402   :  { %v13320_v50 = vsel %vm4793_vm0, %v4865_v51, %v4870_v37  ;;  %v5345_v51 = vrot.slane %v13111_v20, 2  ;;  %v5465_v37 = vld [vmem:[#allocation11 + $0x4b8] sm:$0xff] }
 0x403   :  { %5043 = vmatmul.f32.gmra.mxu0 %v13304_v56  ;;  %5664 = vmatpush.msra.mxu2 %v5465_v37  ;;  %v5463_v37 = vld [vmem:[#allocation11 + $0x4a8] sm:$0xff] }
 0x404   :  { %9625 = vmatmul.msk.f32.gmra.mxu1 %vm3124_vm6, %v13308_v28  ;;  %v13315_v3 = vpop.f32.mrf.mxu2 }
 0x405   :  { %16139 = vst [vmem:[#allocation40_spill] sm:$0xff] %v13315_v3  ;;  %5665 = vmatpush.msra.mxu2 %v5463_v37  ;;  %v16144_v37 = vld [vmem:[#allocation92_spill] sm:$0xff] }
 0x406   :  { %4588 = vmatmul.f32.gmra.mxu2 %v13009_v38  ;;  %v13317_v0 = vpop.f32.mrf.mxu3  ;;  %v5342_v38 = vrot.slane %v13090_v46, 2  ;;  %v5280_v46 = vld [vmem:[#allocation3 + $0x28] sm:$0x3] }
 0x407   :  { %9608 = vmatmul.msk.f32.gmra.mxu3 %vm3124_vm6, %v12977_v4  ;;  %16140 = vst [vmem:[#allocation44_spill] sm:$0xff] %v13317_v0  ;;  %v5277_v4 = vld [vmem:[#allocation3] sm:$0xfc]  ;;  %v5349_v24 = vrot.slane %v5280_v46, 2  ;;  %v5352_v46 = vrot.slane %v13081_v32, 2 }
 0x408   :  { %v5341_v41 = vrot.slane %v5277_v4, 2  ;;  %v16142_v4 = vld [vmem:[#allocation80_spill] sm:$0xff] }
 0x409   :  { %v5283_v32 = vld [vmem:[#allocation3 + $0x50] sm:$0x3] }
 0x40a   :  { %v13336_v0 = vsel %vm1752_vm5, %v5341_v41, %v5342_v38 }
 0x40b   :  { %5046 = vmatmul.f32.gmra.mxu0 %v13320_v50 }
 0x40c   :  { %9626 = vmatmul.msk.f32.gmra.mxu1 %vm3124_vm6, %v13324_v43 }
 0x40e   :  { %4591 = vmatmul.f32.gmra.mxu2 %v13047_v39  ;;  %v13333_v3 = vpop.f32.mrf.mxu3  ;;  %v13340_v39 = vsel %vm1752_vm5, %v5344_v15, %v5345_v51 }
 0x40f   :  { %9609 = vmatmul.msk.f32.gmra.mxu3 %vm3124_vm6, %v13016_v21  ;;  %16141 = vst [vmem:[#allocation48_spill] sm:$0xff] %v13333_v3  ;;  %v5279_v21 = vld [vmem:[#allocation3 + $0x20] sm:$0x3] }
 0x410   :  { %v5347_v20 = vrot.slane %v5279_v21, 2  ;;  %v13354_v21 = vsel %vm1752_vm5, %v5345_v51, %v5349_v24 }
 0x411   :  { %v4462_v14 = vpop.f32.mrf.mxu2 }
 0x412   :  { %v13348_v15 = vsel %vm1752_vm5, %v5342_v38, %v5347_v20  ;;  %v5461_v38 = vld [vmem:[#allocation11 + $0x498] sm:$0xff] }
 0x413   :  { %5548 = vmatmul.f32.vlgmr.msrb.gmra.mxu0 %v13336_v0  ;;  %5666 = vmatpush.msra.mxu2 %v5461_v38 }
 0x414   :  { %9643 = vmatmul.msk.f32.vlgmr.msrb.gmra.mxu1 %vm3124_vm6, %v13340_v39 }
 0x416   :  { %5131 = vmatmul.f32.vlgmr.msrb.gmra.mxu2 %v16142_v4  ;;  %v5282_v4 = vld [vmem:[#allocation3 + $0x38] sm:$0xfc] }
 0x417   :  { %9610 = vmatmul.msk.f32.gmra.mxu3 %vm3124_vm6, %v13060_v44  ;;  %v5281_v44 = vld [vmem:[#allocation3 + $0x30] sm:$0xfc]  ;;  %v5354_v20 = vrot.slane %v5282_v4, 2  ;;  %v5459_v4 = vld [vmem:[#allocation11 + $0x488] sm:$0xff] }
 0x418   :  { %5667 = vmatpush.msra.mxu2 %v5459_v4 }
 0x419   :  { %v4547_v41 = vpop.f32.mrf.mxu2 }
 0x41a   :  { %v4527_v3 = vpop.f32.mrf.mxu3 }
 0x41b   :  { %v13350_v60 = vadd.f32 %v4527_v3, %v4462_v14  ;;  %5551 = vmatmul.f32.gmra.mxu0 %v13348_v15  ;;  %v5355_v3 = vrot.slane %v13086_v13, 2  ;;  %v5351_v14 = vrot.slane %v5281_v44, 2  ;;  %v5284_v13 = vld [vmem:[#allocation3 + $0x58] sm:$0x3]  ;;  %v5491_v44 = vld [vmem:[#allocation11 + $0x588] sm:$0xff] }
 0x41c   :  { %9644 = vmatmul.msk.f32.gmra.mxu1 %vm3124_vm6, %v13354_v21  ;;  %5732 = vmatpush.msra.mxu3 %v5491_v44  ;;  %v5286_v44 = vld [vmem:[#allocation3 + $0x68] sm:$0xfc] }
 0x41d   :  { %16143 = vst [vmem:[#allocation37_spill] sm:$0xff] %v13350_v60  ;;  %v13364_v35 = vsel %vm1752_vm5, %v5351_v14, %v5352_v46 }
 0x41e   :  { %5134 = vmatmul.f32.gmra.mxu2 %v13073_v17  ;;  %v13370_v17 = vsel %vm1752_vm5, %v5354_v20, %v5355_v3 }
 0x41f   :  { %9627 = vmatmul.msk.f32.vlgmr.msrb.gmra.mxu3 %vm3124_vm6, %v16144_v37  ;;  %v5357_v37 = vrot.slane %v5283_v32, 2 }
 0x421   :  { %v4550_v51 = vpop.f32.mrf.mxu2  ;;  %v13378_v20 = vsel %vm1752_vm5, %v5352_v46, %v5357_v37  ;;  %v5365_v46 = vrot.slane %v13130_v62, 2  ;;  %v5487_v62 = vld [vmem:[#allocation11 + $0x568] sm:$0xff] }
 0x422   :  { %v4612_v24 = vpop.f32.mrf.mxu3 }
 0x423   :  { %v13366_v60 = vadd.f32 %v4612_v24, %v4547_v41  ;;  %5554 = vmatmul.f32.gmra.mxu0 %v13364_v35  ;;  %v5359_v41 = vrot.slane %v5284_v13, 2  ;;  %v5362_v13 = vrot.slane %v13126_v55, 2  ;;  %v5287_v55 = vld [vmem:[#allocation3 + $0x80] sm:$0x3] }
 0x424   :  { %9645 = vmatmul.msk.f32.gmra.mxu1 %vm3124_vm6, %v13370_v17 }
 0x425   :  { %v13384_v32 = vsel %vm1752_vm5, %v5355_v3, %v5359_v41  ;;  %v5364_v3 = vrot.slane %v5286_v44, 2 }
 0x426   :  { %5137 = vmatmul.f32.gmra.mxu2 %v13102_v63  ;;  %v5285_v63 = vld [vmem:[#allocation3 + $0x60] sm:$0xfc] }
 0x427   :  { %9628 = vmatmul.msk.f32.gmra.mxu3 %vm3124_vm6, %v13079_v11  ;;  %v5489_v11 = vld [vmem:[#allocation11 + $0x578] sm:$0xff]  ;;  %v5361_v37 = vrot.slane %v5285_v63, 2  ;;  %v5367_v63 = vrot.slane %v5287_v55, 2  ;;  %v5372_v55 = vrot.slane %v13160_v48, 2  ;;  %v5291_v48 = vld [vmem:[#allocation3 + $0xb0] sm:$0x3] }
 0x428   :  { %5733 = vmatpush.msra.mxu3 %v5489_v11  ;;  %v5455_v11 = vld [vmem:[#allocation11 + $0x468] sm:$0xff] }
 0x429   :  { %v4553_v38 = vpop.f32.mrf.mxu2 }
 0x42a   :  { %v4615_v14 = vpop.f32.mrf.mxu3  ;;  %5734 = vmatpush.msra.mxu3 %v5487_v62 }
 0x42b   :  { %v13380_v24 = vadd.f32 %v4615_v14, %v4550_v51  ;;  %5557 = vmatmul.f32.gmra.mxu0 %v13378_v20  ;;  %v5457_v51 = vld [vmem:[#allocation11 + $0x478] sm:$0xff]  ;;  %v13394_v14 = vsel %vm1752_vm5, %v5361_v37, %v5362_v13  ;;  %v13408_v37 = vsel %vm1752_vm5, %v5362_v13, %v5367_v63  ;;  %v5375_v13 = vrot.slane %v13164_v54, 2  ;;  %v5483_v54 = vld [vmem:[#allocation11 + $0x548] sm:$0xff] }
 0x42c   :  { %9646 = vmatmul.msk.f32.gmra.mxu1 %vm3124_vm6, %v13384_v32  ;;  %5668 = vmatpush.msra.mxu2 %v5457_v51 }
 0x42e   :  { %5140 = vmatmul.f32.gmra.mxu2 %v13120_v10  ;;  %v13400_v10 = vsel %vm1752_vm5, %v5364_v3, %v5365_v46 }
 0x42f   :  { %9629 = vmatmul.msk.f32.gmra.mxu3 %vm3124_vm6, %v13106_v1  ;;  %v5288_v1 = vld [vmem:[#allocation3 + $0x88] sm:$0x3]  ;;  %5669 = vmatpush.msra.mxu2 %v5455_v11 }
 0x431   :  { %v4556_v41 = vpop.f32.mrf.mxu2 }
 0x432   :  { %v4618_v4 = vpop.f32.mrf.mxu3 }
 0x433   :  { %v13396_v49 = vadd.f32 %v4618_v4, %v4553_v38  ;;  %5560 = vmatmul.f32.gmra.mxu0 %v13394_v14  ;;  %v5369_v38 = vrot.slane %v5288_v1, 2  ;;  %v5290_v1 = vld [vmem:[#allocation3 + $0x98] sm:$0xfc] }
 0x434   :  { %9647 = vmatmul.msk.f32.gmra.mxu1 %vm3124_vm6, %v13400_v10 }
 0x435   :  { %v13414_v4 = vsel %vm1752_vm5, %v5365_v46, %v5369_v38  ;;  %v5374_v46 = vrot.slane %v5290_v1, 2  ;;  %v5451_v1 = vld [vmem:[#allocation11 + $0x448] sm:$0xff] }
 0x436   :  { %5143 = vmatmul.f32.gmra.mxu2 %v13140_v59  ;;  %v5289_v59 = vld [vmem:[#allocation3 + $0x90] sm:$0xfc] }
 0x437   :  { %9630 = vmatmul.msk.f32.gmra.mxu3 %vm3124_vm6, %v13124_v25  ;;  %v5485_v25 = vld [vmem:[#allocation11 + $0x558] sm:$0xff]  ;;  %v5371_v62 = vrot.slane %v5289_v59, 2  ;;  %v5377_v59 = vrot.slane %v5291_v48, 2 }
 0x438   :  { %5735 = vmatpush.msra.mxu3 %v5485_v25  ;;  %v13435_v25 = vpop.f32.mrf.mxu0  ;;  %v5481_v48 = vld [vmem:[#allocation11 + $0x538] sm:$0xff] }
 0x439   :  { %v4559_v44 = vpop.f32.mrf.mxu2  ;;  %v13424_v11 = vsel %vm1752_vm5, %v5371_v62, %v5372_v55 }
 0x43a   :  { %v4621_v51 = vpop.f32.mrf.mxu3  ;;  %5736 = vmatpush.msra.mxu3 %v5483_v54  ;;  %v5294_v54 = vld [vmem:[#allocation3 + $0xc8] sm:$0xfc] }
 0x43b   :  { %v13410_v3 = vadd.f32 %v4621_v51, %v4556_v41  ;;  %5563 = vmatmul.f32.gmra.mxu0 %v13408_v37  ;;  %v5453_v41 = vld [vmem:[#allocation11 + $0x458] sm:$0xff] }
 0x43c   :  { %9648 = vmatmul.msk.f32.gmra.mxu1 %vm3124_vm6, %v13414_v4  ;;  %5670 = vmatpush.msra.mxu2 %v5453_v41  ;;  %v13439_v41 = vpop.f32.mrf.mxu1 }
 0x43d   :  { %5737 = vmatpush.msra.mxu3 %v5481_v48 }
 0x43e   :  { %5146 = vmatmul.f32.gmra.mxu2 %v13154_v34  ;;  %v13430_v34 = vsel %vm1752_vm5, %v5374_v46, %v5375_v13 }
 0x43f   :  { %9631 = vmatmul.msk.f32.gmra.mxu3 %vm3124_vm6, %v13144_v31  ;;  %v5292_v31 = vld [vmem:[#allocation3 + $0xb8] sm:$0x3]  ;;  %5671 = vmatpush.msra.mxu2 %v5451_v1  ;;  %v5384_v1 = vrot.slane %v5294_v54, 2 }
 0x441   :  { %v4562_v63 = vpop.f32.mrf.mxu2 }
 0x442   :  { %v4624_v38 = vpop.f32.mrf.mxu3 }
 0x443   :  { %v13426_v51 = vadd.f32 %v4624_v38, %v4559_v44  ;;  %5566 = vmatmul.f32.gmra.mxu0 %v13424_v11  ;;  %v5379_v44 = vrot.slane %v5292_v31, 2  ;;  %v13442_v38 = vsel %vm1752_vm5, %v5372_v55, %v5377_v59  ;;  %v5382_v31 = vrot.slane %v13194_v7, 2  ;;  %v13454_v55 = vpop.f32.mrf.mxu0 }
 0x444   :  { %9649 = vmatmul.msk.f32.gmra.mxu1 %vm3124_vm6, %v13430_v34  ;;  %16145 = vst [vmem:[#allocation83_spill] sm:$0xff] %v13454_v55  ;;  %v13459_v59 = vpop.f32.mrf.mxu1 }
 0x445   :  { %16146 = vst [vmem:[#allocation39_spill] sm:$0xff] %v13459_v59 }
 0x446   :  { %5149 = vmatmul.f32.gmra.mxu2 %v13174_v47  ;;  %v13448_v47 = vsel %vm1752_vm5, %v5375_v13, %v5379_v44  ;;  %v5449_v13 = vld [vmem:[#allocation11 + $0x438] sm:$0xff] }
 0x447   :  { %9632 = vmatmul.msk.f32.gmra.mxu3 %vm3124_vm6, %v13158_v33  ;;  %v5293_v33 = vld [vmem:[#allocation3 + $0xc0] sm:$0xfc]  ;;  %5672 = vmatpush.msra.mxu2 %v5449_v13 }
 0x448   :  { %v5381_v44 = vrot.slane %v5293_v33, 2  ;;  %v5479_v33 = vld [vmem:[#allocation11 + $0x528] sm:$0xff] }
 0x449   :  { %v4565_v62 = vpop.f32.mrf.mxu2  ;;  %5738 = vmatpush.msra.mxu3 %v5479_v33  ;;  %v5298_v33 = vld [vmem:[#allocation3 + $0xf8] sm:$0xfc] }
 0x44a   :  { %v4627_v46 = vpop.f32.mrf.mxu3  ;;  %v13462_v7 = vsel %vm1752_vm5, %v5381_v44, %v5382_v31 }
 0x44b   :  { %v13444_v5 = vadd.f32 %v4627_v46, %v4562_v63  ;;  %5569 = vmatmul.f32.gmra.mxu0 %v13442_v38  ;;  %v5385_v63 = vrot.slane %v13198_v18, 2  ;;  %v5296_v18 = vld [vmem:[#allocation3 + $0xe8] sm:$0x3]  ;;  %v13475_v54 = vpop.f32.mrf.mxu0 }
 0x44c   :  { %9650 = vmatmul.msk.f32.gmra.mxu1 %vm3124_vm6, %v13448_v47 }
 0x44d   :  { %v13468_v48 = vsel %vm1752_vm5, %v5384_v1, %v5385_v63  ;;  %v13477_v1 = vpop.f32.mrf.mxu1 }
 0x44e   :  { %5152 = vmatmul.f32.gmra.mxu2 %v13188_v22  ;;  %16147 = vst [vmem:[#allocation51_spill] sm:$0xff] %v13477_v1 }
 0x44f   :  { %9633 = vmatmul.msk.f32.gmra.mxu3 %vm3124_vm6, %v13178_v29  ;;  %v5295_v29 = vld [vmem:[#allocation3 + $0xe0] sm:$0x3] }
 0x450   :  { %v5387_v13 = vrot.slane %v5295_v29, 2  ;;  %v5477_v29 = vld [vmem:[#allocation11 + $0x518] sm:$0xff] }
 0x451   :  { %v4568_v46 = vpop.f32.mrf.mxu2  ;;  %5739 = vmatpush.msra.mxu3 %v5477_v29  ;;  %v5475_v29 = vld [vmem:[#allocation11 + $0x508] sm:$0xff] }
 0x452   :  { %v4630_v30 = vpop.f32.mrf.mxu3  ;;  %v13480_v55 = vsel %vm1752_vm5, %v5382_v31, %v5387_v13  ;;  %v5395_v31 = vrot.slane %v13234_v16, 2 }
 0x453   :  { %v13464_v22 = vadd.f32 %v4630_v30, %v4565_v62  ;;  %5572 = vmatmul.f32.gmra.mxu0 %v13462_v7  ;;  %v5389_v30 = vrot.slane %v5296_v18, 2  ;;  %v5447_v62 = vld [vmem:[#allocation11 + $0x428] sm:$0xff]  ;;  %v5392_v18 = vrot.slane %v13228_v2, 2  ;;  %v13498_v1 = vpop.f32.mrf.mxu0  ;;  %5740 = vmatpush.msra.mxu3 %v5475_v29 }
 0x454   :  { %9651 = vmatmul.msk.f32.gmra.mxu1 %vm3124_vm6, %v13468_v48  ;;  %5673 = vmatpush.msra.mxu2 %v5447_v62  ;;  %16148 = vst [vmem:[#allocation62_spill] sm:$0xff] %v13498_v1 }
 0x455   :  { %v13506_v16 = vpop.f32.mrf.mxu1 }
 0x456   :  { %5155 = vmatmul.f32.gmra.mxu2 %v13208_v8  ;;  %v13486_v8 = vsel %vm1752_vm5, %v5385_v63, %v5389_v30  ;;  %v5394_v63 = vrot.slane %v5298_v33, 2  ;;  %16150 = vst [vmem:[#allocation78_spill] sm:$0xff] %v13506_v16 }
 0x457   :  { %9634 = vmatmul.msk.f32.gmra.mxu3 %vm3124_vm6, %v13192_v42  ;;  %v5297_v42 = vld [vmem:[#allocation3 + $0xf0] sm:$0xfc] }
 0x459   :  { %v4571_v44 = vpop.f32.mrf.mxu2 }
 0x45a   :  { %v4633_v59 = vpop.f32.mrf.mxu3 }
 0x45b   :  { %v13482_v53 = vadd.f32 %v4633_v59, %v4568_v46  ;;  %5575 = vmatmul.f32.gmra.mxu0 %v13480_v55  ;;  %v5445_v59 = vld [vmem:[#allocation11 + $0x418] sm:$0xff]  ;;  %v5391_v46 = vrot.slane %v5297_v42, 2  ;;  %v5300_v42 = vld [vmem:[#allocation3 + $0x118] sm:$0x3] }
 0x45c   :  { %9652 = vmatmul.msk.f32.gmra.mxu1 %vm3124_vm6, %v13486_v8  ;;  %5674 = vmatpush.msra.mxu2 %v5445_v59  ;;  %v5443_v59 = vld [vmem:[#allocation11 + $0x408] sm:$0xff] }
 0x45d   :  { %v13496_v62 = vsel %vm1752_vm5, %v5391_v46, %v5392_v18  ;;  %v13526_v29 = vpop.f32.mrf.mxu1 }
 0x45e   :  { %5158 = vmatmul.f32.gmra.mxu2 %v13222_v6  ;;  %v13504_v6 = vsel %vm1752_vm5, %v5394_v63, %v5395_v31  ;;  %16153 = vst [vmem:[#allocation58_spill] sm:$0xff] %v13526_v29 }
 0x45f   :  { %9635 = vmatmul.msk.f32.gmra.mxu3 %vm3124_vm6, %v13212_v40  ;;  %v5299_v40 = vld [vmem:[#allocation3 + $0x110] sm:$0x3]  ;;  %5675 = vmatpush.msra.mxu2 %v5443_v59 }
 0x460   :  { %v5397_v33 = vrot.slane %v5299_v40, 2  ;;  %v9869_v59 = vld [vmem:[#allocation3 + $0x130] sm:$0xff] }
 0x461   :  { %v4574_v13 = vpop.f32.mrf.mxu2  ;;  %v5402_v16 = vrot.slane %v9869_v59, 2 }
 0x462   :  { %v4636_v30 = vpop.f32.mrf.mxu3 }
 0x463   :  { %v13500_v2 = vadd.f32 %v4636_v30, %v4571_v44  ;;  %5578 = vmatmul.f32.gmra.mxu0 %v13496_v62  ;;  %v5399_v44 = vrot.slane %v5300_v42, 2  ;;  %v13514_v30 = vsel %vm1752_vm5, %v5392_v18, %v5397_v33  ;;  %v5473_v42 = vld [vmem:[#allocation11 + $0x4f8] sm:$0xff]  ;;  %v5302_v18 = vld [vmem:[#allocation3 + $0x128] sm:$0xfc] }
 0x464   :  { %9653 = vmatmul.msk.f32.gmra.mxu1 %vm3124_vm6, %v13504_v6  ;;  %5741 = vmatpush.msra.mxu3 %v5473_v42  ;;  %v5441_v33 = vld [vmem:[#allocation11 + $0x3f8] sm:$0xff] }
 0x465   :  { %16149 = vst [vmem:[#allocation52_spill] sm:$0xff] %v13500_v2  ;;  %v13520_v40 = vsel %vm1752_vm5, %v5395_v31, %v5399_v44  ;;  %v9870_v31 = vld [vmem:[#allocation3 + $0x138] sm:$0xff]  ;;  %5676 = vmatpush.msra.mxu2 %v5441_v33  ;;  %v5303_v42 = vld [vmem:[#allocation3 + $0x140] sm:$0x3] }
 0x466   :  { %5161 = vmatmul.f32.gmra.mxu2 %v13242_v36  ;;  %v13524_v36 = vpop.f32.mrf.mxu0 }
 0x467   :  { %9636 = vmatmul.msk.f32.gmra.mxu3 %vm3124_vm6, %v13226_v26  ;;  %16152 = vst [vmem:[#allocation54_spill] sm:$0xff] %v13524_v36  ;;  %v5301_v26 = vld [vmem:[#allocation3 + $0x120] sm:$0xfc] }
 0x468   :  { %v5401_v44 = vrot.slane %v5301_v26, 2  ;;  %v5407_v26 = vrot.slane %v5303_v42, 2 }
 0x469   :  { %v4577_v46 = vpop.f32.mrf.mxu2 }
 0x46a   :  { %v4639_v63 = vpop.f32.mrf.mxu3  ;;  %v13532_v1 = vsel %vm1752_vm5, %v5401_v44, %v5402_v16 }
 0x46b   :  { %v13516_v2 = vadd.f32 %v4639_v63, %v4574_v13  ;;  %5581 = vmatmul.f32.gmra.mxu0 %v13514_v30  ;;  %v5405_v13 = vrot.slane %v9870_v31, 2  ;;  %v5404_v63 = vrot.slane %v5302_v18, 2  ;;  %v5471_v18 = vld [vmem:[#allocation11 + $0x4e8] sm:$0xff]  ;;  %v13547_v31 = vpop.f32.mrf.mxu1 }
 0x46c   :  { %9654 = vmatmul.msk.f32.gmra.mxu1 %vm3124_vm6, %v13520_v40  ;;  %16155 = vst [vmem:[#allocation66_spill] sm:$0xff] %v13547_v31  ;;  %5742 = vmatpush.msra.mxu3 %v5471_v18 }
 0x46d   :  { %16151 = vst [vmem:[#allocation53_spill] sm:$0xff] %v13516_v2 }
 0x46e   :  { %5164 = vmatmul.f32.gmra.mxu2 %v13256_v9  ;;  %v13538_v9 = vsel %vm1752_vm5, %v5404_v63, %v5405_v13  ;;  %v13543_v59 = vpop.f32.mrf.mxu0  ;;  %v13550_v63 = vsel %vm1752_vm5, %v5402_v16, %v5407_v26  ;;  %v9872_v16 = vld [vmem:[#allocation3 + $0x168] sm:$0xff] }
 0x46f   :  { %9637 = vmatmul.msk.f32.gmra.mxu3 %vm3124_vm6, %v13246_v45  ;;  %v5304_v45 = vld [vmem:[#allocation3 + $0x148] sm:$0x3] }
 0x471   :  { %v4580_v2 = vpop.f32.mrf.mxu2 }
 0x472   :  { %v4642_v36 = vpop.f32.mrf.mxu3 }
 0x473   :  { %v13534_v29 = vadd.f32 %v4642_v36, %v4577_v46  ;;  %5584 = vmatmul.f32.gmra.mxu0 %v13532_v1  ;;  %v5409_v46 = vrot.slane %v5304_v45, 2  ;;  %v5439_v36 = vld [vmem:[#allocation11 + $0x3e8] sm:$0xff]  ;;  %v9871_v45 = vld [vmem:[#allocation3 + $0x160] sm:$0xff] }
 0x474   :  { %9655 = vmatmul.msk.f32.gmra.mxu1 %vm3124_vm6, %v13538_v9  ;;  %5677 = vmatpush.msra.mxu2 %v5439_v36  ;;  %v5306_v36 = vld [vmem:[#allocation3 + $0x158] sm:$0xfc] }
 0x475   :  { %16154 = vst [vmem:[#allocation65_spill] sm:$0xff] %v13534_v29  ;;  %v5412_v29 = vrot.slane %v9871_v45, 2 }
 0x476   :  { %5167 = vmatmul.f32.gmra.mxu2 %v13272_v19  ;;  %v13556_v19 = vsel %vm1752_vm5, %v5405_v13, %v5409_v46  ;;  %v13563_v18 = vpop.f32.mrf.mxu0  ;;  %v13565_v46 = vpop.f32.mrf.mxu1 }
 0x477   :  { %9638 = vmatmul.msk.f32.gmra.mxu3 %vm3124_vm6, %v13260_v61  ;;  %v5305_v61 = vld [vmem:[#allocation3 + $0x150] sm:$0xfc]  ;;  %16157 = vst [vmem:[#allocation70_spill] sm:$0xff] %v13565_v46 }
 0x478   :  { %v5411_v26 = vrot.slane %v5305_v61, 2  ;;  %v5308_v61 = vld [vmem:[#allocation3 + $0x178] sm:$0x3] }
 0x479   :  { %v4583_v33 = vpop.f32.mrf.mxu2 }
 0x47a   :  { %v4645_v44 = vpop.f32.mrf.mxu3  ;;  %v13568_v31 = vsel %vm1752_vm5, %v5411_v26, %v5412_v29 }
 0x47b   :  { %v13552_v42 = vadd.f32 %v4645_v44, %v4580_v2  ;;  %5587 = vmatmul.f32.gmra.mxu0 %v13550_v63  ;;  %v5415_v2 = vrot.slane %v9872_v16, 2  ;;  %v5414_v44 = vrot.slane %v5306_v36, 2  ;;  %v5419_v16 = vrot.slane %v5308_v61, 2 }
 0x47c   :  { %9656 = vmatmul.msk.f32.gmra.mxu1 %vm3124_vm6, %v13556_v19 }
 0x47d   :  { %16156 = vst [vmem:[#allocation69_spill] sm:$0xff] %v13552_v42  ;;  %v13590_v46 = vsel %vm1752_vm5, %v5415_v2, %v5419_v16 }
 0x47e   :  { %5170 = vmatmul.f32.gmra.mxu2 %v13287_v27  ;;  %v13574_v27 = vsel %vm1752_vm5, %v5414_v44, %v5415_v2 }
 0x47f   :  { %9639 = vmatmul.msk.f32.gmra.mxu3 %vm3124_vm6, %v13276_v58  ;;  %v5307_v58 = vld [vmem:[#allocation3 + $0x170] sm:$0x3] }
 0x480   :  { %v5417_v36 = vrot.slane %v5307_v58, 2  ;;  %v13592_v58 = vpop.f32.mrf.mxu1 }
 0x481   :  { %v4586_v13 = vpop.f32.mrf.mxu2 }
 0x482   :  { %v4648_v42 = vpop.f32.mrf.mxu3 }
 0x483   :  { %v13570_v45 = vadd.f32 %v4648_v42, %v4583_v33  ;;  %5590 = vmatmul.f32.gmra.mxu0 %v13568_v31  ;;  %v13582_v42 = vsel %vm1752_vm5, %v5412_v29, %v5417_v36 }
 0x484   :  { %9657 = vmatmul.msk.f32.gmra.mxu1 %vm3124_vm6, %v13574_v27 }
 0x485   :  { %16158 = vst [vmem:[#allocation81_spill] sm:$0xff] %v13570_v45  ;;  %v13584_v45 = vpop.f32.mrf.mxu0 }
 0x486   :  { %5173 = vmatmul.f32.gmra.mxu2 %v13304_v56 }
 0x487   :  { %9640 = vmatmul.msk.f32.gmra.mxu3 %vm3124_vm6, %v13291_v57 }
 0x489   :  { %v4589_v26 = vpop.f32.mrf.mxu2 }
 0x48a   :  { %v4651_v33 = vpop.f32.mrf.mxu3 }
 0x48b   :  { %v13586_v44 = vadd.f32 %v4651_v33, %v4586_v13  ;;  %5593 = vmatmul.f32.gmra.mxu0 %v13582_v42 }
 0x48c   :  { %9658 = vmatmul.msk.f32.gmra.mxu1 %vm3124_vm6, %v13590_v46 }
 0x48d   :  { %16159 = vst [vmem:[#allocation71_spill] sm:$0xff] %v13586_v44 }
 0x48e   :  { %5176 = vmatmul.f32.gmra.mxu2 %v13320_v50  ;;  %v13609_v50 = vld [vmem:[%s15614_s4] sm:$0x3]  ;;  %s10115_s4 = smov 112  }
 0x48f   :  { %9641 = vmatmul.msk.f32.gmra.mxu3 %vm3124_vm6, %v13308_v28  ;;  %v13613_v28 = vperm.slane %v13609_v50, 1 }
 0x491   :  { %v4592_v56 = vpop.f32.mrf.mxu2 }
 0x492   :  { %v4654_v57 = vpop.f32.mrf.mxu3 }
 0x493   :  { %v13599_v29 = vadd.f32 %v4654_v57, %v4589_v26 }
 0x495   :  { %16160 = vst [vmem:[#allocation74_spill] sm:$0xff] %v13599_v29 }
 0x496   :  { %5678 = vmatmul.f32.vlgmr.msra.gmra.mxu2 %v13336_v0 }
 0x497   :  { %9642 = vmatmul.msk.f32.gmra.mxu3 %vm3124_vm6, %v13324_v43  ;;  %v4666_v43 = vadd.f32 %v13613_v28, %v13366_v60 }
 0x499   :  { %v5132_v2 = vpop.f32.mrf.mxu2 }
 0x49a   :  { %v4657_v13 = vpop.f32.mrf.mxu3 }
 0x49b   :  { %v13604_v61 = vadd.f32 %v4657_v13, %v4592_v56  ;;  %v4668_v56 = vadd.f32 %v13613_v28, %v13380_v24  ;;  %v13628_v13 = vpop.f32.mrf.mxu1 }
 0x49d   :  { %16161 = vst [vmem:[#allocation42_spill] sm:$0xff] %v13604_v61 }
 0x49e   :  { %5681 = vmatmul.f32.gmra.mxu2 %v13348_v15 }
 0x49f   :  { %9659 = vmatmul.msk.f32.vlgmr.msra.gmra.mxu3 %vm3124_vm6, %v13340_v39  ;;  %v13626_v39 = vpop.f32.mrf.mxu0 }
 0x4a1   :  { %v5135_v0 = vpop.f32.mrf.mxu2 }
 0x4a2   :  { %v5197_v36 = vpop.f32.mrf.mxu3 }
 0x4a3   :  { %v5198_v16 = vadd.f32 %v5197_v36, %v5132_v2 }
 0x4a5   :  { %v13619_v26 = vadd.f32 %v5198_v16, %v4666_v43 }
 0x4a6   :  { %5684 = vmatmul.f32.gmra.mxu2 %v13364_v35 }
 0x4a7   :  { %9660 = vmatmul.msk.f32.gmra.mxu3 %vm3124_vm6, %v13354_v21  ;;  %v4670_v21 = vadd.f32 %v13613_v28, %v13396_v49  ;;  %v13639_v24 = vpop.f32.mrf.mxu0 }
 0x4a9   :  { %v5138_v15 = vpop.f32.mrf.mxu2 }
 0x4aa   :  { %v5200_v33 = vpop.f32.mrf.mxu3 }
 0x4ab   :  { %v5201_v57 = vadd.f32 %v5200_v33, %v5135_v0  ;;  %v13642_v0 = vpop.f32.mrf.mxu1 }
 0x4ad   :  { %v13630_v61 = vadd.f32 %v5201_v57, %v4668_v56 }
 0x4ae   :  { %5687 = vmatmul.f32.gmra.mxu2 %v13378_v20 }
 0x4af   :  { %9661 = vmatmul.msk.f32.gmra.mxu3 %vm3124_vm6, %v13370_v17  ;;  %v4672_v17 = vadd.f32 %v13613_v28, %v13410_v3  ;;  %v13653_v49 = vpop.f32.mrf.mxu0 }
 0x4b1   :  { %v5141_v60 = vpop.f32.mrf.mxu2 }
 0x4b2   :  { %v5203_v35 = vpop.f32.mrf.mxu3 }
 0x4b3   :  { %v5204_v2 = vadd.f32 %v5203_v35, %v5138_v15 }
 0x4b5   :  { %v13637_v36 = vadd.f32 %v5204_v2, %v4670_v21 }
 0x4b6   :  { %5690 = vmatmul.f32.gmra.mxu2 %v13394_v14  ;;  %v13655_v14 = vpop.f32.mrf.mxu1 }
 0x4b7   :  { %9662 = vmatmul.msk.f32.gmra.mxu3 %vm3124_vm6, %v13384_v32  ;;  %v4674_v32 = vadd.f32 %v13613_v28, %v13426_v51  ;;  %v13664_v3 = vpop.f32.mrf.mxu0 }
 0x4b9   :  { %v5144_v20 = vpop.f32.mrf.mxu2 }
 0x4ba   :  { %v5206_v43 = vpop.f32.mrf.mxu3 }
 0x4bb   :  { %v5207_v16 = vadd.f32 %v5206_v43, %v5141_v60  ;;  %v4676_v60 = vadd.f32 %v13613_v28, %v13444_v5 }
 0x4bd   :  { %v13648_v33 = vadd.f32 %v5207_v16, %v4672_v17 }
 0x4be   :  { %5693 = vmatmul.f32.gmra.mxu2 %v13408_v37  ;;  %v13668_v21 = vpop.f32.mrf.mxu1 }
 0x4bf   :  { %9663 = vmatmul.msk.f32.gmra.mxu3 %vm3124_vm6, %v13400_v10  ;;  %v13677_v17 = vpop.f32.mrf.mxu0 }
 0x4c0   :  { %16162 = vst [vmem:[#allocation75_spill] sm:$0xff] %v13677_v17 }
 0x4c1   :  { %v5147_v15 = vpop.f32.mrf.mxu2 }
 0x4c2   :  { %v5209_v56 = vpop.f32.mrf.mxu3 }
 0x4c3   :  { %v5210_v57 = vadd.f32 %v5209_v56, %v5144_v20 }
 0x4c5   :  { %v13659_v35 = vadd.f32 %v5210_v57, %v4674_v32 }
 0x4c6   :  { %5696 = vmatmul.f32.gmra.mxu2 %v13424_v11  ;;  %v13679_v16 = vpop.f32.mrf.mxu1 }
 0x4c7   :  { %9664 = vmatmul.msk.f32.gmra.mxu3 %vm3124_vm6, %v13414_v4  ;;  %v4678_v4 = vadd.f32 %v13613_v28, %v13464_v22  ;;  %16163 = vst [vmem:[#allocation72_spill] sm:$0xff] %v13679_v16  ;;  %v13692_v32 = vpop.f32.mrf.mxu0  ;;  %v16177_v16 = vld [vmem:[#allocation39_spill] sm:$0xff] }
 0x4c8   :  { %16164 = vst [vmem:[#allocation79_spill] sm:$0xff] %v13692_v32 }
 0x4c9   :  { %v5150_v37 = vpop.f32.mrf.mxu2 }
 0x4ca   :  { %v5212_v10 = vpop.f32.mrf.mxu3 }
 0x4cb   :  { %v5213_v2 = vadd.f32 %v5212_v10, %v5147_v15  ;;  %v4680_v15 = vadd.f32 %v13613_v28, %v13482_v53 }
 0x4cd   :  { %v13670_v43 = vadd.f32 %v5213_v2, %v4676_v60 }
 0x4ce   :  { %5699 = vmatmul.f32.gmra.mxu2 %v13442_v38  ;;  %v13695_v57 = vpop.f32.mrf.mxu1 }
 0x4cf   :  { %9665 = vmatmul.msk.f32.gmra.mxu3 %vm3124_vm6, %v13430_v34  ;;  %16165 = vst [vmem:[#allocation85_spill] sm:$0xff] %v13695_v57  ;;  %v13706_v53 = vpop.f32.mrf.mxu0 }
 0x4d0   :  { %16166 = vst [vmem:[#allocation28_spill] sm:$0xff] %v13706_v53 }
 0x4d1   :  { %v5153_v11 = vpop.f32.mrf.mxu2 }
 0x4d2   :  { %v5215_v51 = vpop.f32.mrf.mxu3 }
 0x4d3   :  { %v5216_v20 = vadd.f32 %v5215_v51, %v5150_v37 }
 0x4d5   :  { %v13681_v5 = vadd.f32 %v5216_v20, %v4678_v4 }
 0x4d6   :  { %5702 = vmatmul.f32.gmra.mxu2 %v13462_v7  ;;  %v13708_v37 = vpop.f32.mrf.mxu1 }
 0x4d7   :  { %9666 = vmatmul.msk.f32.gmra.mxu3 %vm3124_vm6, %v13448_v47  ;;  %16167 = vst [vmem:[#allocation86_spill] sm:$0xff] %v13708_v37  ;;  %v13719_v60 = vpop.f32.mrf.mxu0 }
 0x4d8   :  { %16168 = vst [vmem:[#allocation87_spill] sm:$0xff] %v13719_v60 }
 0x4d9   :  { %v13686_v38 = vpop.f32.mrf.mxu2 }
 0x4da   :  { %v5218_v34 = vpop.f32.mrf.mxu3 }
 0x4db   :  { %v5219_v56 = vadd.f32 %v5218_v34, %v5153_v11 }
 0x4dd   :  { %v13690_v22 = vadd.f32 %v5219_v56, %v4680_v15 }
 0x4de   :  { %5705 = vmatmul.f32.gmra.mxu2 %v13480_v55 }
 0x4df   :  { %9667 = vmatmul.msk.f32.gmra.mxu3 %vm3124_vm6, %v13468_v48 }
 0x4e1   :  { %v13699_v7 = vpop.f32.mrf.mxu2 }
 0x4e2   :  { %v13701_v47 = vpop.f32.mrf.mxu3 }
 0x4e6   :  { %5708 = vmatmul.f32.gmra.mxu2 %v13496_v62 }
 0x4e7   :  { %9668 = vmatmul.msk.f32.gmra.mxu3 %vm3124_vm6, %v13486_v8  ;;  %v13723_v8 = vpop.f32.mrf.mxu1 }
 0x4e8   :  { %16169 = vst [vmem:[#allocation88_spill] sm:$0xff] %v13723_v8 }
 0x4e9   :  { %v13710_v10 = vpop.f32.mrf.mxu2 }
 0x4ea   :  { %v13712_v55 = vpop.f32.mrf.mxu3 }
 0x4ee   :  { %5711 = vmatmul.f32.gmra.mxu2 %v13514_v30  ;;  %v5549_v30 = vpop.f32.mrf.mxu0 }
 0x4ef   :  { %9669 = vmatmul.msk.f32.gmra.mxu3 %vm3124_vm6, %v13504_v6  ;;  %v5614_v51 = vpop.f32.mrf.mxu1 }
 0x4f1   :  { %v13717_v48 = vpop.f32.mrf.mxu2 }
 0x4f2   :  { %v13721_v62 = vpop.f32.mrf.mxu3 }
 0x4f6   :  { %5714 = vmatmul.f32.gmra.mxu2 %v13532_v1  ;;  %v5552_v20 = vpop.f32.mrf.mxu0 }
 0x4f7   :  { %9670 = vmatmul.msk.f32.gmra.mxu3 %vm3124_vm6, %v13520_v40  ;;  %v5617_v1 = vpop.f32.mrf.mxu1 }
 0x4f9   :  { %v13728_v2 = vpop.f32.mrf.mxu2 }
 0x4fa   :  { %v13730_v11 = vpop.f32.mrf.mxu3 }
 0x4fe   :  { %5717 = vmatmul.f32.gmra.mxu2 %v13550_v63 }
 0x4ff   :  { %9671 = vmatmul.msk.f32.gmra.mxu3 %vm3124_vm6, %v13538_v9  ;;  %v5555_v9 = vpop.f32.mrf.mxu0  ;;  %v5620_v63 = vpop.f32.mrf.mxu1 }
 0x501   :  { %v13735_v6 = vpop.f32.mrf.mxu2 }
 0x502   :  { %v13737_v4 = vpop.f32.mrf.mxu3 }
 0x506   :  { %5720 = vmatmul.f32.gmra.mxu2 %v13568_v31 }
 0x507   :  { %9672 = vmatmul.msk.f32.gmra.mxu3 %vm3124_vm6, %v13556_v19  ;;  %v13755_v19 = vpop.f32.mrf.mxu0  ;;  %v13759_v60 = vpop.f32.mrf.mxu1 }
 0x509   :  { %v13742_v40 = vpop.f32.mrf.mxu2 }
 0x50a   :  { %16170 = vst [vmem:[#allocation55_spill] sm:$0xff] %v13742_v40  ;;  %v13744_v34 = vpop.f32.mrf.mxu3 }
 0x50b   :  { %16171 = vst [vmem:[#allocation41_spill] sm:$0xff] %v13744_v34 }
 0x50e   :  { %5723 = vmatmul.f32.gmra.mxu2 %v13582_v42  ;;  %v4483_v42 = vadd.f32 %v13099_v12, %v13066_v23 }
 0x50f   :  { %9673 = vmatmul.msk.f32.gmra.mxu3 %vm3124_vm6, %v13574_v27  ;;  %v13764_v27 = vperm.slane %v13609_v50, 0  ;;  %v13771_v32 = vpop.f32.mrf.mxu0  ;;  %v13773_v23 = vpop.f32.mrf.mxu1  ;;  %v16176_v50 = vld [vmem:[#allocation83_spill] sm:$0xff] }
 0x511   :  { %v13749_v15 = vpop.f32.mrf.mxu2  ;;  %v4665_v29 = vadd.f32 %v13764_v27, %v4483_v42  ;;  %v5618_v42 = vadd.f32 %v5617_v1, %v5552_v20 }
 0x512   :  { %16172 = vst [vmem:[#allocation73_spill] sm:$0xff] %v13749_v15  ;;  %v13751_v56 = vpop.f32.mrf.mxu3  ;;  %v5068_v15 = vadd.f32 %v13439_v41, %v13435_v25  ;;  %v5071_v25 = vadd.f32 %v16177_v16, %v16176_v50 }
 0x513   :  { %16173 = vst [vmem:[#allocation82_spill] sm:$0xff] %v13751_v56  ;;  %v5615_v56 = vadd.f32 %v5614_v51, %v5549_v30 }
 0x514   :  { %v5245_v37 = vadd.f32 %v5068_v15, %v4665_v29  ;;  %v16178_v15 = vld [vmem:[#allocation98_spill] sm:$0xff] }
 0x516   :  { %v5792_v44 = vadd.f32 %v5615_v56, %v5245_v37 }
 0x517   :  { %9674 = vmatmul.msk.f32.gmra.mxu3 %vm3124_vm6, %v13590_v46  ;;  %vm6592_vm6 = vcmask 916480  }
 0x518   :  { %v5824_v51 = vmax.f32 %v5792_v44, 0.0 }
 0x519   :  { %v5679_v31 = vpop.f32.mrf.mxu2 }
 0x51a   :  { %v13757_v8 = vpop.f32.mrf.mxu3 }
 0x51b   :  { %16174 = vst [vmem:[#allocation61_spill] sm:$0xff] %v13757_v8  ;;  %v16175_v8 = vld [vmem:[#allocation99_spill] sm:$0xff] }
 0x51c   :  { %v4486_v57 = vadd.f32 %v16175_v8, %v13097_v52 }
 0x51e   :  { %v4667_v30 = vadd.f32 %v13764_v27, %v4486_v57  ;;  %v16180_v57 = vld [vmem:[#allocation51_spill] sm:$0xff] }
 0x51f   :  { %v5074_v20 = vadd.f32 %v16180_v57, %v13475_v54 }
 0x520   :  { %v5247_v8 = vadd.f32 %v5071_v25, %v4667_v30  ;;  %v13788_v25 = vpop.f32.mrf.mxu0 }
 0x521   :  { %v5682_v46 = vpop.f32.mrf.mxu2 }
 0x522   :  { %v5744_v40 = vpop.f32.mrf.mxu3  ;;  %v5794_v1 = vadd.f32 %v5618_v42, %v5247_v8  ;;  %v5621_v42 = vadd.f32 %v5620_v63, %v5555_v9  ;;  %v16186_v63 = vld [vmem:[#allocation27_spill] sm:$0xff] }
 0x523   :  { %v5745_v53 = vadd.f32 %v5744_v40, %v5679_v31  ;;  %v16179_v31 = vld [vmem:[#allocation35_spill] sm:$0xff] }
 0x524   :  { %v4489_v52 = vadd.f32 %v16179_v31, %v16178_v15  ;;  %v13792_v31 = vpop.f32.mrf.mxu1 }
 0x525   :  { %v5793_v12 = vadd.f32 %v5745_v53, %v13619_v26 }
 0x527   :  { %v5825_v41 = vmax.f32 %v5793_v12, 0.0 }
 0x529   :  { %v5888_v29 = vrot.slane %v5825_v41, 6  ;;  %v5685_v40 = vpop.f32.mrf.mxu2 }
 0x52a   :  { %v5747_v17 = vpop.f32.mrf.mxu3 }
 0x52b   :  { %v5748_v37 = vadd.f32 %v5747_v17, %v5682_v46  ;;  %v5904_v56 = vsel %vm1744_vm2, %v5824_v51, %v5888_v29  ;;  %v5907_v26 = vsel %vm1749_vm3, %v5824_v51, %v5888_v29  ;;  %v5905_v53 = vsel %vm1746_vm4, %v5824_v51, %v5888_v29 }
 0x52c   :  { %v9675_v16 = vrot.slane %v5904_v56, 9  ;;  %v5908_v12 = vrot.slane %v5907_v26, 4  ;;  %v5906_v50 = vrot.slane %v5905_v53, 2  ;;  %v5909_v44 = vsel %vm1752_vm5, %v5888_v29, %v5824_v51 }
 0x52d   :  { %v5795_v41 = vadd.f32 %v5748_v37, %v13630_v61  ;;  %v5910_v15 = vrot.slane %v5909_v44, 6  ;;  %v4669_v26 = vadd.f32 %v13764_v27, %v4489_v52  ;;  %v13801_v61 = vmax.f32 %v5794_v1, 0.0  ;;  %v16188_v1 = vld [vmem:[#allocation62_spill] sm:$0xff] }
 0x52e   :  { %v13790_v17 = vmax.f32 %v5904_v56, %v9675_v16  ;;  %v9677_v46 = vrot.slane %v5908_v12, 9  ;;  %v9676_v30 = vrot.slane %v5906_v50, 9 }
 0x52f   :  { %v5827_v34 = vmax.f32 %v5795_v41, 0.0  ;;  %16184 = vst [vmem:[#allocation94_spill] sm:$0xff] %v13801_v61  ;;  %v5249_v37 = vadd.f32 %v5074_v20, %v4669_v26  ;;  %v9678_v52 = vrot.slane %v5910_v15, 9  ;;  %v16189_v41 = vld [vmem:[#allocation78_spill] sm:$0xff] }
 0x530   :  { %16181 = vst [vmem:[#allocation57_spill] sm:$0xff] %v13790_v17  ;;  %6400 = vrot.lane.b32.xlu2 %v13790_v17, %s10115_s4  ;;  %v13797_v54 = vmax.f32 %v5908_v12, %v9677_v46  ;;  %v13799_v51 = vmax.f32 %v5906_v50, %v9676_v30  ;;  %v16187_v12 = vld [vmem:[#allocation102_spill] sm:$0xff]  ;;  %v5077_v46 = vadd.f32 %v16189_v41, %v16188_v1  ;;  %v13826_v17 = vpop.f32.mrf.mxu0 }
 0x531   :  { %v13803_v29 = vrot.slane %v5827_v34, 6  ;;  %v5688_v8 = vpop.f32.mrf.mxu2  ;;  %v4492_v50 = vadd.f32 %v16187_v12, %v16186_v63  ;;  %v5796_v20 = vadd.f32 %v5621_v42, %v5249_v37  ;;  %v13823_v30 = vmax.f32 %v5910_v15, %v9678_v52  ;;  %v13836_v15 = vpop.f32.mrf.mxu1 }
 0x532   :  { %16182 = vst [vmem:[#allocation46_spill] sm:$0xff] %v13797_v54  ;;  %v5750_v56 = vpop.f32.mrf.mxu3  ;;  %6404 = vrot.lane.b32.xlu1 %v13797_v54, %s10115_s4  ;;  %6402 = vrot.lane.b32.xlu0 %v13799_v51, %s10115_s4  ;;  %v5624_v37 = vadd.f32 %v13759_v60, %v13755_v19 }
 0x533   :  { %16183 = vst [vmem:[#allocation30_spill] sm:$0xff] %v13799_v51  ;;  %v5751_v53 = vadd.f32 %v5750_v56, %v5685_v40  ;;  %v5912_v16 = vsel %vm1746_vm4, %v13801_v61, %v13803_v29  ;;  %v5911_v34 = vsel %vm1744_vm2, %v13801_v61, %v13803_v29  ;;  %v5914_v9 = vsel %vm1749_vm3, %v13801_v61, %v13803_v29 }
 0x534   :  { %16185 = vst [vmem:[#allocation89_spill] sm:$0xff] %v13803_v29  ;;  %v5913_v44 = vrot.slane %v5912_v16, 2  ;;  %v9679_v57 = vrot.slane %v5911_v34, 9  ;;  %v5915_v56 = vrot.slane %v5914_v9, 4  ;;  %v4671_v51 = vadd.f32 %v13764_v27, %v4492_v50  ;;  %v16195_v29 = vld [vmem:[#allocation58_spill] sm:$0xff] }
 0x535   :  { %v5797_v40 = vadd.f32 %v5751_v53, %v13637_v36  ;;  %v5828_v36 = vmax.f32 %v5796_v20, 0.0  ;;  %v16193_v20 = vld [vmem:[#allocation36_spill] sm:$0xff] }
 0x536   :  { %v9680_v26 = vrot.slane %v5913_v44, 9  ;;  %v13832_v42 = vmax.f32 %v5911_v34, %v9679_v57  ;;  %v5251_v9 = vadd.f32 %v5077_v46, %v4671_v51  ;;  %v9681_v12 = vrot.slane %v5915_v56, 9 }
 0x537   :  { %v5829_v54 = vmax.f32 %v5797_v40, 0.0 }
 0x538   :  { %6406 = vrot.lane.b32.xlu2 %v13823_v30, %s10115_s4  ;;  %v13830_v16 = vmax.f32 %v5913_v44, %v9680_v26  ;;  %16191 = vst [vmem:[#allocation90_spill] sm:$0xff] %v13832_v42  ;;  %v5798_v40 = vadd.f32 %v5624_v37, %v5251_v9  ;;  %v13849_v46 = vmax.f32 %v5915_v56, %v9681_v12 }
 0x539   :  { %v5890_v52 = vrot.slane %v5829_v54, 6  ;;  %v5691_v53 = vpop.f32.mrf.mxu2  ;;  %v16192_v54 = vld [vmem:[#allocation101_spill] sm:$0xff]  ;;  %v5627_v56 = vadd.f32 %v13773_v23, %v13771_v32 }
 0x53a   :  { %16190 = vst [vmem:[#allocation97_spill] sm:$0xff] %v13830_v16  ;;  %v5753_v63 = vpop.f32.mrf.mxu3  ;;  %6410 = vrot.lane.b32.xlu1 %v13830_v16, %s10115_s4  ;;  %6408 = vrot.lane.b32.xlu0 %v13832_v42, %s10115_s4  ;;  %v4495_v51 = vadd.f32 %v16193_v20, %v16192_v54  ;;  %v13860_v9 = vmax.f32 %v5798_v40, 0.0  ;;  %v16199_v40 = vld [vmem:[#allocation34_spill] sm:$0xff] }
 0x53b   :  { %v5754_v50 = vadd.f32 %v5753_v63, %v5688_v8  ;;  %v5919_v34 = vsel %vm1746_vm4, %v5828_v36, %v5890_v52  ;;  %v5918_v44 = vsel %vm1744_vm2, %v5828_v36, %v5890_v52  ;;  %v5921_v60 = vsel %vm1749_vm3, %v5828_v36, %v5890_v52  ;;  %v16194_v63 = vld [vmem:[#allocation54_spill] sm:$0xff] }
 0x53c   :  { %v5920_v19 = vrot.slane %v5919_v34, 2  ;;  %v9683_v57 = vrot.slane %v5918_v44, 9  ;;  %v5923_v41 = vsel %vm1752_vm5, %v5890_v52, %v5828_v36  ;;  %v5922_v8 = vrot.slane %v5921_v60, 4  ;;  %16196 = vst [vmem:[#allocation93_spill] sm:$0xff] %v13860_v9  ;;  %v13872_v60 = vpop.f32.mrf.mxu1 }
 0x53d   :  { %v5799_v1 = vadd.f32 %v5754_v50, %v13648_v33  ;;  %v5080_v61 = vadd.f32 %v16195_v29, %v16194_v63  ;;  %v5924_v37 = vrot.slane %v5923_v41, 6  ;;  %v4673_v33 = vadd.f32 %v13764_v27, %v4495_v51  ;;  %v13866_v29 = vpop.f32.mrf.mxu0  ;;  %v16198_v51 = vld [vmem:[#allocation103_spill] sm:$0xff] }
 0x53e   :  { %v9684_v26 = vrot.slane %v5920_v19, 9  ;;  %v13857_v16 = vmax.f32 %v5918_v44, %v9683_v57  ;;  %v9685_v50 = vrot.slane %v5922_v8, 9 }
 0x53f   :  { %v5831_v42 = vmax.f32 %v5799_v1, 0.0  ;;  %v5253_v44 = vadd.f32 %v5080_v61, %v4673_v33 }
 0x540   :  { %6412 = vrot.lane.b32.xlu2 %v13849_v46, %s10115_s4  ;;  %v13855_v34 = vmax.f32 %v5920_v19, %v9684_v26  ;;  %v13886_v1 = vmax.f32 %v5922_v8, %v9685_v50  ;;  %v5630_v50 = vadd.f32 %v13792_v31, %v13788_v25  ;;  %v16203_v31 = vld [vmem:[#allocation26_spill] sm:$0xff] }
 0x541   :  { %v13864_v36 = vrot.slane %v5831_v42, 6  ;;  %v5694_v52 = vpop.f32.mrf.mxu2  ;;  %v9686_v42 = vrot.slane %v5924_v37, 9  ;;  %v5800_v54 = vadd.f32 %v5627_v56, %v5253_v44 }
 0x542   :  { %v5756_v12 = vpop.f32.mrf.mxu3  ;;  %6418 = vrot.lane.b32.xlu1 %v13855_v34, %s10115_s4  ;;  %6416 = vrot.lane.b32.xlu0 %v13857_v16, %s10115_s4 }
 0x543   :  { %16197 = vst [vmem:[#allocation91_spill] sm:$0xff] %v13864_v36  ;;  %v5757_v19 = vadd.f32 %v5756_v12, %v5691_v53  ;;  %v5925_v32 = vsel %vm1744_vm2, %v13860_v9, %v13864_v36  ;;  %v5926_v23 = vsel %vm1746_vm4, %v13860_v9, %v13864_v36  ;;  %v5928_v61 = vsel %vm1749_vm3, %v13860_v9, %v13864_v36  ;;  %v16205_v9 = vld [vmem:[#allocation70_spill] sm:$0xff] }
 0x544   :  { %v9687_v57 = vrot.slane %v5925_v32, 9  ;;  %v4498_v53 = vadd.f32 %v16199_v40, %v16198_v51  ;;  %v5927_v41 = vrot.slane %v5926_v23, 2  ;;  %v13890_v63 = vmax.f32 %v5924_v37, %v9686_v42 }
 0x545   :  { %v5801_v20 = vadd.f32 %v5757_v19, %v13659_v35  ;;  %v5929_v56 = vrot.slane %v5928_v61, 4  ;;  %v16202_v35 = vld [vmem:[#allocation66_spill] sm:$0xff]  ;;  %v5832_v44 = vmax.f32 %v5800_v54, 0.0  ;;  %v13905_v42 = vpop.f32.mrf.mxu0  ;;  %v13907_v61 = vpop.f32.mrf.mxu1 }
 0x546   :  { %16200 = vst [vmem:[#allocation49_spill] sm:$0xff] %v13890_v63  ;;  %v13892_v33 = vmax.f32 %v5925_v32, %v9687_v57  ;;  %v5083_v12 = vadd.f32 %v16202_v35, %v13543_v59  ;;  %v4675_v51 = vadd.f32 %v13764_v27, %v4498_v53  ;;  %v9688_v37 = vrot.slane %v5927_v41, 9 }
 0x547   :  { %v5833_v26 = vmax.f32 %v5801_v20, 0.0  ;;  %v9689_v57 = vrot.slane %v5929_v56, 9 }
 0x548   :  { %6420 = vrot.lane.b32.xlu2 %v13886_v1, %s10115_s4  ;;  %16201 = vst [vmem:[#allocation100_spill] sm:$0xff] %v13892_v33  ;;  %v5255_v20 = vadd.f32 %v5083_v12, %v4675_v51  ;;  %v13912_v35 = vmax.f32 %v5927_v41, %v9688_v37 }
 0x549   :  { %v5892_v19 = vrot.slane %v5833_v26, 6  ;;  %v5697_v36 = vpop.f32.mrf.mxu2  ;;  %v13918_v12 = vmax.f32 %v5929_v56, %v9689_v57 }
 0x54a   :  { %v5759_v8 = vpop.f32.mrf.mxu3  ;;  %6422 = vrot.lane.b32.xlu0 %v13890_v63, %s10115_s4  ;;  %6424 = vrot.lane.b32.xlu1 %v13892_v33, %s10115_s4  ;;  %v5802_v33 = vadd.f32 %v5630_v50, %v5255_v20 }
 0x54b   :  { %v5760_v32 = vadd.f32 %v5759_v8, %v5694_v52  ;;  %v5932_v23 = vsel %vm1744_vm2, %v5832_v44, %v5892_v19  ;;  %v5933_v59 = vsel %vm1746_vm4, %v5832_v44, %v5892_v19  ;;  %v5935_v53 = vsel %vm1749_vm3, %v5832_v44, %v5892_v19  ;;  %v16204_v52 = vld [vmem:[#allocation63_spill] sm:$0xff] }
 0x54c   :  { %v9691_v54 = vrot.slane %v5932_v23, 9  ;;  %v5937_v26 = vsel %vm1752_vm5, %v5892_v19, %v5832_v44  ;;  %v5934_v25 = vrot.slane %v5933_v59, 2  ;;  %v4501_v8 = vadd.f32 %v16204_v52, %v16203_v31 }
 0x54d   :  { %v5803_v40 = vadd.f32 %v5760_v32, %v13670_v43  ;;  %v5936_v43 = vrot.slane %v5935_v53, 4  ;;  %v5938_v32 = vrot.slane %v5937_v26, 6  ;;  %v5086_v44 = vadd.f32 %v16205_v9, %v13563_v18  ;;  %v16206_v53 = vld [vmem:[#allocation56_spill] sm:$0xff]  ;;  %v13944_v31 = vpop.f32.mrf.mxu0 }
 0x54e   :  { %v13920_v51 = vmax.f32 %v5932_v23, %v9691_v54  ;;  %v9692_v50 = vrot.slane %v5934_v25, 9  ;;  %v4677_v56 = vadd.f32 %v13764_v27, %v4501_v8  ;;  %v13931_v23 = vmax.f32 %v5802_v33, 0.0  ;;  %v16207_v33 = vld [vmem:[#allocation31_spill] sm:$0xff] }
 0x54f   :  { %v5835_v63 = vmax.f32 %v5803_v40, 0.0  ;;  %v5633_v59 = vadd.f32 %v13836_v15, %v13826_v17  ;;  %v9693_v18 = vrot.slane %v5936_v43, 9  ;;  %v9694_v9 = vrot.slane %v5938_v32, 9 }
 0x550   :  { %6426 = vrot.lane.b32.xlu2 %v13912_v35, %s10115_s4  ;;  %v4504_v26 = vadd.f32 %v16207_v33, %v16206_v53  ;;  %v13946_v17 = vmax.f32 %v5934_v25, %v9692_v50  ;;  %v5089_v15 = vadd.f32 %v13592_v58, %v13584_v45  ;;  %v5636_v58 = vadd.f32 %v13872_v60, %v13866_v29  ;;  %v16209_v29 = vld [vmem:[#allocation45_spill] sm:$0xff]  ;;  %v16210_v60 = vld [vmem:[#allocation59_spill] sm:$0xff] }
 0x551   :  { %v13924_v41 = vrot.slane %v5835_v63, 6  ;;  %v5700_v19 = vpop.f32.mrf.mxu2  ;;  %v5257_v63 = vadd.f32 %v5086_v44, %v4677_v56  ;;  %v13957_v44 = vmax.f32 %v5936_v43, %v9693_v18  ;;  %v4507_v33 = vadd.f32 %v16210_v60, %v16209_v29 }
 0x552   :  { %v5762_v37 = vpop.f32.mrf.mxu3  ;;  %6428 = vrot.lane.b32.xlu0 %v13918_v12, %s10115_s4  ;;  %6432 = vrot.lane.b32.xlu1 %v13920_v51, %s10115_s4  ;;  %v4679_v45 = vadd.f32 %v13764_v27, %v4504_v26 }
 0x553   :  { %v5763_v57 = vadd.f32 %v5762_v37, %v5697_v36  ;;  %v5942_v20 = vsel %vm1749_vm3, %v13931_v23, %v13924_v41  ;;  %v5940_v40 = vsel %vm1746_vm4, %v13931_v23, %v13924_v41  ;;  %v5804_v36 = vadd.f32 %v5633_v59, %v5257_v63 }
 0x554   :  { %v5939_v8 = vsel %vm1744_vm2, %v13931_v23, %v13924_v41  ;;  %v13959_v37 = vmax.f32 %v5938_v32, %v9694_v9  ;;  %v5943_v25 = vrot.slane %v5942_v20, 4  ;;  %v5941_v50 = vrot.slane %v5940_v40, 2 }
 0x555   :  { %v5805_v54 = vadd.f32 %v5763_v57, %v13681_v5  ;;  %v13950_v5 = vpop.f32.mrf.mxu1  ;;  %v9695_v43 = vrot.slane %v5939_v8, 9  ;;  %v5836_v18 = vmax.f32 %v5804_v36, 0.0  ;;  %v5259_v9 = vadd.f32 %v5089_v15, %v4679_v45  ;;  %v13978_v15 = vpop.f32.mrf.mxu0 }
 0x556   :  { %16208 = vst [vmem:[#allocation50_spill] sm:$0xff] %v13959_v37  ;;  %v9697_v63 = vrot.slane %v5943_v25, 9 }
 0x557   :  { %v5837_v52 = vmax.f32 %v5805_v54, 0.0  ;;  %v9696_v54 = vrot.slane %v5941_v50, 9  ;;  %v5806_v26 = vadd.f32 %v5636_v58, %v5259_v9  ;;  %v16213_v58 = vld [vmem:[#allocation52_spill] sm:$0xff] }
 0x558   :  { %6434 = vrot.lane.b32.xlu2 %v13946_v17, %s10115_s4 }
 0x559   :  { %v5894_v56 = vrot.slane %v5837_v52, 6  ;;  %v5703_v57 = vpop.f32.mrf.mxu2  ;;  %v13973_v52 = vmax.f32 %v5939_v8, %v9695_v43  ;;  %v13984_v45 = vmax.f32 %v5941_v50, %v9696_v54  ;;  %v5092_v8 = vadd.f32 %v13628_v13, %v13626_v39 }
 0x55a   :  { %v5765_v59 = vpop.f32.mrf.mxu3  ;;  %6436 = vrot.lane.b32.xlu0 %v13957_v44, %s10115_s4  ;;  %6438 = vrot.lane.b32.xlu1 %v13959_v37, %s10115_s4  ;;  %v5222_v37 = vadd.f32 %v13701_v47, %v13686_v38  ;;  %v4682_v38 = vadd.f32 %v13613_v28, %v16213_v58  ;;  %v13995_v29 = vmax.f32 %v5806_v26, 0.0  ;;  %v5639_v13 = vadd.f32 %v13907_v61, %v13905_v42 }
 0x55b   :  { %v5766_v32 = vadd.f32 %v5765_v59, %v5700_v19  ;;  %v5949_v40 = vsel %vm1749_vm3, %v5836_v18, %v5894_v56  ;;  %v5947_v53 = vsel %vm1746_vm4, %v5836_v18, %v5894_v56  ;;  %v5946_v19 = vsel %vm1744_vm2, %v5836_v18, %v5894_v56  ;;  %16212 = vst [vmem:[#allocation96_spill] sm:$0xff] %v13984_v45 }
 0x55c   :  { %v5950_v59 = vrot.slane %v5949_v40, 4  ;;  %v9699_v39 = vrot.slane %v5946_v19, 9  ;;  %v5262_v50 = vadd.f32 %v5222_v37, %v4682_v38  ;;  %v5951_v54 = vsel %vm1752_vm5, %v5894_v56, %v5836_v18 }
 0x55d   :  { %v5807_v20 = vadd.f32 %v5766_v32, %v13690_v22  ;;  %v13982_v22 = vmax.f32 %v5943_v25, %v9697_v63  ;;  %v5948_v32 = vrot.slane %v5947_v53, 2  ;;  %v13990_v47 = vpop.f32.mrf.mxu1  ;;  %v5952_v58 = vrot.slane %v5951_v54, 6 }
 0x55e   :  { %v9701_v40 = vrot.slane %v5950_v59, 9 }
 0x55f   :  { %v5839_v36 = vmax.f32 %v5807_v20, 0.0  ;;  %16211 = vst [vmem:[#allocation95_spill] sm:$0xff] %v13982_v22  ;;  %v4681_v20 = vadd.f32 %v13764_v27, %v4507_v33  ;;  %v9700_v53 = vrot.slane %v5948_v32, 9 }
 0x560   :  { %6440 = vrot.lane.b32.xlu2 %v13973_v52, %s10115_s4  ;;  %v14013_v61 = vmax.f32 %v5950_v59, %v9701_v40  ;;  %v9702_v59 = vrot.slane %v5952_v58, 9 }
 0x561   :  { %v13992_v43 = vrot.slane %v5839_v36, 6  ;;  %v5706_v9 = vpop.f32.mrf.mxu2  ;;  %v5261_v60 = vadd.f32 %v5092_v8, %v4681_v20  ;;  %v14007_v36 = vmax.f32 %v5946_v19, %v9699_v39  ;;  %v14015_v37 = vmax.f32 %v5948_v32, %v9700_v53  ;;  %v16215_v20 = vld [vmem:[#allocation64_spill] sm:$0xff] }
 0x562   :  { %v5768_v25 = vpop.f32.mrf.mxu3  ;;  %6444 = vrot.lane.b32.xlu1 %v13982_v22, %s10115_s4  ;;  %6442 = vrot.lane.b32.xlu0 %v13984_v45, %s10115_s4  ;;  %v5225_v22 = vadd.f32 %v13712_v55, %v13699_v7  ;;  %v16216_v7 = vld [vmem:[#allocation47_spill] sm:$0xff] }
 0x563   :  { %v5769_v63 = vadd.f32 %v5768_v25, %v5703_v57  ;;  %v5954_v26 = vsel %vm1746_vm4, %v13995_v29, %v13992_v43  ;;  %v5808_v45 = vadd.f32 %v5639_v13, %v5261_v60  ;;  %v16214_v57 = vld [vmem:[#allocation53_spill] sm:$0xff]  ;;  %v5953_v38 = vsel %vm1744_vm2, %v13995_v29, %v13992_v43  ;;  %v14028_v13 = vpop.f32.mrf.mxu0 }
 0x564   :  { %v5955_v56 = vrot.slane %v5954_v26, 2  ;;  %v4684_v18 = vadd.f32 %v13613_v28, %v16214_v57  ;;  %v4510_v55 = vadd.f32 %v16216_v7, %v16215_v20  ;;  %v5956_v54 = vsel %vm1749_vm3, %v13995_v29, %v13992_v43 }
 0x565   :  { %v5809_v33 = vadd.f32 %v5769_v63, %v5262_v50  ;;  %v5840_v32 = vmax.f32 %v5808_v45, 0.0  ;;  %v14030_v50 = vpop.f32.mrf.mxu1  ;;  %v9703_v53 = vrot.slane %v5953_v38, 9  ;;  %v5095_v60 = vadd.f32 %v13642_v0, %v13639_v24 }
 0x566   :  { %v5264_v39 = vadd.f32 %v5225_v22, %v4684_v18  ;;  %v9704_v40 = vrot.slane %v5955_v56, 9  ;;  %v5957_v22 = vrot.slane %v5956_v54, 4  ;;  %v4683_v45 = vadd.f32 %v13764_v27, %v4510_v55 }
 0x567   :  { %v5841_v42 = vmax.f32 %v5809_v33, 0.0  ;;  %v5228_v57 = vadd.f32 %v13721_v62, %v13710_v10  ;;  %v14049_v24 = vmax.f32 %v5953_v38, %v9703_v53  ;;  %v16222_v10 = vld [vmem:[#allocation77_spill] sm:$0xff] }
 0x568   :  { %6448 = vrot.lane.b32.xlu2 %v14007_v36, %s10115_s4  ;;  %v14047_v18 = vmax.f32 %v5955_v56, %v9704_v40  ;;  %v5263_v20 = vadd.f32 %v5095_v60, %v4683_v45  ;;  %v9705_v56 = vrot.slane %v5957_v22, 9 }
 0x569   :  { %v5896_v8 = vrot.slane %v5841_v42, 6  ;;  %v5709_v19 = vpop.f32.mrf.mxu2  ;;  %v14038_v42 = vmax.f32 %v5952_v58, %v9702_v59  ;;  %16219 = vst [vmem:[#allocation32_spill] sm:$0xff] %v14049_v24  ;;  %v16220_v58 = vld [vmem:[#allocation65_spill] sm:$0xff] }
 0x56a   :  { %v5771_v25 = vpop.f32.mrf.mxu3  ;;  %6452 = vrot.lane.b32.xlu1 %v14013_v61, %s10115_s4  ;;  %6450 = vrot.lane.b32.xlu0 %v14015_v37, %s10115_s4  ;;  %16218 = vst [vmem:[#allocation104_spill] sm:$0xff] %v14047_v18  ;;  %v4686_v7 = vadd.f32 %v13613_v28, %v16220_v58 }
 0x56b   :  { %v5772_v63 = vadd.f32 %v5771_v25, %v5706_v9  ;;  %v5961_v26 = vsel %vm1746_vm4, %v5840_v32, %v5896_v8  ;;  %16217 = vst [vmem:[#allocation60_spill] sm:$0xff] %v14038_v42  ;;  %v5642_v9 = vadd.f32 %v13950_v5, %v13944_v31  ;;  %v5960_v59 = vsel %vm1744_vm2, %v5840_v32, %v5896_v8  ;;  %v7236_v31 = vld [vmem:[#allocation13 + $0xf8] sm:$0xff]  ;;  %v14063_v45 = vpop.f32.mrf.mxu0 }
 0x56c   :  { %v5962_v0 = vrot.slane %v5961_v26, 2  ;;  %v7264_v5 = vld [vmem:[#allocation13 + $0x1d8] sm:$0xff]  ;;  %v5266_v54 = vadd.f32 %v5228_v57, %v4686_v7  ;;  %v5963_v53 = vsel %vm1749_vm3, %v5840_v32, %v5896_v8  ;;  %7371 = vmatpush.msrb.mxu2 %v7236_v31  ;;  %v5098_v26 = vadd.f32 %v13655_v14, %v13653_v49 }
 0x56d   :  { %v5811_v33 = vadd.f32 %v5772_v63, %v5264_v39  ;;  %v16221_v39 = vld [vmem:[#allocation33_spill] sm:$0xff]  ;;  %v5810_v38 = vadd.f32 %v5642_v9, %v5263_v20  ;;  %7414 = vmatpush.msrb.mxu3 %v7264_v5  ;;  %v14065_v58 = vpop.f32.mrf.mxu1  ;;  %v5965_v9 = vsel %vm1752_vm5, %v5896_v8, %v5840_v32  ;;  %v14070_v57 = vmax.f32 %v5957_v22, %v9705_v56  ;;  %v7235_v22 = vld [vmem:[#allocation13 + $0xf0] sm:$0xff] }
 0x56e   :  { %v4513_v62 = vadd.f32 %v16222_v10, %v16221_v39  ;;  %v9708_v60 = vrot.slane %v5962_v0, 9  ;;  %v5645_v31 = vadd.f32 %v13990_v47, %v13978_v15  ;;  %v5231_v15 = vadd.f32 %v13730_v11, %v13717_v48  ;;  %v16226_v56 = vld [vmem:[#allocation69_spill] sm:$0xff]  ;;  %7289 = vmatpush.msra.mxu0 %v7235_v22 }
 0x56f   :  { %v5843_v25 = vmax.f32 %v5811_v33, 0.0  ;;  %v9707_v33 = vrot.slane %v5960_v59, 9  ;;  %16223 = vst [vmem:[#allocation76_spill] sm:$0xff] %v14070_v57  ;;  %v14073_v7 = vmax.f32 %v5810_v38, 0.0  ;;  %v4688_v38 = vadd.f32 %v13613_v28, %v16226_v56 }
 0x570   :  { %6454 = vrot.lane.b32.xlu2 %v14038_v42, %s10115_s4  ;;  %v4685_v20 = vadd.f32 %v13764_v27, %v4513_v62  ;;  %v14079_v49 = vmax.f32 %v5962_v0, %v9708_v60  ;;  %v7263_v62 = vld [vmem:[#allocation13 + $0x1d0] sm:$0xff] }
 0x571   :  { %v5712_v55 = vpop.f32.mrf.mxu2  ;;  %v14067_v39 = vrot.slane %v5843_v25, 6  ;;  %v14081_v14 = vmax.f32 %v5960_v59, %v9707_v33  ;;  %v5966_v25 = vrot.slane %v5965_v9, 6  ;;  %v7262_v59 = vld [vmem:[#allocation13 + $0x1c8] sm:$0xff]  ;;  %7332 = vmatpush.msra.mxu1 %v7263_v62  ;;  %v16228_v9 = vld [vmem:[#allocation67_spill] sm:$0xff] }
 0x572   :  { %v5774_v63 = vpop.f32.mrf.mxu3  ;;  %6458 = vrot.lane.b32.xlu1 %v14047_v18, %s10115_s4  ;;  %6456 = vrot.lane.b32.xlu0 %v14049_v24, %s10115_s4  ;;  %16224 = vst [vmem:[#allocation29_spill] sm:$0xff] %v14079_v49  ;;  %v5265_v5 = vadd.f32 %v5098_v26, %v4685_v20 }
 0x573   :  { %v5775_v40 = vadd.f32 %v5774_v63, %v5709_v19  ;;  %v5964_v19 = vrot.slane %v5963_v53, 4  ;;  %16225 = vst [vmem:[#allocation80_spill] sm:$0xff] %v14081_v14  ;;  %v5967_v32 = vsel %vm1744_vm2, %v14073_v7, %v14067_v39  ;;  %v7234_v63 = vld [vmem:[#allocation13 + $0xe8] sm:$0xff]  ;;  %v5968_v53 = vsel %vm1746_vm4, %v14073_v7, %v14067_v39  ;;  %7415 = vmatpush.msrb.mxu3 %v7262_v59  ;;  %v14104_v22 = vpop.f32.mrf.mxu0  ;;  %v7261_v59 = vld [vmem:[#allocation13 + $0x1c0] sm:$0xff] }
 0x574   :  { %v9710_v11 = vrot.slane %v5966_v25, 9  ;;  %v9711_v60 = vrot.slane %v5967_v32, 9  ;;  %v5970_v33 = vsel %vm1749_vm3, %v14073_v7, %v14067_v39  ;;  %7372 = vmatpush.msrb.mxu2 %v7234_v63  ;;  %v5969_v56 = vrot.slane %v5968_v53, 2  ;;  %7333 = vmatpush.msra.mxu1 %v7261_v59  ;;  %v16236_v59 = vld [vmem:[#allocation84_spill] sm:$0xff] }
 0x575   :  { %v5813_v10 = vadd.f32 %v5775_v40, %v5266_v54  ;;  %v9709_v0 = vrot.slane %v5964_v19, 9  ;;  %v5812_v54 = vadd.f32 %v5645_v31, %v5265_v5  ;;  %v5268_v31 = vadd.f32 %v5231_v15, %v4688_v38  ;;  %v7233_v15 = vld [vmem:[#allocation13 + $0xe0] sm:$0xff] }
 0x576   :  { %v14114_v63 = vmax.f32 %v5967_v32, %v9711_v60  ;;  %7290 = vmatpush.msra.mxu0 %v7233_v15 }
 0x577   :  { %v5845_v8 = vmax.f32 %v5813_v10, 0.0  ;;  %v16227_v10 = vld [vmem:[#allocation68_spill] sm:$0xff]  ;;  %v14102_v5 = vmax.f32 %v5964_v19, %v9709_v0 }
 0x578   :  { %6460 = vrot.lane.b32.xlu2 %v14070_v57, %s10115_s4  ;;  %v4516_v20 = vadd.f32 %v16228_v9, %v16227_v10  ;;  %16231 = vst [vmem:[#allocation83_spill] sm:$0xff] %v14114_v63  ;;  %v7232_v0 = vld [vmem:[#allocation13 + $0xd8] sm:$0xff] }
 0x579   :  { %v5715_v40 = vpop.f32.mrf.mxu2  ;;  %v5898_v26 = vrot.slane %v5845_v8, 6  ;;  %16229 = vst [vmem:[#allocation92_spill] sm:$0xff] %v14102_v5  ;;  %v14112_v8 = vmax.f32 %v5966_v25, %v9710_v11  ;;  %v5234_v25 = vadd.f32 %v13737_v4, %v13728_v2  ;;  %7373 = vmatpush.msrb.mxu2 %v7232_v0  ;;  %v16233_v2 = vld [vmem:[#allocation43_spill] sm:$0xff]  ;;  %v16234_v4 = vld [vmem:[#allocation38_spill] sm:$0xff] }
 0x57a   :  { %v5777_v47 = vpop.f32.mrf.mxu3  ;;  %6466 = vrot.lane.b32.xlu1 %v14079_v49, %s10115_s4  ;;  %6464 = vrot.lane.b32.xlu0 %v14081_v14, %s10115_s4  ;;  %v5844_v14 = vmax.f32 %v5812_v54, 0.0  ;;  %v5101_v49 = vadd.f32 %v13668_v21, %v13664_v3  ;;  %v4687_v38 = vadd.f32 %v13764_v27, %v4516_v20  ;;  %v5648_v54 = vadd.f32 %v14030_v50, %v14028_v13  ;;  %v7260_v21 = vld [vmem:[#allocation13 + $0x1b8] sm:$0xff]  ;;  %v16232_v13 = vld [vmem:[#allocation81_spill] sm:$0xff] }
 0x57b   :  { %v5778_v48 = vadd.f32 %v5777_v47, %v5712_v55  ;;  %v14106_v55 = vpop.f32.mrf.mxu1  ;;  %v5971_v47 = vrot.slane %v5970_v33, 4  ;;  %16230 = vst [vmem:[#allocation99_spill] sm:$0xff] %v14112_v8  ;;  %v9712_v3 = vrot.slane %v5969_v56, 9  ;;  %v4690_v50 = vadd.f32 %v13613_v28, %v16232_v13  ;;  %7416 = vmatpush.msrb.mxu3 %v7260_v21  ;;  %v16242_v21 = vld [vmem:[#allocation72_spill] sm:$0xff] }
 0x57c   :  { %v5974_v19 = vsel %vm1744_vm2, %v5844_v14, %v5898_v26  ;;  %v5267_v11 = vadd.f32 %v5101_v49, %v4687_v38  ;;  %v14130_v20 = vsel %vm1749_vm3, %v5844_v14, %v5898_v26  ;;  %v4519_v15 = vadd.f32 %v16234_v4, %v16233_v2  ;;  %v16237_v38 = vld [vmem:[#allocation44_spill] sm:$0xff]  ;;  %v16245_v2 = vld [vmem:[#allocation85_spill] sm:$0xff] }
 0x57d   :  { %v5815_v62 = vadd.f32 %v5778_v48, %v5268_v31  ;;  %v9713_v32 = vrot.slane %v5971_v47, 9  ;;  %v5975_v48 = vsel %vm1746_vm4, %v5844_v14, %v5898_v26  ;;  %v9715_v33 = vrot.slane %v5974_v19, 9 }
 0x57e   :  { %v14133_v31 = vsel %vm1752_vm5, %v5898_v26, %v5844_v14  ;;  %v5814_v49 = vadd.f32 %v5648_v54, %v5267_v11  ;;  %v5976_v0 = vrot.slane %v5975_v48, 2  ;;  %v5270_v13 = vadd.f32 %v5234_v25, %v4690_v50  ;;  %v7231_v54 = vld [vmem:[#allocation13 + $0xd0] sm:$0xff]  ;;  %v14155_v48 = vpop.f32.mrf.mxu0 }
 0x57f   :  { %v5847_v60 = vmax.f32 %v5815_v62, 0.0  ;;  %v14137_v62 = vmax.f32 %v5969_v56, %v9712_v3  ;;  %v14149_v14 = vmax.f32 %v5974_v19, %v9715_v33  ;;  %v5978_v26 = vrot.slane %v14130_v20, 4  ;;  %v16241_v3 = vld [vmem:[#allocation75_spill] sm:$0xff]  ;;  %7291 = vmatpush.msra.mxu0 %v7231_v54 }
 0x580   :  { %6468 = vrot.lane.b32.xlu2 %v14102_v5, %s10115_s4  ;;  %v5980_v56 = vrot.slane %v14133_v31, 6  ;;  %v5104_v25 = vadd.f32 %v16242_v21, %v16241_v3  ;;  %v16243_v11 = vld [vmem:[#allocation71_spill] sm:$0xff]  ;;  %v9716_v20 = vrot.slane %v5976_v0, 9  ;;  %v5654_v3 = vadd.f32 %v14106_v55, %v14104_v22  ;;  %v7258_v22 = vld [vmem:[#allocation13 + $0x1a8] sm:$0xff] }
 0x581   :  { %v5718_v9 = vpop.f32.mrf.mxu2  ;;  %16235 = vst [vmem:[#allocation39_spill] sm:$0xff] %v14137_v62  ;;  %v14145_v5 = vrot.slane %v5847_v60, 6  ;;  %v4692_v19 = vadd.f32 %v13613_v28, %v16243_v11  ;;  %v14162_v60 = vmax.f32 %v5814_v49, 0.0  ;;  %v16244_v31 = vld [vmem:[#allocation79_spill] sm:$0xff]  ;;  %v16247_v11 = vld [vmem:[#allocation48_spill] sm:$0xff]  ;;  %7417 = vmatpush.msrb.mxu3 %v7258_v22 }
 0x582   :  { %v5780_v53 = vpop.f32.mrf.mxu3  ;;  %6470 = vrot.lane.b32.xlu0 %v14112_v8, %s10115_s4  ;;  %6472 = vrot.lane.b32.xlu1 %v14114_v63, %s10115_s4  ;;  %v4522_v63 = vadd.f32 %v16237_v38, %v16236_v59  ;;  %v14143_v8 = vmax.f32 %v5971_v47, %v9713_v32  ;;  %16240 = vst [vmem:[#allocation35_spill] sm:$0xff] %v14149_v14  ;;  %v9717_v38 = vrot.slane %v5978_v26, 9  ;;  %v7255_v22 = vld [vmem:[#allocation13 + $0x190] sm:$0xff] }
 0x583   :  { %v5781_v10 = vadd.f32 %v5780_v53, %v5715_v40  ;;  %v16238_v40 = vld [vmem:[#allocation41_spill] sm:$0xff]  ;;  %v4689_v32 = vadd.f32 %v13764_v27, %v4519_v15  ;;  %v5107_v4 = vadd.f32 %v16245_v2, %v16244_v31  ;;  %v5651_v15 = vadd.f32 %v14065_v58, %v14063_v45  ;;  %v7230_v45 = vld [vmem:[#allocation13 + $0xc8] sm:$0xff] }
 0x584   :  { %v5237_v53 = vadd.f32 %v16238_v40, %v13735_v6  ;;  %16239 = vst [vmem:[#allocation98_spill] sm:$0xff] %v14143_v8  ;;  %v14157_v6 = vpop.f32.mrf.mxu1  ;;  %v14178_v40 = vsel %vm1749_vm3, %v14162_v60, %v14145_v5  ;;  %v14185_v21 = vsel %vm1746_vm4, %v14162_v60, %v14145_v5  ;;  %v7229_v58 = vld [vmem:[#allocation13 + $0xc0] sm:$0xff]  ;;  %v14189_v31 = vmax.f32 %v5976_v0, %v9716_v20  ;;  %v16250_v0 = vld [vmem:[#allocation86_spill] sm:$0xff] }
 0x585   :  { %v5817_v47 = vadd.f32 %v5781_v10, %v5270_v13  ;;  %v4691_v10 = vadd.f32 %v13764_v27, %v4522_v63  ;;  %v9718_v13 = vrot.slane %v5980_v56, 9  ;;  %v5269_v54 = vadd.f32 %v5104_v25, %v4689_v32  ;;  %7374 = vmatpush.msrb.mxu2 %v7230_v45  ;;  %7292 = vmatpush.msra.mxu0 %v7229_v58  ;;  %v7259_v25 = vld [vmem:[#allocation13 + $0x1b0] sm:$0xff]  ;;  %v7228_v32 = vld [vmem:[#allocation13 + $0xb8] sm:$0xff]  ;;  %v16254_v58 = vld [vmem:[#allocation82_spill] sm:$0xff] }
 0x586   :  { %v5272_v59 = vadd.f32 %v5237_v53, %v4692_v19  ;;  %v16246_v53 = vld [vmem:[#allocation40_spill] sm:$0xff]  ;;  %16248 = vst [vmem:[#allocation51_spill] sm:$0xff] %v14189_v31  ;;  %7334 = vmatpush.msra.mxu1 %v7259_v25 }
 0x587   :  { %v5849_v63 = vmax.f32 %v5817_v47, 0.0  ;;  %v4525_v19 = vadd.f32 %v16247_v11, %v16246_v53  ;;  %v5271_v55 = vadd.f32 %v5107_v4, %v4691_v10  ;;  %v5816_v47 = vadd.f32 %v5651_v15, %v5269_v54  ;;  %v7257_v53 = vld [vmem:[#allocation13 + $0x1a0] sm:$0xff]  ;;  %v7226_v54 = vld [vmem:[#allocation13 + $0xa8] sm:$0xff]  ;;  %7375 = vmatpush.msrb.mxu2 %v7228_v32 }
 0x588   :  { %6474 = vrot.lane.b32.xlu2 %v14137_v62, %s10115_s4  ;;  %v14201_v10 = vmax.f32 %v5980_v56, %v9718_v13  ;;  %v5983_v4 = vrot.slane %v14185_v21, 2  ;;  %v7225_v15 = vld [vmem:[#allocation13 + $0xa0] sm:$0xff]  ;;  %7335 = vmatpush.msra.mxu1 %v7257_v53  ;;  %v7224_v21 = vld [vmem:[#allocation13 + $0x98] sm:$0xff] }
 0x589   :  { %v5721_v2 = vpop.f32.mrf.mxu2  ;;  %v5818_v45 = vadd.f32 %v5654_v3, %v5271_v55  ;;  %v5900_v25 = vrot.slane %v5849_v63, 6  ;;  %v7223_v3 = vld [vmem:[#allocation13 + $0x90] sm:$0xff]  ;;  %v16255_v63 = vld [vmem:[#allocation74_spill] sm:$0xff]  ;;  %v5848_v32 = vmax.f32 %v5816_v47, 0.0  ;;  %v5594_v55 = vpop.f32.mrf.mxu0  ;;  %7376 = vmatpush.msrb.mxu2 %v7226_v54  ;;  %v16258_v62 = vld [vmem:[#allocation88_spill] sm:$0xff] }
 0x58a   :  { %v5783_v33 = vpop.f32.mrf.mxu3  ;;  %v14164_v50 = vpop.permute.xlu2 %6400  ;;  %6476 = vrot.lane.b32.xlu0 %v14143_v8, %s10115_s4  ;;  %6480 = vrot.lane.b32.xlu1 %v14149_v14, %s10115_s4  ;;  %v5981_v14 = vsel %vm1744_vm2, %v14162_v60, %v14145_v5  ;;  %v5985_v8 = vrot.slane %v14178_v40, 4  ;;  %16252 = vst [vmem:[#allocation102_spill] sm:$0xff] %v14201_v10  ;;  %v16253_v40 = vld [vmem:[#allocation55_spill] sm:$0xff]  ;;  %v9720_v24 = vrot.slane %v5983_v4, 9  ;;  %v16261_v54 = vld [vmem:[#allocation61_spill] sm:$0xff] }
 0x58b   :  { %v5784_v49 = vadd.f32 %v5783_v33, %v5718_v9  ;;  %v7227_v9 = vld [vmem:[#allocation13 + $0xb0] sm:$0xff]  ;;  %v5240_v11 = vadd.f32 %v16254_v58, %v16253_v40  ;;  %v9719_v13 = vrot.slane %v5981_v14, 9  ;;  %v16256_v40 = vld [vmem:[#allocation37_spill] sm:$0xff]  ;;  %7336 = vmatpush.msra.mxu1 %v7255_v22  ;;  %v14219_v18 = vmax.f32 %v5818_v45, 0.0  ;;  %7377 = vmatpush.msrb.mxu2 %v7224_v21 }
 0x58c   :  { %7293 = vmatpush.msra.mxu0 %v7227_v9  ;;  %v4694_v9 = vadd.f32 %v13613_v28, %v16255_v63  ;;  %v5659_v53 = vpop.f32.mrf.mxu1  ;;  %v4695_v58 = vadd.f32 %v13764_v27, %v16256_v40  ;;  %v14222_v47 = vsel %vm1749_vm3, %v5848_v32, %v5900_v25  ;;  %v7221_v21 = vld [vmem:[#allocation13 + $0x80] sm:$0xff] }
 0x58d   :  { %v5819_v33 = vadd.f32 %v5784_v49, %v5272_v59  ;;  %v16249_v49 = vld [vmem:[#allocation28_spill] sm:$0xff]  ;;  %v14199_v59 = vmax.f32 %v5978_v26, %v9717_v38 }
 0x58e   :  { %v5110_v20 = vadd.f32 %v16250_v0, %v16249_v49  ;;  %v7256_v49 = vld [vmem:[#allocation13 + $0x198] sm:$0xff]  ;;  %v4693_v0 = vadd.f32 %v13764_v27, %v4525_v19  ;;  %7294 = vmatpush.msra.mxu0 %v7225_v15  ;;  %v5274_v63 = vadd.f32 %v5240_v11, %v4694_v9  ;;  %v5657_v27 = vadd.f32 %v14157_v6, %v14155_v48  ;;  %v7253_v9 = vld [vmem:[#allocation13 + $0x180] sm:$0xff] }
 0x58f   :  { %16251 = vst [vmem:[#allocation27_spill] sm:$0xff] %v14199_v59  ;;  %v5851_v26 = vmax.f32 %v5819_v33, 0.0  ;;  %v9721_v33 = vrot.slane %v5985_v8, 9  ;;  %7418 = vmatpush.msrb.mxu3 %v7256_v49  ;;  %v5988_v49 = vsel %vm1744_vm2, %v5848_v32, %v5900_v25  ;;  %v5992_v48 = vrot.slane %v14222_v47, 4  ;;  %7337 = vmatpush.msra.mxu1 %v7253_v9  ;;  %v7220_v47 = vld [vmem:[#allocation13 + $0x78] sm:$0xff] }
 0x590   :  { %6482 = vrot.lane.b32.xlu2 %v14189_v31, %s10115_s4  ;;  %v16257_v31 = vld [vmem:[#allocation87_spill] sm:$0xff]  ;;  %7295 = vmatpush.msra.mxu0 %v7223_v3  ;;  %v14248_v3 = vsel %vm1752_vm5, %v5900_v25, %v5848_v32 }
 0x591   :  { %v14229_v15 = vrot.slane %v5851_v26, 6  ;;  %v14235_v22 = vmax.f32 %v5985_v8, %v9721_v33  ;;  %v16264_v26 = vld [vmem:[#allocation42_spill] sm:$0xff]  ;;  %v5724_v8 = vpop.f32.mrf.mxu2 }
 0x592   :  { %v5786_v38 = vpop.f32.mrf.mxu3  ;;  %v14207_v56 = vpop.permute.xlu2 %6406  ;;  %6484 = vrot.lane.b32.xlu0 %v14199_v59, %s10115_s4  ;;  %6486 = vrot.lane.b32.xlu1 %v14201_v10, %s10115_s4  ;;  %v5273_v59 = vadd.f32 %v5110_v20, %v4693_v0  ;;  %v5113_v10 = vadd.f32 %v16258_v62, %v16257_v31  ;;  %v5660_v20 = vadd.f32 %v5659_v53, %v5594_v55  ;;  %v16260_v31 = vld [vmem:[#allocation73_spill] sm:$0xff]  ;;  %v6528_v0 = vrot.slane %v14164_v50, 2  ;;  %v7222_v55 = vld [vmem:[#allocation13 + $0x88] sm:$0xff] }
 0x593   :  { %v5787_v19 = vadd.f32 %v5786_v38, %v5721_v2  ;;  %v14225_v2 = vsel %vm1746_vm4, %v5848_v32, %v5900_v25  ;;  %v14231_v62 = vmax.f32 %v5981_v14, %v9719_v13  ;;  %v5243_v45 = vadd.f32 %v16261_v54, %v16260_v31  ;;  %16262 = vst [vmem:[#allocation78_spill] sm:$0xff] %v14235_v22  ;;  %v7254_v25 = vld [vmem:[#allocation13 + $0x188] sm:$0xff]  ;;  %v7219_v32 = vld [vmem:[#allocation13 + $0x70] sm:$0xff] }
 0x594   :  { %v14241_v38 = vmax.f32 %v5983_v4, %v9720_v24  ;;  %v5990_v14 = vrot.slane %v14225_v2, 2  ;;  %v5275_v6 = vadd.f32 %v5113_v10, %v4695_v58  ;;  %v4696_v13 = vadd.f32 %v13613_v28, %v16264_v26  ;;  %7296 = vmatpush.msra.mxu0 %v7221_v21  ;;  %v7252_v2 = vld [vmem:[#allocation13 + $0x178] sm:$0xff]  ;;  %7378 = vmatpush.msrb.mxu2 %v7222_v55  ;;  %v16266_v21 = vld [vmem:[#allocation57_spill] sm:$0xff] }
 0x595   :  { %16259 = vst [vmem:[#allocation62_spill] sm:$0xff] %v14231_v62  ;;  %v5821_v11 = vadd.f32 %v5787_v19, %v5274_v63  ;;  %v5820_v53 = vadd.f32 %v5657_v27, %v5273_v59  ;;  %v6531_v24 = vrot.slane %v14207_v56, 2  ;;  %v9723_v28 = vrot.slane %v5988_v49, 9  ;;  %v7251_v59 = vld [vmem:[#allocation13 + $0x170] sm:$0xff]  ;;  %7419 = vmatpush.msrb.mxu3 %v7254_v25 }
 0x596   :  { %16263 = vst [vmem:[#allocation101_spill] sm:$0xff] %v14241_v38  ;;  %v14260_v10 = vsel %vm1746_vm4, %v14219_v18, %v14229_v15  ;;  %v5822_v33 = vadd.f32 %v5660_v20, %v5275_v6  ;;  %v5276_v40 = vadd.f32 %v5243_v45, %v4696_v13  ;;  %v6593_v27 = vsel %vm6592_vm6, %v14164_v50, %v6528_v0  ;;  %v7250_v13 = vld [vmem:[#allocation13 + $0x168] sm:$0xff] }
 0x597   :  { %v5853_v58 = vmax.f32 %v5821_v11, 0.0  ;;  %v9725_v31 = vrot.slane %v5992_v48, 9  ;;  %v9724_v54 = vrot.slane %v5990_v14, 9  ;;  %v5994_v26 = vrot.slane %v14248_v3, 6  ;;  %7297 = vmatpush.msra.mxu0 %v7219_v32  ;;  %7338 = vmatpush.msra.mxu1 %v7251_v59  ;;  %v7218_v11 = vld [vmem:[#allocation13 + $0x68] sm:$0xff] }
 0x598   :  { %6488 = vrot.lane.b32.xlu2 %v14231_v62, %s10115_s4  ;;  %v5997_v20 = vrot.slane %v14260_v10, 2  ;;  %v5995_v45 = vsel %vm1744_vm2, %v14219_v18, %v14229_v15  ;;  %v14269_v6 = vmax.f32 %v5820_v53, 0.0  ;;  %v6596_v50 = vsel %vm6592_vm6, %v14207_v56, %v6531_v24  ;;  %7379 = vmatpush.msrb.mxu2 %v7220_v47  ;;  %v7216_v10 = vld [vmem:[#allocation13 + $0x58] sm:$0xff]  ;;  %v7214_v59 = vld [vmem:[#allocation13 + $0x48] sm:$0xff]  ;;  %v7211_v47 = vld [vmem:[#allocation13 + $0x30] sm:$0xff] }
 0x599   :  { %v14273_v0 = vmax.f32 %v5988_v49, %v9723_v28  ;;  %7420 = vmatpush.msrb.mxu3 %v7252_v2  ;;  %v14275_v3 = vmax.f32 %v5822_v33, 0.0  ;;  %v14278_v9 = vmax.f32 %v16266_v21, %v6593_v27  ;;  %v14280_v55 = vrot.slane %v5853_v58, 6  ;;  %v7247_v28 = vld [vmem:[#allocation13 + $0x150] sm:$0xff]  ;;  %v7212_v21 = vld [vmem:[#allocation13 + $0x38] sm:$0xff] }
 0x59a   :  { %v5789_v4 = vpop.f32.mrf.mxu3  ;;  %v14251_v19 = vpop.permute.xlu2 %6412  ;;  %6492 = vrot.lane.b32.xlu1 %v14235_v22, %s10115_s4  ;;  %6490 = vrot.lane.b32.xlu0 %v14241_v38, %s10115_s4  ;;  %v7217_v38 = vld [vmem:[#allocation13 + $0x60] sm:$0xff]  ;;  %v14284_v56 = vmax.f32 %v5992_v48, %v9725_v31  ;;  %v14286_v49 = vmax.f32 %v5990_v14, %v9724_v54  ;;  %v9726_v53 = vrot.slane %v5994_v26, 9  ;;  %v9727_v24 = vrot.slane %v5995_v45, 9  ;;  %v7244_v33 = vld [vmem:[#allocation13 + $0x138] sm:$0xff] }
 0x59b   :  { %v5790_v63 = vadd.f32 %v5789_v4, %v5724_v8  ;;  %v7249_v22 = vld [vmem:[#allocation13 + $0x160] sm:$0xff]  ;;  %16265 = vst [vmem:[#allocation36_spill] sm:$0xff] %v14273_v0  ;;  %v7215_v8 = vld [vmem:[#allocation13 + $0x50] sm:$0xff]  ;;  %7298 = vmatpush.msra.mxu0 %v7217_v38  ;;  %7380 = vmatpush.msrb.mxu2 %v7218_v11  ;;  %v14289_v25 = vmax.f32 %v13823_v30, %v6596_v50  ;;  %v7248_v38 = vld [vmem:[#allocation13 + $0x158] sm:$0xff]  ;;  %v6534_v27 = vrot.slane %v14251_v19, 2 }
 0x59c   :  { %7339 = vmatpush.msra.mxu1 %v7249_v22  ;;  %16267 = vst [vmem:[#allocation54_spill] sm:$0xff] %v14284_v56  ;;  %v14296_v22 = vsel %vm1749_vm3, %v14219_v18, %v14229_v15  ;;  %7421 = vmatpush.msrb.mxu3 %v7250_v13  ;;  %v7213_v48 = vld [vmem:[#allocation13 + $0x40] sm:$0xff]  ;;  %v14309_v58 = vsel %vm1746_vm4, %v14269_v6, %v14280_v55 }
 0x59d   :  { %v5823_v62 = vadd.f32 %v5790_v63, %v5276_v40  ;;  %16268 = vst [vmem:[#allocation58_spill] sm:$0xff] %v14286_v49  ;;  %7299 = vmatpush.msra.mxu0 %v7215_v8  ;;  %v7245_v30 = vld [vmem:[#allocation13 + $0x140] sm:$0xff]  ;;  %7381 = vmatpush.msrb.mxu2 %v7216_v10  ;;  %v7246_v63 = vld [vmem:[#allocation13 + $0x148] sm:$0xff]  ;;  %v14317_v11 = vmax.f32 %v5994_v26, %v9726_v53  ;;  %v15739_v13 = vrot.slane %v14296_v22, 4  ;;  %v7243_v8 = vld [vmem:[#allocation13 + $0x130] sm:$0xff]  ;;  %v15745_v26 = vrot.slane %v14309_v58, 2 }
 0x59e   :  { %7340 = vmatpush.msra.mxu1 %v7247_v28  ;;  %v14319_v50 = vmax.f32 %v5995_v45, %v9727_v24  ;;  %7422 = vmatpush.msrb.mxu3 %v7248_v38  ;;  %v14329_v45 = vsel %vm1744_vm2, %v14269_v6, %v14280_v55  ;;  %v7209_v53 = vld [vmem:[#allocation13 + $0x20] sm:$0xff]  ;;  %v16272_v38 = vlaneseq }
 0x59f   :  { %v5855_v4 = vmax.f32 %v5823_v62, 0.0  ;;  %v9728_v62 = vrot.slane %v5997_v20, 9  ;;  %16269 = vst [vmem:[#allocation103_spill] sm:$0xff] %v14317_v11  ;;  %7300 = vmatpush.msra.mxu0 %v7213_v48  ;;  %7382 = vmatpush.msrb.mxu2 %v7214_v59  ;;  %v7241_v24 = vld [vmem:[#allocation13 + $0x120] sm:$0xff]  ;;  %v14346_v59 = vsel %vm1749_vm3, %v14269_v6, %v14280_v55 }
 0x5a0   :  { %6496 = vrot.lane.b32.xlu2 %v14273_v0, %s10115_s4  ;;  %16270 = vst [vmem:[#allocation34_spill] sm:$0xff] %v14319_v50  ;;  %7341 = vmatpush.msra.mxu1 %v7245_v30  ;;  %vm14332_vm14 = vcmp.lt.s32.totalorder %v16272_v38, 240  ;;  %v16276_v38 = vld [vmem:[#allocation30_spill] sm:$0xff]  ;;  %v16278_v0 = vrot.slane %v14296_v22, 4 }
 0x5a1   :  { %v14291_v32 = vrot.slane %v5855_v4, 6  ;;  %v14323_v40 = vmax.f32 %v5997_v20, %v9728_v62  ;;  %7423 = vmatpush.msrb.mxu3 %v7246_v63  ;;  %7301 = vmatpush.msra.mxu0 %v7211_v47  ;;  %v16275_v63 = vmov 0.0   ;;  %v6599_v47 = vsel %vm6592_vm6, %v14251_v19, %v6534_v27  ;;  %v7207_v27 = vld [vmem:[#allocation13 + $0x10] sm:$0xff] }
 0x5a2   :  { %v14298_v14 = vpop.permute.xlu2 %6420  ;;  %6500 = vrot.lane.b32.xlu1 %v14284_v56, %s10115_s4  ;;  %6498 = vrot.lane.b32.xlu0 %v14286_v49, %s10115_s4  ;;  %6787 = vst.msk [vmem:[#allocation4] ss:$8 sm:$0x3] %vm14332_vm14, %v16275_v63  ;;  %v14365_v19 = vsel %vm1752_vm5, %v14280_v55, %v14269_v6  ;;  %v9731_v6 = vrot.slane %v14329_v45, 9  ;;  %v6006_v55 = vrot.slane %v14346_v59, 4  ;;  %v7206_v49 = vld [vmem:[#allocation13 + $0x8] sm:$0xff] }
 0x5a3   :  { %v14314_v2 = vsel %vm1744_vm2, %v14275_v3, %v14291_v32  ;;  %16271 = vst [vmem:[#allocation66_spill] sm:$0xff] %v14323_v40  ;;  %v14339_v20 = vsel %vm1746_vm4, %v14275_v3, %v14291_v32  ;;  %7342 = vmatpush.msra.mxu1 %v7243_v8  ;;  %7383 = vmatpush.msrb.mxu2 %v7212_v21  ;;  %v7242_v8 = vld [vmem:[#allocation13 + $0x128] sm:$0xff]  ;;  %v6008_v59 = vrot.slane %v14365_v19, 6  ;;  %v16280_v19 = vperm.slane %v14278_v9, 2 }
 0x5a4   :  { %v6405_v31 = vpop.permute.xlu1 %6404  ;;  %v6403_v54 = vpop.permute.xlu0 %6402  ;;  %7424 = vmatpush.msrb.mxu3 %v7244_v33  ;;  %6790 = vst.msk [vmem:[#allocation4 + $0x20] ss:$8 sm:$0x3] %vm14332_vm14, %v16275_v63  ;;  %v16277_v21 = vld [vmem:[#allocation46_spill] sm:$0xff]  ;;  %7302 = vmatpush.msra.mxu0 %v7209_v53  ;;  %v14373_v33 = vsel %vm1749_vm3, %v14275_v3, %v14291_v32  ;;  %v9733_v42 = vrot.slane %v6006_v55, 9 }
 0x5a5   :  { %v6530_v28 = vrot.slane %v6405_v31, 2  ;;  %v6529_v10 = vrot.slane %v6403_v54, 2  ;;  %7343 = vmatpush.msra.mxu1 %v7241_v24  ;;  %6793 = vst.msk [vmem:[#allocation4 + $0x40] ss:$8 sm:$0x3] %vm14332_vm14, %v16275_v63  ;;  %v7208_v24 = vld [vmem:[#allocation13 + $0x18] sm:$0xff] }
 0x5a6   :  { %7425 = vmatpush.msrb.mxu3 %v7242_v8  ;;  %6796 = vst.msk [vmem:[#allocation4 + $0x60] ss:$8 sm:$0x3] %vm14332_vm14, %v16275_v63  ;;  %7303 = vmatpush.msra.mxu0 %v7207_v27  ;;  %v7238_v56 = vld [vmem:[#allocation13 + $0x108] sm:$0xff] }
 0x5a7   :  { %v6595_v62 = vsel %vm6592_vm6, %v6405_v31, %v6530_v28  ;;  %v6594_v30 = vsel %vm6592_vm6, %v6403_v54, %v6529_v10  ;;  %v9729_v31 = vrot.slane %v15739_v13, 9  ;;  %v7210_v54 = vld [vmem:[#allocation13 + $0x28] sm:$0xff]  ;;  %v7239_v10 = vld [vmem:[#allocation13 + $0x110] sm:$0xff]  ;;  %v7237_v13 = vld [vmem:[#allocation13 + $0x100] sm:$0xff] }
 0x5a8   :  { %v6722_v4 = vmax.f32 %v16276_v38, %v6594_v30  ;;  %6502 = vrot.lane.b32.xlu2 %v14317_v11, %s10115_s4  ;;  %v6723_v28 = vmax.f32 %v16277_v21, %v6595_v62  ;;  %v7240_v38 = vld [vmem:[#allocation13 + $0x118] sm:$0xff]  ;;  %v9732_v21 = vrot.slane %v15745_v26, 9  ;;  %7384 = vmatpush.msrb.mxu2 %v7210_v54  ;;  %6799 = vst.msk [vmem:[#allocation4 + $0x80] ss:$8 sm:$0x3] %vm14332_vm14, %v16275_v63 }
 0x5a9   :  { %7344 = vmatpush.msra.mxu1 %v7239_v10  ;;  %v14397_v57 = vmax.f32 %v16278_v0, %v9729_v31  ;;  %7426 = vmatpush.msrb.mxu3 %v7240_v38  ;;  %v6538_v0 = vrot.slane %v14298_v14, 2  ;;  %v14409_v31 = vmax.f32 %v14329_v45, %v9731_v6  ;;  %6802 = vst.msk [vmem:[#allocation4 + $0xa0] ss:$8 sm:$0x3] %vm14332_vm14, %v16275_v63  ;;  %v16283_v45 = vld [vmem:[#allocation90_spill] sm:$0xff] }
 0x5aa   :  { %v6900_v30 = vperm.slane %v6722_v4, 0  ;;  %v6901_v62 = vperm.slane %v6722_v4, 2  ;;  %v14375_v53 = vpop.permute.xlu2 %6426  ;;  %6506 = vrot.lane.b32.xlu1 %v14323_v40, %s10115_s4  ;;  %6504 = vrot.lane.b32.xlu0 %v14319_v50, %s10115_s4  ;;  %v7205_v4 = vld [vmem:[#allocation13] sm:$0xff]  ;;  %v14389_v40 = vmax.f32 %v13849_v46, %v6599_v47  ;;  %v6902_v54 = vperm.slane %v6723_v28, 0 }
 0x5ab   :  { %v6903_v8 = vperm.slane %v6723_v28, 2  ;;  %7385 = vmatpush.msrb.mxu2 %v7208_v24  ;;  %v16279_v46 = vperm.slane %v14278_v9, 0  ;;  %7304 = vmatpush.msra.mxu0 %v7205_v4  ;;  %v6905_v28 = vperm.slane %v14289_v25, 2  ;;  %v16281_v9 = vld [vmem:[#allocation97_spill] sm:$0xff]  ;;  %v14439_v4 = vmax.f32 %v6006_v55, %v9733_v42 }
 0x5ac   :  { %v6411_v50 = vpop.permute.xlu1 %6410  ;;  %v6409_v11 = vpop.permute.xlu0 %6408  ;;  %v7032_v27 = vsel %vm3944_vm8, %v6901_v62, %v16280_v19  ;;  %7345 = vmatpush.msra.mxu1 %v7237_v13  ;;  %7427 = vmatpush.msrb.mxu3 %v7238_v56  ;;  %v16282_v13 = vrot.slane %v14309_v58, 2  ;;  %6805 = vst.msk [vmem:[#allocation4 + $0xc0] ss:$8 sm:$0x3] %vm14332_vm14, %v16275_v63  ;;  %v6910_v56 = vperm.slane %v14389_v40, 0  ;;  %v6911_v58 = vperm.slane %v14389_v40, 2 }
 0x5ad   :  { %v6533_v26 = vrot.slane %v6411_v50, 2  ;;  %v7026_v47 = vsel %vm3944_vm8, %v6900_v30, %v16279_v46  ;;  %v6532_v10 = vrot.slane %v6409_v11, 2  ;;  %7386 = vmatpush.msrb.mxu2 %v7206_v49  ;;  %6808 = vst.msk [vmem:[#allocation4 + $0xe0] ss:$8 sm:$0x3] %vm14332_vm14, %v16275_v63  ;;  %v9735_v46 = vrot.slane %v14314_v2, 9 }
 0x5ae   :  { %v14420_v24 = vmax.f32 %v16282_v13, %v9732_v21  ;;  %v7027_v49 = vsel %vm3946_vm9, %v6902_v54, %v7026_v47  ;;  %6811 = vst.msk [vmem:[#allocation4 + $0x11] ss:$8 sm:$0x3] %vm14332_vm14, %v16275_v63  ;;  %v6603_v54 = vsel %vm6592_vm6, %v14298_v14, %v6538_v0  ;;  %v16284_v47 = vperm.slane %v14289_v25, 0  ;;  %v16285_v14 = vld [vmem:[#allocation94_spill] sm:$0xff]  ;;  %v16286_v0 = vld [vmem:[#allocation89_spill] sm:$0xff] }
 0x5af   :  { %v6598_v22 = vsel %vm6592_vm6, %v6411_v50, %v6533_v26  ;;  %v6597_v62 = vsel %vm6592_vm6, %v6409_v11, %v6532_v10  ;;  %v9734_v50 = vrot.slane %v6008_v59, 9  ;;  %v7033_v26 = vsel %vm3946_vm9, %v6903_v8, %v7032_v27  ;;  %6814 = vst.msk [vmem:[#allocation4 + $0x31] ss:$8 sm:$0x3] %vm14332_vm14, %v16275_v63 }
 0x5b0   :  { %v6726_v30 = vmax.f32 %v16281_v9, %v6598_v22  ;;  %6508 = vrot.lane.b32.xlu2 %v14397_v57, %s10115_s4  ;;  %v6725_v11 = vmax.f32 %v16283_v45, %v6597_v62  ;;  %v7028_v42 = vsel %vm3948_vm10, %v16284_v47, %v7027_v49  ;;  %v7034_v55 = vsel %vm3948_vm10, %v6905_v28, %v7033_v26 }
 0x5b1   :  { %v14454_v10 = vmax.f32 %v6008_v59, %v9734_v50  ;;  %6817 = vst.msk [vmem:[#allocation4 + $0x51] ss:$8 sm:$0x3] %vm14332_vm14, %v16275_v63  ;;  %v5916_v22 = vsel %vm1752_vm5, %v16286_v0, %v16285_v14  ;;  %v6011_v59 = vrot.slane %v14339_v20, 2  ;;  %v6013_v50 = vrot.slane %v14373_v33, 4 }
 0x5b2   :  { %v6908_v6 = vperm.slane %v6726_v30, 0  ;;  %v6909_v38 = vperm.slane %v6726_v30, 2  ;;  %v14433_v21 = vpop.permute.xlu2 %6434  ;;  %6514 = vrot.lane.b32.xlu1 %v14420_v24, %s10115_s4  ;;  %6512 = vrot.lane.b32.xlu0 %v14409_v31, %s10115_s4  ;;  %v6906_v40 = vperm.slane %v6725_v11, 0  ;;  %v6907_v8 = vperm.slane %v6725_v11, 2 }
 0x5b3   :  { %6820 = vst.msk [vmem:[#allocation4 + $0x71] ss:$8 sm:$0x3] %vm14332_vm14, %v16275_v63  ;;  %v5917_v20 = vrot.slane %v5916_v22, 6  ;;  %v14485_v33 = vmax.f32 %v14314_v2, %v9735_v46  ;;  %v6731_v2 = vmax.f32 %v13886_v1, %v6603_v54  ;;  %v5944_v14 = vsel %vm1752_vm5, %v13924_v41, %v13931_v23 }
 0x5b4   :  { %v6419_v19 = vpop.permute.xlu1 %6418  ;;  %v6417_v27 = vpop.permute.xlu0 %6416  ;;  %v7029_v9 = vsel %vm3950_vm11, %v6906_v40, %v7028_v42  ;;  %v7035_v25 = vsel %vm3950_vm11, %v6907_v8, %v7034_v55  ;;  %6823 = vst.msk [vmem:[#allocation4 + $0x91] ss:$8 sm:$0x3] %vm14332_vm14, %v16275_v63  ;;  %v16287_v55 = vld [vmem:[#allocation93_spill] sm:$0xff]  ;;  %v5945_v23 = vrot.slane %v5944_v14, 6 }
 0x5b5   :  { %v6537_v30 = vrot.slane %v6419_v19, 2  ;;  %v7030_v28 = vsel %vm3952_vm12, %v6908_v6, %v7029_v9  ;;  %v7036_v62 = vsel %vm3952_vm12, %v6909_v38, %v7035_v25  ;;  %v6536_v13 = vrot.slane %v6417_v27, 2  ;;  %6826 = vst.msk [vmem:[#allocation4 + $0xb1] ss:$8 sm:$0x3] %vm14332_vm14, %v16275_v63 }
 0x5b6   :  { %v7031_v49 = vsel %vm3954_vm13, %v6910_v56, %v7030_v28  ;;  %v7037_v26 = vsel %vm3954_vm13, %v6911_v58, %v7036_v62  ;;  %v9736_v58 = vrot.slane %v6011_v59, 9  ;;  %v6541_v38 = vrot.slane %v14375_v53, 2  ;;  %6829 = vst.msk [vmem:[#allocation4 + $0xd1] ss:$8 sm:$0x3] %vm14332_vm14, %v16275_v63 }
 0x5b7   :  { %v6602_v45 = vsel %vm6592_vm6, %v6419_v19, %v6537_v30  ;;  %7154 = vst [vmem:[#allocation4] sm:$0xfe] %v7031_v49  ;;  %v6601_v6 = vsel %vm6592_vm6, %v6417_v27, %v6536_v13  ;;  %v16288_v19 = vld [vmem:[#allocation91_spill] sm:$0xff]  ;;  %v5958_v25 = vsel %vm1752_vm5, %v13992_v43, %v13995_v29  ;;  %v6918_v13 = vperm.slane %v6731_v2, 0  ;;  %v16289_v49 = vld [vmem:[#allocation49_spill] sm:$0xff]  ;;  %v16290_v43 = vld [vmem:[#allocation100_spill] sm:$0xff] }
 0x5b8   :  { %v6730_v11 = vmax.f32 %v13855_v34, %v6602_v45  ;;  %6516 = vrot.lane.b32.xlu2 %v14439_v4, %s10115_s4  ;;  %7156 = vst.msk [vmem:[#allocation4 + $0x8] sm:$0xfe] %vm7155_vm7, %v7037_v26  ;;  %v6729_v56 = vmax.f32 %v13857_v16, %v6601_v6  ;;  %v9737_v34 = vrot.slane %v6013_v50, 9  ;;  %v9682_v16 = vrot.slane %v5917_v20, 9 }
 0x5b9   :  { %6832 = vst.msk [vmem:[#allocation4 + $0xf1] ss:$8 sm:$0x3] %vm14332_vm14, %v16275_v63  ;;  %v5930_v27 = vsel %vm1752_vm5, %v16288_v19, %v16287_v55  ;;  %v14509_v54 = vmax.f32 %v6011_v59, %v9736_v58  ;;  %v6606_v48 = vsel %vm6592_vm6, %v14375_v53, %v6541_v38  ;;  %v6919_v6 = vperm.slane %v6731_v2, 2 }
 0x5ba   :  { %v14490_v40 = vpop.permute.xlu2 %6440  ;;  %6518 = vrot.lane.b32.xlu0 %v14454_v10, %s10115_s4  ;;  %6520 = vrot.lane.b32.xlu1 %v14485_v33, %s10115_s4  ;;  %v6916_v8 = vperm.slane %v6730_v11, 0  ;;  %v6914_v46 = vperm.slane %v6729_v56, 0  ;;  %v6917_v0 = vperm.slane %v6730_v11, 2  ;;  %v6915_v22 = vperm.slane %v6729_v56, 2 }
 0x5bb   :  { %v14513_v9 = vmax.f32 %v6013_v50, %v9737_v34  ;;  %v14519_v62 = vmax.f32 %v5917_v20, %v9682_v16  ;;  %v5931_v41 = vrot.slane %v5930_v27, 6  ;;  %v5959_v20 = vrot.slane %v5958_v25, 6 }
 0x5bc   :  { %v6423_v47 = vpop.permute.xlu0 %6422  ;;  %v6425_v42 = vpop.permute.xlu1 %6424  ;;  %v7038_v59 = vsel %vm3944_vm8, %v6916_v8, %v6914_v46  ;;  %v7044_v45 = vsel %vm3944_vm8, %v6917_v0, %v6915_v22  ;;  %v14531_v11 = vsel %vm1752_vm5, %v14291_v32, %v14275_v3  ;;  %v6734_v56 = vmax.f32 %v13912_v35, %v6606_v48 }
 0x5bd   :  { %v6539_v1 = vrot.slane %v6423_v47, 2  ;;  %v6540_v63 = vrot.slane %v6425_v42, 2  ;;  %v9690_v16 = vrot.slane %v5931_v41, 9  ;;  %v9698_v8 = vrot.slane %v5945_v23, 9 }
 0x5be   :  { %v7189_v28 = vld [vmem:[#allocation4] sm:$0xff]  ;;  %v5972_v3 = vsel %vm1752_vm5, %v14067_v39, %v14073_v7  ;;  %v5986_v35 = vsel %vm1752_vm5, %v14145_v5, %v14162_v60  ;;  %v7039_v32 = vsel %vm3946_vm9, %v6918_v13, %v7038_v59  ;;  %v7045_v2 = vsel %vm3946_vm9, %v6919_v6, %v7044_v45 }
 0x5bf   :  { %v6604_v30 = vsel %vm6592_vm6, %v6423_v47, %v6539_v1  ;;  %v6605_v53 = vsel %vm6592_vm6, %v6425_v42, %v6540_v63  ;;  %7305 = vmatmul.f32.vlgmr.msra.gmra.mxu0 %v7189_v28  ;;  %v7190_v50 = vld [vmem:[#allocation4 + $0x8] sm:$0xff]  ;;  %7387 = vmatmul.f32.vlgmr.msrb.gmra.mxu2 %v7189_v28  ;;  %v9706_v0 = vrot.slane %v5959_v20, 9  ;;  %v6924_v22 = vperm.slane %v6734_v56, 0 }
 0x5c0   :  { %v6732_v26 = vmax.f32 %v16289_v49, %v6604_v30  ;;  %v6733_v29 = vmax.f32 %v16290_v43, %v6605_v53  ;;  %9739 = vmatmul.msk.f32.vlgmr.msra.gmra.mxu1 %vm6592_vm6, %v7190_v50  ;;  %9747 = vmatmul.msk.f32.vlgmr.msrb.gmra.mxu3 %vm6592_vm6, %v7190_v50  ;;  %v6545_v39 = vrot.slane %v14433_v21, 2  ;;  %v6000_v5 = vsel %vm1752_vm5, %v14229_v15, %v14219_v18 }
 0x5c1   :  { %6522 = vrot.lane.b32.xlu2 %v14509_v54, %s10115_s4  ;;  %v14557_v1 = vmax.f32 %v5931_v41, %v9690_v16  ;;  %v5973_v48 = vrot.slane %v5972_v3, 6  ;;  %v5987_v63 = vrot.slane %v5986_v35, 6  ;;  %v14562_v13 = vmax.f32 %v5945_v23, %v9698_v8 }
 0x5c2   :  { %v6920_v58 = vperm.slane %v6732_v26, 0  ;;  %v6921_v38 = vperm.slane %v6732_v26, 2  ;;  %v14536_v34 = vpop.permute.xlu2 %6448  ;;  %6524 = vrot.lane.b32.xlu0 %v14513_v9, %s10115_s4  ;;  %6414 = vrot.lane.b32.xlu1 %v14519_v62, %s10115_s4  ;;  %v6922_v46 = vperm.slane %v6733_v29, 0  ;;  %v6923_v47 = vperm.slane %v6733_v29, 2 }
 0x5c3   :  { %v6925_v59 = vperm.slane %v6734_v56, 2  ;;  %v14565_v26 = vmax.f32 %v5959_v20, %v9706_v0  ;;  %v6001_v18 = vrot.slane %v6000_v5, 6  ;;  %v6610_v15 = vsel %vm6592_vm6, %v14433_v21, %v6545_v39 }
 0x5c4   :  { %v6429_v42 = vpop.permute.xlu0 %6428  ;;  %v6433_v55 = vpop.permute.xlu1 %6432  ;;  %v7040_v19 = vsel %vm3948_vm10, %v6920_v58, %v7039_v32  ;;  %v7046_v27 = vsel %vm3948_vm10, %v6921_v38, %v7045_v2  ;;  %v9714_v45 = vrot.slane %v5973_v48, 9  ;;  %v9722_v43 = vrot.slane %v5987_v63, 9 }
 0x5c5   :  { %v6542_v14 = vrot.slane %v6429_v42, 2  ;;  %v6544_v7 = vrot.slane %v6433_v55, 2  ;;  %v7041_v25 = vsel %vm3950_vm11, %v6922_v46, %v7040_v19  ;;  %v7047_v30 = vsel %vm3950_vm11, %v6923_v47, %v7046_v27 }
 0x5c6   :  { %v7048_v23 = vsel %vm3952_vm12, %v6925_v59, %v7047_v30  ;;  %v9730_v38 = vrot.slane %v6001_v18, 9  ;;  %v6738_v16 = vmax.f32 %v13946_v17, %v6610_v15  ;;  %v6548_v3 = vrot.slane %v14490_v40, 2  ;;  %v16291_v17 = vld [vmem:[#allocation50_spill] sm:$0xff] }
 0x5c7   :  { %v6607_v60 = vsel %vm6592_vm6, %v6429_v42, %v6542_v14  ;;  %v6609_v49 = vsel %vm6592_vm6, %v6433_v55, %v6544_v7  ;;  %v14586_v32 = vmax.f32 %v5973_v48, %v9714_v45  ;;  %v14588_v2 = vmax.f32 %v5987_v63, %v9722_v43 }
 0x5c8   :  { %v6735_v28 = vmax.f32 %v13918_v12, %v6607_v60  ;;  %v7042_v12 = vsel %vm3952_vm12, %v6924_v22, %v7041_v25  ;;  %v6737_v20 = vmax.f32 %v13920_v51, %v6609_v49  ;;  %v6015_v42 = vrot.slane %v14531_v11, 6 }
 0x5c9   :  { %6430 = vrot.lane.b32.xlu2 %v14557_v1, %s10115_s4  ;;  %v14594_v27 = vmax.f32 %v6001_v18, %v9730_v38  ;;  %v6932_v14 = vperm.slane %v6738_v16, 0  ;;  %v6613_v11 = vsel %vm6592_vm6, %v14490_v40, %v6548_v3  ;;  %vm7158_vm14 = vcmask 909312  }
 0x5ca   :  { %v6926_v41 = vperm.slane %v6735_v28, 0  ;;  %v6927_v53 = vperm.slane %v6735_v28, 2  ;;  %v14571_v50 = vpop.permute.xlu2 %6454  ;;  %6446 = vrot.lane.b32.xlu0 %v14562_v13, %s10115_s4  ;;  %6462 = vrot.lane.b32.xlu1 %v14565_v26, %s10115_s4  ;;  %v6930_v46 = vperm.slane %v6737_v20, 0  ;;  %v6931_v55 = vperm.slane %v6737_v20, 2  ;;  %v16293_v20 = vld [vmem:[#allocation96_spill] sm:$0xff] }
 0x5cb   :  { %v9738_v63 = vrot.slane %v6015_v42, 9  ;;  %v6741_v18 = vmax.f32 %v13973_v52, %v6613_v11  ;;  %v6555_v11 = vrot.slane %v14571_v50, 2 }
 0x5cc   :  { %v7043_v21 = vsel %vm3954_vm13, %v6926_v41, %v7042_v12  ;;  %v7049_v29 = vsel %vm3954_vm13, %v6927_v53, %v7048_v23  ;;  %v6437_v6 = vpop.permute.xlu0 %6436  ;;  %v6439_v56 = vpop.permute.xlu1 %6438  ;;  %v7050_v7 = vsel %vm3944_vm8, %v6932_v14, %v6930_v46  ;;  %v16292_v12 = vld [vmem:[#allocation95_spill] sm:$0xff] }
 0x5cd   :  { %7160 = vst [vmem:[#allocation4 + $0x20] sm:$0xfe] %v7043_v21  ;;  %v6546_v58 = vrot.slane %v6437_v6, 2  ;;  %v6547_v8 = vrot.slane %v6439_v56, 2  ;;  %v14616_v43 = vmax.f32 %v6015_v42, %v9738_v63  ;;  %v6552_v21 = vrot.slane %v14536_v34, 2 }
 0x5ce   :  { %7161 = vst.msk [vmem:[#allocation4 + $0x28] sm:$0xfe] %vm7155_vm7, %v7049_v29 }
 0x5cf   :  { %v6611_v35 = vsel %vm6592_vm6, %v6437_v6, %v6546_v58  ;;  %v6612_v47 = vsel %vm6592_vm6, %v6439_v56, %v6547_v8  ;;  %v6938_v56 = vperm.slane %v6741_v18, 0  ;;  %v6939_v58 = vperm.slane %v6741_v18, 2 }
 0x5d0   :  { %v6739_v51 = vmax.f32 %v13957_v44, %v6611_v35  ;;  %v6740_v19 = vmax.f32 %v16291_v17, %v6612_v47  ;;  %v6933_v44 = vperm.slane %v6738_v16, 2 }
 0x5d1   :  { %6478 = vrot.lane.b32.xlu2 %v14586_v32, %s10115_s4 }
 0x5d2   :  { %v6934_v0 = vperm.slane %v6739_v51, 0  ;;  %v6935_v22 = vperm.slane %v6739_v51, 2  ;;  %v14598_v39 = vpop.permute.xlu2 %6460  ;;  %6494 = vrot.lane.b32.xlu0 %v14588_v2, %s10115_s4  ;;  %6510 = vrot.lane.b32.xlu1 %v14594_v27, %s10115_s4  ;;  %v7056_v25 = vsel %vm3944_vm8, %v6933_v44, %v6931_v55  ;;  %v6936_v30 = vperm.slane %v6740_v19, 0 }
 0x5d3   :  { %v6937_v28 = vperm.slane %v6740_v19, 2  ;;  %v6617_v55 = vsel %vm6592_vm6, %v14536_v34, %v6552_v21 }
 0x5d4   :  { %v6445_v5 = vpop.permute.xlu1 %6444  ;;  %v6443_v60 = vpop.permute.xlu0 %6442  ;;  %v7191_v48 = vld [vmem:[#allocation4 + $0x20] sm:$0xff]  ;;  %v7051_v40 = vsel %vm3946_vm9, %v6934_v0, %v7050_v7  ;;  %v7057_v15 = vsel %vm3946_vm9, %v6935_v22, %v7056_v25 }
 0x5d5   :  { %v6550_v59 = vrot.slane %v6445_v5, 2  ;;  %7308 = vmatmul.f32.gmra.mxu0 %v7191_v48  ;;  %v7192_v49 = vld [vmem:[#allocation4 + $0x28] sm:$0xff]  ;;  %7390 = vmatmul.f32.gmra.mxu2 %v7191_v48  ;;  %v6549_v41 = vrot.slane %v6443_v60, 2  ;;  %v7052_v52 = vsel %vm3948_vm10, %v6936_v30, %v7051_v40  ;;  %v7058_v29 = vsel %vm3948_vm10, %v6937_v28, %v7057_v15 }
 0x5d6   :  { %9740 = vmatmul.msk.f32.gmra.mxu1 %vm6592_vm6, %v7192_v49  ;;  %9748 = vmatmul.msk.f32.gmra.mxu3 %vm6592_vm6, %v7192_v49  ;;  %v7053_v46 = vsel %vm3950_vm11, %v6938_v56, %v7052_v52  ;;  %v7059_v51 = vsel %vm3950_vm11, %v6939_v58, %v7058_v29  ;;  %v6620_v30 = vsel %vm6592_vm6, %v14571_v50, %v6555_v11  ;;  %v16296_v56 = vld [vmem:[#allocation104_spill] sm:$0xff] }
 0x5d7   :  { %v6615_v53 = vsel %vm6592_vm6, %v6445_v5, %v6550_v59  ;;  %v6614_v45 = vsel %vm6592_vm6, %v6443_v60, %v6549_v41  ;;  %v6745_v5 = vmax.f32 %v14007_v36, %v6617_v55  ;;  %v6558_v60 = vrot.slane %v14598_v39, 2 }
 0x5d8   :  { %v6743_v23 = vmax.f32 %v16292_v12, %v6615_v53  ;;  %v6742_v6 = vmax.f32 %v16293_v20, %v6614_v45  ;;  %v16295_v20 = vld [vmem:[#allocation76_spill] sm:$0xff] }
 0x5d9   :  { %6526 = vrot.lane.b32.xlu2 %v14616_v43, %s10115_s4  ;;  %v6946_v49 = vperm.slane %v6745_v5, 0  ;;  %v6947_v18 = vperm.slane %v6745_v5, 2  ;;  %v6623_v15 = vsel %vm6592_vm6, %v14598_v39, %v6558_v60 }
 0x5da   :  { %v6942_v38 = vperm.slane %v6743_v23, 0  ;;  %v6943_v16 = vperm.slane %v6743_v23, 2  ;;  %v14624_v8 = vpop.permute.xlu2 %6468  ;;  %v6940_v3 = vperm.slane %v6742_v6, 0  ;;  %v6941_v35 = vperm.slane %v6742_v6, 2 }
 0x5db   :  { %v6751_v6 = vmax.f32 %v16295_v20, %v6623_v15  ;;  %v6562_v5 = vrot.slane %v14624_v8, 2 }
 0x5dc   :  { %v6453_v47 = vpop.permute.xlu1 %6452  ;;  %v6451_v42 = vpop.permute.xlu0 %6450  ;;  %v7054_v17 = vsel %vm3952_vm12, %v6940_v3, %v7053_v46  ;;  %v7060_v19 = vsel %vm3952_vm12, %v6941_v35, %v7059_v51  ;;  %v16297_v3 = vld [vmem:[#allocation32_spill] sm:$0xff] }
 0x5dd   :  { %v6554_v14 = vrot.slane %v6453_v47, 2  ;;  %v7055_v0 = vsel %vm3954_vm13, %v6942_v38, %v7054_v17  ;;  %v7061_v22 = vsel %vm3954_vm13, %v6943_v16, %v7060_v19  ;;  %v6553_v44 = vrot.slane %v6451_v42, 2 }
 0x5de   :  { %7164 = vst [vmem:[#allocation4 + $0x40] sm:$0xfe] %v7055_v0  ;;  %v6959_v0 = vperm.slane %v6751_v6, 2 }
 0x5df   :  { %v6619_v7 = vsel %vm6592_vm6, %v6453_v47, %v6554_v14  ;;  %7165 = vst.msk [vmem:[#allocation4 + $0x48] sm:$0xfe] %vm7155_vm7, %v7061_v22  ;;  %v6618_v34 = vsel %vm6592_vm6, %v6451_v42, %v6553_v44  ;;  %v6958_v14 = vperm.slane %v6751_v6, 0 }
 0x5e0   :  { %v6747_v48 = vmax.f32 %v14013_v61, %v6619_v7  ;;  %v6746_v63 = vmax.f32 %v14015_v37, %v6618_v34  ;;  %v16294_v61 = vld [vmem:[#allocation60_spill] sm:$0xff] }
 0x5e1   :  { %v6748_v23 = vmax.f32 %v16294_v61, %v6620_v30 }
 0x5e2   :  { %v14642_v25 = vpop.permute.xlu2 %6474  ;;  %v6948_v28 = vperm.slane %v6746_v63, 0  ;;  %v6949_v59 = vperm.slane %v6746_v63, 2  ;;  %v6950_v41 = vperm.slane %v6747_v48, 0  ;;  %v6951_v53 = vperm.slane %v6747_v48, 2 }
 0x5e3   :  { %v6952_v46 = vperm.slane %v6748_v23, 0  ;;  %v6953_v51 = vperm.slane %v6748_v23, 2  ;;  %v16300_v23 = vld [vmem:[#allocation92_spill] sm:$0xff] }
 0x5e4   :  { %v6459_v36 = vpop.permute.xlu1 %6458  ;;  %v6457_v40 = vpop.permute.xlu0 %6456  ;;  %v7062_v37 = vsel %vm3944_vm8, %v6948_v28, %v6946_v49  ;;  %v7068_v45 = vsel %vm3944_vm8, %v6949_v59, %v6947_v18 }
 0x5e5   :  { %v6557_v12 = vrot.slane %v6459_v36, 2  ;;  %v6556_v21 = vrot.slane %v6457_v40, 2  ;;  %v7193_v50 = vld [vmem:[#allocation4 + $0x40] sm:$0xff]  ;;  %v7063_v38 = vsel %vm3946_vm9, %v6950_v41, %v7062_v37  ;;  %v7069_v16 = vsel %vm3946_vm9, %v6951_v53, %v7068_v45  ;;  %v16299_v53 = vld [vmem:[#allocation80_spill] sm:$0xff] }
 0x5e6   :  { %7311 = vmatmul.f32.gmra.mxu0 %v7193_v50  ;;  %v7194_v29 = vld [vmem:[#allocation4 + $0x48] sm:$0xff]  ;;  %7393 = vmatmul.f32.gmra.mxu2 %v7193_v50  ;;  %v7064_v22 = vsel %vm3948_vm10, %v6952_v46, %v7063_v38  ;;  %v7070_v44 = vsel %vm3948_vm10, %v6953_v51, %v7069_v16  ;;  %v6627_v41 = vsel %vm6592_vm6, %v14624_v8, %v6562_v5 }
 0x5e7   :  { %v6622_v52 = vsel %vm6592_vm6, %v6459_v36, %v6557_v12  ;;  %v6621_v58 = vsel %vm6592_vm6, %v6457_v40, %v6556_v21  ;;  %9741 = vmatmul.msk.f32.gmra.mxu1 %vm6592_vm6, %v7194_v29  ;;  %9749 = vmatmul.msk.f32.gmra.mxu3 %vm6592_vm6, %v7194_v29  ;;  %v16298_v36 = vld [vmem:[#allocation29_spill] sm:$0xff]  ;;  %v6755_v37 = vmax.f32 %v16300_v23, %v6627_v41  ;;  %v16301_v38 = vld [vmem:[#allocation99_spill] sm:$0xff]  ;;  %v7626_v46 = vld [vmem:[#allocation13 + $0x2d8] sm:$0xff] }
 0x5e8   :  { %v6750_v39 = vmax.f32 %v16296_v56, %v6622_v52  ;;  %v6749_v35 = vmax.f32 %v16297_v3, %v6621_v58  ;;  %v6565_v56 = vrot.slane %v14642_v25, 2  ;;  %v7654_v51 = vld [vmem:[#allocation13 + $0x3b8] sm:$0xff]  ;;  %7753 = vmatpush.msra.mxu2 %v7626_v46  ;;  %v7625_v41 = vld [vmem:[#allocation13 + $0x2d0] sm:$0xff] }
 0x5e9   :  { %7796 = vmatpush.msra.mxu3 %v7654_v51  ;;  %7671 = vmatpush.msrb.mxu0 %v7625_v41 }
 0x5ea   :  { %v6956_v47 = vperm.slane %v6750_v39, 0  ;;  %v6957_v42 = vperm.slane %v6750_v39, 2  ;;  %v14660_v55 = vpop.permute.xlu2 %6482  ;;  %v6954_v17 = vperm.slane %v6749_v35, 0  ;;  %v6955_v19 = vperm.slane %v6749_v35, 2 }
 0x5eb   :  { %v6569_v23 = vrot.slane %v14660_v55, 2 }
 0x5ec   :  { %v6467_v11 = vpop.permute.xlu1 %6466  ;;  %v6465_v7 = vpop.permute.xlu0 %6464  ;;  %v7065_v34 = vsel %vm3950_vm11, %v6954_v17, %v7064_v22  ;;  %v7071_v60 = vsel %vm3950_vm11, %v6955_v19, %v7070_v44  ;;  %v16302_v19 = vld [vmem:[#allocation83_spill] sm:$0xff]  ;;  %v7652_v22 = vld [vmem:[#allocation13 + $0x3a8] sm:$0xff]  ;;  %v6967_v44 = vperm.slane %v6755_v37, 2 }
 0x5ed   :  { %v6561_v48 = vrot.slane %v6467_v11, 2  ;;  %v7066_v63 = vsel %vm3952_vm12, %v6956_v47, %v7065_v34  ;;  %v7072_v30 = vsel %vm3952_vm12, %v6957_v42, %v7071_v60  ;;  %v6560_v28 = vrot.slane %v6465_v7, 2  ;;  %7797 = vmatpush.msra.mxu3 %v7652_v22 }
 0x5ee   :  { %v7067_v59 = vsel %vm3954_vm13, %v6958_v14, %v7066_v63  ;;  %v7073_v49 = vsel %vm3954_vm13, %v6959_v0, %v7072_v30  ;;  %v6966_v47 = vperm.slane %v6755_v37, 0  ;;  %v7624_v0 = vld [vmem:[#allocation13 + $0x2c8] sm:$0xff]  ;;  %v6634_v46 = vsel %vm6592_vm6, %v14660_v55, %v6569_v23  ;;  %v7646_v23 = vld [vmem:[#allocation13 + $0x378] sm:$0xff] }
 0x5ef   :  { %v6626_v18 = vsel %vm6592_vm6, %v6467_v11, %v6561_v48  ;;  %7168 = vst [vmem:[#allocation4 + $0x60] sm:$0xfe] %v7067_v59  ;;  %v6625_v15 = vsel %vm6592_vm6, %v6465_v7, %v6560_v28  ;;  %v6630_v11 = vsel %vm6592_vm6, %v14642_v25, %v6565_v56  ;;  %7754 = vmatpush.msra.mxu2 %v7624_v0  ;;  %v7651_v56 = vld [vmem:[#allocation13 + $0x3a0] sm:$0xff] }
 0x5f0   :  { %v6754_v40 = vmax.f32 %v16298_v36, %v6626_v18  ;;  %7169 = vst.msk [vmem:[#allocation4 + $0x68] sm:$0xfe] %vm7155_vm7, %v7073_v49  ;;  %v6753_v12 = vmax.f32 %v16299_v53, %v6625_v15  ;;  %v16303_v49 = vld [vmem:[#allocation39_spill] sm:$0xff] }
 0x5f1   :  { %v6758_v18 = vmax.f32 %v16303_v49, %v6630_v11  ;;  %v7653_v53 = vld [vmem:[#allocation13 + $0x3b0] sm:$0xff]  ;;  %v16308_v49 = vld [vmem:[#allocation102_spill] sm:$0xff] }
 0x5f2   :  { %v14678_v61 = vpop.permute.xlu2 %6488  ;;  %v6964_v45 = vperm.slane %v6754_v40, 0  ;;  %v6965_v52 = vperm.slane %v6754_v40, 2  ;;  %v6962_v29 = vperm.slane %v6753_v12, 0  ;;  %v6963_v20 = vperm.slane %v6753_v12, 2  ;;  %v7622_v12 = vld [vmem:[#allocation13 + $0x2b8] sm:$0xff]  ;;  %7714 = vmatpush.msrb.mxu1 %v7653_v53  ;;  %v16306_v11 = vld [vmem:[#allocation51_spill] sm:$0xff] }
 0x5f3   :  { %7755 = vmatpush.msra.mxu2 %v7622_v12 }
 0x5f4   :  { %v6471_v21 = vpop.permute.xlu0 %6470  ;;  %v6473_v50 = vpop.permute.xlu1 %6472  ;;  %v7074_v42 = vsel %vm3944_vm8, %v6964_v45, %v6962_v29  ;;  %v7080_v17 = vsel %vm3944_vm8, %v6965_v52, %v6963_v20  ;;  %v7650_v45 = vld [vmem:[#allocation13 + $0x398] sm:$0xff]  ;;  %v16304_v20 = vld [vmem:[#allocation98_spill] sm:$0xff]  ;;  %7715 = vmatpush.msrb.mxu1 %v7651_v56 }
 0x5f5   :  { %v6563_v6 = vrot.slane %v6471_v21, 2  ;;  %v6564_v39 = vrot.slane %v6473_v50, 2  ;;  %v7075_v60 = vsel %vm3946_vm9, %v6966_v47, %v7074_v42  ;;  %v7081_v48 = vsel %vm3946_vm9, %v6967_v44, %v7080_v17  ;;  %7798 = vmatpush.msra.mxu3 %v7650_v45  ;;  %v7616_v45 = vld [vmem:[#allocation13 + $0x288] sm:$0xff] }
 0x5f6   :  { %v7195_v58 = vld [vmem:[#allocation4 + $0x60] sm:$0xff] }
 0x5f7   :  { %v6628_v8 = vsel %vm6592_vm6, %v6471_v21, %v6563_v6  ;;  %v6629_v3 = vsel %vm6592_vm6, %v6473_v50, %v6564_v39  ;;  %7314 = vmatmul.f32.gmra.mxu0 %v7195_v58  ;;  %v7196_v35 = vld [vmem:[#allocation4 + $0x68] sm:$0xff]  ;;  %7396 = vmatmul.f32.gmra.mxu2 %v7195_v58  ;;  %v7623_v21 = vld [vmem:[#allocation13 + $0x2c0] sm:$0xff]  ;;  %v7620_v50 = vld [vmem:[#allocation13 + $0x2a8] sm:$0xff]  ;;  %v6972_v39 = vperm.slane %v6758_v18, 0 }
 0x5f8   :  { %v6756_v16 = vmax.f32 %v16301_v38, %v6628_v8  ;;  %v6757_v14 = vmax.f32 %v16302_v19, %v6629_v3  ;;  %9742 = vmatmul.msk.f32.gmra.mxu1 %vm6592_vm6, %v7196_v35  ;;  %9750 = vmatmul.msk.f32.gmra.mxu3 %vm6592_vm6, %v7196_v35  ;;  %v6973_v8 = vperm.slane %v6758_v18, 2  ;;  %v7648_v35 = vld [vmem:[#allocation13 + $0x388] sm:$0xff]  ;;  %v16305_v19 = vld [vmem:[#allocation35_spill] sm:$0xff] }
 0x5f9   :  { %7672 = vmatpush.msrb.mxu0 %v7623_v21  ;;  %7756 = vmatpush.msra.mxu2 %v7620_v50 }
 0x5fa   :  { %v6968_v7 = vperm.slane %v6756_v16, 0  ;;  %v6969_v5 = vperm.slane %v6756_v16, 2  ;;  %v14692_v34 = vpop.permute.xlu2 %6496  ;;  %v6970_v63 = vperm.slane %v6757_v14, 0  ;;  %v6971_v30 = vperm.slane %v6757_v14, 2  ;;  %7799 = vmatpush.msra.mxu3 %v7648_v35  ;;  %v7644_v35 = vld [vmem:[#allocation13 + $0x368] sm:$0xff] }
 0x5fc   :  { %v6477_v28 = vpop.permute.xlu0 %6476  ;;  %v6481_v59 = vpop.permute.xlu1 %6480  ;;  %v7076_v25 = vsel %vm3948_vm10, %v6968_v7, %v7075_v60  ;;  %v7082_v36 = vsel %vm3948_vm10, %v6969_v5, %v7081_v48  ;;  %v6762_v7 = vmax.f32 %v16306_v11, %v6634_v46  ;;  %v6572_v5 = vrot.slane %v14678_v61, 2  ;;  %7800 = vmatpush.msra.mxu3 %v7646_v23  ;;  %v7642_v11 = vld [vmem:[#allocation13 + $0x358] sm:$0xff] }
 0x5fd   :  { %v6566_v40 = vrot.slane %v6477_v28, 2  ;;  %v6568_v15 = vrot.slane %v6481_v59, 2  ;;  %v7077_v52 = vsel %vm3950_vm11, %v6970_v63, %v7076_v25  ;;  %v7083_v29 = vsel %vm3950_vm11, %v6971_v30, %v7082_v36  ;;  %v16307_v63 = vld [vmem:[#allocation27_spill] sm:$0xff]  ;;  %v7618_v36 = vld [vmem:[#allocation13 + $0x298] sm:$0xff] }
 0x5fe   :  { %v7078_v51 = vsel %vm3952_vm12, %v6972_v39, %v7077_v52  ;;  %v7084_v47 = vsel %vm3952_vm12, %v6973_v8, %v7083_v29  ;;  %v7621_v25 = vld [vmem:[#allocation13 + $0x2b0] sm:$0xff]  ;;  %7757 = vmatpush.msra.mxu2 %v7618_v36  ;;  %v6981_v21 = vperm.slane %v6762_v7, 2  ;;  %v6637_v50 = vsel %vm6592_vm6, %v14678_v61, %v6572_v5  ;;  %v16309_v61 = vld [vmem:[#allocation62_spill] sm:$0xff]  ;;  %7801 = vmatpush.msra.mxu3 %v7644_v35 }
 0x5ff   :  { %v6631_v37 = vsel %vm6592_vm6, %v6477_v28, %v6566_v40  ;;  %v6633_v58 = vsel %vm6592_vm6, %v6481_v59, %v6568_v15  ;;  %v7649_v40 = vld [vmem:[#allocation13 + $0x390] sm:$0xff]  ;;  %v6980_v15 = vperm.slane %v6762_v7, 0  ;;  %7673 = vmatpush.msrb.mxu0 %v7621_v25  ;;  %v6765_v46 = vmax.f32 %v16309_v61, %v6637_v50  ;;  %v16310_v7 = vld [vmem:[#allocation78_spill] sm:$0xff] }
 0x600   :  { %v6759_v6 = vmax.f32 %v16304_v20, %v6631_v37  ;;  %v6761_v14 = vmax.f32 %v16305_v19, %v6633_v58  ;;  %v7619_v37 = vld [vmem:[#allocation13 + $0x2a0] sm:$0xff]  ;;  %7716 = vmatpush.msrb.mxu1 %v7649_v40  ;;  %7758 = vmatpush.msra.mxu2 %v7616_v45  ;;  %v7614_v19 = vld [vmem:[#allocation13 + $0x278] sm:$0xff]  ;;  %v7641_v35 = vld [vmem:[#allocation13 + $0x350] sm:$0xff] }
 0x601   :  { %7674 = vmatpush.msrb.mxu0 %v7619_v37  ;;  %7802 = vmatpush.msra.mxu3 %v7642_v11  ;;  %v7608_v61 = vld [vmem:[#allocation13 + $0x248] sm:$0xff] }
 0x602   :  { %v6974_v38 = vperm.slane %v6759_v6, 0  ;;  %v6975_v16 = vperm.slane %v6759_v6, 2  ;;  %v14705_v3 = vpop.permute.xlu2 %6502  ;;  %v6978_v48 = vperm.slane %v6761_v14, 0  ;;  %v6979_v59 = vperm.slane %v6761_v14, 2  ;;  %v7645_v14 = vld [vmem:[#allocation13 + $0x370] sm:$0xff]  ;;  %7759 = vmatpush.msra.mxu2 %v7614_v19  ;;  %v16313_v19 = vld [vmem:[#allocation54_spill] sm:$0xff] }
 0x604   :  { %v7079_v42 = vsel %vm3954_vm13, %v6974_v38, %v7078_v51  ;;  %v7085_v17 = vsel %vm3954_vm13, %v6975_v16, %v7084_v47  ;;  %v6485_v0 = vpop.permute.xlu0 %6484  ;;  %v6487_v22 = vpop.permute.xlu1 %6486  ;;  %v7086_v52 = vsel %vm3944_vm8, %v6980_v15, %v6978_v48  ;;  %v7092_v56 = vsel %vm3944_vm8, %v6981_v21, %v6979_v59  ;;  %v7647_v16 = vld [vmem:[#allocation13 + $0x380] sm:$0xff] }
 0x605   :  { %7172 = vst [vmem:[#allocation4 + $0x80] sm:$0xfe] %v7079_v42  ;;  %v6570_v44 = vrot.slane %v6485_v0, 2  ;;  %v6571_v55 = vrot.slane %v6487_v22, 2  ;;  %7717 = vmatpush.msrb.mxu1 %v7647_v16  ;;  %v6986_v59 = vperm.slane %v6765_v46, 0  ;;  %v7611_v16 = vld [vmem:[#allocation13 + $0x260] sm:$0xff] }
 0x606   :  { %7173 = vst.msk [vmem:[#allocation4 + $0x88] sm:$0xfe] %vm7155_vm7, %v7085_v17  ;;  %v7617_v17 = vld [vmem:[#allocation13 + $0x290] sm:$0xff] }
 0x607   :  { %v6635_v60 = vsel %vm6592_vm6, %v6485_v0, %v6570_v44  ;;  %v6636_v28 = vsel %vm6592_vm6, %v6487_v22, %v6571_v55  ;;  %v7615_v22 = vld [vmem:[#allocation13 + $0x280] sm:$0xff]  ;;  %v7612_v44 = vld [vmem:[#allocation13 + $0x268] sm:$0xff]  ;;  %7675 = vmatpush.msrb.mxu0 %v7617_v17  ;;  %7718 = vmatpush.msrb.mxu1 %v7645_v14  ;;  %v7638_v17 = vld [vmem:[#allocation13 + $0x338] sm:$0xff] }
 0x608   :  { %v6763_v30 = vmax.f32 %v16307_v63, %v6635_v60  ;;  %v6764_v18 = vmax.f32 %v16308_v49, %v6636_v28  ;;  %v6576_v60 = vrot.slane %v14692_v34, 2  ;;  %v6987_v49 = vperm.slane %v6765_v46, 2  ;;  %7760 = vmatpush.msra.mxu2 %v7612_v44  ;;  %v16312_v46 = vld [vmem:[#allocation36_spill] sm:$0xff] }
 0x609   :  { %7676 = vmatpush.msrb.mxu0 %v7615_v22 }
 0x60a   :  { %v6982_v41 = vperm.slane %v6763_v30, 0  ;;  %v6983_v53 = vperm.slane %v6763_v30, 2  ;;  %v14721_v12 = vpop.permute.xlu2 %6508  ;;  %v6984_v39 = vperm.slane %v6764_v18, 0  ;;  %v6985_v8 = vperm.slane %v6764_v18, 2  ;;  %v16311_v30 = vld [vmem:[#allocation101_spill] sm:$0xff] }
 0x60b   :  { %v6641_v45 = vsel %vm6592_vm6, %v14692_v34, %v6576_v60 }
 0x60c   :  { %v6493_v29 = vpop.permute.xlu1 %6492  ;;  %v6491_v20 = vpop.permute.xlu0 %6490  ;;  %v7197_v6 = vld [vmem:[#allocation4 + $0x80] sm:$0xff]  ;;  %v7087_v51 = vsel %vm3946_vm9, %v6982_v41, %v7086_v52  ;;  %v7093_v47 = vsel %vm3946_vm9, %v6983_v53, %v7092_v56 }
 0x60d   :  { %v6574_v58 = vrot.slane %v6493_v29, 2  ;;  %7317 = vmatmul.f32.gmra.mxu0 %v7197_v6  ;;  %v7198_v38 = vld [vmem:[#allocation4 + $0x88] sm:$0xff]  ;;  %7399 = vmatmul.f32.gmra.mxu2 %v7197_v6  ;;  %v6573_v42 = vrot.slane %v6491_v20, 2  ;;  %v7088_v48 = vsel %vm3948_vm10, %v6984_v39, %v7087_v51  ;;  %v7094_v63 = vsel %vm3948_vm10, %v6985_v8, %v7093_v47 }
 0x60e   :  { %9743 = vmatmul.msk.f32.gmra.mxu1 %vm6592_vm6, %v7198_v38  ;;  %9751 = vmatmul.msk.f32.gmra.mxu3 %vm6592_vm6, %v7198_v38  ;;  %v7089_v41 = vsel %vm3950_vm11, %v6986_v59, %v7088_v48  ;;  %v7095_v53 = vsel %vm3950_vm11, %v6987_v49, %v7094_v63  ;;  %v7613_v39 = vld [vmem:[#allocation13 + $0x270] sm:$0xff]  ;;  %v7610_v8 = vld [vmem:[#allocation13 + $0x258] sm:$0xff]  ;;  %v6579_v38 = vrot.slane %v14705_v3, 2  ;;  %v6769_v51 = vmax.f32 %v16312_v46, %v6641_v45 }
 0x60f   :  { %v6639_v0 = vsel %vm6592_vm6, %v6493_v29, %v6574_v58  ;;  %v6638_v5 = vsel %vm6592_vm6, %v6491_v20, %v6573_v42  ;;  %v7643_v29 = vld [vmem:[#allocation13 + $0x360] sm:$0xff]  ;;  %v7640_v58 = vld [vmem:[#allocation13 + $0x348] sm:$0xff]  ;;  %7677 = vmatpush.msrb.mxu0 %v7613_v39  ;;  %7761 = vmatpush.msra.mxu2 %v7610_v8  ;;  %v6582_v47 = vrot.slane %v14721_v12, 2 }
 0x610   :  { %v6767_v55 = vmax.f32 %v16310_v7, %v6639_v0  ;;  %v6766_v28 = vmax.f32 %v16311_v30, %v6638_v5  ;;  %7719 = vmatpush.msrb.mxu1 %v7643_v29  ;;  %7803 = vmatpush.msra.mxu3 %v7640_v58  ;;  %v16314_v0 = vld [vmem:[#allocation58_spill] sm:$0xff]  ;;  %v6644_v44 = vsel %vm6592_vm6, %v14705_v3, %v6579_v38  ;;  %v6995_v5 = vperm.slane %v6769_v51, 2 }
 0x611   :  { %7678 = vmatpush.msrb.mxu0 %v7611_v16  ;;  %7762 = vmatpush.msra.mxu2 %v7608_v61  ;;  %v6647_v60 = vsel %vm6592_vm6, %v14721_v12, %v6582_v47  ;;  %v16317_v29 = vld [vmem:[#allocation34_spill] sm:$0xff]  ;;  %v7607_v16 = vld [vmem:[#allocation13 + $0x240] sm:$0xff]  ;;  %v7637_v47 = vld [vmem:[#allocation13 + $0x330] sm:$0xff] }
 0x612   :  { %v6990_v18 = vperm.slane %v6767_v55, 0  ;;  %v6991_v25 = vperm.slane %v6767_v55, 2  ;;  %v14739_v36 = vpop.permute.xlu2 %6516  ;;  %v6988_v40 = vperm.slane %v6766_v28, 0  ;;  %v6989_v15 = vperm.slane %v6766_v28, 2  ;;  %7720 = vmatpush.msrb.mxu1 %v7641_v35  ;;  %7804 = vmatpush.msra.mxu3 %v7638_v17 }
 0x613   :  { %v6994_v55 = vperm.slane %v6769_v51, 0  ;;  %v7604_v51 = vld [vmem:[#allocation13 + $0x228] sm:$0xff] }
 0x614   :  { %v6501_v23 = vpop.permute.xlu1 %6500  ;;  %v6499_v37 = vpop.permute.xlu0 %6498  ;;  %v7090_v21 = vsel %vm3952_vm12, %v6988_v40, %v7089_v41  ;;  %v7096_v50 = vsel %vm3952_vm12, %v6989_v15, %v7095_v53  ;;  %v6775_v53 = vmax.f32 %v14397_v57, %v6647_v60  ;;  %v7609_v57 = vld [vmem:[#allocation13 + $0x250] sm:$0xff] }
 0x615   :  { %v6578_v52 = vrot.slane %v6501_v23, 2  ;;  %v7091_v20 = vsel %vm3954_vm13, %v6990_v18, %v7090_v21  ;;  %v7097_v6 = vsel %vm3954_vm13, %v6991_v25, %v7096_v50  ;;  %v6577_v56 = vrot.slane %v6499_v37, 2  ;;  %v16315_v18 = vld [vmem:[#allocation103_spill] sm:$0xff]  ;;  %7679 = vmatpush.msrb.mxu0 %v7609_v57 }
 0x616   :  { %7176 = vst [vmem:[#allocation4 + $0xa0] sm:$0xfe] %v7091_v20  ;;  %v6772_v25 = vmax.f32 %v16315_v18, %v6644_v44  ;;  %v7006_v35 = vperm.slane %v6775_v53, 0  ;;  %v7007_v17 = vperm.slane %v6775_v53, 2  ;;  %v7635_v53 = vld [vmem:[#allocation13 + $0x320] sm:$0xff] }
 0x617   :  { %v6643_v34 = vsel %vm6592_vm6, %v6501_v23, %v6578_v52  ;;  %7177 = vst.msk [vmem:[#allocation4 + $0xa8] sm:$0xfe] %vm7155_vm7, %v7097_v6  ;;  %v6642_v42 = vsel %vm6592_vm6, %v6499_v37, %v6577_v56  ;;  %v16316_v37 = vld [vmem:[#allocation66_spill] sm:$0xff]  ;;  %v7639_v6 = vld [vmem:[#allocation13 + $0x340] sm:$0xff]  ;;  %v7606_v56 = vld [vmem:[#allocation13 + $0x238] sm:$0xff]  ;;  %7680 = vmatpush.msrb.mxu0 %v7607_v16 }
 0x618   :  { %v6771_v14 = vmax.f32 %v16313_v19, %v6643_v34  ;;  %v6770_v22 = vmax.f32 %v16314_v0, %v6642_v42  ;;  %v7000_v39 = vperm.slane %v6772_v25, 0  ;;  %v7001_v8 = vperm.slane %v6772_v25, 2  ;;  %7721 = vmatpush.msrb.mxu1 %v7639_v6  ;;  %v7636_v34 = vld [vmem:[#allocation13 + $0x328] sm:$0xff]  ;;  %7763 = vmatpush.msra.mxu2 %v7606_v56  ;;  %v7634_v42 = vld [vmem:[#allocation13 + $0x318] sm:$0xff] }
 0x619   :  { %7805 = vmatpush.msra.mxu3 %v7636_v34  ;;  %v6586_v19 = vrot.slane %v14739_v36, 2 }
 0x61a   :  { %v6996_v11 = vperm.slane %v6770_v22, 0  ;;  %v6997_v7 = vperm.slane %v6770_v22, 2  ;;  %v6998_v30 = vperm.slane %v6771_v14, 0  ;;  %v6999_v28 = vperm.slane %v6771_v14, 2  ;;  %7722 = vmatpush.msrb.mxu1 %v7637_v47  ;;  %7764 = vmatpush.msra.mxu2 %v7604_v51 }
 0x61b   :  { %v14761_v48 = vpop.permute.xlu2 %6522  ;;  %7806 = vmatpush.msra.mxu3 %v7634_v42 }
 0x61c   :  { %v6507_v63 = vpop.permute.xlu1 %6506  ;;  %v6505_v49 = vpop.permute.xlu0 %6504  ;;  %v7098_v40 = vsel %vm3944_vm8, %v6996_v11, %v6994_v55  ;;  %v7104_v3 = vsel %vm3944_vm8, %v6997_v7, %v6995_v5  ;;  %7723 = vmatpush.msrb.mxu1 %v7635_v53  ;;  %v6589_v16 = vrot.slane %v14761_v48, 2 }
 0x61d   :  { %v6581_v59 = vrot.slane %v6507_v63, 2  ;;  %v6580_v15 = vrot.slane %v6505_v49, 2  ;;  %v7199_v41 = vld [vmem:[#allocation4 + $0xa0] sm:$0xff]  ;;  %v7099_v50 = vsel %vm3946_vm9, %v6998_v30, %v7098_v40  ;;  %v7105_v52 = vsel %vm3946_vm9, %v6999_v28, %v7104_v3 }
 0x61e   :  { %7320 = vmatmul.f32.gmra.mxu0 %v7199_v41  ;;  %v7200_v12 = vld [vmem:[#allocation4 + $0xa8] sm:$0xff]  ;;  %7402 = vmatmul.f32.gmra.mxu2 %v7199_v41  ;;  %v7100_v14 = vsel %vm3948_vm10, %v7000_v39, %v7099_v50  ;;  %v7106_v0 = vsel %vm3948_vm10, %v7001_v8, %v7105_v52  ;;  %v7600_v50 = vld [vmem:[#allocation13 + $0x208] sm:$0xff] }
 0x61f   :  { %v6646_v23 = vsel %vm6592_vm6, %v6507_v63, %v6581_v59  ;;  %v6645_v21 = vsel %vm6592_vm6, %v6505_v49, %v6580_v15  ;;  %9744 = vmatmul.msk.f32.gmra.mxu1 %vm6592_vm6, %v7200_v12  ;;  %9752 = vmatmul.msk.f32.gmra.mxu3 %vm6592_vm6, %v7200_v12  ;;  %v7605_v15 = vld [vmem:[#allocation13 + $0x230] sm:$0xff]  ;;  %v7602_v41 = vld [vmem:[#allocation13 + $0x218] sm:$0xff] }
 0x620   :  { %v6774_v45 = vmax.f32 %v16316_v37, %v6646_v23  ;;  %v6773_v20 = vmax.f32 %v16317_v29, %v6645_v21  ;;  %v6651_v23 = vsel %vm6592_vm6, %v14739_v36, %v6586_v19  ;;  %7681 = vmatpush.msrb.mxu0 %v7605_v15  ;;  %7765 = vmatpush.msra.mxu2 %v7602_v41  ;;  %v7603_v21 = vld [vmem:[#allocation13 + $0x220] sm:$0xff]  ;;  %v7633_v29 = vld [vmem:[#allocation13 + $0x310] sm:$0xff]  ;;  %v7598_v19 = vld [vmem:[#allocation13 + $0x1f8] sm:$0xff] }
 0x621   :  { %v6779_v36 = vmax.f32 %v14439_v4, %v6651_v23  ;;  %7724 = vmatpush.msrb.mxu1 %v7633_v29  ;;  %v8001_v29 = vld [vmem:[#allocation13 + $0x4a8] sm:$0xff] }
 0x622   :  { %v7004_v58 = vperm.slane %v6774_v45, 0  ;;  %v7005_v38 = vperm.slane %v6774_v45, 2  ;;  %v7002_v61 = vperm.slane %v6773_v20, 0  ;;  %v7003_v46 = vperm.slane %v6773_v20, 2  ;;  %v7632_v45 = vld [vmem:[#allocation13 + $0x308] sm:$0xff]  ;;  %v7630_v20 = vld [vmem:[#allocation13 + $0x2f8] sm:$0xff]  ;;  %7682 = vmatpush.msrb.mxu0 %v7603_v21  ;;  %7766 = vmatpush.msra.mxu2 %v7600_v50 }
 0x623   :  { %v6431_v22 = vpop.permute.xlu2 %6430  ;;  %7807 = vmatpush.msra.mxu3 %v7632_v45  ;;  %v8031_v45 = vld [vmem:[#allocation13 + $0x598] sm:$0xff] }
 0x624   :  { %v6515_v44 = vpop.permute.xlu1 %6514  ;;  %v7101_v11 = vsel %vm3950_vm11, %v7002_v61, %v7100_v14  ;;  %v7107_v7 = vsel %vm3950_vm11, %v7003_v46, %v7106_v0  ;;  %v6543_v55 = vrot.slane %v6431_v22, 2  ;;  %v6513_v60 = vpop.permute.xlu0 %6512  ;;  %v7014_v14 = vperm.slane %v6779_v36, 0  ;;  %7767 = vmatpush.msra.mxu2 %v7598_v19 }
 0x625   :  { %v6585_v5 = vrot.slane %v6515_v44, 2  ;;  %v7102_v63 = vsel %vm3952_vm12, %v7004_v58, %v7101_v11  ;;  %v7108_v30 = vsel %vm3952_vm12, %v7005_v38, %v7107_v7  ;;  %v6584_v28 = vrot.slane %v6513_v60, 2  ;;  %7808 = vmatpush.msra.mxu3 %v7630_v20  ;;  %v7596_v11 = vld [vmem:[#allocation13 + $0x1e8] sm:$0xff] }
 0x626   :  { %v7103_v59 = vsel %vm3954_vm13, %v7006_v35, %v7102_v63  ;;  %v7109_v49 = vsel %vm3954_vm13, %v7007_v17, %v7108_v30  ;;  %v6608_v18 = vsel %vm6592_vm6, %v6431_v22, %v6543_v55  ;;  %v7601_v17 = vld [vmem:[#allocation13 + $0x210] sm:$0xff]  ;;  %v7015_v7 = vperm.slane %v6779_v36, 2  ;;  %7768 = vmatpush.msra.mxu2 %v7596_v11  ;;  %v8029_v20 = vld [vmem:[#allocation13 + $0x588] sm:$0xff] }
 0x627   :  { %v6650_v25 = vsel %vm6592_vm6, %v6515_v44, %v6585_v5  ;;  %7180 = vst [vmem:[#allocation4 + $0xc0] sm:$0xfe] %v7103_v59  ;;  %v6736_v40 = vmax.f32 %v14557_v1, %v6608_v18  ;;  %v6649_v3 = vsel %vm6592_vm6, %v6513_v60, %v6584_v28  ;;  %v7631_v44 = vld [vmem:[#allocation13 + $0x300] sm:$0xff]  ;;  %7683 = vmatpush.msrb.mxu0 %v7601_v17  ;;  %v7628_v60 = vld [vmem:[#allocation13 + $0x2e8] sm:$0xff]  ;;  %v7597_v59 = vld [vmem:[#allocation13 + $0x1f0] sm:$0xff] }
 0x628   :  { %7181 = vst.msk [vmem:[#allocation4 + $0xc8] sm:$0xfe] %vm7155_vm7, %v7109_v49  ;;  %v6778_v12 = vmax.f32 %v14420_v24, %v6650_v25  ;;  %v6777_v37 = vmax.f32 %v14409_v31, %v6649_v3  ;;  %v6654_v63 = vsel %vm6592_vm6, %v14761_v48, %v6589_v16  ;;  %7725 = vmatpush.msrb.mxu1 %v7631_v44  ;;  %v7629_v49 = vld [vmem:[#allocation13 + $0x2f0] sm:$0xff]  ;;  %v7627_v3 = vld [vmem:[#allocation13 + $0x2e0] sm:$0xff] }
 0x629   :  { %v6928_v1 = vperm.slane %v6736_v40, 0  ;;  %v6929_v52 = vperm.slane %v6736_v40, 2  ;;  %7809 = vmatpush.msra.mxu3 %v7628_v60  ;;  %v6782_v21 = vmax.f32 %v14509_v54, %v6654_v63  ;;  %v8028_v17 = vld [vmem:[#allocation13 + $0x580] sm:$0xff]  ;;  %v8026_v60 = vld [vmem:[#allocation13 + $0x570] sm:$0xff]  ;;  %v8023_v63 = vld [vmem:[#allocation13 + $0x558] sm:$0xff] }
 0x62a   :  { %v7012_v31 = vperm.slane %v6778_v12, 0  ;;  %v7010_v6 = vperm.slane %v6777_v37, 0  ;;  %v7013_v58 = vperm.slane %v6778_v12, 2  ;;  %v7011_v38 = vperm.slane %v6777_v37, 2  ;;  %7726 = vmatpush.msrb.mxu1 %v7629_v49  ;;  %v7595_v12 = vld [vmem:[#allocation13 + $0x1e0] sm:$0xff]  ;;  %v8003_v37 = vld [vmem:[#allocation13 + $0x4b8] sm:$0xff] }
 0x62b   :  { %7162 = vst [vmem:[#allocation4 + $0x30] sm:$0x1] %v6928_v1  ;;  %v6479_v24 = vpop.permute.xlu2 %6478  ;;  %8130 = vmatpush.msrb.mxu2 %v8003_v37  ;;  %8173 = vmatpush.msrb.mxu3 %v8031_v45  ;;  %v7020_v16 = vperm.slane %v6782_v21, 0 }
 0x62c   :  { %v6521_v57 = vpop.permute.xlu1 %6520  ;;  %7163 = vst.msk [vmem:[#allocation4 + $0x38] sm:$0x1] %vm7158_vm14, %v6929_v52  ;;  %v6567_v56 = vrot.slane %v6479_v24, 2  ;;  %v6519_v39 = vpop.permute.xlu0 %6518  ;;  %v7110_v0 = vsel %vm3944_vm8, %v7012_v31, %v7010_v6  ;;  %7727 = vmatpush.msrb.mxu1 %v7627_v3 }
 0x62d   :  { %v6588_v8 = vrot.slane %v6521_v57, 2  ;;  %v6587_v34 = vrot.slane %v6519_v39, 2  ;;  %v7111_v18 = vsel %vm3946_vm9, %v7014_v14, %v7110_v0  ;;  %8131 = vmatpush.msrb.mxu2 %v8001_v29  ;;  %8174 = vmatpush.msrb.mxu3 %v8029_v20  ;;  %v7475_v29 = vld [vmem:[#allocation4 + $0x8] sm:$0xfe]  ;;  %v8021_v20 = vld [vmem:[#allocation13 + $0x548] sm:$0xff] }
 0x62e   :  { %v6632_v35 = vsel %vm6592_vm6, %v6479_v24, %v6567_v56  ;;  %v7201_v61 = vld [vmem:[#allocation4 + $0xc0] sm:$0xff] }
 0x62f   :  { %v6653_v4 = vsel %vm6592_vm6, %v6521_v57, %v6588_v8  ;;  %v6760_v46 = vmax.f32 %v14586_v32, %v6632_v35  ;;  %v6652_v51 = vsel %vm6592_vm6, %v6519_v39, %v6587_v34  ;;  %7323 = vmatmul.f32.gmra.mxu0 %v7201_v61  ;;  %v7202_v42 = vld [vmem:[#allocation4 + $0xc8] sm:$0xff]  ;;  %7405 = vmatmul.f32.gmra.mxu2 %v7201_v61  ;;  %v7599_v32 = vld [vmem:[#allocation13 + $0x200] sm:$0xff]  ;;  %v7021_v35 = vperm.slane %v6782_v21, 2 }
 0x630   :  { %v14801_v47 = vmax.f32 %v14485_v33, %v6653_v4  ;;  %v6780_v22 = vmax.f32 %v14454_v10, %v6652_v51  ;;  %9745 = vmatmul.msk.f32.gmra.mxu1 %vm6592_vm6, %v7202_v42  ;;  %9753 = vmatmul.msk.f32.gmra.mxu3 %vm6592_vm6, %v7202_v42  ;;  %v7116_v33 = vsel %vm3944_vm8, %v7013_v58, %v7011_v38  ;;  %v8002_v57 = vld [vmem:[#allocation13 + $0x4b0] sm:$0xff]  ;;  %v7999_v39 = vld [vmem:[#allocation13 + $0x498] sm:$0xff]  ;;  %v8000_v42 = vld [vmem:[#allocation13 + $0x4a0] sm:$0xff] }
 0x631   :  { %v6976_v55 = vperm.slane %v6760_v46, 0  ;;  %v6977_v5 = vperm.slane %v6760_v46, 2  ;;  %7684 = vmatpush.msrb.mxu0 %v7599_v32  ;;  %v7117_v48 = vsel %vm3946_vm9, %v7015_v7, %v7116_v33  ;;  %v8030_v56 = vld [vmem:[#allocation13 + $0x590] sm:$0xff]  ;;  %v8027_v34 = vld [vmem:[#allocation13 + $0x578] sm:$0xff]  ;;  %8132 = vmatpush.msrb.mxu2 %v7999_v39  ;;  %v8025_v32 = vld [vmem:[#allocation13 + $0x568] sm:$0xff] }
 0x632   :  { %v7016_v30 = vperm.slane %v6780_v22, 0  ;;  %v7017_v10 = vperm.slane %v6780_v22, 2  ;;  %v7018_v28 = vperm.slane %v14801_v47, 0  ;;  %v7019_v25 = vperm.slane %v14801_v47, 2  ;;  %8091 = vmatpush.msra.mxu1 %v8030_v56  ;;  %8175 = vmatpush.msrb.mxu3 %v8027_v34  ;;  %v7998_v33 = vld [vmem:[#allocation13 + $0x490] sm:$0xff]  ;;  %v8024_v21 = vld [vmem:[#allocation13 + $0x560] sm:$0xff] }
 0x633   :  { %7174 = vst [vmem:[#allocation4 + $0x90] sm:$0x1] %v6976_v55  ;;  %v6527_v40 = vpop.permute.xlu2 %6526  ;;  %7685 = vmatpush.msrb.mxu0 %v7597_v59  ;;  %v7995_v55 = vld [vmem:[#allocation13 + $0x478] sm:$0xff]  ;;  %v7993_v59 = vld [vmem:[#allocation13 + $0x468] sm:$0xff] }
 0x634   :  { %7175 = vst.msk [vmem:[#allocation4 + $0x98] sm:$0x1] %vm7158_vm14, %v6977_v5  ;;  %v7112_v15 = vsel %vm3948_vm10, %v7016_v30, %v7111_v18  ;;  %v6591_v41 = vrot.slane %v6527_v40, 2  ;;  %v6525_v53 = vpop.permute.xlu0 %6524  ;;  %v6415_v23 = vpop.permute.xlu1 %6414  ;;  %v7118_v50 = vsel %vm3948_vm10, %v7017_v10, %v7117_v48  ;;  %8092 = vmatpush.msra.mxu1 %v8028_v17  ;;  %8176 = vmatpush.msrb.mxu3 %v8025_v32  ;;  %v7996_v30 = vld [vmem:[#allocation13 + $0x480] sm:$0xff]  ;;  %v7478_v34 = vld [vmem:[#allocation4 + $0x20] sm:$0xfe] }
 0x635   :  { %v6590_v1 = vrot.slane %v6525_v53, 2  ;;  %v6535_v52 = vrot.slane %v6415_v23, 2  ;;  %v7113_v36 = vsel %vm3950_vm11, %v7018_v28, %v7112_v15  ;;  %7686 = vmatpush.msrb.mxu0 %v7595_v12  ;;  %v7119_v8 = vsel %vm3950_vm11, %v7019_v25, %v7118_v50  ;;  %v7985_v32 = vld [vmem:[#allocation13 + $0x428] sm:$0xff] }
 0x636   :  { %v6656_v24 = vsel %vm6592_vm6, %v6527_v40, %v6591_v41  ;;  %v7114_v51 = vsel %vm3952_vm12, %v7020_v16, %v7113_v36  ;;  %v7120_v47 = vsel %vm3952_vm12, %v7021_v35, %v7119_v8  ;;  %8093 = vmatpush.msra.mxu1 %v8026_v60  ;;  %8177 = vmatpush.msrb.mxu3 %v8023_v63  ;;  %v7480_v16 = vld [vmem:[#allocation4 + $0x30] sm:$0x1]  ;;  %v7992_v35 = vld [vmem:[#allocation13 + $0x460] sm:$0xff]  ;;  %v7544_v17 = vrot.slane %v7478_v34, 1  ;;  %v7483_v63 = vld [vmem:[#allocation4 + $0x48] sm:$0xfe] }
 0x637   :  { %v6784_v31 = vmax.f32 %v14616_v43, %v6656_v24  ;;  %v6655_v6 = vsel %vm6592_vm6, %v6525_v53, %v6590_v1  ;;  %v6600_v54 = vsel %vm6592_vm6, %v6415_v23, %v6535_v52  ;;  %8048 = vmatpush.msra.mxu0 %v8002_v57  ;;  %v7474_v23 = vld [vmem:[#allocation4] sm:$0xfe] }
 0x638   :  { %v6783_v58 = vmax.f32 %v14513_v9, %v6655_v6  ;;  %v6728_v38 = vmax.f32 %v14519_v62, %v6600_v54  ;;  %v7997_v62 = vld [vmem:[#allocation13 + $0x488] sm:$0xff]  ;;  %8094 = vmatpush.msra.mxu1 %v8024_v21  ;;  %8178 = vmatpush.msrb.mxu3 %v8021_v20  ;;  %v7994_v57 = vld [vmem:[#allocation13 + $0x470] sm:$0xff]  ;;  %v7538_v39 = vrot.slane %v7474_v23, 1 }
 0x639   :  { %v7024_v43 = vperm.slane %v6784_v31, 0  ;;  %v7025_v4 = vperm.slane %v6784_v31, 2  ;;  %8049 = vmatpush.msra.mxu0 %v8000_v42  ;;  %8133 = vmatpush.msrb.mxu2 %v7997_v62  ;;  %v7991_v31 = vld [vmem:[#allocation13 + $0x458] sm:$0xff]  ;;  %v8022_v6 = vld [vmem:[#allocation13 + $0x550] sm:$0xff]  ;;  %v8009_v20 = vld [vmem:[#allocation13 + $0x4e8] sm:$0xff] }
 0x63a   :  { %v7022_v61 = vperm.slane %v6783_v58, 0  ;;  %v7023_v46 = vperm.slane %v6783_v58, 2  ;;  %v6912_v9 = vperm.slane %v6728_v38, 0  ;;  %v6913_v0 = vperm.slane %v6728_v38, 2  ;;  %8095 = vmatpush.msra.mxu1 %v8022_v6  ;;  %v7987_v62 = vld [vmem:[#allocation13 + $0x438] sm:$0xff]  ;;  %v8010_v6 = vld [vmem:[#allocation13 + $0x4f0] sm:$0xff] }
 0x63b   :  { %7186 = vst [vmem:[#allocation4 + $0xf0] sm:$0x1] %v7024_v43  ;;  %8050 = vmatpush.msra.mxu0 %v7998_v33  ;;  %8134 = vmatpush.msrb.mxu2 %v7995_v55  ;;  %v7541_v58 = vrot.slane %v7475_v29, 1  ;;  %v7481_v43 = vld [vmem:[#allocation4 + $0x38] sm:$0x1] }
 0x63c   :  { %7187 = vst.msk [vmem:[#allocation4 + $0xf8] sm:$0x1] %vm7158_vm14, %v7025_v4  ;;  %v7115_v19 = vsel %vm3954_vm13, %v7022_v61, %v7114_v51  ;;  %v7121_v14 = vsel %vm3954_vm13, %v7023_v46, %v7120_v47  ;;  %v6447_v22 = vpop.permute.xlu0 %6446  ;;  %v6463_v11 = vpop.permute.xlu1 %6462  ;;  %v7989_v4 = vld [vmem:[#allocation13 + $0x448] sm:$0xff]  ;;  %v8019_v61 = vld [vmem:[#allocation13 + $0x538] sm:$0xff]  ;;  %v8020_v46 = vld [vmem:[#allocation13 + $0x540] sm:$0xff]  ;;  %v7545_v47 = vrot.slane %v7480_v16, 1 }
 0x63d   :  { %7184 = vst [vmem:[#allocation4 + $0xe0] sm:$0xfe] %v7115_v19  ;;  %v6551_v44 = vrot.slane %v6447_v22, 2  ;;  %v6559_v7 = vrot.slane %v6463_v11, 2  ;;  %8051 = vmatpush.msra.mxu0 %v7996_v30  ;;  %8135 = vmatpush.msrb.mxu2 %v7993_v59  ;;  %v7990_v51 = vld [vmem:[#allocation13 + $0x450] sm:$0xff]  ;;  %v7548_v42 = vrot.slane %v7481_v43, 1 }
 0x63e   :  { %7185 = vst.msk [vmem:[#allocation4 + $0xe8] sm:$0xfe] %vm7155_vm7, %v7121_v14  ;;  %8179 = vmatpush.msrb.mxu3 %v8019_v61  ;;  %8096 = vmatpush.msra.mxu1 %v8020_v46  ;;  %v8017_v19 = vld [vmem:[#allocation13 + $0x528] sm:$0xff]  ;;  %v7988_v14 = vld [vmem:[#allocation13 + $0x440] sm:$0xff]  ;;  %v7492_v34 = vld [vmem:[#allocation4 + $0x90] sm:$0x1] }
 0x63f   :  { %7157 = vst [vmem:[#allocation4 + $0x10] sm:$0x1] %v6912_v9  ;;  %v6616_v5 = vsel %vm6592_vm6, %v6447_v22, %v6551_v44  ;;  %v6624_v28 = vsel %vm6592_vm6, %v6463_v11, %v6559_v7  ;;  %8052 = vmatpush.msra.mxu0 %v7994_v57  ;;  %8136 = vmatpush.msrb.mxu2 %v7991_v31  ;;  %v7479_v9 = vld [vmem:[#allocation4 + $0x28] sm:$0xfe]  ;;  %v8016_v59 = vld [vmem:[#allocation13 + $0x520] sm:$0xff]  ;;  %v7973_v46 = vld [vmem:[#allocation13 + $0x3c8] sm:$0xff] }
 0x640   :  { %7159 = vst.msk [vmem:[#allocation4 + $0x18] sm:$0x1] %vm7158_vm14, %v6913_v0  ;;  %v6744_v10 = vmax.f32 %v14562_v13, %v6616_v5  ;;  %v6752_v49 = vmax.f32 %v14565_v26, %v6624_v28  ;;  %v8018_v0 = vld [vmem:[#allocation13 + $0x530] sm:$0xff]  ;;  %v7547_v22 = vrot.slane %v7479_v9, 1  ;;  %8180 = vmatpush.msrb.mxu3 %v8017_v19  ;;  %v7546_v44 = vsel %vm4793_vm0, %v7544_v17, %v7545_v47  ;;  %v8015_v11 = vld [vmem:[#allocation13 + $0x518] sm:$0xff]  ;;  %v8008_v61 = vld [vmem:[#allocation13 + $0x4e0] sm:$0xff] }
 0x641   :  { %8053 = vmatpush.msra.mxu0 %v7992_v35  ;;  %8137 = vmatpush.msrb.mxu2 %v7989_v4  ;;  %v7482_v5 = vld [vmem:[#allocation4 + $0x40] sm:$0xfe]  ;;  %v7493_v16 = vld [vmem:[#allocation4 + $0x98] sm:$0x1]  ;;  %v7975_v43 = vld [vmem:[#allocation13 + $0x3d8] sm:$0xff]  ;;  %v7563_v47 = vrot.slane %v7492_v34, 1 }
 0x642   :  { %v6944_v18 = vperm.slane %v6744_v10, 0  ;;  %v6945_v25 = vperm.slane %v6744_v10, 2  ;;  %v6960_v40 = vperm.slane %v6752_v49, 0  ;;  %v6961_v3 = vperm.slane %v6752_v49, 2  ;;  %8097 = vmatpush.msra.mxu1 %v8018_v0  ;;  %8181 = vmatpush.msrb.mxu3 %v8015_v11  ;;  %v7986_v10 = vld [vmem:[#allocation13 + $0x430] sm:$0xff]  ;;  %v7983_v49 = vld [vmem:[#allocation13 + $0x418] sm:$0xff]  ;;  %v14863_v57 = vpop.f32.mrf.mxu2 }
 0x643   :  { %8054 = vmatpush.msra.mxu0 %v7990_v51  ;;  %8138 = vmatpush.msrb.mxu2 %v7987_v62  ;;  %v7549_v7 = vsel %vm4793_vm0, %v7547_v22, %v7548_v42  ;;  %v7550_v28 = vrot.slane %v7482_v5, 1  ;;  %v7978_v35 = vld [vmem:[#allocation13 + $0x3f0] sm:$0xff]  ;;  %v7976_v4 = vld [vmem:[#allocation13 + $0x3e0] sm:$0xff]  ;;  %v8005_v51 = vld [vmem:[#allocation13 + $0x4c8] sm:$0xff]  ;;  %v7566_v42 = vrot.slane %v7493_v16, 1 }
 0x644   :  { %7166 = vst [vmem:[#allocation4 + $0x50] sm:$0x1] %v6944_v18  ;;  %v6495_v48 = vpop.permute.xlu0 %6494  ;;  %v7203_v15 = vld [vmem:[#allocation4 + $0xe0] sm:$0xff]  ;;  %v6511_v13 = vpop.permute.xlu1 %6510  ;;  %8098 = vmatpush.msra.mxu1 %v8016_v59  ;;  %v7491_v9 = vld [vmem:[#allocation4 + $0x88] sm:$0xfe]  ;;  %v7972_v5 = vld [vmem:[#allocation13 + $0x3c0] sm:$0xff] }
 0x645   :  { %7167 = vst.msk [vmem:[#allocation4 + $0x58] sm:$0x1] %vm7158_vm14, %v6945_v25  ;;  %v6575_v41 = vrot.slane %v6495_v48, 2  ;;  %7326 = vmatmul.f32.gmra.mxu0 %v7203_v15  ;;  %v7204_v53 = vld [vmem:[#allocation4 + $0xe8] sm:$0xff]  ;;  %7408 = vmatmul.f32.gmra.mxu2 %v7203_v15  ;;  %v6583_v12 = vrot.slane %v6511_v13, 2  ;;  %v8013_v18 = vld [vmem:[#allocation13 + $0x508] sm:$0xff] }
 0x646   :  { %7170 = vst [vmem:[#allocation4 + $0x70] sm:$0x1] %v6960_v40  ;;  %9746 = vmatmul.msk.f32.gmra.mxu1 %vm6592_vm6, %v7204_v53  ;;  %9754 = vmatmul.msk.f32.gmra.mxu3 %vm6592_vm6, %v7204_v53  ;;  %v7476_v26 = vld [vmem:[#allocation4 + $0x10] sm:$0x1]  ;;  %v7553_v25 = vrot.slane %v7483_v63, 1  ;;  %v7984_v40 = vld [vmem:[#allocation13 + $0x420] sm:$0xff] }
 0x647   :  { %7171 = vst.msk [vmem:[#allocation4 + $0x78] sm:$0x1] %vm7158_vm14, %v6961_v3  ;;  %v6640_v37 = vsel %vm6592_vm6, %v6495_v48, %v6575_v41  ;;  %v7477_v45 = vld [vmem:[#allocation4 + $0x18] sm:$0x1]  ;;  %v6648_v1 = vsel %vm6592_vm6, %v6511_v13, %v6583_v12  ;;  %v7539_v52 = vrot.slane %v7476_v26, 1  ;;  %8055 = vmatpush.msra.mxu0 %v7988_v14  ;;  %8139 = vmatpush.msrb.mxu2 %v7985_v32  ;;  %v14855_v3 = vpop.f32.mrf.mxu0  ;;  %v7981_v15 = vld [vmem:[#allocation13 + $0x408] sm:$0xff]  ;;  %v14858_v41 = vpop.f32.mrf.mxu1 }
 0x648   :  { %v6768_v50 = vmax.f32 %v14588_v2, %v6640_v37  ;;  %v6776_v36 = vmax.f32 %v14594_v27, %v6648_v1  ;;  %v7542_v24 = vrot.slane %v7477_v45, 1  ;;  %8182 = vmatpush.msrb.mxu3 %v8013_v18  ;;  %v8014_v12 = vld [vmem:[#allocation13 + $0x510] sm:$0xff]  ;;  %v8011_v26 = vld [vmem:[#allocation13 + $0x4f8] sm:$0xff]  ;;  %v7565_v14 = vrot.slane %v7491_v9, 1 }
 0x649   :  { %v7540_v38 = vsel %vm4793_vm0, %v7538_v39, %v7539_v52  ;;  %8056 = vmatpush.msra.mxu0 %v7986_v10  ;;  %8140 = vmatpush.msrb.mxu2 %v7983_v49  ;;  %v7486_v37 = vld [vmem:[#allocation4 + $0x60] sm:$0xfe]  ;;  %v7979_v1 = vld [vmem:[#allocation13 + $0x3f8] sm:$0xff]  ;;  %v8012_v52 = vld [vmem:[#allocation13 + $0x500] sm:$0xff] }
 0x64a   :  { %v6992_v54 = vperm.slane %v6768_v50, 0  ;;  %v6993_v56 = vperm.slane %v6768_v50, 2  ;;  %v7008_v8 = vperm.slane %v6776_v36, 0  ;;  %v7009_v2 = vperm.slane %v6776_v36, 2  ;;  %8099 = vmatpush.msra.mxu1 %v8014_v12  ;;  %v7982_v45 = vld [vmem:[#allocation13 + $0x410] sm:$0xff]  ;;  %8183 = vmatpush.msrb.mxu3 %v8011_v26  ;;  %v7980_v36 = vld [vmem:[#allocation13 + $0x400] sm:$0xff] }
 0x64b   :  { %v7543_v27 = vsel %vm4793_vm0, %v7541_v58, %v7542_v24  ;;  %v7484_v33 = vld [vmem:[#allocation4 + $0x50] sm:$0x1]  ;;  %8057 = vmatpush.msra.mxu0 %v7984_v40  ;;  %8141 = vmatpush.msrb.mxu2 %v7981_v15  ;;  %v7487_v50 = vld [vmem:[#allocation4 + $0x68] sm:$0xfe]  ;;  %v7977_v24 = vld [vmem:[#allocation13 + $0x3e8] sm:$0xff]  ;;  %v7556_v31 = vrot.slane %v7486_v37, 1 }
 0x64c   :  { %7178 = vst [vmem:[#allocation4 + $0xb0] sm:$0x1] %v6992_v54  ;;  %v7485_v55 = vld [vmem:[#allocation4 + $0x58] sm:$0x1]  ;;  %v7551_v60 = vrot.slane %v7484_v33, 1  ;;  %8100 = vmatpush.msra.mxu1 %v8012_v52  ;;  %8184 = vmatpush.msrb.mxu3 %v8009_v20  ;;  %v8007_v54 = vld [vmem:[#allocation13 + $0x4d8] sm:$0xff] }
 0x64d   :  { %7179 = vst.msk [vmem:[#allocation4 + $0xb8] sm:$0x1] %vm7158_vm14, %v6993_v56  ;;  %7687 = vmatmul.f32.vlgmr.msrb.gmra.mxu0 %v7540_v38  ;;  %7769 = vmatmul.f32.vlgmr.msra.gmra.mxu2 %v7540_v38  ;;  %v7554_v30 = vrot.slane %v7485_v55, 1  ;;  %v7488_v53 = vld [vmem:[#allocation4 + $0x70] sm:$0x1]  ;;  %v14865_v56 = vpop.f32.mrf.mxu3  ;;  %v7559_v39 = vrot.slane %v7487_v50, 1 }
 0x64e   :  { %7182 = vst [vmem:[#allocation4 + $0xd0] sm:$0x1] %v7008_v8  ;;  %9755 = vmatmul.msk.f32.vlgmr.msrb.gmra.mxu1 %vm6592_vm6, %v7543_v27  ;;  %9763 = vmatmul.msk.f32.vlgmr.msra.gmra.mxu3 %vm6592_vm6, %v7543_v27  ;;  %v7552_v48 = vsel %vm4793_vm0, %v7550_v28, %v7551_v60  ;;  %v7489_v23 = vld [vmem:[#allocation4 + $0x78] sm:$0x1]  ;;  %v7557_v21 = vrot.slane %v7488_v53, 1  ;;  %v8006_v33 = vld [vmem:[#allocation13 + $0x4d0] sm:$0xff] }
 0x64f   :  { %7183 = vst.msk [vmem:[#allocation4 + $0xd8] sm:$0x1] %vm7158_vm14, %v7009_v2  ;;  %v7555_v13 = vsel %vm4793_vm0, %v7553_v25, %v7554_v30  ;;  %8058 = vmatpush.msra.mxu0 %v7982_v45  ;;  %v7560_v29 = vrot.slane %v7489_v23, 1  ;;  %8142 = vmatpush.msrb.mxu2 %v7979_v1  ;;  %v7490_v27 = vld [vmem:[#allocation4 + $0x80] sm:$0xfe]  ;;  %v8004_v60 = vld [vmem:[#allocation13 + $0x4c0] sm:$0xff] }
 0x650   :  { %8101 = vmatpush.msra.mxu1 %v8010_v6  ;;  %v7558_v2 = vsel %vm4793_vm0, %v7556_v31, %v7557_v21  ;;  %8185 = vmatpush.msrb.mxu3 %v8007_v54  ;;  %v7562_v17 = vrot.slane %v7490_v27, 1  ;;  %v7494_v63 = vld [vmem:[#allocation4 + $0xa0] sm:$0xfe]  ;;  %v7495_v10 = vld [vmem:[#allocation4 + $0xa8] sm:$0xfe] }
 0x651   :  { %8059 = vmatpush.msra.mxu0 %v7980_v36  ;;  %8143 = vmatpush.msrb.mxu2 %v7977_v24  ;;  %v7561_v38 = vsel %vm4793_vm0, %v7559_v39, %v7560_v29  ;;  %v7568_v49 = vrot.slane %v7494_v63, 1  ;;  %v7571_v25 = vrot.slane %v7495_v10, 1  ;;  %v7498_v26 = vld [vmem:[#allocation4 + $0xc0] sm:$0xfe]  ;;  %v7499_v45 = vld [vmem:[#allocation4 + $0xc8] sm:$0xfe] }
 0x652   :  { %v14867_v8 = vpop.f32.mrf.mxu0  ;;  %8102 = vmatpush.msra.mxu1 %v8008_v61  ;;  %8186 = vmatpush.msrb.mxu3 %v8005_v51  ;;  %v7564_v22 = vsel %vm4793_vm0, %v7562_v17, %v7563_v47  ;;  %v7574_v1 = vrot.slane %v7498_v26, 1  ;;  %v7577_v29 = vrot.slane %v7499_v45, 1  ;;  %v7502_v31 = vld [vmem:[#allocation4 + $0xe0] sm:$0xfe]  ;;  %v7503_v6 = vld [vmem:[#allocation4 + $0xe8] sm:$0xfe] }
 0x653   :  { %v14870_v58 = vpop.f32.mrf.mxu1  ;;  %8060 = vmatpush.msra.mxu0 %v7978_v35  ;;  %8144 = vmatpush.msrb.mxu2 %v7975_v43  ;;  %v7496_v11 = vld [vmem:[#allocation4 + $0xb0] sm:$0x1]  ;;  %v7580_v39 = vrot.slane %v7502_v31, 1  ;;  %v7851_v61 = vld [vmem:[#allocation4] sm:$0xfc] }
 0x654   :  { %v7497_v55 = vld [vmem:[#allocation4 + $0xb8] sm:$0x1]  ;;  %8103 = vmatpush.msra.mxu1 %v8006_v33  ;;  %v7569_v30 = vrot.slane %v7496_v11, 1  ;;  %v7504_v54 = vld [vmem:[#allocation4 + $0xf0] sm:$0x1]  ;;  %v7915_v17 = vrot.slane %v7851_v61, 2 }
 0x655   :  { %7690 = vmatmul.f32.gmra.mxu0 %v7546_v44  ;;  %7772 = vmatmul.f32.gmra.mxu2 %v7546_v44  ;;  %v7567_v44 = vsel %vm4793_vm0, %v7565_v14, %v7566_v42  ;;  %v7572_v28 = vrot.slane %v7497_v55, 1  ;;  %v7500_v53 = vld [vmem:[#allocation4 + $0xd0] sm:$0x1]  ;;  %v7581_v27 = vrot.slane %v7504_v54, 1  ;;  %v7852_v51 = vld [vmem:[#allocation4 + $0x8] sm:$0xfc] }
 0x656   :  { %9756 = vmatmul.msk.f32.gmra.mxu1 %vm6592_vm6, %v7549_v7  ;;  %9764 = vmatmul.msk.f32.gmra.mxu3 %vm6592_vm6, %v7549_v7  ;;  %v7974_v7 = vld [vmem:[#allocation13 + $0x3d0] sm:$0xff]  ;;  %v7501_v12 = vld [vmem:[#allocation4 + $0xd8] sm:$0x1]  ;;  %v7575_v37 = vrot.slane %v7500_v53, 1  ;;  %v7853_v43 = vld [vmem:[#allocation4 + $0x10] sm:$0x3] }
 0x657   :  { %8061 = vmatpush.msra.mxu0 %v7976_v4  ;;  %8145 = vmatpush.msrb.mxu2 %v7973_v46  ;;  %v7578_v21 = vrot.slane %v7501_v12, 1  ;;  %v7582_v16 = vsel %vm4793_vm0, %v7580_v39, %v7581_v27  ;;  %v7854_v4 = vld [vmem:[#allocation4 + $0x18] sm:$0x3]  ;;  %v7916_v46 = vrot.slane %v7853_v43, 2  ;;  %v7859_v53 = vld [vmem:[#allocation4 + $0x40] sm:$0xfc] }
 0x658   :  { %v14875_v62 = vpop.f32.mrf.mxu2  ;;  %8104 = vmatpush.msra.mxu1 %v8004_v60  ;;  %v7576_v36 = vsel %vm4793_vm0, %v7574_v1, %v7575_v37  ;;  %v7919_v9 = vrot.slane %v7854_v4, 2  ;;  %v7858_v33 = vld [vmem:[#allocation4 + $0x38] sm:$0x3]  ;;  %v7860_v26 = vld [vmem:[#allocation4 + $0x48] sm:$0xfc]  ;;  %v7927_v45 = vrot.slane %v7859_v53, 2 }
 0x659   :  { %v14877_v19 = vpop.f32.mrf.mxu3  ;;  %8062 = vmatpush.msra.mxu0 %v7974_v7  ;;  %v7579_v24 = vsel %vm4793_vm0, %v7577_v29, %v7578_v21  ;;  %v7857_v7 = vld [vmem:[#allocation4 + $0x30] sm:$0x3]  ;;  %v7866_v31 = vld [vmem:[#allocation4 + $0x78] sm:$0x3]  ;;  %v7864_v39 = vld [vmem:[#allocation4 + $0x68] sm:$0xfc] }
 0x65a   :  { %v7922_v63 = vrot.slane %v7857_v7, 2  ;;  %v7869_v61 = vld [vmem:[#allocation4 + $0x90] sm:$0x3] }
 0x65b   :  { %8063 = vmatpush.msra.mxu0 %v7972_v5  ;;  %v7855_v5 = vld [vmem:[#allocation4 + $0x20] sm:$0xfc] }
 0x65d   :  { %7693 = vmatmul.f32.gmra.mxu0 %v7552_v48  ;;  %7775 = vmatmul.f32.gmra.mxu2 %v7552_v48  ;;  %v7570_v48 = vsel %vm4793_vm0, %v7568_v49, %v7569_v30  ;;  %v7856_v30 = vld [vmem:[#allocation4 + $0x28] sm:$0xfc]  ;;  %v7921_v49 = vrot.slane %v7855_v5, 2 }
 0x65e   :  { %9757 = vmatmul.msk.f32.gmra.mxu1 %vm6592_vm6, %v7555_v13  ;;  %9765 = vmatmul.msk.f32.gmra.mxu3 %vm6592_vm6, %v7555_v13  ;;  %v7573_v13 = vsel %vm4793_vm0, %v7571_v25, %v7572_v28  ;;  %v7925_v28 = vrot.slane %v7858_v33, 2  ;;  %v7924_v25 = vrot.slane %v7856_v30, 2 }
 0x663   :  { %v14879_v0 = vpop.f32.mrf.mxu0 }
 0x664   :  { %v14882_v32 = vpop.f32.mrf.mxu1 }
 0x665   :  { %7696 = vmatmul.f32.gmra.mxu0 %v7558_v2  ;;  %7778 = vmatmul.f32.gmra.mxu2 %v7558_v2  ;;  %v7505_v2 = vld [vmem:[#allocation4 + $0xf8] sm:$0x1] }
 0x666   :  { %9758 = vmatmul.msk.f32.gmra.mxu1 %vm6592_vm6, %v7561_v38  ;;  %9766 = vmatmul.msk.f32.gmra.mxu3 %vm6592_vm6, %v7561_v38  ;;  %v7583_v38 = vrot.slane %v7503_v6, 1  ;;  %v7584_v34 = vrot.slane %v7505_v2, 1  ;;  %v7863_v6 = vld [vmem:[#allocation4 + $0x60] sm:$0xfc]  ;;  %v7937_v2 = vrot.slane %v7866_v31, 2 }
 0x667   :  { %v7933_v27 = vrot.slane %v7863_v6, 2  ;;  %v7879_v6 = vld [vmem:[#allocation4 + $0xe0] sm:$0xfc] }
 0x668   :  { %v7585_v35 = vsel %vm4793_vm0, %v7583_v38, %v7584_v34 }
 0x669   :  { %v14887_v59 = vpop.f32.mrf.mxu2 }
 0x66a   :  { %v14889_v18 = vpop.f32.mrf.mxu3 }
 0x66d   :  { %7699 = vmatmul.f32.gmra.mxu0 %v7564_v22  ;;  %7781 = vmatmul.f32.gmra.mxu2 %v7564_v22  ;;  %v7918_v22 = vrot.slane %v7852_v51, 2  ;;  %v7867_v51 = vld [vmem:[#allocation4 + $0x80] sm:$0xfc] }
 0x66e   :  { %9759 = vmatmul.msk.f32.gmra.mxu1 %vm6592_vm6, %v7567_v44  ;;  %9767 = vmatmul.msk.f32.gmra.mxu3 %vm6592_vm6, %v7567_v44  ;;  %v7917_v44 = vsel %vm1752_vm5, %v7915_v17, %v7916_v46  ;;  %v7870_v46 = vld [vmem:[#allocation4 + $0x98] sm:$0x3]  ;;  %v7939_v17 = vrot.slane %v7867_v51, 2 }
 0x66f   :  { %v7920_v11 = vsel %vm1752_vm5, %v7918_v22, %v7919_v9  ;;  %v7868_v9 = vld [vmem:[#allocation4 + $0x88] sm:$0xfc] }
 0x670   :  { %v7942_v22 = vrot.slane %v7868_v9, 2 }
 0x674   :  { %v7315_v40 = vpop.f32.mrf.mxu0 }
 0x675   :  { %v7356_v15 = vpop.f32.mrf.mxu1  ;;  %7702 = vmatmul.f32.gmra.mxu0 %v7570_v48  ;;  %7784 = vmatmul.f32.gmra.mxu2 %v7570_v48  ;;  %v7926_v48 = vsel %vm1752_vm5, %v7924_v25, %v7925_v28  ;;  %v7872_v28 = vld [vmem:[#allocation4 + $0xa8] sm:$0xfc] }
 0x676   :  { %v14893_v23 = vadd.f32 %v7356_v15, %v7315_v40  ;;  %9760 = vmatmul.msk.f32.gmra.mxu1 %vm6592_vm6, %v7573_v13  ;;  %9768 = vmatmul.msk.f32.gmra.mxu3 %vm6592_vm6, %v7573_v13  ;;  %v7923_v40 = vsel %vm1752_vm5, %v7921_v49, %v7922_v63  ;;  %v7861_v15 = vld [vmem:[#allocation4 + $0x50] sm:$0x3]  ;;  %v7862_v13 = vld [vmem:[#allocation4 + $0x58] sm:$0x3]  ;;  %v7871_v63 = vld [vmem:[#allocation4 + $0xa0] sm:$0xfc] }
 0x677   :  { %v7928_v12 = vrot.slane %v7861_v15, 2  ;;  %v7931_v37 = vrot.slane %v7862_v13, 2  ;;  %v7948_v15 = vrot.slane %v7872_v28, 2 }
 0x67a   :  { %v7397_v50 = vpop.f32.mrf.mxu2 }
 0x67b   :  { %v7438_v52 = vpop.f32.mrf.mxu3 }
 0x67c   :  { %v14897_v20 = vadd.f32 %v7438_v52, %v7397_v50  ;;  %v7930_v50 = vrot.slane %v7860_v26, 2  ;;  %v7929_v52 = vsel %vm1752_vm5, %v7927_v45, %v7928_v12  ;;  %v7877_v26 = vld [vmem:[#allocation4 + $0xd0] sm:$0x3]  ;;  %v7875_v45 = vld [vmem:[#allocation4 + $0xc0] sm:$0xfc] }
 0x67d   :  { %7705 = vmatmul.f32.gmra.mxu0 %v7576_v36  ;;  %7787 = vmatmul.f32.gmra.mxu2 %v7576_v36 }
 0x67e   :  { %9761 = vmatmul.msk.f32.gmra.mxu1 %vm6592_vm6, %v7579_v24  ;;  %9769 = vmatmul.msk.f32.gmra.mxu3 %vm6592_vm6, %v7579_v24  ;;  %v7932_v36 = vsel %vm1752_vm5, %v7930_v50, %v7931_v37  ;;  %v7865_v24 = vld [vmem:[#allocation4 + $0x70] sm:$0x3]  ;;  %v7878_v37 = vld [vmem:[#allocation4 + $0xd8] sm:$0x3]  ;;  %v7876_v50 = vld [vmem:[#allocation4 + $0xc8] sm:$0xfc] }
 0x67f   :  { %v7934_v54 = vrot.slane %v7865_v24, 2 }
 0x681   :  { %v7935_v43 = vsel %vm1752_vm5, %v7933_v27, %v7934_v54  ;;  %v7880_v54 = vld [vmem:[#allocation4 + $0xe8] sm:$0xfc] }
 0x682   :  { %v7960_v27 = vrot.slane %v7880_v54, 2 }
 0x685   :  { %7708 = vmatmul.f32.gmra.mxu0 %v7582_v16  ;;  %7790 = vmatmul.f32.gmra.mxu2 %v7582_v16  ;;  %v7936_v16 = vrot.slane %v7864_v39, 2  ;;  %v7881_v39 = vld [vmem:[#allocation4 + $0xf0] sm:$0x3] }
 0x686   :  { %9762 = vmatmul.msk.f32.gmra.mxu1 %vm6592_vm6, %v7585_v35  ;;  %9770 = vmatmul.msk.f32.gmra.mxu3 %vm6592_vm6, %v7585_v35 }
 0x687   :  { %v7938_v4 = vsel %vm1752_vm5, %v7936_v16, %v7937_v2  ;;  %v7957_v2 = vrot.slane %v7879_v6, 2  ;;  %v7958_v16 = vrot.slane %v7881_v39, 2 }
 0x68a   :  { %v7318_v47 = vpop.f32.mrf.mxu0 }
 0x68b   :  { %v7359_v42 = vpop.f32.mrf.mxu1 }
 0x68c   :  { %v14907_v14 = vadd.f32 %v7359_v42, %v7318_v47  ;;  %v7940_v47 = vrot.slane %v7869_v61, 2  ;;  %v7943_v42 = vrot.slane %v7870_v46, 2  ;;  %v7959_v46 = vsel %vm1752_vm5, %v7957_v2, %v7958_v16 }
 0x68d   :  { %8064 = vmatmul.f32.vlgmr.msra.gmra.mxu0 %v7917_v44  ;;  %8146 = vmatmul.f32.vlgmr.msrb.gmra.mxu2 %v7917_v44 }
 0x68e   :  { %9771 = vmatmul.msk.f32.vlgmr.msra.gmra.mxu1 %vm6592_vm6, %v7920_v11  ;;  %9779 = vmatmul.msk.f32.vlgmr.msrb.gmra.mxu3 %vm6592_vm6, %v7920_v11  ;;  %v7941_v11 = vsel %vm1752_vm5, %v7939_v17, %v7940_v47  ;;  %v7944_v33 = vsel %vm1752_vm5, %v7942_v22, %v7943_v42 }
 0x690   :  { %v7400_v55 = vpop.f32.mrf.mxu2 }
 0x691   :  { %v7441_v60 = vpop.f32.mrf.mxu3 }
 0x692   :  { %v14913_v10 = vadd.f32 %v7441_v60, %v7400_v55  ;;  %v7873_v55 = vld [vmem:[#allocation4 + $0xb0] sm:$0x3]  ;;  %v7874_v60 = vld [vmem:[#allocation4 + $0xb8] sm:$0x3] }
 0x693   :  { %v7946_v30 = vrot.slane %v7873_v55, 2  ;;  %v7949_v49 = vrot.slane %v7874_v60, 2  ;;  %v7188_v55 = vld [vmem:[%s15616_s6] sm:$0x3]  ;;  %v7354_v60 = vadd.f32 %v14882_v32, %v14879_v0  ;;  %s10116_s6 = smov 96  }
 0x694   :  { %v14968_v28 = vperm.slane %v7188_v55, 0 }
 0x695   :  { %8067 = vmatmul.f32.gmra.mxu0 %v7923_v40  ;;  %8149 = vmatmul.f32.gmra.mxu2 %v7923_v40  ;;  %v7945_v40 = vrot.slane %v7871_v63, 2  ;;  %v7950_v12 = vsel %vm1752_vm5, %v7948_v15, %v7949_v49  ;;  %v7436_v15 = vadd.f32 %v14889_v18, %v14887_v59 }
 0x696   :  { %9772 = vmatmul.msk.f32.gmra.mxu1 %vm6592_vm6, %v7926_v48  ;;  %9780 = vmatmul.msk.f32.gmra.mxu3 %vm6592_vm6, %v7926_v48 }
 0x697   :  { %v7947_v53 = vsel %vm1752_vm5, %v7945_v40, %v7946_v30  ;;  %v7462_v40 = vadd.f32 %v14968_v28, %v7354_v60 }
 0x69b   :  { %v7321_v21 = vpop.f32.mrf.mxu0 }
 0x69c   :  { %v7362_v1 = vpop.f32.mrf.mxu1 }
 0x69d   :  { %v14920_v29 = vadd.f32 %v7362_v1, %v7321_v21  ;;  %8070 = vmatmul.f32.gmra.mxu0 %v7929_v52  ;;  %8152 = vmatmul.f32.gmra.mxu2 %v7929_v52  ;;  %v7952_v21 = vrot.slane %v7877_v26, 2  ;;  %v7955_v1 = vrot.slane %v7878_v37, 2  ;;  %v7951_v52 = vrot.slane %v7875_v45, 2 }
 0x69e   :  { %9773 = vmatmul.msk.f32.gmra.mxu1 %vm6592_vm6, %v7932_v36  ;;  %9781 = vmatmul.msk.f32.gmra.mxu3 %vm6592_vm6, %v7932_v36  ;;  %v7954_v36 = vrot.slane %v7876_v50, 2  ;;  %v7464_v50 = vadd.f32 %v14968_v28, %v14893_v23 }
 0x69f   :  { %v7953_v24 = vsel %vm1752_vm5, %v7951_v52, %v7952_v21 }
 0x6a0   :  { %v7956_v31 = vsel %vm1752_vm5, %v7954_v36, %v7955_v1 }
 0x6a1   :  { %v7403_v38 = vpop.f32.mrf.mxu2 }
 0x6a2   :  { %v7444_v34 = vpop.f32.mrf.mxu3 }
 0x6a3   :  { %v14925_v35 = vadd.f32 %v7444_v34, %v7403_v38  ;;  %v7882_v38 = vld [vmem:[#allocation4 + $0xf8] sm:$0x3] }
 0x6a5   :  { %8073 = vmatmul.f32.gmra.mxu0 %v7935_v43  ;;  %8155 = vmatmul.f32.gmra.mxu2 %v7935_v43 }
 0x6a6   :  { %9774 = vmatmul.msk.f32.gmra.mxu1 %vm6592_vm6, %v7938_v4  ;;  %9782 = vmatmul.msk.f32.gmra.mxu3 %vm6592_vm6, %v7938_v4  ;;  %v7961_v4 = vrot.slane %v7882_v38, 2 }
 0x6a8   :  { %v7962_v51 = vsel %vm1752_vm5, %v7960_v27, %v7961_v4 }
 0x6ac   :  { %v7324_v44 = vpop.f32.mrf.mxu0 }
 0x6ad   :  { %v7365_v7 = vpop.f32.mrf.mxu1  ;;  %8076 = vmatmul.f32.gmra.mxu0 %v7941_v11  ;;  %8158 = vmatmul.f32.gmra.mxu2 %v7941_v11 }
 0x6ae   :  { %v14933_v5 = vadd.f32 %v7365_v7, %v7324_v44  ;;  %9775 = vmatmul.msk.f32.gmra.mxu1 %vm6592_vm6, %v7944_v33  ;;  %9783 = vmatmul.msk.f32.gmra.mxu3 %vm6592_vm6, %v7944_v33 }
 0x6b0   :  { %v7470_v4 = vadd.f32 %v14968_v28, %v14933_v5 }
 0x6b2   :  { %v7406_v25 = vpop.f32.mrf.mxu2 }
 0x6b3   :  { %v7447_v48 = vpop.f32.mrf.mxu3 }
 0x6b4   :  { %v14937_v13 = vadd.f32 %v7447_v48, %v7406_v25 }
 0x6b5   :  { %8079 = vmatmul.f32.gmra.mxu0 %v7947_v53  ;;  %8161 = vmatmul.f32.gmra.mxu2 %v7947_v53 }
 0x6b6   :  { %9776 = vmatmul.msk.f32.gmra.mxu1 %vm6592_vm6, %v7950_v12  ;;  %9784 = vmatmul.msk.f32.gmra.mxu3 %vm6592_vm6, %v7950_v12  ;;  %v14975_v12 = vperm.slane %v7188_v55, 1 }
 0x6b8   :  { %v7463_v32 = vadd.f32 %v14975_v12, %v7436_v15  ;;  %v7471_v55 = vadd.f32 %v14975_v12, %v14937_v13 }
 0x6bd   :  { %8082 = vmatmul.f32.gmra.mxu0 %v7953_v24  ;;  %8164 = vmatmul.f32.gmra.mxu2 %v7953_v24  ;;  %v7465_v24 = vadd.f32 %v14975_v12, %v14897_v20 }
 0x6be   :  { %9777 = vmatmul.msk.f32.gmra.mxu1 %vm6592_vm6, %v7956_v31  ;;  %9785 = vmatmul.msk.f32.gmra.mxu3 %vm6592_vm6, %v7956_v31 }
 0x6c2   :  { %v7327_v34 = vpop.f32.mrf.mxu0 }
 0x6c3   :  { %v7368_v43 = vpop.f32.mrf.mxu1 }
 0x6c4   :  { %v14947_v61 = vadd.f32 %v7368_v43, %v7327_v34 }
 0x6c5   :  { %8085 = vmatmul.f32.gmra.mxu0 %v7959_v46  ;;  %8167 = vmatmul.f32.gmra.mxu2 %v7959_v46 }
 0x6c6   :  { %9778 = vmatmul.msk.f32.gmra.mxu1 %vm6592_vm6, %v7962_v51  ;;  %9786 = vmatmul.msk.f32.gmra.mxu3 %vm6592_vm6, %v7962_v51 }
 0x6c8   :  { %v7409_v47 = vpop.f32.mrf.mxu2 }
 0x6c9   :  { %v7450_v9 = vpop.f32.mrf.mxu3 }
 0x6ca   :  { %v14953_v42 = vadd.f32 %v7450_v9, %v7409_v47  ;;  %v7688_v17 = vpop.f32.mrf.mxu0 }
 0x6cb   :  { %v7729_v22 = vpop.f32.mrf.mxu1 }
 0x6cc   :  { %v7730_v13 = vadd.f32 %v7729_v22, %v7688_v17 }
 0x6d0   :  { %v7770_v44 = vpop.f32.mrf.mxu2 }
 0x6d1   :  { %v7811_v11 = vpop.f32.mrf.mxu3 }
 0x6d2   :  { %v14955_v7 = vpop.f32.mrf.mxu0 }
 0x6d3   :  { %v14957_v33 = vpop.f32.mrf.mxu1 }
 0x6d4   :  { %v7733_v17 = vadd.f32 %v14957_v33, %v14955_v7 }
 0x6d8   :  { %v14964_v63 = vpop.f32.mrf.mxu2 }
 0x6d9   :  { %v14966_v30 = vpop.f32.mrf.mxu3 }
 0x6da   :  { %v7694_v49 = vpop.f32.mrf.mxu0  ;;  %v7815_v22 = vadd.f32 %v14966_v30, %v14964_v63 }
 0x6db   :  { %v7735_v25 = vpop.f32.mrf.mxu1 }
 0x6dc   :  { %v7736_v48 = vadd.f32 %v7735_v25, %v7694_v49 }
 0x6de   :  { %v14973_v53 = vadd.f32 %v7736_v48, %v7462_v40 }
 0x6e0   :  { %v7776_v26 = vpop.f32.mrf.mxu2 }
 0x6e1   :  { %v7817_v0 = vpop.f32.mrf.mxu3 }
 0x6e2   :  { %v7818_v37 = vadd.f32 %v7817_v0, %v7776_v26  ;;  %v7697_v45 = vpop.f32.mrf.mxu0  ;;  %v7348_v0 = vadd.f32 %v14858_v41, %v14855_v3  ;;  %v7433_v3 = vadd.f32 %v14877_v19, %v14875_v62 }
 0x6e3   :  { %v7738_v21 = vpop.f32.mrf.mxu1 }
 0x6e4   :  { %v14980_v1 = vadd.f32 %v7818_v37, %v7463_v32  ;;  %v7739_v52 = vadd.f32 %v7738_v21, %v7697_v45  ;;  %v7430_v32 = vadd.f32 %v14865_v56, %v14863_v57  ;;  %v7812_v37 = vadd.f32 %v7811_v11, %v7770_v44 }
 0x6e5   :  { %v7458_v45 = vadd.f32 %v14968_v28, %v7348_v0 }
 0x6e6   :  { %v14982_v36 = vadd.f32 %v7739_v52, %v7464_v50  ;;  %v7459_v21 = vadd.f32 %v14975_v12, %v7430_v32 }
 0x6e8   :  { %v7779_v59 = vpop.f32.mrf.mxu2 }
 0x6e9   :  { %v7820_v18 = vpop.f32.mrf.mxu3 }
 0x6ea   :  { %v7821_v31 = vadd.f32 %v7820_v18, %v7779_v59  ;;  %v14986_v6 = vpop.f32.mrf.mxu0  ;;  %v7835_v18 = vadd.f32 %v7730_v13, %v7458_v45 }
 0x6eb   :  { %v14988_v54 = vpop.f32.mrf.mxu1 }
 0x6ec   :  { %v14990_v39 = vadd.f32 %v7821_v31, %v7465_v24  ;;  %v7836_v24 = vadd.f32 %v7812_v37, %v7459_v21 }
 0x6f0   :  { %v14992_v2 = vpop.f32.mrf.mxu2 }
 0x6f1   :  { %v14994_v23 = vpop.f32.mrf.mxu3 }
 0x6f2   :  { %v14996_v38 = vpop.f32.mrf.mxu0 }
 0x6f3   :  { %v14998_v27 = vpop.f32.mrf.mxu1 }
 0x6f8   :  { %v15000_v34 = vpop.f32.mrf.mxu2 }
 0x6f9   :  { %v15002_v16 = vpop.f32.mrf.mxu3 }
 0x6fa   :  { %v7706_v20 = vpop.f32.mrf.mxu0 }
 0x6fb   :  { %v7747_v43 = vpop.f32.mrf.mxu1 }
 0x6fc   :  { %v7748_v46 = vadd.f32 %v7747_v43, %v7706_v20  ;;  %v7351_v43 = vadd.f32 %v14870_v58, %v14867_v8 }
 0x6fe   :  { %v15006_v51 = vadd.f32 %v7748_v46, %v7470_v4  ;;  %v7460_v11 = vadd.f32 %v14968_v28, %v7351_v43  ;;  %v7461_v4 = vadd.f32 %v14975_v12, %v7433_v3 }
 0x700   :  { %v7788_v47 = vpop.f32.mrf.mxu2  ;;  %v7838_v62 = vadd.f32 %v7815_v22, %v7461_v4 }
 0x701   :  { %v7829_v9 = vpop.f32.mrf.mxu3 }
 0x702   :  { %v7830_v60 = vadd.f32 %v7829_v9, %v7788_v47  ;;  %v15010_v49 = vpop.f32.mrf.mxu0  ;;  %v7837_v9 = vadd.f32 %v7733_v17, %v7460_v11 }
 0x703   :  { %v15012_v25 = vpop.f32.mrf.mxu1 }
 0x704   :  { %v15014_v40 = vadd.f32 %v7830_v60, %v7471_v55 }
 0x708   :  { %v15016_v48 = vpop.f32.mrf.mxu2 }
 0x709   :  { %v15018_v15 = vpop.f32.mrf.mxu3 }
 0x70a   :  { %v8065_v5 = vpop.f32.mrf.mxu0 }
 0x70b   :  { %v8106_v26 = vpop.f32.mrf.mxu1 }
 0x70c   :  { %v8107_v50 = vadd.f32 %v8106_v26, %v8065_v5 }
 0x70e   :  { %v8212_v57 = vadd.f32 %v8107_v50, %v7835_v18 }
 0x710   :  { %v8147_v52 = vpop.f32.mrf.mxu2  ;;  %v8228_v46 = vmax.f32 %v8212_v57, 0.0 }
 0x711   :  { %v8188_v59 = vpop.f32.mrf.mxu3 }
 0x712   :  { %v8189_v31 = vadd.f32 %v8188_v59, %v8147_v52  ;;  %v8068_v20 = vpop.f32.mrf.mxu0 }
 0x713   :  { %v8109_v41 = vpop.f32.mrf.mxu1 }
 0x714   :  { %v8213_v56 = vadd.f32 %v8189_v31, %v7836_v24  ;;  %v8110_v8 = vadd.f32 %v8109_v41, %v8068_v20 }
 0x716   :  { %v8229_v44 = vmax.f32 %v8213_v56, 0.0  ;;  %v8214_v32 = vadd.f32 %v8110_v8, %v7837_v9 }
 0x718   :  { %v8260_v47 = vrot.slane %v8229_v44, 6  ;;  %v8150_v58 = vpop.f32.mrf.mxu2  ;;  %v8230_v31 = vmax.f32 %v8214_v32, 0.0 }
 0x719   :  { %v8191_v19 = vpop.f32.mrf.mxu3 }
 0x71a   :  { %v8192_v55 = vadd.f32 %v8191_v19, %v8150_v58  ;;  %v8071_v60 = vpop.f32.mrf.mxu0  ;;  %v8268_v5 = vsel %vm1744_vm2, %v8228_v46, %v8260_v47  ;;  %v8273_v7 = vsel %vm1752_vm5, %v8260_v47, %v8228_v46  ;;  %v8269_v33 = vsel %vm1746_vm4, %v8228_v46, %v8260_v47 }
 0x71b   :  { %v8112_v63 = vpop.f32.mrf.mxu1  ;;  %v9787_v30 = vrot.slane %v8268_v5, 9  ;;  %v8274_v26 = vrot.slane %v8273_v7, 6  ;;  %v8270_v0 = vrot.slane %v8269_v33, 2  ;;  %v8271_v37 = vsel %vm1749_vm3, %v8228_v46, %v8260_v47 }
 0x71c   :  { %v8215_v13 = vadd.f32 %v8192_v55, %v7838_v62  ;;  %v8272_v24 = vrot.slane %v8271_v37, 4  ;;  %v8113_v43 = vadd.f32 %v8112_v63, %v8071_v60 }
 0x71d   :  { %v15040_v45 = vmax.f32 %v8268_v5, %v9787_v30  ;;  %v9790_v21 = vrot.slane %v8274_v26, 9  ;;  %v9788_v50 = vrot.slane %v8270_v0, 9 }
 0x71e   :  { %v8231_v52 = vmax.f32 %v8215_v13, 0.0  ;;  %v9789_v11 = vrot.slane %v8272_v24, 9  ;;  %v8216_v47 = vadd.f32 %v8113_v43, %v14973_v53 }
 0x71f   :  { %8516 = vrot.lane.b32.xlu2 %v15040_v45, %s10116_s6  ;;  %v15044_v59 = vmax.f32 %v8274_v26, %v9790_v21  ;;  %v15046_v18 = vmax.f32 %v8270_v0, %v9788_v50 }
 0x720   :  { %v8261_v20 = vrot.slane %v8231_v52, 6  ;;  %v8153_v3 = vpop.f32.mrf.mxu2  ;;  %v15058_v60 = vmax.f32 %v8272_v24, %v9789_v11  ;;  %v8232_v63 = vmax.f32 %v8216_v47, 0.0 }
 0x721   :  { %v8194_v41 = vpop.f32.mrf.mxu3  ;;  %8522 = vrot.lane.b32.xlu1 %v15044_v59, %s10116_s6  ;;  %8518 = vrot.lane.b32.xlu0 %v15046_v18, %s10116_s6 }
 0x722   :  { %v8195_v57 = vadd.f32 %v8194_v41, %v8153_v3  ;;  %v8074_v56 = vpop.f32.mrf.mxu0  ;;  %v8280_v17 = vsel %vm1752_vm5, %v8261_v20, %v8230_v31  ;;  %v8276_v22 = vsel %vm1746_vm4, %v8230_v31, %v8261_v20  ;;  %v8278_v58 = vsel %vm1749_vm3, %v8230_v31, %v8261_v20 }
 0x723   :  { %v8115_v44 = vpop.f32.mrf.mxu1  ;;  %v8281_v4 = vrot.slane %v8280_v17, 6  ;;  %v8277_v46 = vrot.slane %v8276_v22, 2  ;;  %v8275_v55 = vsel %vm1744_vm2, %v8230_v31, %v8261_v20  ;;  %v8279_v33 = vrot.slane %v8278_v58, 4 }
 0x724   :  { %v8217_v8 = vadd.f32 %v8195_v57, %v14980_v1  ;;  %v8116_v26 = vadd.f32 %v8115_v44, %v8074_v56  ;;  %v9791_v1 = vrot.slane %v8275_v55, 9  ;;  %v7742_v41 = vadd.f32 %v14988_v54, %v14986_v6 }
 0x725   :  { %v9794_v9 = vrot.slane %v8281_v4, 9  ;;  %v9792_v62 = vrot.slane %v8277_v46, 9  ;;  %v9793_v24 = vrot.slane %v8279_v33, 9  ;;  %v7824_v57 = vadd.f32 %v14994_v23, %v14992_v2 }
 0x726   :  { %v8233_v19 = vmax.f32 %v8217_v8, 0.0  ;;  %v8218_v43 = vadd.f32 %v8116_v26, %v14982_v36  ;;  %v7466_v56 = vadd.f32 %v14968_v28, %v14907_v14  ;;  %v7467_v17 = vadd.f32 %v14975_v12, %v14913_v10 }
 0x727   :  { %v15060_v5 = vmax.f32 %v8281_v4, %v9794_v9  ;;  %v15062_v7 = vmax.f32 %v8277_v46, %v9792_v62  ;;  %v15084_v44 = vmax.f32 %v8275_v55, %v9791_v1  ;;  %v15086_v11 = vmax.f32 %v8279_v33, %v9793_v24 }
 0x728   :  { %v8262_v30 = vrot.slane %v8233_v19, 6  ;;  %v8156_v53 = vpop.f32.mrf.mxu2  ;;  %v15090_v46 = vmax.f32 %v8218_v43, 0.0  ;;  %v7843_v14 = vadd.f32 %v7742_v41, %v7466_v56  ;;  %v7844_v47 = vadd.f32 %v7824_v57, %v7467_v17 }
 0x729   :  { %v8197_v0 = vpop.f32.mrf.mxu3  ;;  %8520 = vrot.lane.b32.xlu0 %v15058_v60, %s10116_s6  ;;  %8530 = vrot.lane.b32.xlu2 %v15060_v5, %s10116_s6  ;;  %v7827_v1 = vadd.f32 %v15002_v16, %v15000_v34 }
 0x72a   :  { %v8198_v32 = vadd.f32 %v8197_v0, %v8156_v53  ;;  %8526 = vrot.lane.b32.xlu1 %v15062_v7, %s10116_s6  ;;  %v8077_v13 = vpop.f32.mrf.mxu0  ;;  %v8282_v37 = vsel %vm1744_vm2, %v8232_v63, %v8262_v30  ;;  %v8287_v21 = vsel %vm1752_vm5, %v8262_v30, %v8232_v63  ;;  %v8285_v50 = vsel %vm1749_vm3, %v8232_v63, %v8262_v30 }
 0x72b   :  { %v8118_v52 = vpop.f32.mrf.mxu1  ;;  %v9795_v31 = vrot.slane %v8282_v37, 9  ;;  %v8283_v20 = vsel %vm1746_vm4, %v8232_v63, %v8262_v30  ;;  %v8288_v23 = vrot.slane %v8287_v21, 6  ;;  %v7745_v0 = vadd.f32 %v14998_v27, %v14996_v38 }
 0x72c   :  { %v8219_v3 = vadd.f32 %v8198_v32, %v14990_v39  ;;  %v8286_v39 = vrot.slane %v8285_v50, 4  ;;  %v8284_v4 = vrot.slane %v8283_v20, 2  ;;  %v8119_v54 = vadd.f32 %v8118_v52, %v8077_v13 }
 0x72d   :  { %v15088_v36 = vmax.f32 %v8282_v37, %v9795_v31  ;;  %v9798_v53 = vrot.slane %v8288_v23, 9  ;;  %v7468_v32 = vadd.f32 %v14968_v28, %v14920_v29  ;;  %v7469_v37 = vadd.f32 %v14975_v12, %v14925_v35 }
 0x72e   :  { %v8235_v22 = vmax.f32 %v8219_v3, 0.0  ;;  %v9797_v33 = vrot.slane %v8286_v39, 9  ;;  %v9796_v63 = vrot.slane %v8284_v4, 9  ;;  %v8220_v30 = vadd.f32 %v8119_v54, %v7843_v14 }
 0x72f   :  { %v15127_v20 = vmax.f32 %v8288_v23, %v9798_v53  ;;  %v7845_v34 = vadd.f32 %v7745_v0, %v7468_v32  ;;  %v7846_v16 = vadd.f32 %v7827_v1, %v7469_v37  ;;  %v7751_v1 = vadd.f32 %v15012_v25, %v15010_v49 }
 0x730   :  { %v15092_v6 = vrot.slane %v8235_v22, 6  ;;  %v8159_v2 = vpop.f32.mrf.mxu2  ;;  %v15119_v21 = vmax.f32 %v8286_v39, %v9797_v33  ;;  %v15121_v50 = vmax.f32 %v8284_v4, %v9796_v63  ;;  %v15123_v24 = vmax.f32 %v8220_v30, 0.0 }
 0x731   :  { %v8200_v8 = vpop.f32.mrf.mxu3  ;;  %8524 = vrot.lane.b32.xlu0 %v15084_v44, %s10116_s6  ;;  %8532 = vrot.lane.b32.xlu2 %v15088_v36, %s10116_s6 }
 0x732   :  { %v8201_v10 = vadd.f32 %v8200_v8, %v8159_v2  ;;  %8528 = vrot.lane.b32.xlu1 %v15086_v11, %s10116_s6  ;;  %v8080_v58 = vpop.f32.mrf.mxu0  ;;  %v8290_v9 = vsel %vm1746_vm4, %v15090_v46, %v15092_v6  ;;  %v8289_v62 = vsel %vm1744_vm2, %v15090_v46, %v15092_v6  ;;  %v15109_v19 = vsel %vm1752_vm5, %v15092_v6, %v15090_v46 }
 0x733   :  { %v8121_v55 = vpop.f32.mrf.mxu1  ;;  %v8291_v52 = vrot.slane %v8290_v9, 2  ;;  %v9799_v54 = vrot.slane %v8289_v62, 9  ;;  %v8295_v8 = vrot.slane %v15109_v19, 6 }
 0x734   :  { %v8221_v26 = vadd.f32 %v8201_v10, %v7844_v47  ;;  %v8122_v38 = vadd.f32 %v8121_v55, %v8080_v58 }
 0x735   :  { %v9800_v17 = vrot.slane %v8291_v52, 9  ;;  %v15151_v63 = vmax.f32 %v8289_v62, %v9799_v54  ;;  %v9802_v32 = vrot.slane %v8295_v8, 9 }
 0x736   :  { %v8237_v13 = vmax.f32 %v8221_v26, 0.0  ;;  %v8222_v39 = vadd.f32 %v8122_v38, %v7845_v34  ;;  %v15160_v26 = vsel %vm1749_vm3, %v15090_v46, %v15092_v6  ;;  %v7472_v6 = vadd.f32 %v14968_v28, %v14947_v61 }
 0x737   :  { %v15146_v14 = vmax.f32 %v8291_v52, %v9800_v17  ;;  %v7833_v38 = vadd.f32 %v15018_v15, %v15016_v48 }
 0x738   :  { %v15125_v31 = vrot.slane %v8237_v13, 6  ;;  %v8162_v27 = vpop.f32.mrf.mxu2  ;;  %v8238_v58 = vmax.f32 %v8222_v39, 0.0  ;;  %v7849_v25 = vadd.f32 %v7751_v1, %v7472_v6 }
 0x739   :  { %v8203_v29 = vpop.f32.mrf.mxu3  ;;  %8536 = vrot.lane.b32.xlu0 %v15119_v21, %s10116_s6  ;;  %8534 = vrot.lane.b32.xlu2 %v15121_v50, %s10116_s6 }
 0x73a   :  { %v8204_v35 = vadd.f32 %v8203_v29, %v8162_v27  ;;  %8538 = vrot.lane.b32.xlu1 %v15127_v20, %s10116_s6  ;;  %v8301_v43 = vsel %vm1752_vm5, %v15125_v31, %v15123_v24  ;;  %v8297_v3 = vsel %vm1746_vm4, %v15123_v24, %v15125_v31  ;;  %v15144_v41 = vsel %vm1744_vm2, %v15123_v24, %v15125_v31  ;;  %v8083_v57 = vpop.f32.mrf.mxu0 }
 0x73b   :  { %v8124_v56 = vpop.f32.mrf.mxu1  ;;  %v8302_v22 = vrot.slane %v8301_v43, 6  ;;  %v8298_v10 = vrot.slane %v8297_v3, 2  ;;  %v7473_v29 = vadd.f32 %v14975_v12, %v14953_v42  ;;  %v8299_v12 = vsel %vm1749_vm3, %v15123_v24, %v15125_v31 }
 0x73c   :  { %v8223_v4 = vadd.f32 %v8204_v35, %v7846_v16  ;;  %v8125_v55 = vadd.f32 %v8124_v56, %v8083_v57  ;;  %v15177_v35 = vmax.f32 %v8295_v8, %v9802_v32 }
 0x73d   :  { %v9806_v2 = vrot.slane %v8302_v22, 9  ;;  %v9804_v13 = vrot.slane %v8298_v10, 9  ;;  %v7850_v48 = vadd.f32 %v7833_v38, %v7473_v29  ;;  %v8293_v38 = vrot.slane %v15160_v26, 4 }
 0x73e   :  { %v8239_v23 = vmax.f32 %v8223_v4, 0.0  ;;  %v8224_v52 = vadd.f32 %v8125_v55, %v15006_v51  ;;  %v9803_v4 = vrot.slane %v15144_v41, 9 }
 0x73f   :  { %v15148_v47 = vmax.f32 %v8302_v22, %v9806_v2  ;;  %v15179_v43 = vmax.f32 %v8298_v10, %v9804_v13 }
 0x740   :  { %v8265_v9 = vrot.slane %v8239_v23, 6  ;;  %v8165_v33 = vpop.f32.mrf.mxu2  ;;  %v15199_v24 = vmax.f32 %v15144_v41, %v9803_v4 }
 0x741   :  { %v8206_v30 = vpop.f32.mrf.mxu3  ;;  %8542 = vrot.lane.b32.xlu0 %v15146_v14, %s10116_s6  ;;  %8554 = vrot.lane.b32.xlu2 %v15148_v47, %s10116_s6 }
 0x742   :  { %v8207_v19 = vadd.f32 %v8206_v30, %v8165_v33  ;;  %8540 = vrot.lane.b32.xlu1 %v15151_v63, %s10116_s6  ;;  %v8308_v53 = vsel %vm1752_vm5, %v8265_v9, %v8238_v58  ;;  %v8304_v62 = vsel %vm1746_vm4, %v8238_v58, %v8265_v9  ;;  %v8303_v0 = vsel %vm1744_vm2, %v8238_v58, %v8265_v9  ;;  %v8086_v27 = vpop.f32.mrf.mxu0 }
 0x743   :  { %v8309_v37 = vrot.slane %v8308_v53, 6  ;;  %v8127_v34 = vpop.f32.mrf.mxu1  ;;  %v8305_v57 = vrot.slane %v8304_v62, 2  ;;  %v8306_v42 = vsel %vm1749_vm3, %v8238_v58, %v8265_v9  ;;  %v9807_v62 = vrot.slane %v8303_v0, 9 }
 0x744   :  { %v8225_v46 = vadd.f32 %v8207_v19, %v15014_v40  ;;  %v8240_v40 = vmax.f32 %v8224_v52, 0.0  ;;  %v8128_v61 = vadd.f32 %v8127_v34, %v8086_v27  ;;  %v8307_v26 = vrot.slane %v8306_v42, 4 }
 0x745   :  { %v9810_v16 = vrot.slane %v8309_v37, 9  ;;  %v9808_v8 = vrot.slane %v8305_v57, 9  ;;  %v15215_v52 = vmax.f32 %v8303_v0, %v9807_v62 }
 0x746   :  { %v8241_v49 = vmax.f32 %v8225_v46, 0.0  ;;  %v8226_v2 = vadd.f32 %v8128_v61, %v7849_v25 }
 0x747   :  { %v15181_v51 = vmax.f32 %v8309_v37, %v9810_v16  ;;  %v15203_v33 = vmax.f32 %v8305_v57, %v9808_v8  ;;  %v9801_v16 = vrot.slane %v8293_v38, 9  ;;  %v8850_v8 = vld [vmem:[#allocation14 + $0x1b8] sm:$0xff] }
 0x748   :  { %v8266_v3 = vrot.slane %v8241_v49, 6  ;;  %v8168_v28 = vpop.f32.mrf.mxu2  ;;  %v8242_v9 = vmax.f32 %v8226_v2, 0.0  ;;  %8916 = vmatpush.msra.mxu3 %v8850_v8  ;;  %v8732_v8 = vld [vmem:[#allocation14 + $0xb8] sm:$0xff] }
 0x749   :  { %v8209_v15 = vpop.f32.mrf.mxu3  ;;  %8546 = vrot.lane.b32.xlu0 %v15177_v35, %s10116_s6  ;;  %8562 = vrot.lane.b32.xlu2 %v15181_v51, %s10116_s6  ;;  %v15230_v49 = vmax.f32 %v8293_v38, %v9801_v16  ;;  %v8734_v38 = vld [vmem:[#allocation14 + $0xc8] sm:$0xff]  ;;  %v8847_v16 = vld [vmem:[#allocation14 + $0x1a0] sm:$0xff] }
 0x74a   :  { %v8210_v56 = vadd.f32 %v8209_v15, %v8168_v28  ;;  %8550 = vrot.lane.b32.xlu1 %v15179_v43, %s10116_s6  ;;  %v8310_v17 = vsel %vm1744_vm2, %v8240_v40, %v8266_v3  ;;  %v8315_v22 = vsel %vm1752_vm5, %v8266_v3, %v8240_v40  ;;  %v8311_v39 = vsel %vm1746_vm4, %v8240_v40, %v8266_v3 }
 0x74b   :  { %v9811_v54 = vrot.slane %v8310_v17, 9  ;;  %v8313_v10 = vsel %vm1749_vm3, %v8240_v40, %v8266_v3  ;;  %v8316_v30 = vrot.slane %v8315_v22, 6  ;;  %v8312_v6 = vrot.slane %v8311_v39, 2 }
 0x74c   :  { %v8227_v23 = vadd.f32 %v8210_v56, %v7850_v48  ;;  %v8300_v3 = vrot.slane %v8299_v12, 4  ;;  %v9809_v28 = vrot.slane %v8307_v26, 9  ;;  %v8314_v42 = vrot.slane %v8313_v10, 4  ;;  %v8724_v10 = vld [vmem:[#allocation14 + $0x78] sm:$0xff] }
 0x74d   :  { %v15201_v31 = vmax.f32 %v8310_v17, %v9811_v54  ;;  %v9814_v13 = vrot.slane %v8316_v30, 9  ;;  %v9812_v34 = vrot.slane %v8312_v6, 9  ;;  %8778 = vmatpush.msrb.mxu0 %v8724_v10  ;;  %v8829_v10 = vld [vmem:[#allocation14 + $0x110] sm:$0xff] }
 0x74e   :  { %v8243_v58 = vmax.f32 %v8227_v23, 0.0  ;;  %v9805_v57 = vrot.slane %v8300_v3, 9  ;;  %v15242_v15 = vmax.f32 %v8307_v26, %v9809_v28  ;;  %v9813_v17 = vrot.slane %v8314_v42, 9  ;;  %v8838_v23 = vld [vmem:[#allocation14 + $0x158] sm:$0xff]  ;;  %v8832_v26 = vld [vmem:[#allocation14 + $0x128] sm:$0xff] }
 0x74f   :  { %v15220_v27 = vmax.f32 %v8316_v30, %v9814_v13  ;;  %v15228_v29 = vmax.f32 %v8312_v6, %v9812_v34  ;;  %8892 = vmatpush.msra.mxu2 %v8838_v23  ;;  %v8849_v30 = vld [vmem:[#allocation14 + $0x1b0] sm:$0xff]  ;;  %v8722_v13 = vld [vmem:[#allocation14 + $0x68] sm:$0xff]  ;;  %v8834_v6 = vld [vmem:[#allocation14 + $0x138] sm:$0xff] }
 0x750   :  { %v8267_v55 = vrot.slane %v8243_v58, 6  ;;  %16318 = vst [vmem:[#allocation26_spill] sm:$0xff] %v15242_v15  ;;  %v15244_v56 = vmax.f32 %v8300_v3, %v9805_v57  ;;  %v15252_v39 = vmax.f32 %v8314_v42, %v9813_v17  ;;  %v8736_v58 = vld [vmem:[#allocation14 + $0xd8] sm:$0xff]  ;;  %8917 = vmatpush.msra.mxu3 %v8849_v30  ;;  %v8721_v34 = vld [vmem:[#allocation14 + $0x60] sm:$0xff]  ;;  %v8718_v23 = vld [vmem:[#allocation14 + $0x48] sm:$0xff] }
 0x751   :  { %8548 = vrot.lane.b32.xlu0 %v15199_v24, %s10116_s6  ;;  %8564 = vrot.lane.b32.xlu2 %v15201_v31, %s10116_s6  ;;  %v8720_v28 = vld [vmem:[#allocation14 + $0x58] sm:$0xff]  ;;  %v8733_v57 = vld [vmem:[#allocation14 + $0xc0] sm:$0xff] }
 0x752   :  { %8558 = vrot.lane.b32.xlu1 %v15203_v33, %s10116_s6  ;;  %v8318_v19 = vsel %vm1746_vm4, %v8242_v9, %v8267_v55  ;;  %v8317_v41 = vsel %vm1744_vm2, %v8242_v9, %v8267_v55  ;;  %v8322_v53 = vsel %vm1752_vm5, %v8267_v55, %v8242_v9  ;;  %v8320_v32 = vsel %vm1749_vm3, %v8242_v9, %v8267_v55  ;;  %v8837_v9 = vld [vmem:[#allocation14 + $0x150] sm:$0xff]  ;;  %v8831_v42 = vld [vmem:[#allocation14 + $0x120] sm:$0xff]  ;;  %v8846_v17 = vld [vmem:[#allocation14 + $0x198] sm:$0xff] }
 0x753   :  { %v8319_v1 = vrot.slane %v8318_v19, 2  ;;  %v9815_v0 = vrot.slane %v8317_v41, 9  ;;  %v8323_v25 = vrot.slane %v8322_v53, 6  ;;  %v8321_v12 = vrot.slane %v8320_v32, 4  ;;  %16319 = vst [vmem:[#allocation63_spill] sm:$0xff] %v15252_v39  ;;  %8802 = vmatpush.msrb.mxu1 %v8736_v58  ;;  %v8723_v19 = vld [vmem:[#allocation14 + $0x70] sm:$0xff]  ;;  %8893 = vmatpush.msra.mxu2 %v8837_v9 }
 0x754   :  { %v8735_v53 = vld [vmem:[#allocation14 + $0xd0] sm:$0xff]  ;;  %8779 = vmatpush.msrb.mxu0 %v8723_v19  ;;  %v8848_v32 = vld [vmem:[#allocation14 + $0x1a8] sm:$0xff] }
 0x755   :  { %v9816_v37 = vrot.slane %v8319_v1, 9  ;;  %v15232_v40 = vmax.f32 %v8317_v41, %v9815_v0  ;;  %v9818_v61 = vrot.slane %v8323_v25, 9  ;;  %v9817_v22 = vrot.slane %v8321_v12, 9  ;;  %v8836_v41 = vld [vmem:[#allocation14 + $0x148] sm:$0xff]  ;;  %8803 = vmatpush.msrb.mxu1 %v8735_v53  ;;  %8918 = vmatpush.msra.mxu3 %v8848_v32  ;;  %v8717_v53 = vld [vmem:[#allocation14 + $0x40] sm:$0xff] }
 0x756   :  { %8894 = vmatpush.msra.mxu2 %v8836_v41  ;;  %8780 = vmatpush.msrb.mxu0 %v8722_v13  ;;  %v8828_v9 = vld [vmem:[#allocation14 + $0x108] sm:$0xff]  ;;  %v8845_v41 = vld [vmem:[#allocation14 + $0x190] sm:$0xff]  ;;  %v8827_v32 = vld [vmem:[#allocation14 + $0x100] sm:$0xff] }
 0x757   :  { %v15217_v46 = vmax.f32 %v8319_v1, %v9816_v37  ;;  %v15240_v48 = vmax.f32 %v8323_v25, %v9818_v61  ;;  %v15254_v4 = vmax.f32 %v8321_v12, %v9817_v22  ;;  %v8835_v37 = vld [vmem:[#allocation14 + $0x140] sm:$0xff]  ;;  %8804 = vmatpush.msrb.mxu1 %v8734_v38  ;;  %v8833_v25 = vld [vmem:[#allocation14 + $0x130] sm:$0xff]  ;;  %8919 = vmatpush.msra.mxu3 %v8847_v16  ;;  %v8830_v12 = vld [vmem:[#allocation14 + $0x118] sm:$0xff] }
 0x758   :  { %8895 = vmatpush.msra.mxu2 %v8835_v37  ;;  %8781 = vmatpush.msrb.mxu0 %v8721_v34  ;;  %v8719_v22 = vld [vmem:[#allocation14 + $0x50] sm:$0xff]  ;;  %v8716_v13 = vld [vmem:[#allocation14 + $0x38] sm:$0xff]  ;;  %v8844_v34 = vld [vmem:[#allocation14 + $0x188] sm:$0xff] }
 0x759   :  { %8556 = vrot.lane.b32.xlu0 %v15215_v52, %s10116_s6  ;;  %8574 = vrot.lane.b32.xlu2 %v15217_v46, %s10116_s6  ;;  %16320 = vst [vmem:[#allocation70_spill] sm:$0xff] %v15254_v4  ;;  %v8826_v37 = vld [vmem:[#allocation14 + $0xf8] sm:$0xff]  ;;  %v8715_v38 = vld [vmem:[#allocation14 + $0x30] sm:$0xff] }
 0x75a   :  { %8570 = vrot.lane.b32.xlu1 %v15220_v27, %s10116_s6  ;;  %8896 = vmatpush.msra.mxu2 %v8834_v6  ;;  %v8731_v6 = vld [vmem:[#allocation14 + $0xb0] sm:$0xff] }
 0x75b   :  { %8782 = vmatpush.msrb.mxu0 %v8720_v28  ;;  %8805 = vmatpush.msrb.mxu1 %v8733_v57  ;;  %v8825_v16 = vld [vmem:[#allocation14 + $0xf0] sm:$0xff] }
 0x75c   :  { %8897 = vmatpush.msra.mxu2 %v8833_v25  ;;  %8920 = vmatpush.msra.mxu3 %v8846_v17  ;;  %v8714_v25 = vld [vmem:[#allocation14 + $0x28] sm:$0xff] }
 0x75d   :  { %8783 = vmatpush.msrb.mxu0 %v8719_v22  ;;  %8806 = vmatpush.msrb.mxu1 %v8732_v8  ;;  %v8730_v17 = vld [vmem:[#allocation14 + $0xa8] sm:$0xff]  ;;  %v8823_v22 = vld [vmem:[#allocation14 + $0xe0] sm:$0xff]  ;;  %v9060_v8 = vld [vmem:[#allocation14 + $0x318] sm:$0xff] }
 0x75e   :  { %8898 = vmatpush.msra.mxu2 %v8832_v26  ;;  %8921 = vmatpush.msra.mxu3 %v8845_v41  ;;  %v8824_v26 = vld [vmem:[#allocation14 + $0xe8] sm:$0xff] }
 0x75f   :  { %8784 = vmatpush.msrb.mxu0 %v8718_v23  ;;  %8807 = vmatpush.msrb.mxu1 %v8731_v6  ;;  %v8843_v23 = vld [vmem:[#allocation14 + $0x180] sm:$0xff] }
 0x760   :  { %8899 = vmatpush.msra.mxu2 %v8831_v42  ;;  %8922 = vmatpush.msra.mxu3 %v8844_v34  ;;  %v8729_v6 = vld [vmem:[#allocation14 + $0xa0] sm:$0xff]  ;;  %v9058_v34 = vld [vmem:[#allocation14 + $0x308] sm:$0xff] }
 0x761   :  { %8566 = vrot.lane.b32.xlu0 %v15228_v29, %s10116_s6  ;;  %8544 = vrot.lane.b32.xlu2 %v15230_v49, %s10116_s6 }
 0x762   :  { %8572 = vrot.lane.b32.xlu1 %v15232_v40, %s10116_s6  ;;  %8900 = vmatpush.msra.mxu2 %v8830_v12  ;;  %v8713_v12 = vld [vmem:[#allocation14 + $0x20] sm:$0xff] }
 0x763   :  { %8785 = vmatpush.msrb.mxu0 %v8717_v53  ;;  %8808 = vmatpush.msrb.mxu1 %v8730_v17  ;;  %v9059_v53 = vld [vmem:[#allocation14 + $0x310] sm:$0xff] }
 0x764   :  { %8901 = vmatpush.msra.mxu2 %v8829_v10  ;;  %v8712_v10 = vld [vmem:[#allocation14 + $0x18] sm:$0xff]  ;;  %8923 = vmatpush.msra.mxu3 %v8843_v23 }
 0x765   :  { %8786 = vmatpush.msrb.mxu0 %v8716_v13  ;;  %8809 = vmatpush.msrb.mxu1 %v8729_v6  ;;  %v8839_v6 = vld [vmem:[#allocation14 + $0x160] sm:$0xff] }
 0x766   :  { %8902 = vmatpush.msra.mxu2 %v8828_v9  ;;  %v8842_v9 = vld [vmem:[#allocation14 + $0x178] sm:$0xff] }
 0x767   :  { %8787 = vmatpush.msrb.mxu0 %v8715_v38  ;;  %8924 = vmatpush.msra.mxu3 %v8842_v9 }
 0x768   :  { %8903 = vmatpush.msra.mxu2 %v8827_v32  ;;  %v8711_v32 = vld [vmem:[#allocation14 + $0x10] sm:$0xff] }
 0x769   :  { %8578 = vrot.lane.b32.xlu0 %v15240_v48, %s10116_s6  ;;  %8560 = vrot.lane.b32.xlu2 %v15242_v15, %s10116_s6  ;;  %v8948_v15 = vld [vmem:[#allocation14 + $0x230] sm:$0xff] }
 0x76a   :  { %8552 = vrot.lane.b32.xlu1 %v15244_v56, %s10116_s6  ;;  %8904 = vmatpush.msra.mxu2 %v8826_v37  ;;  %v8841_v37 = vld [vmem:[#allocation14 + $0x170] sm:$0xff] }
 0x76b   :  { %8788 = vmatpush.msrb.mxu0 %v8714_v25  ;;  %8925 = vmatpush.msra.mxu3 %v8841_v37  ;;  %v9056_v37 = vld [vmem:[#allocation14 + $0x2f8] sm:$0xff] }
 0x76c   :  { %8905 = vmatpush.msra.mxu2 %v8825_v16  ;;  %v8710_v16 = vld [vmem:[#allocation14 + $0x8] sm:$0xff] }
 0x76d   :  { %8789 = vmatpush.msrb.mxu0 %v8713_v12 }
 0x76e   :  { %8906 = vmatpush.msra.mxu2 %v8824_v26  ;;  %v8840_v26 = vld [vmem:[#allocation14 + $0x168] sm:$0xff] }
 0x76f   :  { %8790 = vmatpush.msrb.mxu0 %v8712_v10  ;;  %8926 = vmatpush.msra.mxu3 %v8840_v26 }
 0x770   :  { %8907 = vmatpush.msra.mxu2 %v8823_v22 }
 0x771   :  { %8568 = vrot.lane.b32.xlu0 %v15252_v39, %s10116_s6  ;;  %8791 = vmatpush.msrb.mxu0 %v8711_v32  ;;  %v8709_v32 = vld [vmem:[#allocation14] sm:$0xff]  ;;  %v9072_v39 = vld [vmem:[#allocation14 + $0x378] sm:$0xff] }
 0x772   :  { %8576 = vrot.lane.b32.xlu1 %v15254_v4, %s10116_s6  ;;  %9114 = vmatpush.msrb.mxu2 %v9060_v8  ;;  %v8949_v4 = vld [vmem:[#allocation14 + $0x238] sm:$0xff] }
 0x773   :  { %8792 = vmatpush.msrb.mxu0 %v8710_v16  ;;  %v8728_v16 = vld [vmem:[#allocation14 + $0x98] sm:$0xff]  ;;  %8927 = vmatpush.msra.mxu3 %v8839_v6 }
 0x774   :  { %9115 = vmatpush.msrb.mxu2 %v9059_v53  ;;  %v9057_v53 = vld [vmem:[#allocation14 + $0x300] sm:$0xff]  ;;  %8810 = vmatpush.msrb.mxu1 %v8728_v16 }
 0x775   :  { %8793 = vmatpush.msrb.mxu0 %v8709_v32  ;;  %9138 = vmatpush.msrb.mxu3 %v9072_v39  ;;  %v8726_v39 = vld [vmem:[#allocation14 + $0x88] sm:$0xff] }
 0x776   :  { %9116 = vmatpush.msrb.mxu2 %v9058_v34 }
 0x777   :  { %9003 = vmatpush.msra.mxu0 %v8949_v4  ;;  %v9054_v4 = vld [vmem:[#allocation14 + $0x2e8] sm:$0xff] }
 0x778   :  { %9117 = vmatpush.msrb.mxu2 %v9057_v53 }
 0x779   :  { %v15260_v54 = vpop.permute.xlu2 %8516  ;;  %9004 = vmatpush.msra.mxu0 %v8948_v15 }
 0x77a   :  { %v8580_v41 = vrot.slane %v15260_v54, 2  ;;  %9118 = vmatpush.msrb.mxu2 %v9056_v37 }
 0x77c   :  { %v8612_v12 = vsel %vm217_vm1, %v15260_v54, %v8580_v41 }
 0x783   :  { %v15262_v2 = vpop.permute.xlu2 %8530 }
 0x784   :  { %v8587_v13 = vrot.slane %v15262_v2, 2 }
 0x786   :  { %v8619_v8 = vsel %vm217_vm1, %v15262_v2, %v8587_v13  ;;  %v15308_v2 = vmax.f32 %v15040_v45, %v8612_v12 }
 0x78b   :  { %v15264_v55 = vpop.permute.xlu2 %8532 }
 0x78c   :  { %v8588_v25 = vrot.slane %v15264_v55, 2 }
 0x78e   :  { %v8620_v13 = vsel %vm217_vm1, %v15264_v55, %v8588_v25  ;;  %v9055_v55 = vld [vmem:[#allocation14 + $0x2f0] sm:$0xff] }
 0x78f   :  { %v9071_v25 = vld [vmem:[#allocation14 + $0x370] sm:$0xff]  ;;  %9119 = vmatpush.msrb.mxu2 %v9055_v55 }
 0x790   :  { %9139 = vmatpush.msrb.mxu3 %v9071_v25  ;;  %v8961_v25 = vld [vmem:[#allocation14 + $0x298] sm:$0xff] }
 0x791   :  { %9120 = vmatpush.msrb.mxu2 %v9054_v4 }
 0x793   :  { %v15266_v62 = vpop.permute.xlu1 %8522  ;;  %v15268_v1 = vpop.permute.xlu0 %8518 }
 0x794   :  { %v15270_v0 = vpop.permute.xlu2 %8534  ;;  %v8583_v38 = vrot.slane %v15266_v62, 2  ;;  %v8581_v17 = vrot.slane %v15268_v1, 2 }
 0x795   :  { %v8589_v10 = vrot.slane %v15270_v0, 2 }
 0x796   :  { %v8615_v54 = vsel %vm217_vm1, %v15266_v62, %v8583_v38  ;;  %v15314_v62 = vmax.f32 %v15060_v5, %v8619_v8  ;;  %v8613_v38 = vsel %vm217_vm1, %v15268_v1, %v8581_v17  ;;  %v8727_v1 = vld [vmem:[#allocation14 + $0x90] sm:$0xff]  ;;  %v8947_v17 = vld [vmem:[#allocation14 + $0x228] sm:$0xff]  ;;  %v8745_v8 = vperm.slane %v15308_v2, 0 }
 0x797   :  { %v15322_v12 = vmax.f32 %v15044_v59, %v8615_v54  ;;  %v8621_v53 = vsel %vm217_vm1, %v15270_v0, %v8589_v10  ;;  %v15332_v59 = vmax.f32 %v15046_v18, %v8613_v38  ;;  %8811 = vmatpush.msrb.mxu1 %v8727_v1  ;;  %9005 = vmatpush.msra.mxu0 %v8947_v17  ;;  %v9069_v54 = vld [vmem:[#allocation14 + $0x360] sm:$0xff]  ;;  %v8945_v38 = vld [vmem:[#allocation14 + $0x218] sm:$0xff]  ;;  %v8944_v17 = vld [vmem:[#allocation14 + $0x210] sm:$0xff] }
 0x798   :  { %v9083_v15 = vperm.slane %v15314_v62, 0  ;;  %v15342_v32 = vmax.f32 %v15121_v50, %v8621_v53  ;;  %v9084_v37 = vperm.slane %v15314_v62, 2 }
 0x799   :  { %8812 = vmatpush.msrb.mxu1 %v8726_v39  ;;  %v8859_v53 = vperm.slane %v15332_v59, 0  ;;  %v8860_v4 = vperm.slane %v15332_v59, 2 }
 0x79a   :  { %v8864_v59 = vperm.slane %v15342_v32, 2 }
 0x79b   :  { %v15272_v3 = vpop.permute.xlu0 %8520 }
 0x79c   :  { %v15274_v61 = vpop.permute.xlu1 %8526  ;;  %v15276_v58 = vpop.permute.xlu2 %8554  ;;  %v8582_v34 = vrot.slane %v15272_v3, 2 }
 0x79d   :  { %v8585_v22 = vrot.slane %v15274_v61, 2  ;;  %v8599_v5 = vrot.slane %v15276_v58, 2 }
 0x79e   :  { %v8614_v0 = vsel %vm217_vm1, %v15272_v3, %v8582_v34  ;;  %v8946_v3 = vld [vmem:[#allocation14 + $0x220] sm:$0xff]  ;;  %v9082_v34 = vperm.slane %v15322_v12, 2 }
 0x79f   :  { %v8617_v26 = vsel %vm217_vm1, %v15274_v61, %v8585_v22  ;;  %v15328_v61 = vmax.f32 %v15088_v36, %v8620_v13  ;;  %v9070_v22 = vld [vmem:[#allocation14 + $0x368] sm:$0xff]  ;;  %v8746_v36 = vperm.slane %v15308_v2, 2  ;;  %v9081_v13 = vperm.slane %v15322_v12, 0  ;;  %9006 = vmatpush.msra.mxu0 %v8946_v3  ;;  %v9052_v12 = vld [vmem:[#allocation14 + $0x2d8] sm:$0xff] }
 0x7a0   :  { %v15337_v10 = vmax.f32 %v15062_v7, %v8617_v26  ;;  %v9053_v7 = vld [vmem:[#allocation14 + $0x2e0] sm:$0xff]  ;;  %v8631_v50 = vsel %vm217_vm1, %v15276_v58, %v8599_v5  ;;  %9140 = vmatpush.msrb.mxu3 %v9070_v22  ;;  %v8863_v22 = vperm.slane %v15342_v32, 0  ;;  %v8960_v58 = vld [vmem:[#allocation14 + $0x290] sm:$0xff] }
 0x7a1   :  { %v8749_v26 = vperm.slane %v15328_v61, 0  ;;  %9121 = vmatpush.msrb.mxu2 %v9053_v7  ;;  %v15371_v39 = vmax.f32 %v15148_v47, %v8631_v50  ;;  %9007 = vmatpush.msra.mxu0 %v8945_v38  ;;  %v15379_v7 = vsel %vm3962_vm15, %v9084_v37, %v9082_v34  ;;  %v9067_v47 = vld [vmem:[#allocation14 + $0x350] sm:$0xff]  ;;  %v8959_v37 = vld [vmem:[#allocation14 + $0x288] sm:$0xff]  ;;  %v9049_v32 = vld [vmem:[#allocation14 + $0x2c0] sm:$0xff] }
 0x7a2   :  { %v8861_v5 = vperm.slane %v15337_v10, 0  ;;  %9141 = vmatpush.msrb.mxu3 %v9069_v54 }
 0x7a3   :  { %v15278_v30 = vpop.permute.xlu0 %8524  ;;  %9122 = vmatpush.msrb.mxu2 %v9052_v12  ;;  %9008 = vmatpush.msra.mxu0 %v8944_v17  ;;  %v9050_v12 = vld [vmem:[#allocation14 + $0x2c8] sm:$0xff] }
 0x7a4   :  { %v15280_v19 = vpop.permute.xlu1 %8528  ;;  %v15282_v28 = vpop.permute.xlu2 %8562  ;;  %v8584_v45 = vrot.slane %v15278_v30, 2  ;;  %v8875_v34 = vsel %vm3962_vm15, %v8861_v5, %v8859_v53 }
 0x7a5   :  { %v8586_v62 = vrot.slane %v15280_v19, 2  ;;  %v8603_v55 = vrot.slane %v15282_v28, 2 }
 0x7a6   :  { %v8616_v18 = vsel %vm217_vm1, %v15278_v30, %v8584_v45  ;;  %v8725_v30 = vld [vmem:[#allocation14 + $0x80] sm:$0xff]  ;;  %v15357_v45 = vmax.f32 %v15058_v60, %v8614_v0  ;;  %v9068_v60 = vld [vmem:[#allocation14 + $0x358] sm:$0xff]  ;;  %v8862_v0 = vperm.slane %v15337_v10, 2  ;;  %v8943_v10 = vld [vmem:[#allocation14 + $0x208] sm:$0xff] }
 0x7a7   :  { %v15365_v1 = vmax.f32 %v15084_v44, %v8616_v18  ;;  %8813 = vmatpush.msrb.mxu1 %v8725_v30  ;;  %v9051_v44 = vld [vmem:[#allocation14 + $0x2d0] sm:$0xff]  ;;  %v15376_v18 = vsel %vm3962_vm15, %v9083_v15, %v9081_v13  ;;  %v8618_v30 = vsel %vm217_vm1, %v15280_v19, %v8586_v62  ;;  %v8635_v15 = vsel %vm217_vm1, %v15282_v28, %v8603_v55  ;;  %v9066_v19 = vld [vmem:[#allocation14 + $0x348] sm:$0xff] }
 0x7a8   :  { %v8970_v50 = vperm.slane %v15357_v45, 0  ;;  %9142 = vmatpush.msrb.mxu3 %v9068_v60  ;;  %9123 = vmatpush.msrb.mxu2 %v9051_v44  ;;  %v8882_v62 = vsel %vm3962_vm15, %v8862_v0, %v8860_v4  ;;  %v9089_v28 = vperm.slane %v15371_v39, 0  ;;  %v15400_v53 = vmax.f32 %v15086_v11, %v8618_v30  ;;  %v8958_v44 = vld [vmem:[#allocation14 + $0x280] sm:$0xff]  ;;  %v8957_v30 = vld [vmem:[#allocation14 + $0x278] sm:$0xff] }
 0x7a9   :  { %9027 = vmatpush.msra.mxu1 %v8961_v25  ;;  %v8747_v38 = vperm.slane %v15365_v1, 0  ;;  %v8748_v55 = vperm.slane %v15365_v1, 2  ;;  %9009 = vmatpush.msra.mxu0 %v8943_v10  ;;  %v8942_v1 = vld [vmem:[#allocation14 + $0x200] sm:$0xff]  ;;  %v15414_v10 = vsel %vm3944_vm8, %v8863_v22, %v8875_v34  ;;  %v9064_v34 = vld [vmem:[#allocation14 + $0x338] sm:$0xff] }
 0x7aa   :  { %9143 = vmatpush.msrb.mxu3 %v9067_v47  ;;  %v9090_v47 = vperm.slane %v15371_v39, 2  ;;  %9124 = vmatpush.msrb.mxu2 %v9050_v12 }
 0x7ab   :  { %v15284_v57 = vpop.permute.xlu0 %8536  ;;  %9028 = vmatpush.msra.mxu1 %v8960_v58  ;;  %v15403_v58 = vmax.f32 %v15181_v51, %v8635_v15  ;;  %v8761_v15 = vsel %vm3962_vm15, %v8747_v38, %v8745_v8  ;;  %9010 = vmatpush.msra.mxu0 %v8942_v1  ;;  %v8768_v12 = vsel %vm3962_vm15, %v8748_v55, %v8746_v36  ;;  %v8956_v38 = vld [vmem:[#allocation14 + $0x270] sm:$0xff] }
 0x7ac   :  { %v15286_v42 = vpop.permute.xlu1 %8538  ;;  %v15305_v41 = vpop.permute.xlu2 %8564  ;;  %v8590_v4 = vrot.slane %v15284_v57, 2  ;;  %9144 = vmatpush.msrb.mxu3 %v9066_v19  ;;  %9125 = vmatpush.msrb.mxu2 %v9049_v32  ;;  %v15448_v32 = vsel %vm3944_vm8, %v8749_v26, %v8761_v15 }
 0x7ad   :  { %v8591_v54 = vrot.slane %v15286_v42, 2  ;;  %v8604_v13 = vrot.slane %v15305_v41, 2  ;;  %9029 = vmatpush.msra.mxu1 %v8959_v37  ;;  %v15421_v37 = vsel %vm3944_vm8, %v8864_v59, %v8882_v62  ;;  %v9092_v62 = vperm.slane %v15403_v58, 2 }
 0x7ae   :  { %v8622_v2 = vsel %vm217_vm1, %v15284_v57, %v8590_v4  ;;  %v16321_v4 = vperm.slane %v15328_v61, 2 }
 0x7af   :  { %v8623_v5 = vsel %vm217_vm1, %v15286_v42, %v8591_v54  ;;  %v8636_v11 = vsel %vm217_vm1, %v15305_v41, %v8604_v13  ;;  %v9065_v42 = vld [vmem:[#allocation14 + $0x340] sm:$0xff]  ;;  %v8941_v54 = vld [vmem:[#allocation14 + $0x1f8] sm:$0xff]  ;;  %9030 = vmatpush.msra.mxu1 %v8958_v44  ;;  %v15467_v61 = vmax.f32 %v15119_v21, %v8622_v2 }
 0x7b0   :  { %v9048_v13 = vld [vmem:[#allocation14 + $0x2b8] sm:$0xff]  ;;  %v15430_v19 = vmax.f32 %v15127_v20, %v8623_v5  ;;  %9145 = vmatpush.msrb.mxu3 %v9065_v42  ;;  %v15440_v36 = vmax.f32 %v15201_v31, %v8636_v11  ;;  %9011 = vmatpush.msra.mxu0 %v8941_v54  ;;  %v9047_v20 = vld [vmem:[#allocation14 + $0x2b0] sm:$0xff]  ;;  %v8939_v31 = vld [vmem:[#allocation14 + $0x1e8] sm:$0xff]  ;;  %v15456_v1 = vsel %vm3944_vm8, %v16321_v4, %v8768_v12 }
 0x7b1   :  { %9031 = vmatpush.msra.mxu1 %v8957_v30  ;;  %9126 = vmatpush.msrb.mxu2 %v9048_v13  ;;  %v9046_v11 = vld [vmem:[#allocation14 + $0x2a8] sm:$0xff]  ;;  %v8938_v30 = vld [vmem:[#allocation14 + $0x1e0] sm:$0xff]  ;;  %v8974_v39 = vperm.slane %v15467_v61, 0 }
 0x7b2   :  { %9146 = vmatpush.msrb.mxu3 %v9064_v34  ;;  %v9086_v42 = vperm.slane %v15430_v19, 2  ;;  %v8757_v15 = vperm.slane %v15440_v36, 0  ;;  %v8954_v21 = vld [vmem:[#allocation14 + $0x260] sm:$0xff] }
 0x7b3   :  { %v15296_v23 = vpop.permute.xlu0 %8542  ;;  %9032 = vmatpush.msra.mxu1 %v8956_v38  ;;  %9127 = vmatpush.msrb.mxu2 %v9047_v20  ;;  %v9045_v12 = vld [vmem:[#allocation14 + $0x2a0] sm:$0xff]  ;;  %v8937_v38 = vld [vmem:[#allocation14 + $0x1d8] sm:$0xff] }
 0x7b4   :  { %v15301_v9 = vpop.permute.xlu1 %8540  ;;  %v15373_v3 = vpop.permute.xlu2 %8574  ;;  %v8593_v25 = vrot.slane %v15296_v23, 2 }
 0x7b5   :  { %v8592_v60 = vrot.slane %v15301_v9, 2  ;;  %v8609_v51 = vrot.slane %v15373_v3, 2  ;;  %9128 = vmatpush.msrb.mxu2 %v9046_v11  ;;  %v8935_v11 = vld [vmem:[#allocation14 + $0x1c8] sm:$0xff] }
 0x7b6   :  { %v8625_v41 = vsel %vm217_vm1, %v15296_v23, %v8593_v25  ;;  %v8940_v23 = vld [vmem:[#allocation14 + $0x1f0] sm:$0xff]  ;;  %v8972_v25 = vperm.slane %v15400_v53, 0 }
 0x7b7   :  { %v8624_v8 = vsel %vm217_vm1, %v15301_v9, %v8592_v60  ;;  %v9063_v9 = vld [vmem:[#allocation14 + $0x330] sm:$0xff]  ;;  %v15443_v55 = vmax.f32 %v15146_v14, %v8625_v41  ;;  %v8641_v60 = vsel %vm217_vm1, %v15373_v3, %v8609_v51  ;;  %9012 = vmatpush.msra.mxu0 %v8940_v23  ;;  %v8955_v3 = vld [vmem:[#allocation14 + $0x268] sm:$0xff]  ;;  %v9085_v51 = vperm.slane %v15430_v19, 0  ;;  %v9061_v23 = vld [vmem:[#allocation14 + $0x320] sm:$0xff]  ;;  %9129 = vmatpush.msrb.mxu2 %v9045_v12 }
 0x7b8   :  { %v15459_v14 = vmax.f32 %v15151_v63, %v8624_v8  ;;  %9147 = vmatpush.msrb.mxu3 %v9063_v9  ;;  %v8758_v41 = vperm.slane %v15440_v36, 2  ;;  %9033 = vmatpush.msra.mxu1 %v8955_v3 }
 0x7b9   :  { %9013 = vmatpush.msra.mxu0 %v8939_v31  ;;  %v8936_v31 = vld [vmem:[#allocation14 + $0x1d0] sm:$0xff] }
 0x7ba   :  { %v8751_v2 = vperm.slane %v15459_v14, 0  ;;  %9034 = vmatpush.msra.mxu1 %v8954_v21 }
 0x7bb   :  { %v15346_v6 = vpop.permute.xlu0 %8546  ;;  %9014 = vmatpush.msra.mxu0 %v8938_v30  ;;  %v8934_v30 = vld [vmem:[#allocation14 + $0x1c0] sm:$0xff] }
 0x7bc   :  { %v15353_v16 = vpop.permute.xlu1 %8550  ;;  %v8595_v22 = vrot.slane %v15346_v6, 2  ;;  %v8545_v5 = vpop.permute.xlu2 %8544 }
 0x7bd   :  { %v8597_v57 = vrot.slane %v15353_v16, 2  ;;  %v8594_v13 = vrot.slane %v8545_v5, 2  ;;  %9015 = vmatpush.msra.mxu0 %v8937_v38 }
 0x7be   :  { %v8627_v26 = vsel %vm217_vm1, %v15346_v6, %v8595_v22  ;;  %v9062_v6 = vld [vmem:[#allocation14 + $0x328] sm:$0xff]  ;;  %v15474_v22 = vmax.f32 %v15217_v46, %v8641_v60  ;;  %v8866_v46 = vperm.slane %v15443_v55, 2  ;;  %v9105_v60 = vsel %vm3944_vm8, %v9086_v42, %v15379_v7 }
 0x7bf   :  { %v8691_v19 = vmax.f32 %v15177_v35, %v8627_v26  ;;  %v8629_v8 = vsel %vm217_vm1, %v15353_v16, %v8597_v57  ;;  %9148 = vmatpush.msrb.mxu3 %v9062_v6  ;;  %v8953_v35 = vld [vmem:[#allocation14 + $0x258] sm:$0xff]  ;;  %v9098_v16 = vsel %vm3944_vm8, %v9085_v51, %v15376_v18  ;;  %v8752_v57 = vperm.slane %v15459_v14, 2  ;;  %v8952_v18 = vld [vmem:[#allocation14 + $0x250] sm:$0xff]  ;;  %9016 = vmatpush.msra.mxu0 %v8936_v31  ;;  %v8951_v42 = vld [vmem:[#allocation14 + $0x248] sm:$0xff] }
 0x7c0   :  { %v8626_v4 = vsel %vm217_vm1, %v8545_v5, %v8594_v13  ;;  %v8874_v14 = vperm.slane %v15474_v22, 2  ;;  %9035 = vmatpush.msra.mxu1 %v8953_v35  ;;  %v8763_v5 = vsel %vm3946_vm9, %v8751_v2, %v15448_v32 }
 0x7c1   :  { %9149 = vmatpush.msrb.mxu3 %v9061_v23  ;;  %9017 = vmatpush.msra.mxu0 %v8935_v11 }
 0x7c2   :  { %9036 = vmatpush.msra.mxu1 %v8952_v18 }
 0x7c3   :  { %v15397_v17 = vpop.permute.xlu0 %8548  ;;  %9018 = vmatpush.msra.mxu0 %v8934_v30 }
 0x7c4   :  { %v15408_v0 = vpop.permute.xlu1 %8558  ;;  %v8596_v59 = vrot.slane %v15397_v17, 2  ;;  %9037 = vmatpush.msra.mxu1 %v8951_v42 }
 0x7c5   :  { %v8601_v44 = vrot.slane %v15408_v0, 2 }
 0x7c6   :  { %v8628_v63 = vsel %vm217_vm1, %v15397_v17, %v8596_v59  ;;  %v8865_v17 = vperm.slane %v15443_v55, 0 }
 0x7c7   :  { %v8692_v20 = vmax.f32 %v15199_v24, %v8628_v63  ;;  %v8633_v9 = vsel %vm217_vm1, %v15408_v0, %v8601_v44  ;;  %v8873_v24 = vperm.slane %v15474_v22, 0  ;;  %v8693_v0 = vmax.f32 %v15179_v43, %v8629_v8 }
 0x7c8   :  { %v8877_v7 = vsel %vm3946_vm9, %v8865_v17, %v15414_v10  ;;  %v9087_v44 = vperm.slane %v8691_v19, 0  ;;  %v8697_v3 = vmax.f32 %v15203_v33, %v8633_v9  ;;  %v8884_v43 = vsel %vm3946_vm9, %v8866_v46, %v15421_v37  ;;  %v8950_v17 = vld [vmem:[#allocation14 + $0x240] sm:$0xff] }
 0x7c9   :  { %v8753_v51 = vperm.slane %v8692_v20, 0  ;;  %v8770_v10 = vsel %vm3946_vm9, %v8752_v57, %v15456_v1  ;;  %v15508_v63 = vmax.f32 %v15230_v49, %v8626_v4  ;;  %v8867_v37 = vperm.slane %v8693_v0, 0  ;;  %9038 = vmatpush.msra.mxu1 %v8950_v17  ;;  %v9169_v17 = vld [vmem:[#allocation16 + $0x68] sm:$0xff] }
 0x7ca   :  { %v8868_v8 = vperm.slane %v8693_v0, 2  ;;  %v8869_v1 = vperm.slane %v8697_v3, 0  ;;  %v8870_v38 = vperm.slane %v8697_v3, 2 }
 0x7cb   :  { %v8557_v54 = vpop.permute.xlu0 %8556  ;;  %v8764_v23 = vsel %vm3948_vm10, %v8753_v51, %v8763_v5 }
 0x7cc   :  { %v15476_v34 = vpop.permute.xlu1 %8570  ;;  %v8600_v59 = vrot.slane %v8557_v54, 2  ;;  %v8885_v31 = vsel %vm3948_vm10, %v8868_v8, %v8884_v43 }
 0x7cd   :  { %v8607_v33 = vrot.slane %v15476_v34, 2 }
 0x7ce   :  { %v8632_v55 = vsel %vm217_vm1, %v8557_v54, %v8600_v59  ;;  %v8754_v54 = vperm.slane %v8692_v20, 2 }
 0x7cf   :  { %v8696_v26 = vmax.f32 %v15215_v52, %v8632_v55  ;;  %v9088_v52 = vperm.slane %v8691_v19, 2  ;;  %v9099_v19 = vsel %vm3946_vm9, %v9087_v44, %v9098_v16  ;;  %v8639_v20 = vsel %vm217_vm1, %v15476_v34, %v8607_v33 }
 0x7d0   :  { %v8771_v2 = vsel %vm3948_vm10, %v8754_v54, %v8770_v10  ;;  %v8878_v16 = vsel %vm3948_vm10, %v8867_v37, %v8877_v7  ;;  %v8886_v34 = vsel %vm3950_vm11, %v8870_v38, %v8885_v31  ;;  %v8703_v18 = vmax.f32 %v15220_v27, %v8639_v20  ;;  %v9171_v54 = vld [vmem:[#allocation16 + $0x78] sm:$0xff] }
 0x7d1   :  { %v8755_v13 = vperm.slane %v8696_v26, 0  ;;  %v8756_v21 = vperm.slane %v8696_v26, 2  ;;  %v9106_v49 = vsel %vm3946_vm9, %v9088_v52, %v9105_v60  ;;  %v8879_v0 = vsel %vm3950_vm11, %v8869_v1, %v8878_v16 }
 0x7d2   :  { %v9093_v30 = vperm.slane %v8703_v18, 0 }
 0x7d3   :  { %v8567_v6 = vpop.permute.xlu0 %8566  ;;  %v8765_v60 = vsel %vm3950_vm11, %v8755_v13, %v8764_v23  ;;  %v8772_v57 = vsel %vm3950_vm11, %v8756_v21, %v8771_v2  ;;  %v8973_v13 = vperm.slane %v15400_v53, 2  ;;  %v9091_v21 = vperm.slane %v15403_v58, 0 }
 0x7d4   :  { %v8605_v32 = vrot.slane %v8567_v6, 2  ;;  %v8573_v12 = vpop.permute.xlu1 %8572  ;;  %v8773_v43 = vsel %vm3952_vm12, %v8758_v41, %v8772_v57  ;;  %v8986_v2 = vsel %vm3962_vm15, %v8972_v25, %v8970_v50  ;;  %v16324_v25 = vld [vmem:[#allocation63_spill] sm:$0xff] }
 0x7d5   :  { %v8608_v59 = vrot.slane %v8573_v12, 2  ;;  %v8987_v57 = vsel %vm3944_vm8, %v8974_v39, %v8986_v2  ;;  %v9210_v39 = vld [vmem:[#allocation17 + $0x68] sm:$0xff] }
 0x7d6   :  { %v8637_v46 = vsel %vm217_vm1, %v8567_v6, %v8605_v32  ;;  %v9100_v6 = vsel %vm3948_vm10, %v9089_v28, %v9099_v19  ;;  %v8975_v28 = vperm.slane %v15467_v61, 2 }
 0x7d7   :  { %v8701_v9 = vmax.f32 %v15228_v29, %v8637_v46  ;;  %v8640_v35 = vsel %vm217_vm1, %v8573_v12, %v8608_v59  ;;  %v8561_v29 = vpop.permute.xlu2 %8560  ;;  %v8976_v59 = vperm.slane %v15508_v63, 0 }
 0x7d8   :  { %v8704_v55 = vmax.f32 %v15232_v40, %v8640_v35  ;;  %v8766_v40 = vsel %vm3952_vm12, %v8757_v15, %v8765_v60  ;;  %v9107_v15 = vsel %vm3948_vm10, %v9090_v47, %v9106_v49  ;;  %v8602_v36 = vrot.slane %v8561_v29, 2  ;;  %v9170_v47 = vld [vmem:[#allocation16 + $0x70] sm:$0xff] }
 0x7d9   :  { %v8871_v4 = vperm.slane %v8701_v9, 0  ;;  %v8872_v26 = vperm.slane %v8701_v9, 2  ;;  %v9108_v32 = vsel %vm3950_vm11, %v9092_v62, %v9107_v15  ;;  %v8977_v49 = vperm.slane %v15508_v63, 2  ;;  %v16323_v9 = vld [vmem:[#allocation26_spill] sm:$0xff]  ;;  %v9167_v15 = vld [vmem:[#allocation16 + $0x58] sm:$0xff] }
 0x7da   :  { %v8759_v44 = vperm.slane %v8704_v55, 0  ;;  %v8760_v3 = vperm.slane %v8704_v55, 2  ;;  %v8634_v19 = vsel %vm217_vm1, %v8561_v29, %v8602_v36  ;;  %v16322_v63 = vperm.slane %v15357_v45, 2  ;;  %v9166_v36 = vld [vmem:[#allocation16 + $0x50] sm:$0xff] }
 0x7db   :  { %v8887_v7 = vsel %vm3952_vm12, %v8872_v26, %v8886_v34  ;;  %v8579_v11 = vpop.permute.xlu0 %8578  ;;  %v8880_v5 = vsel %vm3952_vm12, %v8871_v4, %v8879_v0  ;;  %v8698_v35 = vmax.f32 %v16323_v9, %v8634_v19  ;;  %v8988_v0 = vsel %vm3946_vm9, %v8976_v59, %v8987_v57  ;;  %v9206_v19 = vld [vmem:[#allocation17 + $0x48] sm:$0xff]  ;;  %v9204_v59 = vld [vmem:[#allocation17 + $0x38] sm:$0xff] }
 0x7dc   :  { %v8611_v52 = vrot.slane %v8579_v11, 2  ;;  %v8553_v51 = vpop.permute.xlu1 %8552  ;;  %v8767_v42 = vsel %vm3954_vm13, %v8759_v44, %v8766_v40  ;;  %v8774_v27 = vsel %vm3954_vm13, %v8760_v3, %v8773_v43  ;;  %v8881_v10 = vsel %vm3954_vm13, %v8873_v24, %v8880_v5  ;;  %v16325_v44 = vld [vmem:[#allocation70_spill] sm:$0xff]  ;;  %v9200_v9 = vld [vmem:[#allocation17 + $0x18] sm:$0xff] }
 0x7dd   :  { %v8598_v33 = vrot.slane %v8553_v51, 2  ;;  %8794 = vmatmul.f32.vlgmr.msrb.gmra.mxu0 %v8767_v42  ;;  %9819 = vmatmul.msk.f32.vlgmr.msrb.gmra.mxu1 %vm217_vm1, %v8774_v27  ;;  %v8888_v41 = vsel %vm3954_vm13, %v8874_v14, %v8887_v7  ;;  %v9094_v24 = vperm.slane %v8703_v18, 2  ;;  %v8993_v20 = vsel %vm3962_vm15, %v8973_v13, %v16322_v63  ;;  %v9158_v13 = vld [vmem:[#allocation16 + $0x10] sm:$0xff] }
 0x7de   :  { %v8643_v37 = vsel %vm217_vm1, %v8579_v11, %v8611_v52  ;;  %8908 = vmatmul.f32.vlgmr.msra.gmra.mxu2 %v8881_v10  ;;  %9820 = vmatmul.msk.f32.vlgmr.msra.gmra.mxu3 %vm217_vm1, %v8888_v41  ;;  %v8994_v55 = vsel %vm3944_vm8, %v8975_v28, %v8993_v20  ;;  %v8980_v29 = vperm.slane %v8698_v35, 0  ;;  %v8981_v18 = vperm.slane %v8698_v35, 2  ;;  %v9164_v41 = vld [vmem:[#allocation16 + $0x40] sm:$0xff] }
 0x7df   :  { %v8707_v22 = vmax.f32 %v15240_v48, %v8643_v37  ;;  %v8630_v14 = vsel %vm217_vm1, %v8553_v51, %v8598_v33  ;;  %9176 = vmatpush.msrb.mxu1 %v9171_v54  ;;  %v9101_v48 = vsel %vm3950_vm11, %v9091_v21, %v9100_v6  ;;  %v9109_v61 = vsel %vm3952_vm12, %v9094_v24, %v9108_v32  ;;  %v9168_v54 = vld [vmem:[#allocation16 + $0x60] sm:$0xff]  ;;  %v9165_v33 = vld [vmem:[#allocation16 + $0x48] sm:$0xff]  ;;  %v9163_v6 = vld [vmem:[#allocation16 + $0x38] sm:$0xff] }
 0x7e0   :  { %v8694_v12 = vmax.f32 %v15244_v56, %v8630_v14  ;;  %v9102_v58 = vsel %vm3952_vm12, %v9093_v30, %v9101_v48  ;;  %v8995_v4 = vsel %vm3946_vm9, %v8977_v49, %v8994_v55  ;;  %v9162_v30 = vld [vmem:[#allocation16 + $0x30] sm:$0xff]  ;;  %v9161_v24 = vld [vmem:[#allocation16 + $0x28] sm:$0xff]  ;;  %v9160_v37 = vld [vmem:[#allocation16 + $0x20] sm:$0xff] }
 0x7e1   :  { %v9095_v8 = vperm.slane %v8707_v22, 0  ;;  %v9096_v1 = vperm.slane %v8707_v22, 2  ;;  %9177 = vmatpush.msrb.mxu1 %v9170_v47  ;;  %v9159_v47 = vld [vmem:[#allocation16 + $0x18] sm:$0xff]  ;;  %v9211_v22 = vld [vmem:[#allocation17 + $0x70] sm:$0xff]  ;;  %v9157_v14 = vld [vmem:[#allocation16 + $0x8] sm:$0xff] }
 0x7e2   :  { %v8978_v23 = vperm.slane %v8694_v12, 0  ;;  %v8979_v62 = vperm.slane %v8694_v12, 2  ;;  %v9212_v21 = vld [vmem:[#allocation17 + $0x78] sm:$0xff]  ;;  %v9156_v28 = vld [vmem:[#allocation16] sm:$0xff] }
 0x7e3   :  { %v8569_v38 = vpop.permute.xlu0 %8568  ;;  %v9103_v56 = vsel %vm3954_vm13, %v9095_v8, %v9102_v58  ;;  %v9110_v46 = vsel %vm3954_vm13, %v9096_v1, %v9109_v61  ;;  %9178 = vmatpush.msrb.mxu1 %v9169_v17  ;;  %9217 = vmatpush.msra.mxu3 %v9212_v21  ;;  %v9209_v32 = vld [vmem:[#allocation17 + $0x60] sm:$0xff]  ;;  %v9208_v12 = vld [vmem:[#allocation17 + $0x58] sm:$0xff]  ;;  %v9207_v17 = vld [vmem:[#allocation17 + $0x50] sm:$0xff] }
 0x7e4   :  { %v8606_v16 = vrot.slane %v8569_v38, 2  ;;  %v8577_v60 = vpop.permute.xlu1 %8576  ;;  %v8989_v45 = vsel %vm3948_vm10, %v8978_v23, %v8988_v0  ;;  %v8996_v50 = vsel %vm3948_vm10, %v8979_v62, %v8995_v4  ;;  %v9205_v8 = vld [vmem:[#allocation17 + $0x40] sm:$0xff]  ;;  %v9203_v58 = vld [vmem:[#allocation17 + $0x30] sm:$0xff]  ;;  %v9840_v62 = vld [vmem:[%s15618_s8] ss:$0 sm:$0xff] }
 0x7e5   :  { %v8610_v31 = vrot.slane %v8577_v60, 2  ;;  %v8997_v40 = vsel %vm3950_vm11, %v8981_v18, %v8996_v50  ;;  %v8990_v52 = vsel %vm3950_vm11, %v8980_v29, %v8989_v45  ;;  %9179 = vmatpush.msrb.mxu1 %v9168_v54  ;;  %9218 = vmatpush.msra.mxu3 %v9211_v22  ;;  %v9198_v45 = vld [vmem:[#allocation17 + $0x8] sm:$0xff]  ;;  %v9197_v50 = vld [vmem:[#allocation17] sm:$0xff] }
 0x7e6   :  { %v8638_v53 = vsel %vm217_vm1, %v8569_v38, %v8606_v16  ;;  %9130 = vmatmul.f32.vlgmr.msrb.gmra.mxu2 %v9103_v56  ;;  %9822 = vmatmul.msk.f32.vlgmr.msrb.gmra.mxu3 %vm217_vm1, %v9110_v46  ;;  %v9202_v38 = vld [vmem:[#allocation17 + $0x28] sm:$0xff]  ;;  %v9201_v46 = vld [vmem:[#allocation17 + $0x20] sm:$0xff] }
 0x7e7   :  { %v8702_v26 = vmax.f32 %v16324_v25, %v8638_v53  ;;  %v8642_v34 = vsel %vm217_vm1, %v8577_v60, %v8610_v31  ;;  %9180 = vmatpush.msrb.mxu1 %v9167_v15  ;;  %9219 = vmatpush.msra.mxu3 %v9210_v39  ;;  %v9199_v53 = vld [vmem:[#allocation17 + $0x10] sm:$0xff]  ;;  %v9841_v25 = vld [vmem:[%s15620_s10] ss:$0 sm:$0xff] }
 0x7e8   :  { %v8706_v3 = vmax.f32 %v16325_v44, %v8642_v34  ;;  %v9842_v18 = vld [vmem:[%s15622_s12] ss:$0 sm:$0xff] }
 0x7e9   :  { %v8982_v7 = vperm.slane %v8702_v26, 0  ;;  %v8983_v11 = vperm.slane %v8702_v26, 2  ;;  %9181 = vmatpush.msrb.mxu1 %v9166_v36  ;;  %9220 = vmatpush.msra.mxu3 %v9209_v32 }
 0x7ea   :  { %v8984_v43 = vperm.slane %v8706_v3, 0  ;;  %v8985_v5 = vperm.slane %v8706_v3, 2 }
 0x7eb   :  { %v8998_v51 = vsel %vm3952_vm12, %v8983_v11, %v8997_v40  ;;  %v8991_v42 = vsel %vm3952_vm12, %v8982_v7, %v8990_v52  ;;  %9182 = vmatpush.msrb.mxu1 %v9165_v33  ;;  %9221 = vmatpush.msra.mxu3 %v9208_v12 }
 0x7ec   :  { %v8992_v27 = vsel %vm3954_vm13, %v8984_v43, %v8991_v42  ;;  %v8999_v10 = vsel %vm3954_vm13, %v8985_v5, %v8998_v51 }
 0x7ed   :  { %9019 = vmatmul.f32.vlgmr.msra.gmra.mxu0 %v8992_v27  ;;  %9821 = vmatmul.msk.f32.vlgmr.msra.gmra.mxu1 %vm217_vm1, %v8999_v10 }
 0x7ee   :  { %9183 = vmatpush.msrb.mxu1 %v9164_v41  ;;  %9222 = vmatpush.msra.mxu3 %v9207_v17 }
 0x7f0   :  { %9184 = vmatpush.msrb.mxu1 %v9163_v6  ;;  %9223 = vmatpush.msra.mxu3 %v9206_v19 }
 0x7f2   :  { %9185 = vmatpush.msrb.mxu1 %v9162_v30  ;;  %9224 = vmatpush.msra.mxu3 %v9205_v8 }
 0x7f4   :  { %9186 = vmatpush.msrb.mxu1 %v9161_v24  ;;  %9225 = vmatpush.msra.mxu3 %v9204_v59 }
 0x7f6   :  { %9187 = vmatpush.msrb.mxu1 %v9160_v37  ;;  %9226 = vmatpush.msra.mxu3 %v9203_v58 }
 0x7f8   :  { %9188 = vmatpush.msrb.mxu1 %v9159_v47  ;;  %9227 = vmatpush.msra.mxu3 %v9202_v38 }
 0x7fa   :  { %9189 = vmatpush.msrb.mxu1 %v9158_v13  ;;  %9228 = vmatpush.msra.mxu3 %v9201_v46 }
 0x7fc   :  { %9190 = vmatpush.msrb.mxu1 %v9157_v14  ;;  %9229 = vmatpush.msra.mxu3 %v9200_v9 }
 0x7fe   :  { %9191 = vmatpush.msrb.mxu1 %v9156_v28  ;;  %9230 = vmatpush.msra.mxu3 %v9199_v53 }
 0x800   :  { %9231 = vmatpush.msra.mxu3 %v9198_v45 }
 0x802   :  { %9232 = vmatpush.msra.mxu3 %v9197_v50 }
 0x85a   :  { %v8795_v49 = vpop.f32.mrf.mxu0  ;;  %v8815_v61 = vpop.f32.mrf.mxu1 }
 0x85b   :  { %v8816_v23 = vadd.f32 %v8815_v61, %v8795_v49 }
 0x85d   :  { %v8821_v2 = vadd.f32 %v9840_v62, %v8816_v23 }
 0x861   :  { %v8909_v1 = vpop.f32.mrf.mxu2  ;;  %v8929_v48 = vpop.f32.mrf.mxu3 }
 0x862   :  { %v8930_v56 = vadd.f32 %v8929_v48, %v8909_v1 }
 0x864   :  { %v8932_v60 = vadd.f32 %v8930_v56, %v8821_v2 }
 0x869   :  { %v9131_v63 = vpop.f32.mrf.mxu2  ;;  %v9151_v20 = vpop.f32.mrf.mxu3 }
 0x86a   :  { %v9020_v35 = vpop.f32.mrf.mxu0  ;;  %v9040_v16 = vpop.f32.mrf.mxu1  ;;  %v9152_v55 = vadd.f32 %v9151_v20, %v9131_v63 }
 0x86b   :  { %v9041_v57 = vadd.f32 %v9040_v16, %v9020_v35 }
 0x86d   :  { %v9043_v31 = vadd.f32 %v9041_v57, %v8932_v60 }
 0x86f   :  { %v9154_v0 = vadd.f32 %v9152_v55, %v9043_v31 }
 0x871   :  { %v9155_v4 = vmax.f32 %v9154_v0, 0.0 }
 0x873   :  { %9192 = vmatmul.f32.vlgmr.msrb.gmra.mxu1 %v9155_v4 }
 0x8f0   :  { %v9193_v26 = vpop.f32.mrf.mxu1 }
 0x8f1   :  { %v9194_v34 = vadd.f32 %v9841_v25, %v9193_v26 }
 0x8f3   :  { %v9196_v29 = vmax.f32 %v9194_v34, 0.0 }
 0x8f5   :  { %9233 = vmatmul.f32.vlgmr.msra.gmra.mxu3 %v9196_v29 }
 0x978   :  { %v9234_v44 = vpop.f32.mrf.mxu3 }
 0x979   :  { %v9235_v3 = vadd.f32 %v9842_v18, %v9234_v44 }
 0x97b   :  { %9237 = vst [vmem:[#allocation19] sm:$0xff] %v9235_v3 }
 0x97c   :  { %9248 = dma.vmem_to_hbm [thread:$0]  %s9244_s19, 128, %s9246_s21, [#allocation7]  }
 0x97d   :  { %10099 = dma.done.wait [#allocation7], 128  }
 0x97e   :  { %10100 = vsyncadd [#allocation7], 4294967168 }
 0x97f   :  { %9253 = vsyncpa [#allocation6], 1 }
 0x980   :  { %9254 = vsyncpa [#allocation9], 1 }
 0x981   :  { %9255 = vsyncpa [#allocation12], 1 }
 0x982   :  { %9256 = vsyncpa [#allocation15], 1 }
 0x983   :  { %9257 = vsyncpa [#allocation18], 1 }
 0x984   :  { %9258 = vsyncpa [#allocation7], 1 }

</bundles_post_ra>
